<compile_context>
chip_gen: v7x
topology: tpu7x:2x2x1
jax: 0.10.0
libtpu: 0.0.40
codegen_flags: <defaults>
</compile_context>

<pallas_src>
import functools

import jax
import jax.numpy as jnp
from jax.experimental import pallas as pl
from jax.experimental.pallas import tpu as pltpu

H = 128          # LSTM hidden size per direction
NUM_LABELS = 22  # fc2 output size
C_IN = 192       # fc1 input size
C_MID = 320      # fc1 output size / LSTM input size
FC2_PAD = 128    # lane-dense fc2 output width (>= NUM_LABELS)
VMEM_LIMIT = 32 * 1024 * 1024   # explicit scoped-VMEM budget (safe on v5e..v7x)


def _round_up(x, m):
    return (x + m - 1) // m * m


def _is_v5_mxu():
    """True on 128x128-MXU generations (v5 and older) -> split recurrent dots."""
    try:
        kind = jax.devices()[0].device_kind.lower()
    except Exception:
        return False
    return ("v5" in kind) or ("v4" in kind) or ("v3" in kind) or ("v2" in kind)


def _pick_row_tile(M, cap=1024):
    """Largest tm <= cap dividing M; prefer multiples of 16 (bf16 sublane tile)."""
    cap = min(cap, M)
    for t in range(cap - cap % 16, 15, -16):
        if M % t == 0:
            return t
    for t in range(cap - cap % 8, 7, -8):
        if M % t == 0:
            return t
    return M


def _pick_time_block(T, Bp, time_block):
    """LSTM time block: limited by unroll vreg pressure and kernel-2 VMEM."""
    TB = min(time_block, T)
    # vreg-pressure guard: each unrolled step keeps (Bp, 8H) of gates live.
    if Bp >= 256:
        TB = min(TB, 4)
    elif Bp >= 64:
        TB = min(TB, 8)
    # VMEM guard (v7x has 64 MiB physical / 32 MiB scoped): gate input blocks
    # are TB*Bp*4H bf16, double-buffered, x2 directions -> keep under ~16 MiB.
    max_tb_vmem = max(1, (16 * 1024 * 1024) // (Bp * 4 * H * 2 * 2 * 2))
    return max(1, min(TB, max_tb_vmem))


# ---------------------------------------------------------------------------
# Kernel 1: fused fc1 + bidirectional LSTM input projection (M-tiled)
# ---------------------------------------------------------------------------
def proj_kernel(x_ref, w1_ref, b1_ref, wih_ref, bih_ref, xg_ref):
    # fc1: (tm, 192) @ (192, 320) -> h1 kept on-chip (never touches HBM)
    h1 = (
        jnp.dot(x_ref[...], w1_ref[...], preferred_element_type=jnp.float32)
        + b1_ref[...]
    )
    # both directions' input gates in one matmul: (tm, 320) @ (320, 1024)
    xg_ref[...] = (
        jnp.dot(h1.astype(jnp.bfloat16), wih_ref[...],
                preferred_element_type=jnp.float32)
        + bih_ref[...]
    ).astype(jnp.bfloat16)


def fused_input_proj(x2d, w1, b1, wih, bih, *, tm):
    M, _ = x2d.shape
    G = wih.shape[1]  # 8H = 1024
    nM = M // tm
    flops = 2 * M * (C_IN * C_MID + C_MID * G)
    bytes_accessed = (M * C_IN * 2 + w1.size * 2 + wih.size * 2
                      + M * G * 2 + (C_MID + G) * 4)
    return pl.pallas_call(
        proj_kernel,
        out_shape=jax.ShapeDtypeStruct((M, G), jnp.bfloat16),
        grid_spec=pltpu.PrefetchScalarGridSpec(
            num_scalar_prefetch=0,
            grid=(nM,),
            in_specs=[
                pl.BlockSpec((tm, C_IN), lambda m: (m, 0)),
                pl.BlockSpec((C_IN, C_MID), lambda m: (0, 0)),
                pl.BlockSpec((1, C_MID), lambda m: (0, 0)),
                pl.BlockSpec((C_MID, G), lambda m: (0, 0)),
                pl.BlockSpec((1, G), lambda m: (0, 0)),
            ],
            out_specs=pl.BlockSpec((tm, G), lambda m: (m, 0)),
        ),
        compiler_params=pltpu.CompilerParams(
            dimension_semantics=("parallel",),
            vmem_limit_bytes=VMEM_LIMIT),
        cost_estimate=pl.CostEstimate(flops=flops, transcendentals=0,
                                      bytes_accessed=bytes_accessed),
    )(x2d, w1, b1.reshape(1, C_MID), wih, bih.reshape(1, G))


# ---------------------------------------------------------------------------
# Kernel 2: fused bidirectional LSTM recurrence, time-blocked grid.
#   - state [h_f | h_b] : (Bp, 2H) f32 VMEM scratch, persists across grid steps
#   - recurrent matmul in bf16 (f32 accumulate); block-diag on v6e/v7x,
#     split into two half-size dots on 128x128-MXU chips
#   - backward direction's time reversal handled purely by index_maps
# ---------------------------------------------------------------------------
def bilstm_kernel(xgf_ref, xgb_ref, whh_ref, of_ref, ob_ref, h_scr, c_scr,
                  *, TB, t_pad, fuse_rec):
    tb = pl.program_id(0)

    @pl.when(tb == 0)
    def _():
        h_scr[...] = jnp.zeros_like(h_scr)
        c_scr[...] = jnp.zeros_like(c_scr)

    for j in range(TB):          # unrolled inner time loop
        jb = TB - 1 - j          # backward direction walks its block in reverse

        h_all = h_scr[...].astype(jnp.bfloat16)
        if fuse_rec:
            rec = jnp.dot(h_all, whh_ref[...],
                          preferred_element_type=jnp.float32)      # (Bp, 8H)
            rec_f, rec_b = rec[:, :4 * H], rec[:, 4 * H:]
        else:
            rec_f = jnp.dot(h_all[:, :H], whh_ref[:H, :4 * H],
                            preferred_element_type=jnp.float32)    # (Bp, 4H)
            rec_b = jnp.dot(h_all[:, H:], whh_ref[H:, 4 * H:],
                            preferred_element_type=jnp.float32)    # (Bp, 4H)

        gf = xgf_ref[j].astype(jnp.float32) + rec_f
        gb = xgb_ref[jb].astype(jnp.float32) + rec_b

        # forward direction gates (PyTorch order i, f, g, o)
        i_f = jax.nn.sigmoid(gf[:, 0 * H:1 * H])
        f_f = jax.nn.sigmoid(gf[:, 1 * H:2 * H])
        g_f = jnp.tanh(gf[:, 2 * H:3 * H])
        o_f = jax.nn.sigmoid(gf[:, 3 * H:4 * H])
        c_f = f_f * c_scr[:, :H] + i_f * g_f
        h_f = o_f * jnp.tanh(c_f)

        # backward direction gates
        i_b = jax.nn.sigmoid(gb[:, 0 * H:1 * H])
        f_b = jax.nn.sigmoid(gb[:, 1 * H:2 * H])
        g_b = jnp.tanh(gb[:, 2 * H:3 * H])
        o_b = jax.nn.sigmoid(gb[:, 3 * H:4 * H])
        c_b = f_b * c_scr[:, H:] + i_b * g_b
        h_b = o_b * jnp.tanh(c_b)

        if t_pad > 0:
            # Backward direction meets padded timesteps first: freeze its
            # (zero) state until real timesteps begin.
            valid_b = (tb * TB + j) >= t_pad
            c_b = jnp.where(valid_b, c_b, c_scr[:, H:])
            h_b = jnp.where(valid_b, h_b, h_scr[:, H:])

        c_scr[:, :H] = c_f
        c_scr[:, H:] = c_b
        h_scr[:, :H] = h_f
        h_scr[:, H:] = h_b
        of_ref[j] = h_f.astype(jnp.bfloat16)
        ob_ref[jb] = h_b.astype(jnp.bfloat16)


def bilstm(xg, whh, *, T, TB, fuse_rec):
    Tp, Bp, _ = xg.shape
    nTb = Tp // TB
    t_pad = Tp - T
    kern = functools.partial(bilstm_kernel, TB=TB, t_pad=t_pad,
                             fuse_rec=fuse_rec)
    flops = Tp * Bp * 2 * (2 * H) * (8 * H) + Tp * Bp * 8 * H * 8
    transc = Tp * Bp * 10 * H
    bytes_accessed = Tp * Bp * 8 * H * 2 + Tp * Bp * 2 * H * 2 + 2 * H * 8 * H * 2
    return pl.pallas_call(
        kern,
        out_shape=(jax.ShapeDtypeStruct((Tp, Bp, H), jnp.bfloat16),
                   jax.ShapeDtypeStruct((Tp, Bp, H), jnp.bfloat16)),
        grid_spec=pltpu.PrefetchScalarGridSpec(
            num_scalar_prefetch=0,
            grid=(nTb,),
            in_specs=[
                # forward gates: columns [0, 4H), natural time order
                pl.BlockSpec((TB, Bp, 4 * H), lambda tb: (tb, 0, 0)),
                # backward gates: columns [4H, 8H), reversed time blocks
                pl.BlockSpec((TB, Bp, 4 * H), lambda tb: (nTb - 1 - tb, 0, 1)),
                pl.BlockSpec((2 * H, 8 * H), lambda tb: (0, 0)),
            ],
            out_specs=(
                pl.BlockSpec((TB, Bp, H), lambda tb: (tb, 0, 0)),
                pl.BlockSpec((TB, Bp, H), lambda tb: (nTb - 1 - tb, 0, 0)),
            ),
            scratch_shapes=[
                pltpu.VMEM((Bp, 2 * H), jnp.float32),   # [h_f | h_b]
                pltpu.VMEM((Bp, 2 * H), jnp.float32),   # [c_f | c_b]
            ],
        ),
        compiler_params=pltpu.CompilerParams(
            dimension_semantics=("arbitrary",),          # sequential recurrence
            vmem_limit_bytes=VMEM_LIMIT),
        cost_estimate=pl.CostEstimate(flops=flops, transcendentals=transc,
                                      bytes_accessed=bytes_accessed),
    )(xg, xg, whh)


# ---------------------------------------------------------------------------
# Kernel 3: lane-dense fc2 (output padded to 128 lanes), M-tiled
# ---------------------------------------------------------------------------
def fc2_kernel(hf_ref, hb_ref, w2f_ref, w2b_ref, b2_ref, o_ref):
    o_ref[...] = (
        jnp.dot(hf_ref[...], w2f_ref[...], preferred_element_type=jnp.float32)
        + jnp.dot(hb_ref[...], w2b_ref[...], preferred_element_type=jnp.float32)
        + b2_ref[...]
    )


def fc2(hf2d, hb2d, w2f, w2b, b2, *, tm):
    M = hf2d.shape[0]
    nM = M // tm
    flops = 2 * M * 2 * H * FC2_PAD
    bytes_accessed = (2 * M * H * 2 + M * FC2_PAD * 4
                      + (w2f.size + w2b.size) * 2 + FC2_PAD * 4)
    return pl.pallas_call(
        fc2_kernel,
        out_shape=jax.ShapeDtypeStruct((M, FC2_PAD), jnp.float32),
        grid_spec=pltpu.PrefetchScalarGridSpec(
            num_scalar_prefetch=0,
            grid=(nM,),
            in_specs=[
                pl.BlockSpec((tm, H), lambda m: (m, 0)),
                pl.BlockSpec((tm, H), lambda m: (m, 0)),
                pl.BlockSpec((H, FC2_PAD), lambda m: (0, 0)),
                pl.BlockSpec((H, FC2_PAD), lambda m: (0, 0)),
                pl.BlockSpec((1, FC2_PAD), lambda m: (0, 0)),
            ],
            out_specs=pl.BlockSpec((tm, FC2_PAD), lambda m: (m, 0)),
        ),
        compiler_params=pltpu.CompilerParams(
            dimension_semantics=("parallel",),
            vmem_limit_bytes=VMEM_LIMIT),
        cost_estimate=pl.CostEstimate(flops=flops, transcendentals=0,
                                      bytes_accessed=bytes_accessed),
    )(hf2d, hb2d, w2f, w2b, b2.reshape(1, FC2_PAD))


# ---------------------------------------------------------------------------
# Full forward:  (B, 192, T) -> (B, 1, 22, T)
# ---------------------------------------------------------------------------
def net_forward(x, p, *, time_block=16, row_tile_cap=1024):
    B, C, T = x.shape
    assert C == C_IN

    Bp = _round_up(max(B, 8), 8)                 # sublane-dense batch
    TB = _pick_time_block(T, Bp, time_block)     # LSTM time block / unroll
    Tp = _round_up(T, TB)
    M = Tp * Bp
    tm = _pick_row_tile(M, cap=row_tile_cap)     # row tile for kernels 1 & 3

    # ---- input layout: (B,192,T) -> time-major bf16 (Tp, Bp, 192), zero pad
    xt = jnp.transpose(x, (2, 0, 1)).astype(jnp.bfloat16)   # (T, B, 192)
    xt = jnp.pad(xt, ((0, Tp - T), (0, Bp - B), (0, 0)))     # (Tp, Bp, 192)
    x2d = xt.reshape(M, C_IN)

    # ---- parameter packing (tiny, done once per call in plain JAX)
    bf = jnp.bfloat16
    w1 = p["w1"].astype(bf)                                             # (192,320)
    wih = jnp.concatenate([p["wih_f"], p["wih_b"]], axis=1).astype(bf)  # (320,1024)
    bih = jnp.concatenate([p["bih_f"] + p["bhh_f"],
                           p["bih_b"] + p["bhh_b"]])                    # (1024,)
    whh = jnp.zeros((2 * H, 8 * H), jnp.float32)                        # block-diag
    whh = whh.at[:H, :4 * H].set(p["whh_f"])
    whh = whh.at[H:, 4 * H:].set(p["whh_b"])
    whh = whh.astype(bf)
    w2f = jnp.pad(p["w2"][:H], ((0, 0), (0, FC2_PAD - NUM_LABELS))).astype(bf)
    w2b = jnp.pad(p["w2"][H:], ((0, 0), (0, FC2_PAD - NUM_LABELS))).astype(bf)
    b2p = jnp.pad(p["b2"], (0, FC2_PAD - NUM_LABELS))

    # ---- kernel 1: fused fc1 + W_ih projections (both directions), bf16 out
    xg = fused_input_proj(x2d, w1, p["b1"], wih, bih, tm=tm)   # (M, 1024) bf16
    xg = xg.reshape(Tp, Bp, 8 * H)                             # free reshape

    # ---- kernel 2: fused bidirectional LSTM recurrence (bf16 rec matmul)
    h_f, h_b = bilstm(xg, whh, T=T, TB=TB, fuse_rec=not _is_v5_mxu())

    # ---- kernel 3: lane-dense fc2
    y = fc2(h_f.reshape(M, H), h_b.reshape(M, H), w2f, w2b, b2p, tm=tm)

    # ---- unpad + final PyTorch layout: (B, 1, 22, T)
    y = y.reshape(Tp, Bp, FC2_PAD)[:T, :B, :NUM_LABELS]        # (T, B, 22)
    return jnp.transpose(y, (1, 2, 0)).reshape(B, 1, NUM_LABELS, T)


# ---------------------------------------------------------------------------
# Pure-JAX reference (same bf16 rounding points as the kernels)
# ---------------------------------------------------------------------------
def _lstm_ref_dir(xg_bf16, whh_bf16):
    def step(carry, g_in):
        h, c = carry
        gates = g_in.astype(jnp.float32) + jnp.dot(
            h.astype(jnp.bfloat16), whh_bf16, preferred_element_type=jnp.float32)
        i = jax.nn.sigmoid(gates[:, 0 * H:1 * H])
        f = jax.nn.sigmoid(gates[:, 1 * H:2 * H])
        g = jnp.tanh(gates[:, 2 * H:3 * H])
        o = jax.nn.sigmoid(gates[:, 3 * H:4 * H])
        c = f * c + i * g
        h = o * jnp.tanh(c)
        return (h, c), h

    B = xg_bf16.shape[1]
    init = (jnp.zeros((B, H), jnp.float32), jnp.zeros((B, H), jnp.float32))
    _, hs = jax.lax.scan(step, init, xg_bf16)
    return hs


def net_forward_ref(x, p):
    B, C, T = x.shape
    bf = jnp.bfloat16
    xt = jnp.transpose(x, (2, 0, 1)).reshape(T * B, C).astype(bf)
    h1 = jnp.dot(xt, p["w1"].astype(bf),
                 preferred_element_type=jnp.float32) + p["b1"]
    h1b = h1.astype(bf)
    xg_f = (jnp.dot(h1b, p["wih_f"].astype(bf), preferred_element_type=jnp.float32)
            + (p["bih_f"] + p["bhh_f"])).astype(bf).reshape(T, B, 4 * H)
    xg_b = (jnp.dot(h1b, p["wih_b"].astype(bf), preferred_element_type=jnp.float32)
            + (p["bih_b"] + p["bhh_b"])).astype(bf).reshape(T, B, 4 * H)
    h_f = _lstm_ref_dir(xg_f, p["whh_f"].astype(bf))
    h_b = _lstm_ref_dir(xg_b[::-1], p["whh_b"].astype(bf))[::-1]
    y = (jnp.dot(h_f.reshape(T * B, H).astype(bf), p["w2"][:H].astype(bf),
                 preferred_element_type=jnp.float32)
         + jnp.dot(h_b.reshape(T * B, H).astype(bf), p["w2"][H:].astype(bf),
                   preferred_element_type=jnp.float32)
         + p["b2"]).reshape(T, B, NUM_LABELS)
    return jnp.transpose(y, (1, 2, 0)).reshape(B, 1, NUM_LABELS, T)


def init_params(key):
    ks = jax.random.split(key, 12)
    s = 0.05
    return {
        "w1": s * jax.random.normal(ks[0], (C_IN, C_MID), jnp.float32),
        "b1": s * jax.random.normal(ks[1], (C_MID,), jnp.float32),
        "wih_f": s * jax.random.normal(ks[2], (C_MID, 4 * H), jnp.float32),
        "whh_f": s * jax.random.normal(ks[3], (H, 4 * H), jnp.float32),
        "bih_f": s * jax.random.normal(ks[4], (4 * H,), jnp.float32),
        "bhh_f": s * jax.random.normal(ks[5], (4 * H,), jnp.float32),
        "wih_b": s * jax.random.normal(ks[6], (C_MID, 4 * H), jnp.float32),
        "whh_b": s * jax.random.normal(ks[7], (H, 4 * H), jnp.float32),
        "bih_b": s * jax.random.normal(ks[8], (4 * H,), jnp.float32),
        "bhh_b": s * jax.random.normal(ks[9], (4 * H,), jnp.float32),
        "w2": s * jax.random.normal(ks[10], (2 * H, NUM_LABELS), jnp.float32),
        "b2": s * jax.random.normal(ks[11], (NUM_LABELS,), jnp.float32),
    }


if __name__ == "__main__":
    key = jax.random.PRNGKey(0)
    kx, kp = jax.random.split(key)

    B, T = 2, 8
    x = jax.random.normal(kx, (B, C_IN, T), jnp.float32)   # (batch, 192, seq)
    params = init_params(kp)

    out = jax.block_until_ready(jax.jit(net_forward)(x, params))
    assert out.shape == (B, 1, NUM_LABELS, T), out.shape

    ref = jax.block_until_ready(jax.jit(net_forward_ref)(x, params))
    max_err = float(jnp.max(jnp.abs(out - ref)))
    assert jnp.allclose(out, ref, rtol=2e-3, atol=2e-3), max_err

    print("KERNEL_OK")
</pallas_src>

<mosaic_0001>
module attributes {stable_mosaic.version = 11 : i64} {
  func.func @proj_kernel(%arg0: i32, %arg1: memref<64x192xbf16, #tpu.memory_space<vmem>>, %arg2: memref<192x320xbf16, #tpu.memory_space<vmem>>, %arg3: memref<1x320xf32, #tpu.memory_space<vmem>>, %arg4: memref<320x1024xbf16, #tpu.memory_space<vmem>>, %arg5: memref<1x1024xf32, #tpu.memory_space<vmem>>, %arg6: memref<64x1024xbf16, #tpu.memory_space<vmem>>) attributes {dimension_semantics = [#tpu.dimension_semantics<parallel>], iteration_bounds = array<i64: 1>, scalar_prefetch = 0 : i64, scratch_operands = 0 : i64, tpu.core_type = #tpu.core_type<tc>, window_params = [{transform_indices = @transform_0, window_bounds = array<i64: 64, 192>}, {pipeline_mode = #tpu.pipeline_mode<synchronous>, transform_indices = @transform_1, window_bounds = array<i64: 192, 320>}, {pipeline_mode = #tpu.pipeline_mode<synchronous>, transform_indices = @transform_2, window_bounds = array<i64: 1, 320>}, {pipeline_mode = #tpu.pipeline_mode<synchronous>, transform_indices = @transform_3, window_bounds = array<i64: 320, 1024>}, {pipeline_mode = #tpu.pipeline_mode<synchronous>, transform_indices = @transform_4, window_bounds = array<i64: 1, 1024>}, {transform_indices = @transform_5, window_bounds = array<i64: 64, 1024>}]} {
    %c0 = arith.constant 0 : index
    %c0_0 = arith.constant 0 : index
    %0 = vector.load %arg1[%c0, %c0_0] : memref<64x192xbf16, #tpu.memory_space<vmem>>, vector<64x192xbf16>
    %c0_1 = arith.constant 0 : index
    %c0_2 = arith.constant 0 : index
    %1 = vector.load %arg2[%c0_1, %c0_2] : memref<192x320xbf16, #tpu.memory_space<vmem>>, vector<192x320xbf16>
    %cst = arith.constant dense<0.000000e+00> : vector<64x320xf32>
    %2 = tpu.matmul %0, %1, %cst {dimension_numbers = #tpu.dot_dimension_numbers<[1], [0], [0], [1], [0, 0, 1, 1], [], []>} : vector<64x192xbf16>, vector<192x320xbf16>, vector<64x320xf32> -> vector<64x320xf32>
    %c0_3 = arith.constant 0 : index
    %c0_4 = arith.constant 0 : index
    %3 = vector.load %arg3[%c0_3, %c0_4] : memref<1x320xf32, #tpu.memory_space<vmem>>, vector<1x320xf32>
    %4 = vector.broadcast %3 : vector<1x320xf32> to vector<64x320xf32>
    %5 = arith.addf %2, %4 : vector<64x320xf32>
    %6 = arith.truncf %5 : vector<64x320xf32> to vector<64x320xbf16>
    %c0_5 = arith.constant 0 : index
    %c0_6 = arith.constant 0 : index
    %7 = vector.load %arg4[%c0_5, %c0_6] : memref<320x1024xbf16, #tpu.memory_space<vmem>>, vector<320x1024xbf16>
    %cst_7 = arith.constant dense<0.000000e+00> : vector<64x1024xf32>
    %8 = tpu.matmul %6, %7, %cst_7 {dimension_numbers = #tpu.dot_dimension_numbers<[1], [0], [0], [1], [0, 0, 1, 1], [], []>} : vector<64x320xbf16>, vector<320x1024xbf16>, vector<64x1024xf32> -> vector<64x1024xf32>
    %c0_8 = arith.constant 0 : index
    %c0_9 = arith.constant 0 : index
    %9 = vector.load %arg5[%c0_8, %c0_9] : memref<1x1024xf32, #tpu.memory_space<vmem>>, vector<1x1024xf32>
    %10 = vector.broadcast %9 : vector<1x1024xf32> to vector<64x1024xf32>
    %11 = arith.addf %8, %10 : vector<64x1024xf32>
    %12 = arith.truncf %11 : vector<64x1024xf32> to vector<64x1024xbf16>
    %c0_10 = arith.constant 0 : index
    %c0_11 = arith.constant 0 : index
    %13 = vector.load %arg6[%c0_10, %c0_11] : memref<64x1024xbf16, #tpu.memory_space<vmem>>, vector<64x1024xbf16>
    tpu.vector_store %arg6[%c0_10, %c0_11], %12 {strides = array<i32>} : memref<64x1024xbf16, #tpu.memory_space<vmem>>, vector<64x1024xbf16>,
    return
  }
  func.func @transform_0(%arg0: i32) -> (i32, i32) {
    %c0_i32 = arith.constant 0 : i32
    %c0_i32_0 = arith.constant 0 : i32
    return %arg0, %c0_i32 : i32, i32
  }
  func.func @transform_1(%arg0: i32) -> (i32, i32) {
    %c0_i32 = arith.constant 0 : i32
    %c0_i32_0 = arith.constant 0 : i32
    %c0_i32_1 = arith.constant 0 : i32
    return %c0_i32, %c0_i32_0 : i32, i32
  }
  func.func @transform_2(%arg0: i32) -> (i32, i32) {
    %c0_i32 = arith.constant 0 : i32
    %c0_i32_0 = arith.constant 0 : i32
    %c0_i32_1 = arith.constant 0 : i32
    return %c0_i32, %c0_i32_0 : i32, i32
  }
  func.func @transform_3(%arg0: i32) -> (i32, i32) {
    %c0_i32 = arith.constant 0 : i32
    %c0_i32_0 = arith.constant 0 : i32
    %c0_i32_1 = arith.constant 0 : i32
    return %c0_i32, %c0_i32_0 : i32, i32
  }
  func.func @transform_4(%arg0: i32) -> (i32, i32) {
    %c0_i32 = arith.constant 0 : i32
    %c0_i32_0 = arith.constant 0 : i32
    %c0_i32_1 = arith.constant 0 : i32
    return %c0_i32, %c0_i32_0 : i32, i32
  }
  func.func @transform_5(%arg0: i32) -> (i32, i32) {
    %c0_i32 = arith.constant 0 : i32
    %c0_i32_0 = arith.constant 0 : i32
    return %arg0, %c0_i32 : i32, i32
  }
}

module attributes {stable_mosaic.version = 11 : i64} {
  func.func @bilstm_kernel(%arg0: i32, %arg1: memref<8x8x512xbf16, #tpu.memory_space<vmem>>, %arg2: memref<8x8x512xbf16, #tpu.memory_space<vmem>>, %arg3: memref<256x1024xbf16, #tpu.memory_space<vmem>>, %arg4: memref<8x8x128xbf16, #tpu.memory_space<vmem>>, %arg5: memref<8x8x128xbf16, #tpu.memory_space<vmem>>, %arg6: memref<8x256xf32, #tpu.memory_space<vmem>>, %arg7: memref<8x256xf32, #tpu.memory_space<vmem>>) attributes {dimension_semantics = [#tpu.dimension_semantics<arbitrary>], iteration_bounds = array<i64: 1>, scalar_prefetch = 0 : i64, scratch_operands = 2 : i64, tpu.core_type = #tpu.core_type<tc>, window_params = [{transform_indices = @transform_0, window_bounds = array<i64: 8, 8, 512>}, {transform_indices = @transform_1, window_bounds = array<i64: 8, 8, 512>}, {pipeline_mode = #tpu.pipeline_mode<synchronous>, transform_indices = @transform_2, window_bounds = array<i64: 256, 1024>}, {transform_indices = @transform_3, window_bounds = array<i64: 8, 8, 128>}, {transform_indices = @transform_4, window_bounds = array<i64: 8, 8, 128>}]} {
    %c0_i32 = arith.constant 0 : i32
    %0 = arith.cmpi eq, %arg0, %c0_i32 : i32
    %1 = arith.extui %0 : i1 to i32
    %c0_i32_0 = arith.constant 0 : i32
    %2 = arith.cmpi ne, %1, %c0_i32_0 : i32
    scf.if %2 {
      %cst_271 = arith.constant 0.000000e+00 : f32
      %627 = vector.broadcast %cst_271 : f32 to vector<8x256xf32>
      %c0_272 = arith.constant 0 : index
      %c0_273 = arith.constant 0 : index
      %628 = vector.load %arg6[%c0_272, %c0_273] : memref<8x256xf32, #tpu.memory_space<vmem>>, vector<8x256xf32>
      tpu.vector_store %arg6[%c0_272, %c0_273], %627 {strides = array<i32>} : memref<8x256xf32, #tpu.memory_space<vmem>>, vector<8x256xf32>,
      %cst_274 = arith.constant 0.000000e+00 : f32
      %629 = vector.broadcast %cst_274 : f32 to vector<8x256xf32>
      %c0_275 = arith.constant 0 : index
      %c0_276 = arith.constant 0 : index
      %630 = vector.load %arg7[%c0_275, %c0_276] : memref<8x256xf32, #tpu.memory_space<vmem>>, vector<8x256xf32>
      tpu.vector_store %arg7[%c0_275, %c0_276], %629 {strides = array<i32>} : memref<8x256xf32, #tpu.memory_space<vmem>>, vector<8x256xf32>,
    } else {
    }
    %c0 = arith.constant 0 : index
    %c0_1 = arith.constant 0 : index
    %3 = vector.load %arg6[%c0, %c0_1] : memref<8x256xf32, #tpu.memory_space<vmem>>, vector<8x256xf32>
    %4 = arith.truncf %3 : vector<8x256xf32> to vector<8x256xbf16>
    %c0_2 = arith.constant 0 : index
    %c0_3 = arith.constant 0 : index
    %5 = vector.load %arg3[%c0_2, %c0_3] : memref<256x1024xbf16, #tpu.memory_space<vmem>>, vector<256x1024xbf16>
    %cst = arith.constant dense<0.000000e+00> : vector<8x1024xf32>
    %6 = tpu.matmul %4, %5, %cst {dimension_numbers = #tpu.dot_dimension_numbers<[1], [0], [0], [1], [0, 0, 1, 1], [], []>} : vector<8x256xbf16>, vector<256x1024xbf16>, vector<8x1024xf32> -> vector<8x1024xf32>
    %7 = vector.extract_strided_slice %6 {offsets = [0, 0], sizes = [8, 512], strides = [1, 1]} : vector<8x1024xf32> to vector<8x512xf32>
    %8 = vector.extract_strided_slice %6 {offsets = [0, 512], sizes = [8, 512], strides = [1, 1]} : vector<8x1024xf32> to vector<8x512xf32>
    %c0_4 = arith.constant 0 : index
    %c0_5 = arith.constant 0 : index
    %c0_6 = arith.constant 0 : index
    %9 = vector.load %arg1[%c0_4, %c0_5, %c0_6] : memref<8x8x512xbf16, #tpu.memory_space<vmem>>, vector<1x8x512xbf16>
    %10 = vector.shape_cast %9 : vector<1x8x512xbf16> to vector<8x512xbf16>
    %11 = arith.extf %10 : vector<8x512xbf16> to vector<8x512xf32>
    %12 = arith.addf %11, %7 : vector<8x512xf32>
    %c7 = arith.constant 7 : index
    %c0_7 = arith.constant 0 : index
    %c0_8 = arith.constant 0 : index
    %13 = vector.load %arg2[%c7, %c0_7, %c0_8] : memref<8x8x512xbf16, #tpu.memory_space<vmem>>, vector<1x8x512xbf16>
    %14 = vector.shape_cast %13 : vector<1x8x512xbf16> to vector<8x512xbf16>
    %15 = arith.extf %14 : vector<8x512xbf16> to vector<8x512xf32>
    %16 = arith.addf %15, %8 : vector<8x512xf32>
    %17 = vector.extract_strided_slice %12 {offsets = [0, 0], sizes = [8, 128], strides = [1, 1]} : vector<8x512xf32> to vector<8x128xf32>
    %18 = arith.negf %17 : vector<8x128xf32>
    %19 = math.exp %18 : vector<8x128xf32>
    %cst_9 = arith.constant 1.000000e+00 : f32
    %20 = vector.broadcast %cst_9 : f32 to vector<8x128xf32>
    %21 = arith.addf %20, %19 : vector<8x128xf32>
    %22 = arith.divf %20, %21 : vector<8x128xf32>
    %23 = vector.extract_strided_slice %12 {offsets = [0, 128], sizes = [8, 128], strides = [1, 1]} : vector<8x512xf32> to vector<8x128xf32>
    %24 = arith.negf %23 : vector<8x128xf32>
    %25 = math.exp %24 : vector<8x128xf32>
    %cst_10 = arith.constant 1.000000e+00 : f32
    %26 = vector.broadcast %cst_10 : f32 to vector<8x128xf32>
    %27 = arith.addf %26, %25 : vector<8x128xf32>
    %28 = arith.divf %26, %27 : vector<8x128xf32>
    %29 = vector.extract_strided_slice %12 {offsets = [0, 256], sizes = [8, 128], strides = [1, 1]} : vector<8x512xf32> to vector<8x128xf32>
    %30 = math.tanh %29 : vector<8x128xf32>
    %31 = vector.extract_strided_slice %12 {offsets = [0, 384], sizes = [8, 128], strides = [1, 1]} : vector<8x512xf32> to vector<8x128xf32>
    %32 = arith.negf %31 : vector<8x128xf32>
    %33 = math.exp %32 : vector<8x128xf32>
    %cst_11 = arith.constant 1.000000e+00 : f32
    %34 = vector.broadcast %cst_11 : f32 to vector<8x128xf32>
    %35 = arith.addf %34, %33 : vector<8x128xf32>
    %36 = arith.divf %34, %35 : vector<8x128xf32>
    %c0_12 = arith.constant 0 : index
    %c0_13 = arith.constant 0 : index
    %37 = vector.load %arg7[%c0_12, %c0_13] : memref<8x256xf32, #tpu.memory_space<vmem>>, vector<8x128xf32>
    %38 = arith.mulf %28, %37 : vector<8x128xf32>
    %39 = arith.mulf %22, %30 : vector<8x128xf32>
    %40 = arith.addf %38, %39 : vector<8x128xf32>
    %41 = math.tanh %40 : vector<8x128xf32>
    %42 = arith.mulf %36, %41 : vector<8x128xf32>
    %43 = vector.extract_strided_slice %16 {offsets = [0, 0], sizes = [8, 128], strides = [1, 1]} : vector<8x512xf32> to vector<8x128xf32>
    %44 = arith.negf %43 : vector<8x128xf32>
    %45 = math.exp %44 : vector<8x128xf32>
    %cst_14 = arith.constant 1.000000e+00 : f32
    %46 = vector.broadcast %cst_14 : f32 to vector<8x128xf32>
    %47 = arith.addf %46, %45 : vector<8x128xf32>
    %48 = arith.divf %46, %47 : vector<8x128xf32>
    %49 = vector.extract_strided_slice %16 {offsets = [0, 128], sizes = [8, 128], strides = [1, 1]} : vector<8x512xf32> to vector<8x128xf32>
    %50 = arith.negf %49 : vector<8x128xf32>
    %51 = math.exp %50 : vector<8x128xf32>
    %cst_15 = arith.constant 1.000000e+00 : f32
    %52 = vector.broadcast %cst_15 : f32 to vector<8x128xf32>
    %53 = arith.addf %52, %51 : vector<8x128xf32>
    %54 = arith.divf %52, %53 : vector<8x128xf32>
    %55 = vector.extract_strided_slice %16 {offsets = [0, 256], sizes = [8, 128], strides = [1, 1]} : vector<8x512xf32> to vector<8x128xf32>
    %56 = math.tanh %55 : vector<8x128xf32>
    %57 = vector.extract_strided_slice %16 {offsets = [0, 384], sizes = [8, 128], strides = [1, 1]} : vector<8x512xf32> to vector<8x128xf32>
    %58 = arith.negf %57 : vector<8x128xf32>
    %59 = math.exp %58 : vector<8x128xf32>
    %cst_16 = arith.constant 1.000000e+00 : f32
    %60 = vector.broadcast %cst_16 : f32 to vector<8x128xf32>
    %61 = arith.addf %60, %59 : vector<8x128xf32>
    %62 = arith.divf %60, %61 : vector<8x128xf32>
    %c0_17 = arith.constant 0 : index
    %c128 = arith.constant 128 : index
    %63 = vector.load %arg7[%c0_17, %c128] : memref<8x256xf32, #tpu.memory_space<vmem>>, vector<8x128xf32>
    %64 = arith.mulf %54, %63 : vector<8x128xf32>
    %65 = arith.mulf %48, %56 : vector<8x128xf32>
    %66 = arith.addf %64, %65 : vector<8x128xf32>
    %67 = math.tanh %66 : vector<8x128xf32>
    %68 = arith.mulf %62, %67 : vector<8x128xf32>
    %c0_18 = arith.constant 0 : index
    %c0_19 = arith.constant 0 : index
    %69 = vector.load %arg7[%c0_18, %c0_19] : memref<8x256xf32, #tpu.memory_space<vmem>>, vector<8x128xf32>
    tpu.vector_store %arg7[%c0_18, %c0_19], %40 {strides = array<i32>} : memref<8x256xf32, #tpu.memory_space<vmem>>, vector<8x128xf32>,
    %c0_20 = arith.constant 0 : index
    %c128_21 = arith.constant 128 : index
    %70 = vector.load %arg7[%c0_20, %c128_21] : memref<8x256xf32, #tpu.memory_space<vmem>>, vector<8x128xf32>
    tpu.vector_store %arg7[%c0_20, %c128_21], %66 {strides = array<i32>} : memref<8x256xf32, #tpu.memory_space<vmem>>, vector<8x128xf32>,
    %c0_22 = arith.constant 0 : index
    %c0_23 = arith.constant 0 : index
    %71 = vector.load %arg6[%c0_22, %c0_23] : memref<8x256xf32, #tpu.memory_space<vmem>>, vector<8x128xf32>
    tpu.vector_store %arg6[%c0_22, %c0_23], %42 {strides = array<i32>} : memref<8x256xf32, #tpu.memory_space<vmem>>, vector<8x128xf32>,
    %c0_24 = arith.constant 0 : index
    %c128_25 = arith.constant 128 : index
    %72 = vector.load %arg6[%c0_24, %c128_25] : memref<8x256xf32, #tpu.memory_space<vmem>>, vector<8x128xf32>
    tpu.vector_store %arg6[%c0_24, %c128_25], %68 {strides = array<i32>} : memref<8x256xf32, #tpu.memory_space<vmem>>, vector<8x128xf32>,
    %73 = arith.truncf %42 : vector<8x128xf32> to vector<8x128xbf16>
    %c0_26 = arith.constant 0 : index
    %c0_27 = arith.constant 0 : index
    %c0_28 = arith.constant 0 : index
    %74 = vector.load %arg4[%c0_26, %c0_27, %c0_28] : memref<8x8x128xbf16, #tpu.memory_space<vmem>>, vector<1x8x128xbf16>
    %75 = vector.shape_cast %74 : vector<1x8x128xbf16> to vector<8x128xbf16>
    %76 = vector.shape_cast %73 : vector<8x128xbf16> to vector<1x8x128xbf16>
    tpu.vector_store %arg4[%c0_26, %c0_27, %c0_28], %76 {strides = array<i32>} : memref<8x8x128xbf16, #tpu.memory_space<vmem>>, vector<1x8x128xbf16>,
    %77 = arith.truncf %68 : vector<8x128xf32> to vector<8x128xbf16>
    %c7_29 = arith.constant 7 : index
    %c0_30 = arith.constant 0 : index
    %c0_31 = arith.constant 0 : index
    %78 = vector.load %arg5[%c7_29, %c0_30, %c0_31] : memref<8x8x128xbf16, #tpu.memory_space<vmem>>, vector<1x8x128xbf16>
    %79 = vector.shape_cast %78 : vector<1x8x128xbf16> to vector<8x128xbf16>
    %80 = vector.shape_cast %77 : vector<8x128xbf16> to vector<1x8x128xbf16>
    tpu.vector_store %arg5[%c7_29, %c0_30, %c0_31], %80 {strides = array<i32>} : memref<8x8x128xbf16, #tpu.memory_space<vmem>>, vector<1x8x128xbf16>,
    %c0_32 = arith.constant 0 : index
    %c0_33 = arith.constant 0 : index
    %81 = vector.load %arg6[%c0_32, %c0_33] : memref<8x256xf32, #tpu.memory_space<vmem>>, vector<8x256xf32>
    %82 = arith.truncf %81 : vector<8x256xf32> to vector<8x256xbf16>
    %c0_34 = arith.constant 0 : index
    %c0_35 = arith.constant 0 : index
    %83 = vector.load %arg3[%c0_34, %c0_35] : memref<256x1024xbf16, #tpu.memory_space<vmem>>, vector<256x1024xbf16>
    %cst_36 = arith.constant dense<0.000000e+00> : vector<8x1024xf32>
    %84 = tpu.matmul %82, %83, %cst_36 {dimension_numbers = #tpu.dot_dimension_numbers<[1], [0], [0], [1], [0, 0, 1, 1], [], []>} : vector<8x256xbf16>, vector<256x1024xbf16>, vector<8x1024xf32> -> vector<8x1024xf32>
    %85 = vector.extract_strided_slice %84 {offsets = [0, 0], sizes = [8, 512], strides = [1, 1]} : vector<8x1024xf32> to vector<8x512xf32>
    %86 = vector.extract_strided_slice %84 {offsets = [0, 512], sizes = [8, 512], strides = [1, 1]} : vector<8x1024xf32> to vector<8x512xf32>
    %c1 = arith.constant 1 : index
    %c0_37 = arith.constant 0 : index
    %c0_38 = arith.constant 0 : index
    %87 = vector.load %arg1[%c1, %c0_37, %c0_38] : memref<8x8x512xbf16, #tpu.memory_space<vmem>>, vector<1x8x512xbf16>
    %88 = vector.shape_cast %87 : vector<1x8x512xbf16> to vector<8x512xbf16>
    %89 = arith.extf %88 : vector<8x512xbf16> to vector<8x512xf32>
    %90 = arith.addf %89, %85 : vector<8x512xf32>
    %c6 = arith.constant 6 : index
    %c0_39 = arith.constant 0 : index
    %c0_40 = arith.constant 0 : index
    %91 = vector.load %arg2[%c6, %c0_39, %c0_40] : memref<8x8x512xbf16, #tpu.memory_space<vmem>>, vector<1x8x512xbf16>
    %92 = vector.shape_cast %91 : vector<1x8x512xbf16> to vector<8x512xbf16>
    %93 = arith.extf %92 : vector<8x512xbf16> to vector<8x512xf32>
    %94 = arith.addf %93, %86 : vector<8x512xf32>
    %95 = vector.extract_strided_slice %90 {offsets = [0, 0], sizes = [8, 128], strides = [1, 1]} : vector<8x512xf32> to vector<8x128xf32>
    %96 = arith.negf %95 : vector<8x128xf32>
    %97 = math.exp %96 : vector<8x128xf32>
    %cst_41 = arith.constant 1.000000e+00 : f32
    %98 = vector.broadcast %cst_41 : f32 to vector<8x128xf32>
    %99 = arith.addf %98, %97 : vector<8x128xf32>
    %100 = arith.divf %98, %99 : vector<8x128xf32>
    %101 = vector.extract_strided_slice %90 {offsets = [0, 128], sizes = [8, 128], strides = [1, 1]} : vector<8x512xf32> to vector<8x128xf32>
    %102 = arith.negf %101 : vector<8x128xf32>
    %103 = math.exp %102 : vector<8x128xf32>
    %cst_42 = arith.constant 1.000000e+00 : f32
    %104 = vector.broadcast %cst_42 : f32 to vector<8x128xf32>
    %105 = arith.addf %104, %103 : vector<8x128xf32>
    %106 = arith.divf %104, %105 : vector<8x128xf32>
    %107 = vector.extract_strided_slice %90 {offsets = [0, 256], sizes = [8, 128], strides = [1, 1]} : vector<8x512xf32> to vector<8x128xf32>
    %108 = math.tanh %107 : vector<8x128xf32>
    %109 = vector.extract_strided_slice %90 {offsets = [0, 384], sizes = [8, 128], strides = [1, 1]} : vector<8x512xf32> to vector<8x128xf32>
    %110 = arith.negf %109 : vector<8x128xf32>
    %111 = math.exp %110 : vector<8x128xf32>
    %cst_43 = arith.constant 1.000000e+00 : f32
    %112 = vector.broadcast %cst_43 : f32 to vector<8x128xf32>
    %113 = arith.addf %112, %111 : vector<8x128xf32>
    %114 = arith.divf %112, %113 : vector<8x128xf32>
    %c0_44 = arith.constant 0 : index
    %c0_45 = arith.constant 0 : index
    %115 = vector.load %arg7[%c0_44, %c0_45] : memref<8x256xf32, #tpu.memory_space<vmem>>, vector<8x128xf32>
    %116 = arith.mulf %106, %115 : vector<8x128xf32>
    %117 = arith.mulf %100, %108 : vector<8x128xf32>
    %118 = arith.addf %116, %117 : vector<8x128xf32>
    %119 = math.tanh %118 : vector<8x128xf32>
    %120 = arith.mulf %114, %119 : vector<8x128xf32>
    %121 = vector.extract_strided_slice %94 {offsets = [0, 0], sizes = [8, 128], strides = [1, 1]} : vector<8x512xf32> to vector<8x128xf32>
    %122 = arith.negf %121 : vector<8x128xf32>
    %123 = math.exp %122 : vector<8x128xf32>
    %cst_46 = arith.constant 1.000000e+00 : f32
    %124 = vector.broadcast %cst_46 : f32 to vector<8x128xf32>
    %125 = arith.addf %124, %123 : vector<8x128xf32>
    %126 = arith.divf %124, %125 : vector<8x128xf32>
    %127 = vector.extract_strided_slice %94 {offsets = [0, 128], sizes = [8, 128], strides = [1, 1]} : vector<8x512xf32> to vector<8x128xf32>
    %128 = arith.negf %127 : vector<8x128xf32>
    %129 = math.exp %128 : vector<8x128xf32>
    %cst_47 = arith.constant 1.000000e+00 : f32
    %130 = vector.broadcast %cst_47 : f32 to vector<8x128xf32>
    %131 = arith.addf %130, %129 : vector<8x128xf32>
    %132 = arith.divf %130, %131 : vector<8x128xf32>
    %133 = vector.extract_strided_slice %94 {offsets = [0, 256], sizes = [8, 128], strides = [1, 1]} : vector<8x512xf32> to vector<8x128xf32>
    %134 = math.tanh %133 : vector<8x128xf32>
    %135 = vector.extract_strided_slice %94 {offsets = [0, 384], sizes = [8, 128], strides = [1, 1]} : vector<8x512xf32> to vector<8x128xf32>
    %136 = arith.negf %135 : vector<8x128xf32>
    %137 = math.exp %136 : vector<8x128xf32>
    %cst_48 = arith.constant 1.000000e+00 : f32
    %138 = vector.broadcast %cst_48 : f32 to vector<8x128xf32>
    %139 = arith.addf %138, %137 : vector<8x128xf32>
    %140 = arith.divf %138, %139 : vector<8x128xf32>
    %c0_49 = arith.constant 0 : index
    %c128_50 = arith.constant 128 : index
    %141 = vector.load %arg7[%c0_49, %c128_50] : memref<8x256xf32, #tpu.memory_space<vmem>>, vector<8x128xf32>
    %142 = arith.mulf %132, %141 : vector<8x128xf32>
    %143 = arith.mulf %126, %134 : vector<8x128xf32>
    %144 = arith.addf %142, %143 : vector<8x128xf32>
    %145 = math.tanh %144 : vector<8x128xf32>
    %146 = arith.mulf %140, %145 : vector<8x128xf32>
    %c0_51 = arith.constant 0 : index
    %c0_52 = arith.constant 0 : index
    %147 = vector.load %arg7[%c0_51, %c0_52] : memref<8x256xf32, #tpu.memory_space<vmem>>, vector<8x128xf32>
    tpu.vector_store %arg7[%c0_51, %c0_52], %118 {strides = array<i32>} : memref<8x256xf32, #tpu.memory_space<vmem>>, vector<8x128xf32>,
    %c0_53 = arith.constant 0 : index
    %c128_54 = arith.constant 128 : index
    %148 = vector.load %arg7[%c0_53, %c128_54] : memref<8x256xf32, #tpu.memory_space<vmem>>, vector<8x128xf32>
    tpu.vector_store %arg7[%c0_53, %c128_54], %144 {strides = array<i32>} : memref<8x256xf32, #tpu.memory_space<vmem>>, vector<8x128xf32>,
    %c0_55 = arith.constant 0 : index
    %c0_56 = arith.constant 0 : index
    %149 = vector.load %arg6[%c0_55, %c0_56] : memref<8x256xf32, #tpu.memory_space<vmem>>, vector<8x128xf32>
    tpu.vector_store %arg6[%c0_55, %c0_56], %120 {strides = array<i32>} : memref<8x256xf32, #tpu.memory_space<vmem>>, vector<8x128xf32>,
    %c0_57 = arith.constant 0 : index
    %c128_58 = arith.constant 128 : index
    %150 = vector.load %arg6[%c0_57, %c128_58] : memref<8x256xf32, #tpu.memory_space<vmem>>, vector<8x128xf32>
    tpu.vector_store %arg6[%c0_57, %c128_58], %146 {strides = array<i32>} : memref<8x256xf32, #tpu.memory_space<vmem>>, vector<8x128xf32>,
    %151 = arith.truncf %120 : vector<8x128xf32> to vector<8x128xbf16>
    %c1_59 = arith.constant 1 : index
    %c0_60 = arith.constant 0 : index
    %c0_61 = arith.constant 0 : index
    %152 = vector.load %arg4[%c1_59, %c0_60, %c0_61] : memref<8x8x128xbf16, #tpu.memory_space<vmem>>, vector<1x8x128xbf16>
    %153 = vector.shape_cast %152 : vector<1x8x128xbf16> to vector<8x128xbf16>
    %154 = vector.shape_cast %151 : vector<8x128xbf16> to vector<1x8x128xbf16>
    tpu.vector_store %arg4[%c1_59, %c0_60, %c0_61], %154 {strides = array<i32>} : memref<8x8x128xbf16, #tpu.memory_space<vmem>>, vector<1x8x128xbf16>,
    %155 = arith.truncf %146 : vector<8x128xf32> to vector<8x128xbf16>
    %c6_62 = arith.constant 6 : index
    %c0_63 = arith.constant 0 : index
    %c0_64 = arith.constant 0 : index
    %156 = vector.load %arg5[%c6_62, %c0_63, %c0_64] : memref<8x8x128xbf16, #tpu.memory_space<vmem>>, vector<1x8x128xbf16>
    %157 = vector.shape_cast %156 : vector<1x8x128xbf16> to vector<8x128xbf16>
    %158 = vector.shape_cast %155 : vector<8x128xbf16> to vector<1x8x128xbf16>
    tpu.vector_store %arg5[%c6_62, %c0_63, %c0_64], %158 {strides = array<i32>} : memref<8x8x128xbf16, #tpu.memory_space<vmem>>, vector<1x8x128xbf16>,
    %c0_65 = arith.constant 0 : index
    %c0_66 = arith.constant 0 : index
    %159 = vector.load %arg6[%c0_65, %c0_66] : memref<8x256xf32, #tpu.memory_space<vmem>>, vector<8x256xf32>
    %160 = arith.truncf %159 : vector<8x256xf32> to vector<8x256xbf16>
    %c0_67 = arith.constant 0 : index
    %c0_68 = arith.constant 0 : index
    %161 = vector.load %arg3[%c0_67, %c0_68] : memref<256x1024xbf16, #tpu.memory_space<vmem>>, vector<256x1024xbf16>
    %cst_69 = arith.constant dense<0.000000e+00> : vector<8x1024xf32>
    %162 = tpu.matmul %160, %161, %cst_69 {dimension_numbers = #tpu.dot_dimension_numbers<[1], [0], [0], [1], [0, 0, 1, 1], [], []>} : vector<8x256xbf16>, vector<256x1024xbf16>, vector<8x1024xf32> -> vector<8x1024xf32>
    %163 = vector.extract_strided_slice %162 {offsets = [0, 0], sizes = [8, 512], strides = [1, 1]} : vector<8x1024xf32> to vector<8x512xf32>
    %164 = vector.extract_strided_slice %162 {offsets = [0, 512], sizes = [8, 512], strides = [1, 1]} : vector<8x1024xf32> to vector<8x512xf32>
    %c2 = arith.constant 2 : index
    %c0_70 = arith.constant 0 : index
    %c0_71 = arith.constant 0 : index
    %165 = vector.load %arg1[%c2, %c0_70, %c0_71] : memref<8x8x512xbf16, #tpu.memory_space<vmem>>, vector<1x8x512xbf16>
    %166 = vector.shape_cast %165 : vector<1x8x512xbf16> to vector<8x512xbf16>
    %167 = arith.extf %166 : vector<8x512xbf16> to vector<8x512xf32>
    %168 = arith.addf %167, %163 : vector<8x512xf32>
    %c5 = arith.constant 5 : index
    %c0_72 = arith.constant 0 : index
    %c0_73 = arith.constant 0 : index
    %169 = vector.load %arg2[%c5, %c0_72, %c0_73] : memref<8x8x512xbf16, #tpu.memory_space<vmem>>, vector<1x8x512xbf16>
    %170 = vector.shape_cast %169 : vector<1x8x512xbf16> to vector<8x512xbf16>
    %171 = arith.extf %170 : vector<8x512xbf16> to vector<8x512xf32>
    %172 = arith.addf %171, %164 : vector<8x512xf32>
    %173 = vector.extract_strided_slice %168 {offsets = [0, 0], sizes = [8, 128], strides = [1, 1]} : vector<8x512xf32> to vector<8x128xf32>
    %174 = arith.negf %173 : vector<8x128xf32>
    %175 = math.exp %174 : vector<8x128xf32>
    %cst_74 = arith.constant 1.000000e+00 : f32
    %176 = vector.broadcast %cst_74 : f32 to vector<8x128xf32>
    %177 = arith.addf %176, %175 : vector<8x128xf32>
    %178 = arith.divf %176, %177 : vector<8x128xf32>
    %179 = vector.extract_strided_slice %168 {offsets = [0, 128], sizes = [8, 128], strides = [1, 1]} : vector<8x512xf32> to vector<8x128xf32>
    %180 = arith.negf %179 : vector<8x128xf32>
    %181 = math.exp %180 : vector<8x128xf32>
    %cst_75 = arith.constant 1.000000e+00 : f32
    %182 = vector.broadcast %cst_75 : f32 to vector<8x128xf32>
    %183 = arith.addf %182, %181 : vector<8x128xf32>
    %184 = arith.divf %182, %183 : vector<8x128xf32>
    %185 = vector.extract_strided_slice %168 {offsets = [0, 256], sizes = [8, 128], strides = [1, 1]} : vector<8x512xf32> to vector<8x128xf32>
    %186 = math.tanh %185 : vector<8x128xf32>
    %187 = vector.extract_strided_slice %168 {offsets = [0, 384], sizes = [8, 128], strides = [1, 1]} : vector<8x512xf32> to vector<8x128xf32>
    %188 = arith.negf %187 : vector<8x128xf32>
    %189 = math.exp %188 : vector<8x128xf32>
    %cst_76 = arith.constant 1.000000e+00 : f32
    %190 = vector.broadcast %cst_76 : f32 to vector<8x128xf32>
    %191 = arith.addf %190, %189 : vector<8x128xf32>
    %192 = arith.divf %190, %191 : vector<8x128xf32>
    %c0_77 = arith.constant 0 : index
    %c0_78 = arith.constant 0 : index
    %193 = vector.load %arg7[%c0_77, %c0_78] : memref<8x256xf32, #tpu.memory_space<vmem>>, vector<8x128xf32>
    %194 = arith.mulf %184, %193 : vector<8x128xf32>
    %195 = arith.mulf %178, %186 : vector<8x128xf32>
    %196 = arith.addf %194, %195 : vector<8x128xf32>
    %197 = math.tanh %196 : vector<8x128xf32>
    %198 = arith.mulf %192, %197 : vector<8x128xf32>
    %199 = vector.extract_strided_slice %172 {offsets = [0, 0], sizes = [8, 128], strides = [1, 1]} : vector<8x512xf32> to vector<8x128xf32>
    %200 = arith.negf %199 : vector<8x128xf32>
    %201 = math.exp %200 : vector<8x128xf32>
    %cst_79 = arith.constant 1.000000e+00 : f32
    %202 = vector.broadcast %cst_79 : f32 to vector<8x128xf32>
    %203 = arith.addf %202, %201 : vector<8x128xf32>
    %204 = arith.divf %202, %203 : vector<8x128xf32>
    %205 = vector.extract_strided_slice %172 {offsets = [0, 128], sizes = [8, 128], strides = [1, 1]} : vector<8x512xf32> to vector<8x128xf32>
    %206 = arith.negf %205 : vector<8x128xf32>
    %207 = math.exp %206 : vector<8x128xf32>
    %cst_80 = arith.constant 1.000000e+00 : f32
    %208 = vector.broadcast %cst_80 : f32 to vector<8x128xf32>
    %209 = arith.addf %208, %207 : vector<8x128xf32>
    %210 = arith.divf %208, %209 : vector<8x128xf32>
    %211 = vector.extract_strided_slice %172 {offsets = [0, 256], sizes = [8, 128], strides = [1, 1]} : vector<8x512xf32> to vector<8x128xf32>
    %212 = math.tanh %211 : vector<8x128xf32>
    %213 = vector.extract_strided_slice %172 {offsets = [0, 384], sizes = [8, 128], strides = [1, 1]} : vector<8x512xf32> to vector<8x128xf32>
    %214 = arith.negf %213 : vector<8x128xf32>
    %215 = math.exp %214 : vector<8x128xf32>
    %cst_81 = arith.constant 1.000000e+00 : f32
    %216 = vector.broadcast %cst_81 : f32 to vector<8x128xf32>
    %217 = arith.addf %216, %215 : vector<8x128xf32>
    %218 = arith.divf %216, %217 : vector<8x128xf32>
    %c0_82 = arith.constant 0 : index
    %c128_83 = arith.constant 128 : index
    %219 = vector.load %arg7[%c0_82, %c128_83] : memref<8x256xf32, #tpu.memory_space<vmem>>, vector<8x128xf32>
    %220 = arith.mulf %210, %219 : vector<8x128xf32>
    %221 = arith.mulf %204, %212 : vector<8x128xf32>
    %222 = arith.addf %220, %221 : vector<8x128xf32>
    %223 = math.tanh %222 : vector<8x128xf32>
    %224 = arith.mulf %218, %223 : vector<8x128xf32>
    %c0_84 = arith.constant 0 : index
    %c0_85 = arith.constant 0 : index
    %225 = vector.load %arg7[%c0_84, %c0_85] : memref<8x256xf32, #tpu.memory_space<vmem>>, vector<8x128xf32>
    tpu.vector_store %arg7[%c0_84, %c0_85], %196 {strides = array<i32>} : memref<8x256xf32, #tpu.memory_space<vmem>>, vector<8x128xf32>,
    %c0_86 = arith.constant 0 : index
    %c128_87 = arith.constant 128 : index
    %226 = vector.load %arg7[%c0_86, %c128_87] : memref<8x256xf32, #tpu.memory_space<vmem>>, vector<8x128xf32>
    tpu.vector_store %arg7[%c0_86, %c128_87], %222 {strides = array<i32>} : memref<8x256xf32, #tpu.memory_space<vmem>>, vector<8x128xf32>,
    %c0_88 = arith.constant 0 : index
    %c0_89 = arith.constant 0 : index
    %227 = vector.load %arg6[%c0_88, %c0_89] : memref<8x256xf32, #tpu.memory_space<vmem>>, vector<8x128xf32>
    tpu.vector_store %arg6[%c0_88, %c0_89], %198 {strides = array<i32>} : memref<8x256xf32, #tpu.memory_space<vmem>>, vector<8x128xf32>,
    %c0_90 = arith.constant 0 : index
    %c128_91 = arith.constant 128 : index
    %228 = vector.load %arg6[%c0_90, %c128_91] : memref<8x256xf32, #tpu.memory_space<vmem>>, vector<8x128xf32>
    tpu.vector_store %arg6[%c0_90, %c128_91], %224 {strides = array<i32>} : memref<8x256xf32, #tpu.memory_space<vmem>>, vector<8x128xf32>,
    %229 = arith.truncf %198 : vector<8x128xf32> to vector<8x128xbf16>
    %c2_92 = arith.constant 2 : index
    %c0_93 = arith.constant 0 : index
    %c0_94 = arith.constant 0 : index
    %230 = vector.load %arg4[%c2_92, %c0_93, %c0_94] : memref<8x8x128xbf16, #tpu.memory_space<vmem>>, vector<1x8x128xbf16>
    %231 = vector.shape_cast %230 : vector<1x8x128xbf16> to vector<8x128xbf16>
    %232 = vector.shape_cast %229 : vector<8x128xbf16> to vector<1x8x128xbf16>
    tpu.vector_store %arg4[%c2_92, %c0_93, %c0_94], %232 {strides = array<i32>} : memref<8x8x128xbf16, #tpu.memory_space<vmem>>, vector<1x8x128xbf16>,
    %233 = arith.truncf %224 : vector<8x128xf32> to vector<8x128xbf16>
    %c5_95 = arith.constant 5 : index
    %c0_96 = arith.constant 0 : index
    %c0_97 = arith.constant 0 : index
    %234 = vector.load %arg5[%c5_95, %c0_96, %c0_97] : memref<8x8x128xbf16, #tpu.memory_space<vmem>>, vector<1x8x128xbf16>
    %235 = vector.shape_cast %234 : vector<1x8x128xbf16> to vector<8x128xbf16>
    %236 = vector.shape_cast %233 : vector<8x128xbf16> to vector<1x8x128xbf16>
    tpu.vector_store %arg5[%c5_95, %c0_96, %c0_97], %236 {strides = array<i32>} : memref<8x8x128xbf16, #tpu.memory_space<vmem>>, vector<1x8x128xbf16>,
    %c0_98 = arith.constant 0 : index
    %c0_99 = arith.constant 0 : index
    %237 = vector.load %arg6[%c0_98, %c0_99] : memref<8x256xf32, #tpu.memory_space<vmem>>, vector<8x256xf32>
    %238 = arith.truncf %237 : vector<8x256xf32> to vector<8x256xbf16>
    %c0_100 = arith.constant 0 : index
    %c0_101 = arith.constant 0 : index
    %239 = vector.load %arg3[%c0_100, %c0_101] : memref<256x1024xbf16, #tpu.memory_space<vmem>>, vector<256x1024xbf16>
    %cst_102 = arith.constant dense<0.000000e+00> : vector<8x1024xf32>
    %240 = tpu.matmul %238, %239, %cst_102 {dimension_numbers = #tpu.dot_dimension_numbers<[1], [0], [0], [1], [0, 0, 1, 1], [], []>} : vector<8x256xbf16>, vector<256x1024xbf16>, vector<8x1024xf32> -> vector<8x1024xf32>
    %241 = vector.extract_strided_slice %240 {offsets = [0, 0], sizes = [8, 512], strides = [1, 1]} : vector<8x1024xf32> to vector<8x512xf32>
    %242 = vector.extract_strided_slice %240 {offsets = [0, 512], sizes = [8, 512], strides = [1, 1]} : vector<8x1024xf32> to vector<8x512xf32>
    %c3 = arith.constant 3 : index
    %c0_103 = arith.constant 0 : index
    %c0_104 = arith.constant 0 : index
    %243 = vector.load %arg1[%c3, %c0_103, %c0_104] : memref<8x8x512xbf16, #tpu.memory_space<vmem>>, vector<1x8x512xbf16>
    %244 = vector.shape_cast %243 : vector<1x8x512xbf16> to vector<8x512xbf16>
    %245 = arith.extf %244 : vector<8x512xbf16> to vector<8x512xf32>
    %246 = arith.addf %245, %241 : vector<8x512xf32>
    %c4 = arith.constant 4 : index
    %c0_105 = arith.constant 0 : index
    %c0_106 = arith.constant 0 : index
    %247 = vector.load %arg2[%c4, %c0_105, %c0_106] : memref<8x8x512xbf16, #tpu.memory_space<vmem>>, vector<1x8x512xbf16>
    %248 = vector.shape_cast %247 : vector<1x8x512xbf16> to vector<8x512xbf16>
    %249 = arith.extf %248 : vector<8x512xbf16> to vector<8x512xf32>
    %250 = arith.addf %249, %242 : vector<8x512xf32>
    %251 = vector.extract_strided_slice %246 {offsets = [0, 0], sizes = [8, 128], strides = [1, 1]} : vector<8x512xf32> to vector<8x128xf32>
    %252 = arith.negf %251 : vector<8x128xf32>
    %253 = math.exp %252 : vector<8x128xf32>
    %cst_107 = arith.constant 1.000000e+00 : f32
    %254 = vector.broadcast %cst_107 : f32 to vector<8x128xf32>
    %255 = arith.addf %254, %253 : vector<8x128xf32>
    %256 = arith.divf %254, %255 : vector<8x128xf32>
    %257 = vector.extract_strided_slice %246 {offsets = [0, 128], sizes = [8, 128], strides = [1, 1]} : vector<8x512xf32> to vector<8x128xf32>
    %258 = arith.negf %257 : vector<8x128xf32>
    %259 = math.exp %258 : vector<8x128xf32>
    %cst_108 = arith.constant 1.000000e+00 : f32
    %260 = vector.broadcast %cst_108 : f32 to vector<8x128xf32>
    %261 = arith.addf %260, %259 : vector<8x128xf32>
    %262 = arith.divf %260, %261 : vector<8x128xf32>
    %263 = vector.extract_strided_slice %246 {offsets = [0, 256], sizes = [8, 128], strides = [1, 1]} : vector<8x512xf32> to vector<8x128xf32>
    %264 = math.tanh %263 : vector<8x128xf32>
    %265 = vector.extract_strided_slice %246 {offsets = [0, 384], sizes = [8, 128], strides = [1, 1]} : vector<8x512xf32> to vector<8x128xf32>
    %266 = arith.negf %265 : vector<8x128xf32>
    %267 = math.exp %266 : vector<8x128xf32>
    %cst_109 = arith.constant 1.000000e+00 : f32
    %268 = vector.broadcast %cst_109 : f32 to vector<8x128xf32>
    %269 = arith.addf %268, %267 : vector<8x128xf32>
    %270 = arith.divf %268, %269 : vector<8x128xf32>
    %c0_110 = arith.constant 0 : index
    %c0_111 = arith.constant 0 : index
    %271 = vector.load %arg7[%c0_110, %c0_111] : memref<8x256xf32, #tpu.memory_space<vmem>>, vector<8x128xf32>
    %272 = arith.mulf %262, %271 : vector<8x128xf32>
    %273 = arith.mulf %256, %264 : vector<8x128xf32>
    %274 = arith.addf %272, %273 : vector<8x128xf32>
    %275 = math.tanh %274 : vector<8x128xf32>
    %276 = arith.mulf %270, %275 : vector<8x128xf32>
    %277 = vector.extract_strided_slice %250 {offsets = [0, 0], sizes = [8, 128], strides = [1, 1]} : vector<8x512xf32> to vector<8x128xf32>
    %278 = arith.negf %277 : vector<8x128xf32>
    %279 = math.exp %278 : vector<8x128xf32>
    %cst_112 = arith.constant 1.000000e+00 : f32
    %280 = vector.broadcast %cst_112 : f32 to vector<8x128xf32>
    %281 = arith.addf %280, %279 : vector<8x128xf32>
    %282 = arith.divf %280, %281 : vector<8x128xf32>
    %283 = vector.extract_strided_slice %250 {offsets = [0, 128], sizes = [8, 128], strides = [1, 1]} : vector<8x512xf32> to vector<8x128xf32>
    %284 = arith.negf %283 : vector<8x128xf32>
    %285 = math.exp %284 : vector<8x128xf32>
    %cst_113 = arith.constant 1.000000e+00 : f32
    %286 = vector.broadcast %cst_113 : f32 to vector<8x128xf32>
    %287 = arith.addf %286, %285 : vector<8x128xf32>
    %288 = arith.divf %286, %287 : vector<8x128xf32>
    %289 = vector.extract_strided_slice %250 {offsets = [0, 256], sizes = [8, 128], strides = [1, 1]} : vector<8x512xf32> to vector<8x128xf32>
    %290 = math.tanh %289 : vector<8x128xf32>
    %291 = vector.extract_strided_slice %250 {offsets = [0, 384], sizes = [8, 128], strides = [1, 1]} : vector<8x512xf32> to vector<8x128xf32>
    %292 = arith.negf %291 : vector<8x128xf32>
    %293 = math.exp %292 : vector<8x128xf32>
    %cst_114 = arith.constant 1.000000e+00 : f32
    %294 = vector.broadcast %cst_114 : f32 to vector<8x128xf32>
    %295 = arith.addf %294, %293 : vector<8x128xf32>
    %296 = arith.divf %294, %295 : vector<8x128xf32>
    %c0_115 = arith.constant 0 : index
    %c128_116 = arith.constant 128 : index
    %297 = vector.load %arg7[%c0_115, %c128_116] : memref<8x256xf32, #tpu.memory_space<vmem>>, vector<8x128xf32>
    %298 = arith.mulf %288, %297 : vector<8x128xf32>
    %299 = arith.mulf %282, %290 : vector<8x128xf32>
    %300 = arith.addf %298, %299 : vector<8x128xf32>
    %301 = math.tanh %300 : vector<8x128xf32>
    %302 = arith.mulf %296, %301 : vector<8x128xf32>
    %c0_117 = arith.constant 0 : index
    %c0_118 = arith.constant 0 : index
    %303 = vector.load %arg7[%c0_117, %c0_118] : memref<8x256xf32, #tpu.memory_space<vmem>>, vector<8x128xf32>
    tpu.vector_store %arg7[%c0_117, %c0_118], %274 {strides = array<i32>} : memref<8x256xf32, #tpu.memory_space<vmem>>, vector<8x128xf32>,
    %c0_119 = arith.constant 0 : index
    %c128_120 = arith.constant 128 : index
    %304 = vector.load %arg7[%c0_119, %c128_120] : memref<8x256xf32, #tpu.memory_space<vmem>>, vector<8x128xf32>
    tpu.vector_store %arg7[%c0_119, %c128_120], %300 {strides = array<i32>} : memref<8x256xf32, #tpu.memory_space<vmem>>, vector<8x128xf32>,
    %c0_121 = arith.constant 0 : index
    %c0_122 = arith.constant 0 : index
    %305 = vector.load %arg6[%c0_121, %c0_122] : memref<8x256xf32, #tpu.memory_space<vmem>>, vector<8x128xf32>
    tpu.vector_store %arg6[%c0_121, %c0_122], %276 {strides = array<i32>} : memref<8x256xf32, #tpu.memory_space<vmem>>, vector<8x128xf32>,
    %c0_123 = arith.constant 0 : index
    %c128_124 = arith.constant 128 : index
    %306 = vector.load %arg6[%c0_123, %c128_124] : memref<8x256xf32, #tpu.memory_space<vmem>>, vector<8x128xf32>
    tpu.vector_store %arg6[%c0_123, %c128_124], %302 {strides = array<i32>} : memref<8x256xf32, #tpu.memory_space<vmem>>, vector<8x128xf32>,
    %307 = arith.truncf %276 : vector<8x128xf32> to vector<8x128xbf16>
    %c3_125 = arith.constant 3 : index
    %c0_126 = arith.constant 0 : index
    %c0_127 = arith.constant 0 : index
    %308 = vector.load %arg4[%c3_125, %c0_126, %c0_127] : memref<8x8x128xbf16, #tpu.memory_space<vmem>>, vector<1x8x128xbf16>
    %309 = vector.shape_cast %308 : vector<1x8x128xbf16> to vector<8x128xbf16>
    %310 = vector.shape_cast %307 : vector<8x128xbf16> to vector<1x8x128xbf16>
    tpu.vector_store %arg4[%c3_125, %c0_126, %c0_127], %310 {strides = array<i32>} : memref<8x8x128xbf16, #tpu.memory_space<vmem>>, vector<1x8x128xbf16>,
    %311 = arith.truncf %302 : vector<8x128xf32> to vector<8x128xbf16>
    %c4_128 = arith.constant 4 : index
    %c0_129 = arith.constant 0 : index
    %c0_130 = arith.constant 0 : index
    %312 = vector.load %arg5[%c4_128, %c0_129, %c0_130] : memref<8x8x128xbf16, #tpu.memory_space<vmem>>, vector<1x8x128xbf16>
    %313 = vector.shape_cast %312 : vector<1x8x128xbf16> to vector<8x128xbf16>
    %314 = vector.shape_cast %311 : vector<8x128xbf16> to vector<1x8x128xbf16>
    tpu.vector_store %arg5[%c4_128, %c0_129, %c0_130], %314 {strides = array<i32>} : memref<8x8x128xbf16, #tpu.memory_space<vmem>>, vector<1x8x128xbf16>,
    %c0_131 = arith.constant 0 : index
    %c0_132 = arith.constant 0 : index
    %315 = vector.load %arg6[%c0_131, %c0_132] : memref<8x256xf32, #tpu.memory_space<vmem>>, vector<8x256xf32>
    %316 = arith.truncf %315 : vector<8x256xf32> to vector<8x256xbf16>
    %c0_133 = arith.constant 0 : index
    %c0_134 = arith.constant 0 : index
    %317 = vector.load %arg3[%c0_133, %c0_134] : memref<256x1024xbf16, #tpu.memory_space<vmem>>, vector<256x1024xbf16>
    %cst_135 = arith.constant dense<0.000000e+00> : vector<8x1024xf32>
    %318 = tpu.matmul %316, %317, %cst_135 {dimension_numbers = #tpu.dot_dimension_numbers<[1], [0], [0], [1], [0, 0, 1, 1], [], []>} : vector<8x256xbf16>, vector<256x1024xbf16>, vector<8x1024xf32> -> vector<8x1024xf32>
    %319 = vector.extract_strided_slice %318 {offsets = [0, 0], sizes = [8, 512], strides = [1, 1]} : vector<8x1024xf32> to vector<8x512xf32>
    %320 = vector.extract_strided_slice %318 {offsets = [0, 512], sizes = [8, 512], strides = [1, 1]} : vector<8x1024xf32> to vector<8x512xf32>
    %c4_136 = arith.constant 4 : index
    %c0_137 = arith.constant 0 : index
    %c0_138 = arith.constant 0 : index
    %321 = vector.load %arg1[%c4_136, %c0_137, %c0_138] : memref<8x8x512xbf16, #tpu.memory_space<vmem>>, vector<1x8x512xbf16>
    %322 = vector.shape_cast %321 : vector<1x8x512xbf16> to vector<8x512xbf16>
    %323 = arith.extf %322 : vector<8x512xbf16> to vector<8x512xf32>
    %324 = arith.addf %323, %319 : vector<8x512xf32>
    %c3_139 = arith.constant 3 : index
    %c0_140 = arith.constant 0 : index
    %c0_141 = arith.constant 0 : index
    %325 = vector.load %arg2[%c3_139, %c0_140, %c0_141] : memref<8x8x512xbf16, #tpu.memory_space<vmem>>, vector<1x8x512xbf16>
    %326 = vector.shape_cast %325 : vector<1x8x512xbf16> to vector<8x512xbf16>
    %327 = arith.extf %326 : vector<8x512xbf16> to vector<8x512xf32>
    %328 = arith.addf %327, %320 : vector<8x512xf32>
    %329 = vector.extract_strided_slice %324 {offsets = [0, 0], sizes = [8, 128], strides = [1, 1]} : vector<8x512xf32> to vector<8x128xf32>
    %330 = arith.negf %329 : vector<8x128xf32>
    %331 = math.exp %330 : vector<8x128xf32>
    %cst_142 = arith.constant 1.000000e+00 : f32
    %332 = vector.broadcast %cst_142 : f32 to vector<8x128xf32>
    %333 = arith.addf %332, %331 : vector<8x128xf32>
    %334 = arith.divf %332, %333 : vector<8x128xf32>
    %335 = vector.extract_strided_slice %324 {offsets = [0, 128], sizes = [8, 128], strides = [1, 1]} : vector<8x512xf32> to vector<8x128xf32>
    %336 = arith.negf %335 : vector<8x128xf32>
    %337 = math.exp %336 : vector<8x128xf32>
    %cst_143 = arith.constant 1.000000e+00 : f32
    %338 = vector.broadcast %cst_143 : f32 to vector<8x128xf32>
    %339 = arith.addf %338, %337 : vector<8x128xf32>
    %340 = arith.divf %338, %339 : vector<8x128xf32>
    %341 = vector.extract_strided_slice %324 {offsets = [0, 256], sizes = [8, 128], strides = [1, 1]} : vector<8x512xf32> to vector<8x128xf32>
    %342 = math.tanh %341 : vector<8x128xf32>
    %343 = vector.extract_strided_slice %324 {offsets = [0, 384], sizes = [8, 128], strides = [1, 1]} : vector<8x512xf32> to vector<8x128xf32>
    %344 = arith.negf %343 : vector<8x128xf32>
    %345 = math.exp %344 : vector<8x128xf32>
    %cst_144 = arith.constant 1.000000e+00 : f32
    %346 = vector.broadcast %cst_144 : f32 to vector<8x128xf32>
    %347 = arith.addf %346, %345 : vector<8x128xf32>
    %348 = arith.divf %346, %347 : vector<8x128xf32>
    %c0_145 = arith.constant 0 : index
    %c0_146 = arith.constant 0 : index
    %349 = vector.load %arg7[%c0_145, %c0_146] : memref<8x256xf32, #tpu.memory_space<vmem>>, vector<8x128xf32>
    %350 = arith.mulf %340, %349 : vector<8x128xf32>
    %351 = arith.mulf %334, %342 : vector<8x128xf32>
    %352 = arith.addf %350, %351 : vector<8x128xf32>
    %353 = math.tanh %352 : vector<8x128xf32>
    %354 = arith.mulf %348, %353 : vector<8x128xf32>
    %355 = vector.extract_strided_slice %328 {offsets = [0, 0], sizes = [8, 128], strides = [1, 1]} : vector<8x512xf32> to vector<8x128xf32>
    %356 = arith.negf %355 : vector<8x128xf32>
    %357 = math.exp %356 : vector<8x128xf32>
    %cst_147 = arith.constant 1.000000e+00 : f32
    %358 = vector.broadcast %cst_147 : f32 to vector<8x128xf32>
    %359 = arith.addf %358, %357 : vector<8x128xf32>
    %360 = arith.divf %358, %359 : vector<8x128xf32>
    %361 = vector.extract_strided_slice %328 {offsets = [0, 128], sizes = [8, 128], strides = [1, 1]} : vector<8x512xf32> to vector<8x128xf32>
    %362 = arith.negf %361 : vector<8x128xf32>
    %363 = math.exp %362 : vector<8x128xf32>
    %cst_148 = arith.constant 1.000000e+00 : f32
    %364 = vector.broadcast %cst_148 : f32 to vector<8x128xf32>
    %365 = arith.addf %364, %363 : vector<8x128xf32>
    %366 = arith.divf %364, %365 : vector<8x128xf32>
    %367 = vector.extract_strided_slice %328 {offsets = [0, 256], sizes = [8, 128], strides = [1, 1]} : vector<8x512xf32> to vector<8x128xf32>
    %368 = math.tanh %367 : vector<8x128xf32>
    %369 = vector.extract_strided_slice %328 {offsets = [0, 384], sizes = [8, 128], strides = [1, 1]} : vector<8x512xf32> to vector<8x128xf32>
    %370 = arith.negf %369 : vector<8x128xf32>
    %371 = math.exp %370 : vector<8x128xf32>
    %cst_149 = arith.constant 1.000000e+00 : f32
    %372 = vector.broadcast %cst_149 : f32 to vector<8x128xf32>
    %373 = arith.addf %372, %371 : vector<8x128xf32>
    %374 = arith.divf %372, %373 : vector<8x128xf32>
    %c0_150 = arith.constant 0 : index
    %c128_151 = arith.constant 128 : index
    %375 = vector.load %arg7[%c0_150, %c128_151] : memref<8x256xf32, #tpu.memory_space<vmem>>, vector<8x128xf32>
    %376 = arith.mulf %366, %375 : vector<8x128xf32>
    %377 = arith.mulf %360, %368 : vector<8x128xf32>
    %378 = arith.addf %376, %377 : vector<8x128xf32>
    %379 = math.tanh %378 : vector<8x128xf32>
    %380 = arith.mulf %374, %379 : vector<8x128xf32>
    %c0_152 = arith.constant 0 : index
    %c0_153 = arith.constant 0 : index
    %381 = vector.load %arg7[%c0_152, %c0_153] : memref<8x256xf32, #tpu.memory_space<vmem>>, vector<8x128xf32>
    tpu.vector_store %arg7[%c0_152, %c0_153], %352 {strides = array<i32>} : memref<8x256xf32, #tpu.memory_space<vmem>>, vector<8x128xf32>,
    %c0_154 = arith.constant 0 : index
    %c128_155 = arith.constant 128 : index
    %382 = vector.load %arg7[%c0_154, %c128_155] : memref<8x256xf32, #tpu.memory_space<vmem>>, vector<8x128xf32>
    tpu.vector_store %arg7[%c0_154, %c128_155], %378 {strides = array<i32>} : memref<8x256xf32, #tpu.memory_space<vmem>>, vector<8x128xf32>,
    %c0_156 = arith.constant 0 : index
    %c0_157 = arith.constant 0 : index
    %383 = vector.load %arg6[%c0_156, %c0_157] : memref<8x256xf32, #tpu.memory_space<vmem>>, vector<8x128xf32>
    tpu.vector_store %arg6[%c0_156, %c0_157], %354 {strides = array<i32>} : memref<8x256xf32, #tpu.memory_space<vmem>>, vector<8x128xf32>,
    %c0_158 = arith.constant 0 : index
    %c128_159 = arith.constant 128 : index
    %384 = vector.load %arg6[%c0_158, %c128_159] : memref<8x256xf32, #tpu.memory_space<vmem>>, vector<8x128xf32>
    tpu.vector_store %arg6[%c0_158, %c128_159], %380 {strides = array<i32>} : memref<8x256xf32, #tpu.memory_space<vmem>>, vector<8x128xf32>,
    %385 = arith.truncf %354 : vector<8x128xf32> to vector<8x128xbf16>
    %c4_160 = arith.constant 4 : index
    %c0_161 = arith.constant 0 : index
    %c0_162 = arith.constant 0 : index
    %386 = vector.load %arg4[%c4_160, %c0_161, %c0_162] : memref<8x8x128xbf16, #tpu.memory_space<vmem>>, vector<1x8x128xbf16>
    %387 = vector.shape_cast %386 : vector<1x8x128xbf16> to vector<8x128xbf16>
    %388 = vector.shape_cast %385 : vector<8x128xbf16> to vector<1x8x128xbf16>
    tpu.vector_store %arg4[%c4_160, %c0_161, %c0_162], %388 {strides = array<i32>} : memref<8x8x128xbf16, #tpu.memory_space<vmem>>, vector<1x8x128xbf16>,
    %389 = arith.truncf %380 : vector<8x128xf32> to vector<8x128xbf16>
    %c3_163 = arith.constant 3 : index
    %c0_164 = arith.constant 0 : index
    %c0_165 = arith.constant 0 : index
    %390 = vector.load %arg5[%c3_163, %c0_164, %c0_165] : memref<8x8x128xbf16, #tpu.memory_space<vmem>>, vector<1x8x128xbf16>
    %391 = vector.shape_cast %390 : vector<1x8x128xbf16> to vector<8x128xbf16>
    %392 = vector.shape_cast %389 : vector<8x128xbf16> to vector<1x8x128xbf16>
    tpu.vector_store %arg5[%c3_163, %c0_164, %c0_165], %392 {strides = array<i32>} : memref<8x8x128xbf16, #tpu.memory_space<vmem>>, vector<1x8x128xbf16>,
    %c0_166 = arith.constant 0 : index
    %c0_167 = arith.constant 0 : index
    %393 = vector.load %arg6[%c0_166, %c0_167] : memref<8x256xf32, #tpu.memory_space<vmem>>, vector<8x256xf32>
    %394 = arith.truncf %393 : vector<8x256xf32> to vector<8x256xbf16>
    %c0_168 = arith.constant 0 : index
    %c0_169 = arith.constant 0 : index
    %395 = vector.load %arg3[%c0_168, %c0_169] : memref<256x1024xbf16, #tpu.memory_space<vmem>>, vector<256x1024xbf16>
    %cst_170 = arith.constant dense<0.000000e+00> : vector<8x1024xf32>
    %396 = tpu.matmul %394, %395, %cst_170 {dimension_numbers = #tpu.dot_dimension_numbers<[1], [0], [0], [1], [0, 0, 1, 1], [], []>} : vector<8x256xbf16>, vector<256x1024xbf16>, vector<8x1024xf32> -> vector<8x1024xf32>
    %397 = vector.extract_strided_slice %396 {offsets = [0, 0], sizes = [8, 512], strides = [1, 1]} : vector<8x1024xf32> to vector<8x512xf32>
    %398 = vector.extract_strided_slice %396 {offsets = [0, 512], sizes = [8, 512], strides = [1, 1]} : vector<8x1024xf32> to vector<8x512xf32>
    %c5_171 = arith.constant 5 : index
    %c0_172 = arith.constant 0 : index
    %c0_173 = arith.constant 0 : index
    %399 = vector.load %arg1[%c5_171, %c0_172, %c0_173] : memref<8x8x512xbf16, #tpu.memory_space<vmem>>, vector<1x8x512xbf16>
    %400 = vector.shape_cast %399 : vector<1x8x512xbf16> to vector<8x512xbf16>
    %401 = arith.extf %400 : vector<8x512xbf16> to vector<8x512xf32>
    %402 = arith.addf %401, %397 : vector<8x512xf32>
    %c2_174 = arith.constant 2 : index
    %c0_175 = arith.constant 0 : index
    %c0_176 = arith.constant 0 : index
    %403 = vector.load %arg2[%c2_174, %c0_175, %c0_176] : memref<8x8x512xbf16, #tpu.memory_space<vmem>>, vector<1x8x512xbf16>
    %404 = vector.shape_cast %403 : vector<1x8x512xbf16> to vector<8x512xbf16>
    %405 = arith.extf %404 : vector<8x512xbf16> to vector<8x512xf32>
    %406 = arith.addf %405, %398 : vector<8x512xf32>
    %407 = vector.extract_strided_slice %402 {offsets = [0, 0], sizes = [8, 128], strides = [1, 1]} : vector<8x512xf32> to vector<8x128xf32>
    %408 = arith.negf %407 : vector<8x128xf32>
    %409 = math.exp %408 : vector<8x128xf32>
    %cst_177 = arith.constant 1.000000e+00 : f32
    %410 = vector.broadcast %cst_177 : f32 to vector<8x128xf32>
    %411 = arith.addf %410, %409 : vector<8x128xf32>
    %412 = arith.divf %410, %411 : vector<8x128xf32>
    %413 = vector.extract_strided_slice %402 {offsets = [0, 128], sizes = [8, 128], strides = [1, 1]} : vector<8x512xf32> to vector<8x128xf32>
    %414 = arith.negf %413 : vector<8x128xf32>
    %415 = math.exp %414 : vector<8x128xf32>
    %cst_178 = arith.constant 1.000000e+00 : f32
    %416 = vector.broadcast %cst_178 : f32 to vector<8x128xf32>
    %417 = arith.addf %416, %415 : vector<8x128xf32>
    %418 = arith.divf %416, %417 : vector<8x128xf32>
    %419 = vector.extract_strided_slice %402 {offsets = [0, 256], sizes = [8, 128], strides = [1, 1]} : vector<8x512xf32> to vector<8x128xf32>
    %420 = math.tanh %419 : vector<8x128xf32>
    %421 = vector.extract_strided_slice %402 {offsets = [0, 384], sizes = [8, 128], strides = [1, 1]} : vector<8x512xf32> to vector<8x128xf32>
    %422 = arith.negf %421 : vector<8x128xf32>
    %423 = math.exp %422 : vector<8x128xf32>
    %cst_179 = arith.constant 1.000000e+00 : f32
    %424 = vector.broadcast %cst_179 : f32 to vector<8x128xf32>
    %425 = arith.addf %424, %423 : vector<8x128xf32>
    %426 = arith.divf %424, %425 : vector<8x128xf32>
    %c0_180 = arith.constant 0 : index
    %c0_181 = arith.constant 0 : index
    %427 = vector.load %arg7[%c0_180, %c0_181] : memref<8x256xf32, #tpu.memory_space<vmem>>, vector<8x128xf32>
    %428 = arith.mulf %418, %427 : vector<8x128xf32>
    %429 = arith.mulf %412, %420 : vector<8x128xf32>
    %430 = arith.addf %428, %429 : vector<8x128xf32>
    %431 = math.tanh %430 : vector<8x128xf32>
    %432 = arith.mulf %426, %431 : vector<8x128xf32>
    %433 = vector.extract_strided_slice %406 {offsets = [0, 0], sizes = [8, 128], strides = [1, 1]} : vector<8x512xf32> to vector<8x128xf32>
    %434 = arith.negf %433 : vector<8x128xf32>
    %435 = math.exp %434 : vector<8x128xf32>
    %cst_182 = arith.constant 1.000000e+00 : f32
    %436 = vector.broadcast %cst_182 : f32 to vector<8x128xf32>
    %437 = arith.addf %436, %435 : vector<8x128xf32>
    %438 = arith.divf %436, %437 : vector<8x128xf32>
    %439 = vector.extract_strided_slice %406 {offsets = [0, 128], sizes = [8, 128], strides = [1, 1]} : vector<8x512xf32> to vector<8x128xf32>
    %440 = arith.negf %439 : vector<8x128xf32>
    %441 = math.exp %440 : vector<8x128xf32>
    %cst_183 = arith.constant 1.000000e+00 : f32
    %442 = vector.broadcast %cst_183 : f32 to vector<8x128xf32>
    %443 = arith.addf %442, %441 : vector<8x128xf32>
    %444 = arith.divf %442, %443 : vector<8x128xf32>
    %445 = vector.extract_strided_slice %406 {offsets = [0, 256], sizes = [8, 128], strides = [1, 1]} : vector<8x512xf32> to vector<8x128xf32>
    %446 = math.tanh %445 : vector<8x128xf32>
    %447 = vector.extract_strided_slice %406 {offsets = [0, 384], sizes = [8, 128], strides = [1, 1]} : vector<8x512xf32> to vector<8x128xf32>
    %448 = arith.negf %447 : vector<8x128xf32>
    %449 = math.exp %448 : vector<8x128xf32>
    %cst_184 = arith.constant 1.000000e+00 : f32
    %450 = vector.broadcast %cst_184 : f32 to vector<8x128xf32>
    %451 = arith.addf %450, %449 : vector<8x128xf32>
    %452 = arith.divf %450, %451 : vector<8x128xf32>
    %c0_185 = arith.constant 0 : index
    %c128_186 = arith.constant 128 : index
    %453 = vector.load %arg7[%c0_185, %c128_186] : memref<8x256xf32, #tpu.memory_space<vmem>>, vector<8x128xf32>
    %454 = arith.mulf %444, %453 : vector<8x128xf32>
    %455 = arith.mulf %438, %446 : vector<8x128xf32>
    %456 = arith.addf %454, %455 : vector<8x128xf32>
    %457 = math.tanh %456 : vector<8x128xf32>
    %458 = arith.mulf %452, %457 : vector<8x128xf32>
    %c0_187 = arith.constant 0 : index
    %c0_188 = arith.constant 0 : index
    %459 = vector.load %arg7[%c0_187, %c0_188] : memref<8x256xf32, #tpu.memory_space<vmem>>, vector<8x128xf32>
    tpu.vector_store %arg7[%c0_187, %c0_188], %430 {strides = array<i32>} : memref<8x256xf32, #tpu.memory_space<vmem>>, vector<8x128xf32>,
    %c0_189 = arith.constant 0 : index
    %c128_190 = arith.constant 128 : index
    %460 = vector.load %arg7[%c0_189, %c128_190] : memref<8x256xf32, #tpu.memory_space<vmem>>, vector<8x128xf32>
    tpu.vector_store %arg7[%c0_189, %c128_190], %456 {strides = array<i32>} : memref<8x256xf32, #tpu.memory_space<vmem>>, vector<8x128xf32>,
    %c0_191 = arith.constant 0 : index
    %c0_192 = arith.constant 0 : index
    %461 = vector.load %arg6[%c0_191, %c0_192] : memref<8x256xf32, #tpu.memory_space<vmem>>, vector<8x128xf32>
    tpu.vector_store %arg6[%c0_191, %c0_192], %432 {strides = array<i32>} : memref<8x256xf32, #tpu.memory_space<vmem>>, vector<8x128xf32>,
    %c0_193 = arith.constant 0 : index
    %c128_194 = arith.constant 128 : index
    %462 = vector.load %arg6[%c0_193, %c128_194] : memref<8x256xf32, #tpu.memory_space<vmem>>, vector<8x128xf32>
    tpu.vector_store %arg6[%c0_193, %c128_194], %458 {strides = array<i32>} : memref<8x256xf32, #tpu.memory_space<vmem>>, vector<8x128xf32>,
    %463 = arith.truncf %432 : vector<8x128xf32> to vector<8x128xbf16>
    %c5_195 = arith.constant 5 : index
    %c0_196 = arith.constant 0 : index
    %c0_197 = arith.constant 0 : index
    %464 = vector.load %arg4[%c5_195, %c0_196, %c0_197] : memref<8x8x128xbf16, #tpu.memory_space<vmem>>, vector<1x8x128xbf16>
    %465 = vector.shape_cast %464 : vector<1x8x128xbf16> to vector<8x128xbf16>
    %466 = vector.shape_cast %463 : vector<8x128xbf16> to vector<1x8x128xbf16>
    tpu.vector_store %arg4[%c5_195, %c0_196, %c0_197], %466 {strides = array<i32>} : memref<8x8x128xbf16, #tpu.memory_space<vmem>>, vector<1x8x128xbf16>,
    %467 = arith.truncf %458 : vector<8x128xf32> to vector<8x128xbf16>
    %c2_198 = arith.constant 2 : index
    %c0_199 = arith.constant 0 : index
    %c0_200 = arith.constant 0 : index
    %468 = vector.load %arg5[%c2_198, %c0_199, %c0_200] : memref<8x8x128xbf16, #tpu.memory_space<vmem>>, vector<1x8x128xbf16>
    %469 = vector.shape_cast %468 : vector<1x8x128xbf16> to vector<8x128xbf16>
    %470 = vector.shape_cast %467 : vector<8x128xbf16> to vector<1x8x128xbf16>
    tpu.vector_store %arg5[%c2_198, %c0_199, %c0_200], %470 {strides = array<i32>} : memref<8x8x128xbf16, #tpu.memory_space<vmem>>, vector<1x8x128xbf16>,
    %c0_201 = arith.constant 0 : index
    %c0_202 = arith.constant 0 : index
    %471 = vector.load %arg6[%c0_201, %c0_202] : memref<8x256xf32, #tpu.memory_space<vmem>>, vector<8x256xf32>
    %472 = arith.truncf %471 : vector<8x256xf32> to vector<8x256xbf16>
    %c0_203 = arith.constant 0 : index
    %c0_204 = arith.constant 0 : index
    %473 = vector.load %arg3[%c0_203, %c0_204] : memref<256x1024xbf16, #tpu.memory_space<vmem>>, vector<256x1024xbf16>
    %cst_205 = arith.constant dense<0.000000e+00> : vector<8x1024xf32>
    %474 = tpu.matmul %472, %473, %cst_205 {dimension_numbers = #tpu.dot_dimension_numbers<[1], [0], [0], [1], [0, 0, 1, 1], [], []>} : vector<8x256xbf16>, vector<256x1024xbf16>, vector<8x1024xf32> -> vector<8x1024xf32>
    %475 = vector.extract_strided_slice %474 {offsets = [0, 0], sizes = [8, 512], strides = [1, 1]} : vector<8x1024xf32> to vector<8x512xf32>
    %476 = vector.extract_strided_slice %474 {offsets = [0, 512], sizes = [8, 512], strides = [1, 1]} : vector<8x1024xf32> to vector<8x512xf32>
    %c6_206 = arith.constant 6 : index
    %c0_207 = arith.constant 0 : index
    %c0_208 = arith.constant 0 : index
    %477 = vector.load %arg1[%c6_206, %c0_207, %c0_208] : memref<8x8x512xbf16, #tpu.memory_space<vmem>>, vector<1x8x512xbf16>
    %478 = vector.shape_cast %477 : vector<1x8x512xbf16> to vector<8x512xbf16>
    %479 = arith.extf %478 : vector<8x512xbf16> to vector<8x512xf32>
    %480 = arith.addf %479, %475 : vector<8x512xf32>
    %c1_209 = arith.constant 1 : index
    %c0_210 = arith.constant 0 : index
    %c0_211 = arith.constant 0 : index
    %481 = vector.load %arg2[%c1_209, %c0_210, %c0_211] : memref<8x8x512xbf16, #tpu.memory_space<vmem>>, vector<1x8x512xbf16>
    %482 = vector.shape_cast %481 : vector<1x8x512xbf16> to vector<8x512xbf16>
    %483 = arith.extf %482 : vector<8x512xbf16> to vector<8x512xf32>
    %484 = arith.addf %483, %476 : vector<8x512xf32>
    %485 = vector.extract_strided_slice %480 {offsets = [0, 0], sizes = [8, 128], strides = [1, 1]} : vector<8x512xf32> to vector<8x128xf32>
    %486 = arith.negf %485 : vector<8x128xf32>
    %487 = math.exp %486 : vector<8x128xf32>
    %cst_212 = arith.constant 1.000000e+00 : f32
    %488 = vector.broadcast %cst_212 : f32 to vector<8x128xf32>
    %489 = arith.addf %488, %487 : vector<8x128xf32>
    %490 = arith.divf %488, %489 : vector<8x128xf32>
    %491 = vector.extract_strided_slice %480 {offsets = [0, 128], sizes = [8, 128], strides = [1, 1]} : vector<8x512xf32> to vector<8x128xf32>
    %492 = arith.negf %491 : vector<8x128xf32>
    %493 = math.exp %492 : vector<8x128xf32>
    %cst_213 = arith.constant 1.000000e+00 : f32
    %494 = vector.broadcast %cst_213 : f32 to vector<8x128xf32>
    %495 = arith.addf %494, %493 : vector<8x128xf32>
    %496 = arith.divf %494, %495 : vector<8x128xf32>
    %497 = vector.extract_strided_slice %480 {offsets = [0, 256], sizes = [8, 128], strides = [1, 1]} : vector<8x512xf32> to vector<8x128xf32>
    %498 = math.tanh %497 : vector<8x128xf32>
    %499 = vector.extract_strided_slice %480 {offsets = [0, 384], sizes = [8, 128], strides = [1, 1]} : vector<8x512xf32> to vector<8x128xf32>
    %500 = arith.negf %499 : vector<8x128xf32>
    %501 = math.exp %500 : vector<8x128xf32>
    %cst_214 = arith.constant 1.000000e+00 : f32
    %502 = vector.broadcast %cst_214 : f32 to vector<8x128xf32>
    %503 = arith.addf %502, %501 : vector<8x128xf32>
    %504 = arith.divf %502, %503 : vector<8x128xf32>
    %c0_215 = arith.constant 0 : index
    %c0_216 = arith.constant 0 : index
    %505 = vector.load %arg7[%c0_215, %c0_216] : memref<8x256xf32, #tpu.memory_space<vmem>>, vector<8x128xf32>
    %506 = arith.mulf %496, %505 : vector<8x128xf32>
    %507 = arith.mulf %490, %498 : vector<8x128xf32>
    %508 = arith.addf %506, %507 : vector<8x128xf32>
    %509 = math.tanh %508 : vector<8x128xf32>
    %510 = arith.mulf %504, %509 : vector<8x128xf32>
    %511 = vector.extract_strided_slice %484 {offsets = [0, 0], sizes = [8, 128], strides = [1, 1]} : vector<8x512xf32> to vector<8x128xf32>
    %512 = arith.negf %511 : vector<8x128xf32>
    %513 = math.exp %512 : vector<8x128xf32>
    %cst_217 = arith.constant 1.000000e+00 : f32
    %514 = vector.broadcast %cst_217 : f32 to vector<8x128xf32>
    %515 = arith.addf %514, %513 : vector<8x128xf32>
    %516 = arith.divf %514, %515 : vector<8x128xf32>
    %517 = vector.extract_strided_slice %484 {offsets = [0, 128], sizes = [8, 128], strides = [1, 1]} : vector<8x512xf32> to vector<8x128xf32>
    %518 = arith.negf %517 : vector<8x128xf32>
    %519 = math.exp %518 : vector<8x128xf32>
    %cst_218 = arith.constant 1.000000e+00 : f32
    %520 = vector.broadcast %cst_218 : f32 to vector<8x128xf32>
    %521 = arith.addf %520, %519 : vector<8x128xf32>
    %522 = arith.divf %520, %521 : vector<8x128xf32>
    %523 = vector.extract_strided_slice %484 {offsets = [0, 256], sizes = [8, 128], strides = [1, 1]} : vector<8x512xf32> to vector<8x128xf32>
    %524 = math.tanh %523 : vector<8x128xf32>
    %525 = vector.extract_strided_slice %484 {offsets = [0, 384], sizes = [8, 128], strides = [1, 1]} : vector<8x512xf32> to vector<8x128xf32>
    %526 = arith.negf %525 : vector<8x128xf32>
    %527 = math.exp %526 : vector<8x128xf32>
    %cst_219 = arith.constant 1.000000e+00 : f32
    %528 = vector.broadcast %cst_219 : f32 to vector<8x128xf32>
    %529 = arith.addf %528, %527 : vector<8x128xf32>
    %530 = arith.divf %528, %529 : vector<8x128xf32>
    %c0_220 = arith.constant 0 : index
    %c128_221 = arith.constant 128 : index
    %531 = vector.load %arg7[%c0_220, %c128_221] : memref<8x256xf32, #tpu.memory_space<vmem>>, vector<8x128xf32>
    %532 = arith.mulf %522, %531 : vector<8x128xf32>
    %533 = arith.mulf %516, %524 : vector<8x128xf32>
    %534 = arith.addf %532, %533 : vector<8x128xf32>
    %535 = math.tanh %534 : vector<8x128xf32>
    %536 = arith.mulf %530, %535 : vector<8x128xf32>
    %c0_222 = arith.constant 0 : index
    %c0_223 = arith.constant 0 : index
    %537 = vector.load %arg7[%c0_222, %c0_223] : memref<8x256xf32, #tpu.memory_space<vmem>>, vector<8x128xf32>
    tpu.vector_store %arg7[%c0_222, %c0_223], %508 {strides = array<i32>} : memref<8x256xf32, #tpu.memory_space<vmem>>, vector<8x128xf32>,
    %c0_224 = arith.constant 0 : index
    %c128_225 = arith.constant 128 : index
    %538 = vector.load %arg7[%c0_224, %c128_225] : memref<8x256xf32, #tpu.memory_space<vmem>>, vector<8x128xf32>
    tpu.vector_store %arg7[%c0_224, %c128_225], %534 {strides = array<i32>} : memref<8x256xf32, #tpu.memory_space<vmem>>, vector<8x128xf32>,
    %c0_226 = arith.constant 0 : index
    %c0_227 = arith.constant 0 : index
    %539 = vector.load %arg6[%c0_226, %c0_227] : memref<8x256xf32, #tpu.memory_space<vmem>>, vector<8x128xf32>
    tpu.vector_store %arg6[%c0_226, %c0_227], %510 {strides = array<i32>} : memref<8x256xf32, #tpu.memory_space<vmem>>, vector<8x128xf32>,
    %c0_228 = arith.constant 0 : index
    %c128_229 = arith.constant 128 : index
    %540 = vector.load %arg6[%c0_228, %c128_229] : memref<8x256xf32, #tpu.memory_space<vmem>>, vector<8x128xf32>
    tpu.vector_store %arg6[%c0_228, %c128_229], %536 {strides = array<i32>} : memref<8x256xf32, #tpu.memory_space<vmem>>, vector<8x128xf32>,
    %541 = arith.truncf %510 : vector<8x128xf32> to vector<8x128xbf16>
    %c6_230 = arith.constant 6 : index
    %c0_231 = arith.constant 0 : index
    %c0_232 = arith.constant 0 : index
    %542 = vector.load %arg4[%c6_230, %c0_231, %c0_232] : memref<8x8x128xbf16, #tpu.memory_space<vmem>>, vector<1x8x128xbf16>
    %543 = vector.shape_cast %542 : vector<1x8x128xbf16> to vector<8x128xbf16>
    %544 = vector.shape_cast %541 : vector<8x128xbf16> to vector<1x8x128xbf16>
    tpu.vector_store %arg4[%c6_230, %c0_231, %c0_232], %544 {strides = array<i32>} : memref<8x8x128xbf16, #tpu.memory_space<vmem>>, vector<1x8x128xbf16>,
    %545 = arith.truncf %536 : vector<8x128xf32> to vector<8x128xbf16>
    %c1_233 = arith.constant 1 : index
    %c0_234 = arith.constant 0 : index
    %c0_235 = arith.constant 0 : index
    %546 = vector.load %arg5[%c1_233, %c0_234, %c0_235] : memref<8x8x128xbf16, #tpu.memory_space<vmem>>, vector<1x8x128xbf16>
    %547 = vector.shape_cast %546 : vector<1x8x128xbf16> to vector<8x128xbf16>
    %548 = vector.shape_cast %545 : vector<8x128xbf16> to vector<1x8x128xbf16>
    tpu.vector_store %arg5[%c1_233, %c0_234, %c0_235], %548 {strides = array<i32>} : memref<8x8x128xbf16, #tpu.memory_space<vmem>>, vector<1x8x128xbf16>,
    %c0_236 = arith.constant 0 : index
    %c0_237 = arith.constant 0 : index
    %549 = vector.load %arg6[%c0_236, %c0_237] : memref<8x256xf32, #tpu.memory_space<vmem>>, vector<8x256xf32>
    %550 = arith.truncf %549 : vector<8x256xf32> to vector<8x256xbf16>
    %c0_238 = arith.constant 0 : index
    %c0_239 = arith.constant 0 : index
    %551 = vector.load %arg3[%c0_238, %c0_239] : memref<256x1024xbf16, #tpu.memory_space<vmem>>, vector<256x1024xbf16>
    %cst_240 = arith.constant dense<0.000000e+00> : vector<8x1024xf32>
    %552 = tpu.matmul %550, %551, %cst_240 {dimension_numbers = #tpu.dot_dimension_numbers<[1], [0], [0], [1], [0, 0, 1, 1], [], []>} : vector<8x256xbf16>, vector<256x1024xbf16>, vector<8x1024xf32> -> vector<8x1024xf32>
    %553 = vector.extract_strided_slice %552 {offsets = [0, 0], sizes = [8, 512], strides = [1, 1]} : vector<8x1024xf32> to vector<8x512xf32>
    %554 = vector.extract_strided_slice %552 {offsets = [0, 512], sizes = [8, 512], strides = [1, 1]} : vector<8x1024xf32> to vector<8x512xf32>
    %c7_241 = arith.constant 7 : index
    %c0_242 = arith.constant 0 : index
    %c0_243 = arith.constant 0 : index
    %555 = vector.load %arg1[%c7_241, %c0_242, %c0_243] : memref<8x8x512xbf16, #tpu.memory_space<vmem>>, vector<1x8x512xbf16>
    %556 = vector.shape_cast %555 : vector<1x8x512xbf16> to vector<8x512xbf16>
    %557 = arith.extf %556 : vector<8x512xbf16> to vector<8x512xf32>
    %558 = arith.addf %557, %553 : vector<8x512xf32>
    %c0_244 = arith.constant 0 : index
    %c0_245 = arith.constant 0 : index
    %c0_246 = arith.constant 0 : index
    %559 = vector.load %arg2[%c0_244, %c0_245, %c0_246] : memref<8x8x512xbf16, #tpu.memory_space<vmem>>, vector<1x8x512xbf16>
    %560 = vector.shape_cast %559 : vector<1x8x512xbf16> to vector<8x512xbf16>
    %561 = arith.extf %560 : vector<8x512xbf16> to vector<8x512xf32>
    %562 = arith.addf %561, %554 : vector<8x512xf32>
    %563 = vector.extract_strided_slice %558 {offsets = [0, 0], sizes = [8, 128], strides = [1, 1]} : vector<8x512xf32> to vector<8x128xf32>
    %564 = arith.negf %563 : vector<8x128xf32>
    %565 = math.exp %564 : vector<8x128xf32>
    %cst_247 = arith.constant 1.000000e+00 : f32
    %566 = vector.broadcast %cst_247 : f32 to vector<8x128xf32>
    %567 = arith.addf %566, %565 : vector<8x128xf32>
    %568 = arith.divf %566, %567 : vector<8x128xf32>
    %569 = vector.extract_strided_slice %558 {offsets = [0, 128], sizes = [8, 128], strides = [1, 1]} : vector<8x512xf32> to vector<8x128xf32>
    %570 = arith.negf %569 : vector<8x128xf32>
    %571 = math.exp %570 : vector<8x128xf32>
    %cst_248 = arith.constant 1.000000e+00 : f32
    %572 = vector.broadcast %cst_248 : f32 to vector<8x128xf32>
    %573 = arith.addf %572, %571 : vector<8x128xf32>
    %574 = arith.divf %572, %573 : vector<8x128xf32>
    %575 = vector.extract_strided_slice %558 {offsets = [0, 256], sizes = [8, 128], strides = [1, 1]} : vector<8x512xf32> to vector<8x128xf32>
    %576 = math.tanh %575 : vector<8x128xf32>
    %577 = vector.extract_strided_slice %558 {offsets = [0, 384], sizes = [8, 128], strides = [1, 1]} : vector<8x512xf32> to vector<8x128xf32>
    %578 = arith.negf %577 : vector<8x128xf32>
    %579 = math.exp %578 : vector<8x128xf32>
    %cst_249 = arith.constant 1.000000e+00 : f32
    %580 = vector.broadcast %cst_249 : f32 to vector<8x128xf32>
    %581 = arith.addf %580, %579 : vector<8x128xf32>
    %582 = arith.divf %580, %581 : vector<8x128xf32>
    %c0_250 = arith.constant 0 : index
    %c0_251 = arith.constant 0 : index
    %583 = vector.load %arg7[%c0_250, %c0_251] : memref<8x256xf32, #tpu.memory_space<vmem>>, vector<8x128xf32>
    %584 = arith.mulf %574, %583 : vector<8x128xf32>
    %585 = arith.mulf %568, %576 : vector<8x128xf32>
    %586 = arith.addf %584, %585 : vector<8x128xf32>
    %587 = math.tanh %586 : vector<8x128xf32>
    %588 = arith.mulf %582, %587 : vector<8x128xf32>
    %589 = vector.extract_strided_slice %562 {offsets = [0, 0], sizes = [8, 128], strides = [1, 1]} : vector<8x512xf32> to vector<8x128xf32>
    %590 = arith.negf %589 : vector<8x128xf32>
    %591 = math.exp %590 : vector<8x128xf32>
    %cst_252 = arith.constant 1.000000e+00 : f32
    %592 = vector.broadcast %cst_252 : f32 to vector<8x128xf32>
    %593 = arith.addf %592, %591 : vector<8x128xf32>
    %594 = arith.divf %592, %593 : vector<8x128xf32>
    %595 = vector.extract_strided_slice %562 {offsets = [0, 128], sizes = [8, 128], strides = [1, 1]} : vector<8x512xf32> to vector<8x128xf32>
    %596 = arith.negf %595 : vector<8x128xf32>
    %597 = math.exp %596 : vector<8x128xf32>
    %cst_253 = arith.constant 1.000000e+00 : f32
    %598 = vector.broadcast %cst_253 : f32 to vector<8x128xf32>
    %599 = arith.addf %598, %597 : vector<8x128xf32>
    %600 = arith.divf %598, %599 : vector<8x128xf32>
    %601 = vector.extract_strided_slice %562 {offsets = [0, 256], sizes = [8, 128], strides = [1, 1]} : vector<8x512xf32> to vector<8x128xf32>
    %602 = math.tanh %601 : vector<8x128xf32>
    %603 = vector.extract_strided_slice %562 {offsets = [0, 384], sizes = [8, 128], strides = [1, 1]} : vector<8x512xf32> to vector<8x128xf32>
    %604 = arith.negf %603 : vector<8x128xf32>
    %605 = math.exp %604 : vector<8x128xf32>
    %cst_254 = arith.constant 1.000000e+00 : f32
    %606 = vector.broadcast %cst_254 : f32 to vector<8x128xf32>
    %607 = arith.addf %606, %605 : vector<8x128xf32>
    %608 = arith.divf %606, %607 : vector<8x128xf32>
    %c0_255 = arith.constant 0 : index
    %c128_256 = arith.constant 128 : index
    %609 = vector.load %arg7[%c0_255, %c128_256] : memref<8x256xf32, #tpu.memory_space<vmem>>, vector<8x128xf32>
    %610 = arith.mulf %600, %609 : vector<8x128xf32>
    %611 = arith.mulf %594, %602 : vector<8x128xf32>
    %612 = arith.addf %610, %611 : vector<8x128xf32>
    %613 = math.tanh %612 : vector<8x128xf32>
    %614 = arith.mulf %608, %613 : vector<8x128xf32>
    %c0_257 = arith.constant 0 : index
    %c0_258 = arith.constant 0 : index
    %615 = vector.load %arg7[%c0_257, %c0_258] : memref<8x256xf32, #tpu.memory_space<vmem>>, vector<8x128xf32>
    tpu.vector_store %arg7[%c0_257, %c0_258], %586 {strides = array<i32>} : memref<8x256xf32, #tpu.memory_space<vmem>>, vector<8x128xf32>,
    %c0_259 = arith.constant 0 : index
    %c128_260 = arith.constant 128 : index
    %616 = vector.load %arg7[%c0_259, %c128_260] : memref<8x256xf32, #tpu.memory_space<vmem>>, vector<8x128xf32>
    tpu.vector_store %arg7[%c0_259, %c128_260], %612 {strides = array<i32>} : memref<8x256xf32, #tpu.memory_space<vmem>>, vector<8x128xf32>,
    %c0_261 = arith.constant 0 : index
    %c0_262 = arith.constant 0 : index
    %617 = vector.load %arg6[%c0_261, %c0_262] : memref<8x256xf32, #tpu.memory_space<vmem>>, vector<8x128xf32>
    tpu.vector_store %arg6[%c0_261, %c0_262], %588 {strides = array<i32>} : memref<8x256xf32, #tpu.memory_space<vmem>>, vector<8x128xf32>,
    %c0_263 = arith.constant 0 : index
    %c128_264 = arith.constant 128 : index
    %618 = vector.load %arg6[%c0_263, %c128_264] : memref<8x256xf32, #tpu.memory_space<vmem>>, vector<8x128xf32>
    tpu.vector_store %arg6[%c0_263, %c128_264], %614 {strides = array<i32>} : memref<8x256xf32, #tpu.memory_space<vmem>>, vector<8x128xf32>,
    %619 = arith.truncf %588 : vector<8x128xf32> to vector<8x128xbf16>
    %c7_265 = arith.constant 7 : index
    %c0_266 = arith.constant 0 : index
    %c0_267 = arith.constant 0 : index
    %620 = vector.load %arg4[%c7_265, %c0_266, %c0_267] : memref<8x8x128xbf16, #tpu.memory_space<vmem>>, vector<1x8x128xbf16>
    %621 = vector.shape_cast %620 : vector<1x8x128xbf16> to vector<8x128xbf16>
    %622 = vector.shape_cast %619 : vector<8x128xbf16> to vector<1x8x128xbf16>
    tpu.vector_store %arg4[%c7_265, %c0_266, %c0_267], %622 {strides = array<i32>} : memref<8x8x128xbf16, #tpu.memory_space<vmem>>, vector<1x8x128xbf16>,
    %623 = arith.truncf %614 : vector<8x128xf32> to vector<8x128xbf16>
    %c0_268 = arith.constant 0 : index
    %c0_269 = arith.constant 0 : index
    %c0_270 = arith.constant 0 : index
    %624 = vector.load %arg5[%c0_268, %c0_269, %c0_270] : memref<8x8x128xbf16, #tpu.memory_space<vmem>>, vector<1x8x128xbf16>
    %625 = vector.shape_cast %624 : vector<1x8x128xbf16> to vector<8x128xbf16>
    %626 = vector.shape_cast %623 : vector<8x128xbf16> to vector<1x8x128xbf16>
    tpu.vector_store %arg5[%c0_268, %c0_269, %c0_270], %626 {strides = array<i32>} : memref<8x8x128xbf16, #tpu.memory_space<vmem>>, vector<1x8x128xbf16>,
    return
  }
  func.func @transform_0(%arg0: i32) -> (i32, i32, i32) {
    %c0_i32 = arith.constant 0 : i32
    %c0_i32_0 = arith.constant 0 : i32
    %c0_i32_1 = arith.constant 0 : i32
    return %arg0, %c0_i32, %c0_i32_0 : i32, i32, i32
  }
  func.func @transform_1(%arg0: i32) -> (i32, i32, i32) {
    %c0_i32 = arith.constant 0 : i32
    %0 = arith.subi %c0_i32, %arg0 : i32
    %c0_i32_0 = arith.constant 0 : i32
    %c1_i32 = arith.constant 1 : i32
    %c0_i32_1 = arith.constant 0 : i32
    return %0, %c0_i32_0, %c1_i32 : i32, i32, i32
  }
  func.func @transform_2(%arg0: i32) -> (i32, i32) {
    %c0_i32 = arith.constant 0 : i32
    %c0_i32_0 = arith.constant 0 : i32
    %c0_i32_1 = arith.constant 0 : i32
    return %c0_i32, %c0_i32_0 : i32, i32
  }
  func.func @transform_3(%arg0: i32) -> (i32, i32, i32) {
    %c0_i32 = arith.constant 0 : i32
    %c0_i32_0 = arith.constant 0 : i32
    %c0_i32_1 = arith.constant 0 : i32
    return %arg0, %c0_i32, %c0_i32_0 : i32, i32, i32
  }
  func.func @transform_4(%arg0: i32) -> (i32, i32, i32) {
    %c0_i32 = arith.constant 0 : i32
    %0 = arith.subi %c0_i32, %arg0 : i32
    %c0_i32_0 = arith.constant 0 : i32
    %c0_i32_1 = arith.constant 0 : i32
    %c0_i32_2 = arith.constant 0 : i32
    return %0, %c0_i32_0, %c0_i32_1 : i32, i32, i32
  }
}

module attributes {stable_mosaic.version = 11 : i64} {
  func.func @fc2_kernel(%arg0: i32, %arg1: memref<64x128xbf16, #tpu.memory_space<vmem>>, %arg2: memref<64x128xbf16, #tpu.memory_space<vmem>>, %arg3: memref<128x128xbf16, #tpu.memory_space<vmem>>, %arg4: memref<128x128xbf16, #tpu.memory_space<vmem>>, %arg5: memref<1x128xf32, #tpu.memory_space<vmem>>, %arg6: memref<64x128xf32, #tpu.memory_space<vmem>>) attributes {dimension_semantics = [#tpu.dimension_semantics<parallel>], iteration_bounds = array<i64: 1>, scalar_prefetch = 0 : i64, scratch_operands = 0 : i64, tpu.core_type = #tpu.core_type<tc>, window_params = [{transform_indices = @transform_0, window_bounds = array<i64: 64, 128>}, {transform_indices = @transform_1, window_bounds = array<i64: 64, 128>}, {pipeline_mode = #tpu.pipeline_mode<synchronous>, transform_indices = @transform_2, window_bounds = array<i64: 128, 128>}, {pipeline_mode = #tpu.pipeline_mode<synchronous>, transform_indices = @transform_3, window_bounds = array<i64: 128, 128>}, {pipeline_mode = #tpu.pipeline_mode<synchronous>, transform_indices = @transform_4, window_bounds = array<i64: 1, 128>}, {transform_indices = @transform_5, window_bounds = array<i64: 64, 128>}]} {
    %c0 = arith.constant 0 : index
    %c0_0 = arith.constant 0 : index
    %0 = vector.load %arg1[%c0, %c0_0] : memref<64x128xbf16, #tpu.memory_space<vmem>>, vector<64x128xbf16>
    %c0_1 = arith.constant 0 : index
    %c0_2 = arith.constant 0 : index
    %1 = vector.load %arg3[%c0_1, %c0_2] : memref<128x128xbf16, #tpu.memory_space<vmem>>, vector<128x128xbf16>
    %cst = arith.constant dense<0.000000e+00> : vector<64x128xf32>
    %2 = tpu.matmul %0, %1, %cst {dimension_numbers = #tpu.dot_dimension_numbers<[1], [0], [0], [1], [0, 0, 1, 1], [], []>} : vector<64x128xbf16>, vector<128x128xbf16>, vector<64x128xf32> -> vector<64x128xf32>
    %c0_3 = arith.constant 0 : index
    %c0_4 = arith.constant 0 : index
    %3 = vector.load %arg2[%c0_3, %c0_4] : memref<64x128xbf16, #tpu.memory_space<vmem>>, vector<64x128xbf16>
    %c0_5 = arith.constant 0 : index
    %c0_6 = arith.constant 0 : index
    %4 = vector.load %arg4[%c0_5, %c0_6] : memref<128x128xbf16, #tpu.memory_space<vmem>>, vector<128x128xbf16>
    %cst_7 = arith.constant dense<0.000000e+00> : vector<64x128xf32>
    %5 = tpu.matmul %3, %4, %cst_7 {dimension_numbers = #tpu.dot_dimension_numbers<[1], [0], [0], [1], [0, 0, 1, 1], [], []>} : vector<64x128xbf16>, vector<128x128xbf16>, vector<64x128xf32> -> vector<64x128xf32>
    %6 = arith.addf %2, %5 : vector<64x128xf32>
    %c0_8 = arith.constant 0 : index
    %c0_9 = arith.constant 0 : index
    %7 = vector.load %arg5[%c0_8, %c0_9] : memref<1x128xf32, #tpu.memory_space<vmem>>, vector<1x128xf32>
    %8 = vector.broadcast %7 : vector<1x128xf32> to vector<64x128xf32>
    %9 = arith.addf %6, %8 : vector<64x128xf32>
    %c0_10 = arith.constant 0 : index
    %c0_11 = arith.constant 0 : index
    %10 = vector.load %arg6[%c0_10, %c0_11] : memref<64x128xf32, #tpu.memory_space<vmem>>, vector<64x128xf32>
    tpu.vector_store %arg6[%c0_10, %c0_11], %9 {strides = array<i32>} : memref<64x128xf32, #tpu.memory_space<vmem>>, vector<64x128xf32>,
    return
  }
  func.func @transform_0(%arg0: i32) -> (i32, i32) {
    %c0_i32 = arith.constant 0 : i32
    %c0_i32_0 = arith.constant 0 : i32
    return %arg0, %c0_i32 : i32, i32
  }
  func.func @transform_1(%arg0: i32) -> (i32, i32) {
    %c0_i32 = arith.constant 0 : i32
    %c0_i32_0 = arith.constant 0 : i32
    return %arg0, %c0_i32 : i32, i32
  }
  func.func @transform_2(%arg0: i32) -> (i32, i32) {
    %c0_i32 = arith.constant 0 : i32
    %c0_i32_0 = arith.constant 0 : i32
    %c0_i32_1 = arith.constant 0 : i32
    return %c0_i32, %c0_i32_0 : i32, i32
  }
  func.func @transform_3(%arg0: i32) -> (i32, i32) {
    %c0_i32 = arith.constant 0 : i32
    %c0_i32_0 = arith.constant 0 : i32
    %c0_i32_1 = arith.constant 0 : i32
    return %c0_i32, %c0_i32_0 : i32, i32
  }
  func.func @transform_4(%arg0: i32) -> (i32, i32) {
    %c0_i32 = arith.constant 0 : i32
    %c0_i32_0 = arith.constant 0 : i32
    %c0_i32_1 = arith.constant 0 : i32
    return %c0_i32, %c0_i32_0 : i32, i32
  }
  func.func @transform_5(%arg0: i32) -> (i32, i32) {
    %c0_i32 = arith.constant 0 : i32
    %c0_i32_0 = arith.constant 0 : i32
    return %arg0, %c0_i32 : i32, i32
  }
}

</mosaic_0001>

<bundles_post_ra>
// kernel: net_forward.5
= control target key start
LH: loop header
LB: loop body
LE: loop exit
PB: predicated region body
PF: predicated region fallthrough
CT: control target
= control target key end

     0   :  { %s628_s3 = inlined_call_operand.vmem [shape: bf16[128,128], index: 3, kind: input, shape index: {}]   ;;  %s629_s2 = inlined_call_operand.vmem [shape: bf16[128,128], index: 2, kind: input, shape index: {}]   ;;  %s630_s1 = inlined_call_operand.vmem [shape: bf16[64,128], index: 1, kind: input, shape index: {}]   ;;  %s631_s0 = inlined_call_operand.vmem [shape: bf16[64,128], index: 0, kind: input, shape index: {}]   ;;  %s632_s4 = inlined_call_operand.vmem [shape: f32[1,128], index: 4, kind: input, shape index: {}]   ;;  %s633_s5 = inlined_call_operand.vmem [shape: f32[64,128], index: 5, kind: output, shape index: {}]  }
   0x1   :  { %v475_v0 = vld [vmem:[%s628_s3] sm:$0xff]   ;;  %v477_v2 = vld [vmem:[%s628_s3 + $0x8] sm:$0xff]   ;;  %v479_v4 = vld [vmem:[%s628_s3 + $0x10] sm:$0xff]  }
   0x2   :  { %v476_v1 = vld [vmem:[%s629_s2] sm:$0xff]   ;;  %419 = vmatprep.subr.bf16.mxu1 %v475_v0  ;;  %v478_v3 = vld [vmem:[%s629_s2 + $0x8] sm:$0xff]   ;;  %v480_v5 = vld [vmem:[%s629_s2 + $0x10] sm:$0xff]  }
   0x3   :  { %443 = vmatprep.subr.bf16.mxu0 %v476_v1  ;;  %420 = vmatpush3.bf16.msra.mxu1 %v475_v0  ;;  %v481_v6 = vld [vmem:[%s628_s3 + $0x18] sm:$0xff]   ;;  %v483_v8 = vld [vmem:[%s628_s3 + $0x20] sm:$0xff]   ;;  %v485_v10 = vld [vmem:[%s628_s3 + $0x28] sm:$0xff]  }
   0x4   :  { %444 = vmatpush3.bf16.msra.mxu0 %v476_v1  ;;  %421 = vmatprep.subr.bf16.mxu1 %v477_v2  ;;  %v482_v7 = vld [vmem:[%s629_s2 + $0x18] sm:$0xff]   ;;  %v484_v9 = vld [vmem:[%s629_s2 + $0x20] sm:$0xff]   ;;  %v486_v11 = vld [vmem:[%s629_s2 + $0x28] sm:$0xff]  }
   0x5   :  { %445 = vmatprep.subr.bf16.mxu0 %v478_v3  ;;  %v491_v12 = vld [vmem:[%s630_s1] sm:$0xff]   ;;  %v487_v14 = vld [vmem:[%s628_s3 + $0x30] sm:$0xff]   ;;  %v489_v16 = vld [vmem:[%s628_s3 + $0x38] sm:$0xff]  }
   0x6   :  { %v492_v13 = vld [vmem:[%s631_s0] sm:$0xff]   ;;  %435 = vmatprep.mubr.bf16.mxu1 %v491_v12  ;;  %v488_v15 = vld [vmem:[%s629_s2 + $0x30] sm:$0xff]   ;;  %v490_v17 = vld [vmem:[%s629_s2 + $0x38] sm:$0xff]  }
   0x7   :  { %422 = vmatpush3.bf16.msra.mxu1 %v477_v2  ;;  %459 = vmatprep.mubr.bf16.mxu0 %v492_v13  ;;  %v493_v18 = vld [vmem:[%s630_s1 + $0x8] sm:$0xff]   ;;  %v495_v20 = vld [vmem:[%s630_s1 + $0x10] sm:$0xff]   ;;  %v497_v22 = vld [vmem:[%s630_s1 + $0x18] sm:$0xff]  }
   0x8   :  { %446 = vmatpush3.bf16.msra.mxu0 %v478_v3  ;;  %423 = vmatprep.subr.bf16.mxu1 %v479_v4  ;;  %v494_v19 = vld [vmem:[%s631_s0 + $0x8] sm:$0xff]   ;;  %v496_v21 = vld [vmem:[%s631_s0 + $0x10] sm:$0xff]   ;;  %v498_v23 = vld [vmem:[%s631_s0 + $0x18] sm:$0xff]  }
   0x9   :  { %447 = vmatprep.subr.bf16.mxu0 %v480_v5  ;;  %v394_v26 = vld [vmem:[%s632_s4] ss:$0 sm:$0xff] }
   0xb   :  { %424 = vmatpush3.bf16.msra.mxu1 %v479_v4 }
   0xc   :  { %448 = vmatpush3.bf16.msra.mxu0 %v480_v5  ;;  %425 = vmatprep.subr.bf16.mxu1 %v481_v6 }
   0xd   :  { %449 = vmatprep.subr.bf16.mxu0 %v482_v7 }
   0xf   :  { %426 = vmatpush3.bf16.msra.mxu1 %v481_v6 }
  0x10   :  { %450 = vmatpush3.bf16.msra.mxu0 %v482_v7  ;;  %427 = vmatprep.subr.bf16.mxu1 %v483_v8 }
  0x11   :  { %451 = vmatprep.subr.bf16.mxu0 %v484_v9 }
  0x13   :  { %428 = vmatpush3.bf16.msra.mxu1 %v483_v8 }
  0x14   :  { %452 = vmatpush3.bf16.msra.mxu0 %v484_v9  ;;  %429 = vmatprep.subr.bf16.mxu1 %v485_v10 }
  0x15   :  { %453 = vmatprep.subr.bf16.mxu0 %v486_v11 }
  0x17   :  { %430 = vmatpush3.bf16.msra.mxu1 %v485_v10 }
  0x18   :  { %454 = vmatpush3.bf16.msra.mxu0 %v486_v11  ;;  %431 = vmatprep.subr.bf16.mxu1 %v487_v14 }
  0x19   :  { %455 = vmatprep.subr.bf16.mxu0 %v488_v15 }
  0x1b   :  { %432 = vmatpush3.bf16.msra.mxu1 %v487_v14 }
  0x1c   :  { %456 = vmatpush3.bf16.msra.mxu0 %v488_v15  ;;  %433 = vmatprep.subr.bf16.mxu1 %v489_v16 }
  0x1d   :  { %457 = vmatprep.subr.bf16.mxu0 %v490_v17 }
  0x1f   :  { %434 = vmatpush3.bf16.msra.mxu1 %v489_v16 }
  0x20   :  { %458 = vmatpush3.bf16.msra.mxu0 %v490_v17 }
  0x22   :  { %436 = vmatmul.mubr.bf16.vlgmr.msra.gmra.mrb[0].mxu1 %v493_v18 }
  0x23   :  { %460 = vmatmul.mubr.bf16.vlgmr.msra.gmra.mrb[0].mxu0 %v494_v19  ;;  %439 = vmatprep.mubr.bf16.mxu1 %v495_v20 }
  0x24   :  { %463 = vmatprep.mubr.bf16.mxu0 %v496_v21 }
  0x2a   :  { %440 = vmatmul.mubr.bf16.gmra.mrb[4].mxu1 %v497_v22 }
  0x2b   :  { %464 = vmatmul.mubr.bf16.gmra.mrb[4].mxu0 %v498_v23 }
  0xf5   :  { %v437_v24 = vpop.f32.mrb[0].mxu1 }
  0xf6   :  { %v461_v25 = vpop.f32.mrb[0].mxu0  ;;  %v175_v27 = vpop.f32.mrb[1].mxu1 }
  0xf7   :  { %v321_v28 = vadd.f32 %v461_v25, %v437_v24  ;;  %v312_v29 = vpop.f32.mrb[1].mxu0  ;;  %v438_v30 = vpop.f32.mrb[2].mxu1 }
  0xf8   :  { %v313_v31 = vadd.f32 %v312_v29, %v175_v27  ;;  %v462_v32 = vpop.f32.mrb[2].mxu0  ;;  %v178_v33 = vpop.f32.mrb[3].mxu1 }
  0xf9   :  { %v352_v34 = vadd.f32 %v394_v26, %v321_v28  ;;  %v324_v35 = vadd.f32 %v462_v32, %v438_v30  ;;  %v315_v36 = vpop.f32.mrb[3].mxu0 }
  0xfa   :  { %v350_v37 = vadd.f32 %v394_v26, %v313_v31  ;;  %v316_v38 = vadd.f32 %v315_v36, %v178_v33 }
  0xfb   :  { %360 = vst [vmem:[%s633_s5 + $0x10] sm:$0xff] %v352_v34  ;;  %v353_v39 = vadd.f32 %v394_v26, %v324_v35 }
  0xfc   :  { %358 = vst [vmem:[%s633_s5] sm:$0xff] %v350_v37  ;;  %v351_v40 = vadd.f32 %v394_v26, %v316_v38 }
  0xfd   :  { %361 = vst [vmem:[%s633_s5 + $0x18] sm:$0xff] %v353_v39  ;;  %v441_v41 = vpop.f32.mrb[4].mxu1 }
  0xfe   :  { %359 = vst [vmem:[%s633_s5 + $0x8] sm:$0xff] %v351_v40  ;;  %v465_v42 = vpop.f32.mrb[4].mxu0  ;;  %v191_v43 = vpop.f32.mrb[5].mxu1 }
  0xff   :  { %v337_v44 = vadd.f32 %v465_v42, %v441_v41  ;;  %v328_v45 = vpop.f32.mrb[5].mxu0  ;;  %v442_v46 = vpop.f32.mrb[6].mxu1 }
 0x100   :  { %v329_v47 = vadd.f32 %v328_v45, %v191_v43  ;;  %v466_v48 = vpop.f32.mrb[6].mxu0  ;;  %v194_v49 = vpop.f32.mrb[7].mxu1 }
 0x101   :  { %v356_v50 = vadd.f32 %v394_v26, %v337_v44  ;;  %v340_v51 = vadd.f32 %v466_v48, %v442_v46  ;;  %v331_v52 = vpop.f32.mrb[7].mxu0 }
 0x102   :  { %v354_v53 = vadd.f32 %v394_v26, %v329_v47  ;;  %v332_v54 = vadd.f32 %v331_v52, %v194_v49 }
 0x103   :  { %364 = vst [vmem:[%s633_s5 + $0x30] sm:$0xff] %v356_v50  ;;  %v357_v55 = vadd.f32 %v394_v26, %v340_v51 }
 0x104   :  { %362 = vst [vmem:[%s633_s5 + $0x20] sm:$0xff] %v354_v53  ;;  %v355_v56 = vadd.f32 %v394_v26, %v332_v54 }
 0x105   :  { %365 = vst [vmem:[%s633_s5 + $0x38] sm:$0xff] %v357_v55 }
 0x106   :  { %363 = vst [vmem:[%s633_s5 + $0x28] sm:$0xff] %v355_v56 }

// kernel: net_forward.3
= control target key start
LH: loop header
LB: loop body
LE: loop exit
PB: predicated region body
PF: predicated region fallthrough
CT: control target
= control target key end

     0   :  { %v2792_v1 = vmov 0   ;;  %vm322_vm0 = vcmask 523264   ;;  %s3819_s1 = inlined_call_operand.vmem [shape: bf16[192,320], index: 1, kind: input, shape index: {}]   ;;  %s3820_s0 = inlined_call_operand.vmem [shape: bf16[64,192], index: 0, kind: input, shape index: {}]   ;;  %s3821_s3 = inlined_call_operand.vmem [shape: bf16[320,1024], index: 3, kind: input, shape index: {}]   ;;  %s3822_s2 = inlined_call_operand.vmem [shape: f32[1,320], index: 2, kind: input, shape index: {}]   ;;  %s3823_s4 = inlined_call_operand.vmem [shape: f32[1,1024], index: 4, kind: input, shape index: {}]   ;;  %s3824_s5 = inlined_call_operand.vmem [shape: bf16[64,1024], index: 5, kind: output, shape index: {}]  }
   0x1   :  { %v2732_v0 = vld [vmem:[%s3819_s1 + $0x4] ss:$12 sps:$4 sm:$0xff]   ;;  %408 = vmatprep.subr.bf16.mxu1 %v2792_v1  ;;  %v2734_v2 = vld [vmem:[%s3819_s1] ss:$12 sps:$4 sm:$0xff]   ;;  %v2735_v3 = vld [vmem:[%s3819_s1 + $0x1c] ss:$12 sps:$4 sm:$0xff]  }
   0x2   :  { %335 = vmatprep.subr.bf16.mxu0 %v2732_v0  ;;  %v2737_v4 = vld [vmem:[%s3819_s1 + $0x18] ss:$12 sps:$4 sm:$0xff]   ;;  %v2738_v5 = vld [vmem:[%s3819_s1 + $0x34] ss:$12 sps:$4 sm:$0xff]   ;;  %v2740_v6 = vld [vmem:[%s3819_s1 + $0x30] ss:$12 sps:$4 sm:$0xff]  }
   0x3   :  { %336 = vmatpush1.bf16.msra.mxu0 %v2734_v2  ;;  %v2741_v7 = vld [vmem:[%s3819_s1 + $0x4c] ss:$12 sps:$4 sm:$0xff]   ;;  %v2743_v8 = vld [vmem:[%s3819_s1 + $0x48] ss:$12 sps:$4 sm:$0xff]   ;;  %v2744_v9 = vld [vmem:[%s3819_s1 + $0x64] ss:$12 sps:$4 sm:$0xff]  }
   0x4   :  { %337 = vmatprep.subr.bf16.mxu0 %v2735_v3  ;;  %v2758_v10 = vld [vmem:[%s3819_s1 + $0x8] ss:$12 sps:$4 sm:$0xff]   ;;  %v2762_v11 = vld [vmem:[%s3819_s1 + $0x20] ss:$12 sps:$4 sm:$0xff]   ;;  %v2766_v14 = vld [vmem:[%s3819_s1 + $0x38] ss:$12 sps:$4 sm:$0xff]  }
   0x5   :  { %409 = vmatpush1.bf16.msra.mxu1 %v2758_v10  ;;  %v2746_v12 = vld [vmem:[%s3819_s1 + $0x60] ss:$12 sps:$4 sm:$0xff]   ;;  %v2747_v13 = vld [vmem:[%s3819_s1 + $0x7c] ss:$12 sps:$4 sm:$0xff]   ;;  %v2749_v15 = vld [vmem:[%s3819_s1 + $0x78] ss:$12 sps:$4 sm:$0xff]  }
   0x6   :  { %410 = vmatprep.subr.bf16.mxu1 %v2792_v1  ;;  %v2750_v16 = vld [vmem:[%s3819_s1 + $0x94] ss:$12 sps:$4 sm:$0xff]   ;;  %v2774_v17 = vld [vmem:[%s3820_s0 + $0x4] ss:$8 sps:$4 sm:$0xff]   ;;  %v2770_v18 = vld [vmem:[%s3819_s1 + $0x50] ss:$12 sps:$4 sm:$0xff]  }
   0x7   :  { %338 = vmatpush1.bf16.msra.mxu0 %v2737_v4  ;;  %v2752_v19 = vld [vmem:[%s3819_s1 + $0x90] ss:$12 sps:$4 sm:$0xff]   ;;  %v2753_v20 = vld [vmem:[%s3819_s1 + $0xac] ss:$12 sps:$4 sm:$0xff]   ;;  %2355 = vmatprep.mubr.msk.bf16.mxu0 %vm322_vm0, %v2774_v17  ;;  %v2775_v21 = vld [vmem:[%s3819_s1 + $0x68] ss:$12 sps:$4 sm:$0xff]  }
   0x8   :  { %339 = vmatprep.subr.bf16.mxu0 %v2738_v5  ;;  %2359 = vmatprep.mubr.msk.bf16.mxu1 %vm322_vm0, %v2774_v17  ;;  %v2755_v22 = vld [vmem:[%s3819_s1 + $0xa8] ss:$12 sps:$4 sm:$0xff]   ;;  %v2756_v23 = vld [vmem:[%s3819_s1 + $0xc4] ss:$12 sps:$4 sm:$0xff]   ;;  %v2776_v24 = vld [vmem:[%s3819_s1 + $0x80] ss:$12 sps:$4 sm:$0xff]  }
   0x9   :  { %411 = vmatpush1.bf16.msra.mxu1 %v2762_v11  ;;  %v2759_v25 = vld [vmem:[%s3819_s1 + $0xc0] ss:$12 sps:$4 sm:$0xff]   ;;  %v2760_v26 = vld [vmem:[%s3819_s1 + $0xdc] ss:$12 sps:$4 sm:$0xff]   ;;  %v2780_v27 = vld [vmem:[%s3819_s1 + $0x98] ss:$12 sps:$4 sm:$0xff]  }
   0xa   :  { %412 = vmatprep.subr.bf16.mxu1 %v2792_v1  ;;  %v2763_v28 = vld [vmem:[%s3819_s1 + $0xd8] ss:$12 sps:$4 sm:$0xff]   ;;  %v2764_v29 = vld [vmem:[%s3819_s1 + $0xf4] ss:$12 sps:$4 sm:$0xff]   ;;  %v2781_v30 = vld [vmem:[%s3819_s1 + $0xb0] ss:$12 sps:$4 sm:$0xff]  }
   0xb   :  { %340 = vmatpush1.bf16.msra.mxu0 %v2740_v6  ;;  %v2767_v31 = vld [vmem:[%s3819_s1 + $0xf0] ss:$12 sps:$4 sm:$0xff]   ;;  %v2768_v32 = vld [vmem:[%s3819_s1 + $0x10c] ss:$12 sps:$4 sm:$0xff]   ;;  %v485_v33 = vld [vmem:[%s3821_s3] sm:$0xff] }
   0xc   :  { %341 = vmatprep.subr.bf16.mxu0 %v2741_v7  ;;  %v489_v34 = vld [vmem:[%s3821_s3 + $0x20] sm:$0xff]  ;;  %v2785_v35 = vld [vmem:[%s3819_s1 + $0xc8] ss:$12 sps:$4 sm:$0xff]   ;;  %v2779_v51 = vld [vmem:[%s3820_s0 + $0x10] ss:$8 sps:$4 sm:$0xff]  }
   0xd   :  { %413 = vmatpush1.bf16.msra.mxu1 %v2766_v14  ;;  %v2771_v36 = vld [vmem:[%s3819_s1 + $0x108] ss:$12 sps:$4 sm:$0xff]   ;;  %v2364_v37 = vcombine.high %v485_v33, %v489_v34  ;;  %v2786_v39 = vld [vmem:[%s3819_s1 + $0xe0] ss:$12 sps:$4 sm:$0xff]   ;;  %v2363_v43 = vcombine.low %v485_v33, %v489_v34  ;;  %v2790_v45 = vld [vmem:[%s3819_s1 + $0xf8] ss:$12 sps:$4 sm:$0xff]  }
   0xe   :  { %414 = vmatprep.subr.bf16.mxu1 %v2792_v1  ;;  %v2772_v38 = vld [vmem:[%s3820_s0] ss:$8 sps:$4 sm:$0xff]   ;;  %v2777_v42 = vld [vmem:[%s3820_s0 + $0x14] ss:$8 sps:$4 sm:$0xff]   ;;  %v2782_v56 = vld [vmem:[%s3820_s0 + $0x24] ss:$8 sps:$4 sm:$0xff]  }
   0xf   :  { %342 = vmatpush1.bf16.msra.mxu0 %v2743_v8  ;;  %v493_v40 = vld [vmem:[%s3821_s3 + $0x40] sm:$0xff]  ;;  %v486_v48 = vld [vmem:[%s3821_s3 + $0x8] sm:$0xff]  ;;  %v2791_v53 = vld [vmem:[%s3819_s1 + $0x110] ss:$12 sps:$4 sm:$0xff]  }
  0x10   :  { %343 = vmatprep.subr.bf16.mxu0 %v2744_v9  ;;  %v497_v41 = vld [vmem:[%s3821_s3 + $0x60] sm:$0xff]  ;;  %v490_v49 = vld [vmem:[%s3821_s3 + $0x28] sm:$0xff]  ;;  %v2787_v11 = vld [vmem:[%s3820_s0 + $0x34] ss:$8 sps:$4 sm:$0xff]  }
  0x11   :  { %415 = vmatpush1.bf16.msra.mxu1 %v2770_v18  ;;  %v2372_v44 = vcombine.high %v493_v40, %v497_v41  ;;  %v501_v46 = vld [vmem:[%s3821_s3 + $0x80] sm:$0xff]  ;;  %v2371_v50 = vcombine.low %v493_v40, %v497_v41  ;;  %v2366_v57 = vcombine.high %v486_v48, %v490_v49  ;;  %v494_v58 = vld [vmem:[%s3821_s3 + $0x48] sm:$0xff]  ;;  %v2365_v62 = vcombine.low %v486_v48, %v490_v49 }
  0x12   :  { %416 = vmatprep.subr.bf16.mxu1 %v2792_v1  ;;  %v505_v47 = vld [vmem:[%s3821_s3 + $0xa0] sm:$0xff]  ;;  %v498_v59 = vld [vmem:[%s3821_s3 + $0x68] sm:$0xff] }
  0x13   :  { %344 = vmatpush1.bf16.msra.mxu0 %v2746_v12  ;;  %v2380_v52 = vcombine.high %v501_v46, %v505_v47  ;;  %v509_v54 = vld [vmem:[%s3821_s3 + $0xc0] sm:$0xff]  ;;  %v2379_v60 = vcombine.low %v501_v46, %v505_v47  ;;  %v2374_v2 = vcombine.high %v494_v58, %v498_v59  ;;  %v502_v3 = vld [vmem:[%s3821_s3 + $0x88] sm:$0xff]  ;;  %v2373_v8 = vcombine.low %v494_v58, %v498_v59 }
  0x14   :  { %345 = vmatprep.subr.bf16.mxu0 %v2747_v13  ;;  %v513_v55 = vld [vmem:[%s3821_s3 + $0xe0] sm:$0xff]  ;;  %v506_v4 = vld [vmem:[%s3821_s3 + $0xa8] sm:$0xff] }
  0x15   :  { %417 = vmatpush1.bf16.msra.mxu1 %v2775_v21  ;;  %v2388_v61 = vcombine.high %v509_v54, %v513_v55  ;;  %v517_v63 = vld [vmem:[%s3821_s3 + $0x100] sm:$0xff]  ;;  %v2387_v5 = vcombine.low %v509_v54, %v513_v55  ;;  %v2382_v12 = vcombine.high %v502_v3, %v506_v4  ;;  %v510_v13 = vld [vmem:[%s3821_s3 + $0xc8] sm:$0xff]  ;;  %v2381_v17 = vcombine.low %v502_v3, %v506_v4 }
  0x16   :  { %418 = vmatprep.subr.bf16.mxu1 %v2792_v1  ;;  %v521_v0 = vld [vmem:[%s3821_s3 + $0x120] sm:$0xff]  ;;  %v514_v14 = vld [vmem:[%s3821_s3 + $0xe8] sm:$0xff] }
  0x17   :  { %346 = vmatpush1.bf16.msra.mxu0 %v2749_v15  ;;  %v2396_v6 = vcombine.high %v517_v63, %v521_v0  ;;  %v2784_v7 = vld [vmem:[%s3820_s0 + $0x20] ss:$8 sps:$4 sm:$0xff]   ;;  %v2395_v15 = vcombine.low %v517_v63, %v521_v0 }
  0x18   :  { %347 = vmatprep.subr.bf16.mxu0 %v2750_v16  ;;  %v525_v9 = vld [vmem:[%s3821_s3 + $0x140] sm:$0xff]  ;;  %v518_v21 = vld [vmem:[%s3821_s3 + $0x108] sm:$0xff] }
  0x19   :  { %419 = vmatpush1.bf16.msra.mxu1 %v2776_v24  ;;  %v529_v10 = vld [vmem:[%s3821_s3 + $0x160] sm:$0xff]  ;;  %v542_v46 = vld [vmem:[%s3821_s3 + $0x1c8] sm:$0xff] }
  0x1a   :  { %420 = vmatprep.subr.bf16.mxu1 %v2792_v1  ;;  %v2404_v16 = vcombine.high %v525_v9, %v529_v10  ;;  %v533_v18 = vld [vmem:[%s3821_s3 + $0x180] sm:$0xff]  ;;  %v546_v47 = vld [vmem:[%s3821_s3 + $0x1e8] sm:$0xff] }
  0x1b   :  { %348 = vmatpush1.bf16.msra.mxu0 %v2752_v19  ;;  %v537_v19 = vld [vmem:[%s3821_s3 + $0x1a0] sm:$0xff]  ;;  %v550_v54 = vld [vmem:[%s3821_s3 + $0x208] sm:$0xff]  ;;  %v2421_v58 = vcombine.low %v542_v46, %v546_v47 }
  0x1c   :  { %349 = vmatprep.subr.bf16.mxu0 %v2753_v20  ;;  %v2390_v20 = vcombine.high %v510_v13, %v514_v14  ;;  %v2412_v24 = vcombine.high %v533_v18, %v537_v19  ;;  %v554_v55 = vld [vmem:[%s3821_s3 + $0x228] sm:$0xff]  ;;  %v573_v59 = vld [vmem:[%s3821_s3 + $0x2c0] sm:$0xff] }
  0x1d   :  { %421 = vmatpush1.bf16.msra.mxu1 %v2780_v27  ;;  %v541_v27 = vld [vmem:[%s3821_s3 + $0x1c0] sm:$0xff]  ;;  %v562_v63 = vld [vmem:[%s3821_s3 + $0x268] sm:$0xff]  ;;  %v2429_v3 = vcombine.low %v550_v54, %v554_v55 }
  0x1e   :  { %422 = vmatprep.subr.bf16.mxu1 %v2792_v1  ;;  %v581_v4 = vld [vmem:[%s3821_s3 + $0x300] sm:$0xff] }
  0x1f   :  { %350 = vmatpush1.bf16.msra.mxu0 %v2755_v22  ;;  %v522_v22 = vld [vmem:[%s3821_s3 + $0x128] sm:$0xff] }
  0x20   :  { %351 = vmatprep.subr.bf16.mxu0 %v2756_v23  ;;  %v2403_v23 = vcombine.low %v525_v9, %v529_v10  ;;  %v2397_v34 = vcombine.low %v518_v21, %v522_v22 }
  0x21   :  { %423 = vmatpush1.bf16.msra.mxu1 %v2781_v30  ;;  %v526_v30 = vld [vmem:[%s3821_s3 + $0x148] sm:$0xff] }
  0x22   :  { %424 = vmatprep.subr.bf16.mxu1 %v2792_v1 }
  0x23   :  { %352 = vmatpush1.bf16.msra.mxu0 %v2759_v25  ;;  %v2789_v25 = vld [vmem:[%s3820_s0 + $0x30] ss:$8 sps:$4 sm:$0xff]  }
  0x24   :  { %353 = vmatprep.subr.bf16.mxu0 %v2760_v26  ;;  %v2389_v26 = vcombine.low %v510_v13, %v514_v14  ;;  %v593_v13 = vld [vmem:[%s3821_s3 + $0x360] sm:$0xff] }
  0x25   :  { %425 = vmatpush1.bf16.msra.mxu1 %v2785_v35  ;;  %v549_v35 = vld [vmem:[%s3821_s3 + $0x200] sm:$0xff] }
  0x26   :  { %426 = vmatprep.subr.bf16.mxu1 %v2792_v1 }
  0x27   :  { %354 = vmatpush1.bf16.msra.mxu0 %v2763_v28  ;;  %v545_v28 = vld [vmem:[%s3821_s3 + $0x1e0] sm:$0xff] }
  0x28   :  { %355 = vmatprep.subr.bf16.mxu0 %v2764_v29  ;;  %v2398_v29 = vcombine.high %v518_v21, %v522_v22  ;;  %v2420_v33 = vcombine.high %v541_v27, %v545_v28  ;;  %v2419_v40 = vcombine.low %v541_v27, %v545_v28  ;;  %v582_v21 = vld [vmem:[%s3821_s3 + $0x308] sm:$0xff] }
  0x29   :  { %427 = vmatpush1.bf16.msra.mxu1 %v2786_v39  ;;  %v538_v39 = vld [vmem:[%s3821_s3 + $0x1a8] sm:$0xff] }
  0x2a   :  { %428 = vmatprep.subr.bf16.mxu1 %v2792_v1  ;;  %v586_v22 = vld [vmem:[%s3821_s3 + $0x328] sm:$0xff] }
  0x2b   :  { %356 = vmatpush1.bf16.msra.mxu0 %v2767_v31  ;;  %v530_v31 = vld [vmem:[%s3821_s3 + $0x168] sm:$0xff]  ;;  %v2461_v28 = vcombine.low %v582_v21, %v586_v22 }
  0x2c   :  { %357 = vmatprep.subr.bf16.mxu0 %v2768_v32  ;;  %v2411_v32 = vcombine.low %v533_v18, %v537_v19  ;;  %v594_v27 = vld [vmem:[%s3821_s3 + $0x368] sm:$0xff] }
  0x2d   :  { %429 = vmatpush1.bf16.msra.mxu1 %v2790_v45 }
  0x2e   :  { %430 = vmatprep.subr.bf16.mxu1 %v2792_v1 }
  0x2f   :  { %358 = vmatpush1.bf16.msra.mxu0 %v2771_v36  ;;  %v553_v36 = vld [vmem:[%s3821_s3 + $0x220] sm:$0xff] }
  0x30   :  { %1499 = vmatprep.subr.bf16.mxu0 %v2364_v37  ;;  %v2406_v37 = vcombine.high %v526_v30, %v530_v31  ;;  %v2428_v41 = vcombine.high %v549_v35, %v553_v36  ;;  %v2427_v48 = vcombine.low %v549_v35, %v553_v36  ;;  %v602_v35 = vld [vmem:[%s3821_s3 + $0x3a8] sm:$0xff] }
  0x31   :  { %431 = vmatpush1.bf16.msra.mxu1 %v2791_v53  ;;  %v2422_v53 = vcombine.high %v542_v46, %v546_v47  ;;  %v613_v47 = vld [vmem:[%s3821_s3 + $0x400] sm:$0xff] }
  0x32   :  { %368 = vmatmul.mubr.bf16.vlgmr.msra.gmra.mrb[0].mxu0 %v2772_v38  ;;  %1645 = vmatprep.subr.bf16.mxu1 %v2366_v57 }
  0x33   :  { %2356 = vmatprep.mubr.msk.bf16.mxu0 %vm322_vm0, %v2777_v42  ;;  %1500 = vmatpush1.bf16.msra.mxu0 %v2363_v43  ;;  %v557_v43 = vld [vmem:[%s3821_s3 + $0x240] sm:$0xff] }
  0x34   :  { %1501 = vmatprep.subr.bf16.mxu0 %v2372_v44  ;;  %441 = vmatmul.mubr.bf16.vlgmr.msra.gmra.mrb[0].mxu1 %v2772_v38  ;;  %v534_v38 = vld [vmem:[%s3821_s3 + $0x188] sm:$0xff]  ;;  %v561_v44 = vld [vmem:[%s3821_s3 + $0x260] sm:$0xff] }
  0x35   :  { %2360 = vmatprep.mubr.msk.bf16.mxu1 %vm322_vm0, %v2777_v42  ;;  %1646 = vmatpush1.bf16.msra.mxu1 %v2365_v62  ;;  %v2405_v42 = vcombine.low %v526_v30, %v530_v31  ;;  %v2414_v45 = vcombine.high %v534_v38, %v538_v39  ;;  %v2436_v49 = vcombine.high %v557_v43, %v561_v44  ;;  %v558_v62 = vld [vmem:[%s3821_s3 + $0x248] sm:$0xff]  ;;  %v597_v31 = vld [vmem:[%s3821_s3 + $0x380] sm:$0xff] }
  0x36   :  { %1647 = vmatprep.subr.bf16.mxu1 %v2374_v2 }
  0x37   :  { %1502 = vmatpush1.bf16.msra.mxu0 %v2371_v50  ;;  %v2413_v50 = vcombine.low %v534_v38, %v538_v39  ;;  %v605_v39 = vld [vmem:[%s3821_s3 + $0x3c0] sm:$0xff] }
  0x38   :  { %1503 = vmatprep.subr.bf16.mxu0 %v2380_v52  ;;  %v569_v52 = vld [vmem:[%s3821_s3 + $0x2a0] sm:$0xff] }
  0x39   :  { %1648 = vmatpush1.bf16.msra.mxu1 %v2373_v8  ;;  %v570_v8 = vld [vmem:[%s3821_s3 + $0x2a8] sm:$0xff] }
  0x3a   :  { %378 = vmatmul.mubr.bf16.gmra.mrb[4].mxu0 %v2779_v51  ;;  %1649 = vmatprep.subr.bf16.mxu1 %v2382_v12  ;;  %v589_v12 = vld [vmem:[%s3821_s3 + $0x340] sm:$0xff] }
  0x3b   :  { %2357 = vmatprep.mubr.msk.bf16.mxu0 %vm322_vm0, %v2782_v56  ;;  %1504 = vmatpush1.bf16.msra.mxu0 %v2379_v60  ;;  %v577_v60 = vld [vmem:[%s3821_s3 + $0x2e0] sm:$0xff]  ;;  %v2468_v18 = vcombine.high %v589_v12, %v593_v13 }
  0x3c   :  { %1505 = vmatprep.subr.bf16.mxu0 %v2388_v61  ;;  %449 = vmatmul.mubr.bf16.gmra.mrb[4].mxu1 %v2779_v51  ;;  %v565_v51 = vld [vmem:[%s3821_s3 + $0x280] sm:$0xff]  ;;  %v2430_v61 = vcombine.high %v550_v54, %v554_v55  ;;  %v2452_v2 = vcombine.high %v573_v59, %v577_v60  ;;  %v2451_v9 = vcombine.low %v573_v59, %v577_v60  ;;  %v79_v55 = vlaneseq }
  0x3d   :  { %2361 = vmatprep.mubr.msk.bf16.mxu1 %vm322_vm0, %v2782_v56  ;;  %1650 = vmatpush1.bf16.msra.mxu1 %v2381_v17  ;;  %v2435_v56 = vcombine.low %v557_v43, %v561_v44  ;;  %v2444_v57 = vcombine.high %v565_v51, %v569_v52  ;;  %v2443_v0 = vcombine.low %v565_v51, %v569_v52  ;;  %v610_v43 = vld [vmem:[%s3821_s3 + $0x3e8] sm:$0xff] }
  0x3e   :  { %1651 = vmatprep.subr.bf16.mxu1 %v2390_v20  ;;  %v618_v52 = vld [vmem:[%s3821_s3 + $0x428] sm:$0xff] }
  0x3f   :  { %1506 = vmatpush1.bf16.msra.mxu0 %v2387_v5  ;;  %v585_v5 = vld [vmem:[%s3821_s3 + $0x320] sm:$0xff] }
  0x40   :  { %1507 = vmatprep.subr.bf16.mxu0 %v2396_v6  ;;  %v2438_v6 = vcombine.high %v558_v62, %v562_v63  ;;  %v2460_v10 = vcombine.high %v581_v4, %v585_v5  ;;  %v2459_v17 = vcombine.low %v581_v4, %v585_v5  ;;  %v621_v5 = vld [vmem:[%s3821_s3 + $0x440] sm:$0xff] }
  0x41   :  { %1652 = vmatpush1.bf16.msra.mxu1 %v2389_v26  ;;  %v590_v26 = vld [vmem:[%s3821_s3 + $0x348] sm:$0xff] }
  0x42   :  { %388 = vmatmul.mubr.bf16.gmra.mrb[8].mxu0 %v2784_v7  ;;  %1653 = vmatprep.subr.bf16.mxu1 %v2398_v29  ;;  %v2470_v29 = vcombine.high %v590_v26, %v594_v27  ;;  %v2469_v30 = vcombine.low %v590_v26, %v594_v27 }
  0x43   :  { %2358 = vmatprep.mubr.msk.bf16.mxu0 %vm322_vm0, %v2787_v11  ;;  %1508 = vmatpush1.bf16.msra.mxu0 %v2395_v15  ;;  %v574_v15 = vld [vmem:[%s3821_s3 + $0x2c8] sm:$0xff] }
  0x44   :  { %1509 = vmatprep.subr.bf16.mxu0 %v2404_v16  ;;  %457 = vmatmul.mubr.bf16.gmra.mrb[8].mxu1 %v2784_v7  ;;  %v566_v7 = vld [vmem:[%s3821_s3 + $0x288] sm:$0xff] }
  0x45   :  { %2362 = vmatprep.mubr.msk.bf16.mxu1 %vm322_vm0, %v2787_v11  ;;  %1654 = vmatpush1.bf16.msra.mxu1 %v2397_v34  ;;  %v2437_v11 = vcombine.low %v558_v62, %v562_v63  ;;  %v2446_v14 = vcombine.high %v566_v7, %v570_v8  ;;  %v578_v16 = vld [vmem:[%s3821_s3 + $0x2e8] sm:$0xff]  ;;  %v2445_v19 = vcombine.low %v566_v7, %v570_v8  ;;  %v625_v8 = vld [vmem:[%s3821_s3 + $0x460] sm:$0xff] }
  0x46   :  { %1655 = vmatprep.subr.bf16.mxu1 %v2406_v37  ;;  %v2454_v20 = vcombine.high %v574_v15, %v578_v16 }
  0x47   :  { %1510 = vmatpush1.bf16.msra.mxu0 %v2403_v23  ;;  %v2467_v23 = vcombine.low %v589_v12, %v593_v13 }
  0x48   :  { %1511 = vmatprep.subr.bf16.mxu0 %v2412_v24  ;;  %v2453_v24 = vcombine.low %v574_v15, %v578_v16  ;;  %v629_v16 = vld [vmem:[%s3821_s3 + $0x480] sm:$0xff] }
  0x49   :  { %1656 = vmatpush1.bf16.msra.mxu1 %v2405_v42 }
  0x4a   :  { %398 = vmatmul.mubr.bf16.gmra.mrb[12].mxu0 %v2789_v25  ;;  %1657 = vmatprep.subr.bf16.mxu1 %v2414_v45 }
  0x4b   :  { %1512 = vmatpush1.bf16.msra.mxu0 %v2411_v32  ;;  %v601_v32 = vld [vmem:[%s3821_s3 + $0x3a0] sm:$0xff] }
  0x4c   :  { %1513 = vmatprep.subr.bf16.mxu0 %v2420_v33  ;;  %465 = vmatmul.mubr.bf16.gmra.mrb[12].mxu1 %v2789_v25  ;;  %v2462_v25 = vcombine.high %v582_v21, %v586_v22  ;;  %v598_v33 = vld [vmem:[%s3821_s3 + $0x388] sm:$0xff]  ;;  %v2476_v34 = vcombine.high %v597_v31, %v601_v32  ;;  %v2475_v36 = vcombine.low %v597_v31, %v601_v32  ;;  %v637_v32 = vld [vmem:[%s3821_s3 + $0x4c0] sm:$0xff] }
  0x4d   :  { %1658 = vmatpush1.bf16.msra.mxu1 %v2413_v50  ;;  %v2477_v37 = vcombine.low %v598_v33, %v602_v35  ;;  %v2478_v38 = vcombine.high %v598_v33, %v602_v35 }
  0x4e   :  { %1659 = vmatprep.subr.bf16.mxu1 %v2422_v53 }
  0x4f   :  { %1514 = vmatpush1.bf16.msra.mxu0 %v2419_v40  ;;  %v609_v40 = vld [vmem:[%s3821_s3 + $0x3e0] sm:$0xff] }
  0x50   :  { %1515 = vmatprep.subr.bf16.mxu0 %v2428_v41  ;;  %v606_v41 = vld [vmem:[%s3821_s3 + $0x3c8] sm:$0xff]  ;;  %v2484_v42 = vcombine.high %v605_v39, %v609_v40  ;;  %v2483_v44 = vcombine.low %v605_v39, %v609_v40 }
  0x51   :  { %1660 = vmatpush1.bf16.msra.mxu1 %v2421_v58  ;;  %v2485_v45 = vcombine.low %v606_v41, %v610_v43  ;;  %v2486_v46 = vcombine.high %v606_v41, %v610_v43  ;;  %v77_v58 = vld [vmem:[%s3822_s2] sm:$0x7]  ;;  %v642_v39 = vld [vmem:[%s3821_s3 + $0x4e8] sm:$0xff] }
  0x52   :  { %1661 = vmatprep.subr.bf16.mxu1 %v2430_v61 }
  0x53   :  { %1516 = vmatpush1.bf16.msra.mxu0 %v2427_v48  ;;  %v617_v48 = vld [vmem:[%s3821_s3 + $0x420] sm:$0xff] }
  0x54   :  { %1517 = vmatprep.subr.bf16.mxu0 %v2436_v49  ;;  %v614_v49 = vld [vmem:[%s3821_s3 + $0x408] sm:$0xff]  ;;  %v2491_v50 = vcombine.low %v613_v47, %v617_v48  ;;  %v2492_v51 = vcombine.high %v613_v47, %v617_v48 }
  0x55   :  { %1662 = vmatpush1.bf16.msra.mxu1 %v2429_v3  ;;  %v2493_v53 = vcombine.low %v614_v49, %v618_v52  ;;  %v2494_v54 = vcombine.high %v614_v49, %v618_v52  ;;  %v3260_v49 = vld [vmem:[%s3821_s3 + $0x10] sm:$0xff] }
  0x56   :  { %1663 = vmatprep.subr.bf16.mxu1 %v2438_v6 }
  0x57   :  { %1518 = vmatpush1.bf16.msra.mxu0 %v2435_v56  ;;  %v3179_v56 = vshrl.u32 %v79_v55, 7 }
  0x58   :  { %1519 = vmatprep.subr.bf16.mxu0 %v2444_v57 }
  0x59   :  { %1664 = vmatpush1.bf16.msra.mxu1 %v2437_v11  ;;  %v81_v57 = vsub.s32 0, %v3179_v56  ;;  %v85_v59 = vsub.s32 1, %v3179_v56  ;;  %v89_v11 = vsub.s32 2, %v3179_v56 }
  0x5a   :  { %1665 = vmatprep.subr.bf16.mxu1 %v2446_v14  ;;  %v2500_v14 = vcombine.high %v621_v5, %v625_v8 }
  0x5b   :  { %1520 = vmatpush1.bf16.msra.mxu0 %v2443_v0  ;;  %v3188_v60 = vrot.slane %v77_v58, %v81_v57  ;;  %v3192_v62 = vrot.slane %v77_v58, %v85_v59  ;;  %v3231_v21 = vrot.slane %v77_v58, %v89_v11 }
  0x5c   :  { %1521 = vmatprep.subr.bf16.mxu0 %v2452_v2 }
  0x5d   :  { %1666 = vmatpush1.bf16.msra.mxu1 %v2445_v19  ;;  %v630_v19 = vld [vmem:[%s3821_s3 + $0x488] sm:$0xff] }
  0x5e   :  { %1667 = vmatprep.subr.bf16.mxu1 %v2454_v20  ;;  %v634_v20 = vld [vmem:[%s3821_s3 + $0x4a8] sm:$0xff] }
  0x5f   :  { %1522 = vmatpush1.bf16.msra.mxu0 %v2451_v9  ;;  %v622_v9 = vld [vmem:[%s3821_s3 + $0x448] sm:$0xff] }
  0x60   :  { %1523 = vmatprep.subr.bf16.mxu0 %v2460_v10  ;;  %v626_v10 = vld [vmem:[%s3821_s3 + $0x468] sm:$0xff] }
  0x61   :  { %1668 = vmatpush1.bf16.msra.mxu1 %v2453_v24  ;;  %v2502_v15 = vcombine.high %v622_v9, %v626_v10  ;;  %v2499_v24 = vcombine.low %v621_v5, %v625_v8 }
  0x62   :  { %1669 = vmatprep.subr.bf16.mxu1 %v2462_v25  ;;  %v2501_v25 = vcombine.low %v622_v9, %v626_v10 }
  0x63   :  { %1524 = vmatpush1.bf16.msra.mxu0 %v2459_v17  ;;  %v633_v17 = vld [vmem:[%s3821_s3 + $0x4a0] sm:$0xff] }
  0x64   :  { %1525 = vmatprep.subr.bf16.mxu0 %v2468_v18  ;;  %v2508_v26 = vcombine.high %v629_v16, %v633_v17  ;;  %v2507_v41 = vcombine.low %v629_v16, %v633_v17 }
  0x65   :  { %1670 = vmatpush1.bf16.msra.mxu1 %v2461_v28 }
  0x66   :  { %1671 = vmatprep.subr.bf16.mxu1 %v2470_v29 }
  0x67   :  { %1526 = vmatpush1.bf16.msra.mxu0 %v2467_v23 }
  0x68   :  { %1527 = vmatprep.subr.bf16.mxu0 %v2476_v34 }
  0x69   :  { %1672 = vmatpush1.bf16.msra.mxu1 %v2469_v30  ;;  %v2510_v30 = vcombine.high %v630_v19, %v634_v20 }
  0x6a   :  { %1673 = vmatprep.subr.bf16.mxu1 %v2478_v38  ;;  %v638_v38 = vld [vmem:[%s3821_s3 + $0x4c8] sm:$0xff] }
  0x6b   :  { %1528 = vmatpush1.bf16.msra.mxu0 %v2475_v36  ;;  %v2518_v48 = vcombine.high %v638_v38, %v642_v39 }
  0x6c   :  { %1529 = vmatprep.subr.bf16.mxu0 %v2484_v42 }
  0x6d   :  { %1674 = vmatpush1.bf16.msra.mxu1 %v2477_v37  ;;  %v641_v37 = vld [vmem:[%s3821_s3 + $0x4e0] sm:$0xff] }
  0x6e   :  { %1675 = vmatprep.subr.bf16.mxu1 %v2486_v46  ;;  %v2516_v47 = vcombine.high %v637_v32, %v641_v37 }
  0x6f   :  { %1530 = vmatpush1.bf16.msra.mxu0 %v2483_v44  ;;  %v2509_v44 = vcombine.low %v630_v19, %v634_v20 }
  0x70   :  { %1572 = vmatprep.subr.bf16.mxu0 %v2492_v51 }
  0x71   :  { %1676 = vmatpush1.bf16.msra.mxu1 %v2485_v45 }
  0x72   :  { %1718 = vmatprep.subr.bf16.mxu1 %v2494_v54  ;;  %v3279_v54 = vld [vmem:[%s3821_s3 + $0x38] sm:$0xff] }
 0x105   :  { %v369_v61 = vpop.f32.mrb[0].mxu0 }
 0x106   :  { %v371_v63 = vpop.f32.mrb[1].mxu0  ;;  %v370_v2 = vadd.f32 %v369_v61, %v3188_v60  ;;  %v2515_v61 = vcombine.low %v637_v32, %v641_v37 }
 0x107   :  { %v373_v0 = vpop.f32.mrb[2].mxu0  ;;  %v372_v6 = vadd.f32 %v371_v63, %v3192_v62  ;;  %v442_v31 = vpop.f32.mrb[0].mxu1  ;;  %v2517_v63 = vcombine.low %v638_v38, %v642_v39  ;;  %v499_v38 = vld [vmem:[%s3821_s3 + $0x70] sm:$0xff]  ;;  %v496_v39 = vld [vmem:[%s3821_s3 + $0x58] sm:$0xff] }
 0x108   :  { %v374_v3 = vadd.f32 %v373_v0, %v3188_v60  ;;  %v375_v4 = vpop.f32.mrb[3].mxu0  ;;  %v443_v35 = vadd.f32 %v442_v31, %v3231_v21  ;;  %v444_v36 = vpop.f32.mrb[1].mxu1 }
 0x109   :  { %v376_v7 = vadd.f32 %v375_v4, %v3192_v62  ;;  %v445_v42 = vpop.f32.mrb[2].mxu1 }
 0x10a   :  { %v3211_v12 = vpack.c.bf16 %v374_v3, %v370_v2  ;;  %v446_v45 = vadd.f32 %v445_v42, %v3231_v21  ;;  %v447_v46 = vpop.f32.mrb[3].mxu1 }
 0x10b   :  { %v3213_v13 = vpack.c.bf16 %v376_v7, %v372_v6 }
 0x10c   :  { %v3269_v52 = vpack.c.bf16 %v446_v45, %v443_v35 }
 0x10d   :  { %v379_v18 = vpop.f32.mrb[4].mxu0  ;;  %1531 = vmatprep.mubr.bf16.mxu0 %v3213_v13  ;;  %1677 = vmatprep.mubr.bf16.mxu1 %v3213_v13 }
 0x10e   :  { %v381_v22 = vpop.f32.mrb[5].mxu0  ;;  %1532 = vmatmul.mubr.bf16.vlgmr.msra.gmra.mrb[16].mxu0 %v3211_v12  ;;  %1678 = vmatmul.mubr.bf16.vlgmr.msra.gmra.mrb[16].mxu1 %v3211_v12  ;;  %v380_v27 = vadd.f32 %v379_v18, %v3188_v60 }
 0x10f   :  { %v383_v23 = vpop.f32.mrb[6].mxu0  ;;  %1573 = vmatpush1.bf16.msra.mxu0 %v2491_v50  ;;  %1719 = vmatpush1.bf16.msra.mxu1 %v2493_v53  ;;  %v382_v33 = vadd.f32 %v381_v22, %v3192_v62  ;;  %v3265_v50 = vld [vmem:[%s3821_s3 + $0x30] sm:$0xff]  ;;  %v3274_v53 = vld [vmem:[%s3821_s3 + $0x18] sm:$0xff]  ;;  %v450_v6 = vpop.f32.mrb[4].mxu1 }
 0x110   :  { %v384_v28 = vadd.f32 %v383_v23, %v3188_v60  ;;  %v385_v29 = vpop.f32.mrb[7].mxu0  ;;  %1574 = vmatprep.subr.bf16.mxu0 %v2500_v14  ;;  %1720 = vmatprep.subr.bf16.mxu1 %v2502_v15  ;;  %v2368_v0 = vcombine.high %v3260_v49, %v3265_v50  ;;  %v2370_v5 = vcombine.high %v3274_v53, %v3279_v54  ;;  %v452_v10 = vpop.f32.mrb[5].mxu1 }
 0x111   :  { %v386_v34 = vadd.f32 %v385_v29, %v3192_v62  ;;  %v451_v9 = vadd.f32 %v450_v6, %v3231_v21  ;;  %v453_v15 = vpop.f32.mrb[6].mxu1  ;;  %v2367_v46 = vcombine.low %v3260_v49, %v3265_v50  ;;  %v504_v49 = vld [vmem:[%s3821_s3 + $0x98] sm:$0xff] }
 0x112   :  { %v3252_v40 = vpack.c.bf16 %v384_v28, %v380_v27  ;;  %v454_v17 = vadd.f32 %v453_v15, %v3231_v21  ;;  %v455_v18 = vpop.f32.mrb[7].mxu1  ;;  %v508_v50 = vld [vmem:[%s3821_s3 + $0xb8] sm:$0xff]  ;;  %v519_v15 = vld [vmem:[%s3821_s3 + $0x110] sm:$0xff] }
 0x113   :  { %v3254_v43 = vpack.c.bf16 %v386_v34, %v382_v33  ;;  %1575 = vmatpush1.bf16.msra.mxu0 %v2499_v24  ;;  %1721 = vmatpush1.bf16.msra.mxu1 %v2501_v25  ;;  %v516_v6 = vld [vmem:[%s3821_s3 + $0xf8] sm:$0xff] }
 0x114   :  { %1576 = vmatprep.subr.bf16.mxu0 %v2508_v26  ;;  %1722 = vmatprep.subr.bf16.mxu1 %v2510_v30  ;;  %v3299_v20 = vpack.c.bf16 %v454_v17, %v451_v9  ;;  %v523_v17 = vld [vmem:[%s3821_s3 + $0x130] sm:$0xff]  ;;  %v520_v18 = vld [vmem:[%s3821_s3 + $0x118] sm:$0xff] }
 0x115   :  { %v389_v51 = vpop.f32.mrb[8].mxu0  ;;  %1541 = vmatprep.mubr.bf16.mxu0 %v3254_v43  ;;  %1687 = vmatprep.mubr.bf16.mxu1 %v3254_v43 }
 0x116   :  { %v391_v55 = vpop.f32.mrb[9].mxu0  ;;  %1542 = vmatmul.mubr.bf16.gmra.mrb[20].mxu0 %v3252_v40  ;;  %1688 = vmatmul.mubr.bf16.gmra.mrb[20].mxu1 %v3252_v40  ;;  %v390_v2 = vadd.f32 %v389_v51, %v3188_v60 }
 0x117   :  { %v393_v58 = vpop.f32.mrb[10].mxu0  ;;  %1577 = vmatpush1.bf16.msra.mxu0 %v2507_v41  ;;  %1723 = vmatpush1.bf16.msra.mxu1 %v2509_v44  ;;  %v392_v7 = vadd.f32 %v391_v55, %v3192_v62  ;;  %v458_v27 = vpop.f32.mrb[8].mxu1  ;;  %v500_v41 = vld [vmem:[%s3821_s3 + $0x78] sm:$0xff] }
 0x118   :  { %v394_v3 = vadd.f32 %v393_v58, %v3188_v60  ;;  %v395_v4 = vpop.f32.mrb[11].mxu0  ;;  %1578 = vmatprep.subr.bf16.mxu0 %v2516_v47  ;;  %1724 = vmatprep.subr.bf16.mxu1 %v2518_v48  ;;  %v459_v30 = vadd.f32 %v458_v27, %v3231_v21  ;;  %v460_v31 = vpop.f32.mrb[9].mxu1  ;;  %v2369_v47 = vcombine.low %v3274_v53, %v3279_v54  ;;  %v531_v27 = vld [vmem:[%s3821_s3 + $0x170] sm:$0xff] }
 0x119   :  { %v396_v8 = vadd.f32 %v395_v4, %v3192_v62  ;;  %v461_v33 = vpop.f32.mrb[10].mxu1  ;;  %v2378_v58 = vcombine.high %v496_v39, %v500_v41  ;;  %v2377_v54 = vcombine.low %v496_v39, %v500_v41  ;;  %v515_v4 = vld [vmem:[%s3821_s3 + $0xf0] sm:$0xff] }
 0x11a   :  { %v3292_v14 = vpack.c.bf16 %v394_v3, %v390_v2  ;;  %v462_v35 = vadd.f32 %v461_v33, %v3231_v21  ;;  %v463_v36 = vpop.f32.mrb[11].mxu1  ;;  %v2386_v2 = vcombine.high %v504_v49, %v508_v50  ;;  %v511_v3 = vld [vmem:[%s3821_s3 + $0xd0] sm:$0xff] }
 0x11b   :  { %v3294_v16 = vpack.c.bf16 %v396_v8, %v392_v7  ;;  %1579 = vmatpush1.bf16.msra.mxu0 %v2515_v61  ;;  %1725 = vmatpush1.bf16.msra.mxu1 %v2517_v63  ;;  %v503_v61 = vld [vmem:[%s3821_s3 + $0x90] sm:$0xff]  ;;  %v2385_v8 = vcombine.low %v504_v49, %v508_v50  ;;  %v2392_v9 = vcombine.high %v511_v3, %v515_v4  ;;  %v552_v50 = vld [vmem:[%s3821_s3 + $0x218] sm:$0xff] }
 0x11c   :  { %1791 = vmatprep.subr.bf16.mxu0 %v2368_v0  ;;  %1937 = vmatprep.subr.bf16.mxu1 %v2370_v5  ;;  %v507_v63 = vld [vmem:[%s3821_s3 + $0xb0] sm:$0xff]  ;;  %v512_v5 = vld [vmem:[%s3821_s3 + $0xd8] sm:$0xff] }
 0x11d   :  { %v399_v19 = vpop.f32.mrb[12].mxu0  ;;  %1551 = vmatprep.mubr.bf16.mxu0 %v3294_v16  ;;  %1697 = vmatprep.mubr.bf16.mxu1 %v3294_v16  ;;  %v2384_v0 = vcombine.high %v503_v61, %v507_v63  ;;  %v2383_v7 = vcombine.low %v503_v61, %v507_v63  ;;  %v2394_v10 = vcombine.high %v512_v5, %v516_v6  ;;  %v535_v36 = vld [vmem:[%s3821_s3 + $0x190] sm:$0xff] }
 0x11e   :  { %v401_v22 = vpop.f32.mrb[13].mxu0  ;;  %1552 = vmatmul.mubr.bf16.gmra.mrb[24].mxu0 %v3292_v14  ;;  %1698 = vmatmul.mubr.bf16.gmra.mrb[24].mxu1 %v3292_v14  ;;  %v400_v24 = vadd.f32 %v399_v19, %v3188_v60  ;;  %v524_v19 = vld [vmem:[%s3821_s3 + $0x138] sm:$0xff]  ;;  %v555_v49 = vld [vmem:[%s3821_s3 + $0x230] sm:$0xff] }
 0x11f   :  { %v403_v23 = vpop.f32.mrb[14].mxu0  ;;  %v402_v28 = vadd.f32 %v401_v22, %v3192_v62  ;;  %v466_v37 = vpop.f32.mrb[12].mxu1  ;;  %v2391_v22 = vcombine.low %v511_v3, %v515_v4  ;;  %v2401_v31 = vcombine.low %v520_v18, %v524_v19  ;;  %v559_v4 = vld [vmem:[%s3821_s3 + $0x250] sm:$0xff] }
 0x120   :  { %v404_v25 = vadd.f32 %v403_v23, %v3188_v60  ;;  %v405_v26 = vpop.f32.mrb[15].mxu0  ;;  %v3315_v60 = vpack.c.bf16 %v462_v35, %v459_v30  ;;  %v467_v42 = vadd.f32 %v466_v37, %v3231_v21  ;;  %v468_v44 = vpop.f32.mrb[13].mxu1  ;;  %v2393_v23 = vcombine.low %v512_v5, %v516_v6  ;;  %v536_v37 = vld [vmem:[%s3821_s3 + $0x198] sm:$0xff]  ;;  %v563_v5 = vld [vmem:[%s3821_s3 + $0x270] sm:$0xff] }
 0x121   :  { %v406_v29 = vadd.f32 %v405_v26, %v3192_v62  ;;  %v495_v62 = vld [vmem:[%s3821_s3 + $0x50] sm:$0xff]  ;;  %v469_v45 = vpop.f32.mrb[14].mxu1  ;;  %v2399_v30 = vcombine.low %v519_v15, %v523_v17  ;;  %v560_v6 = vld [vmem:[%s3821_s3 + $0x258] sm:$0xff] }
 0x122   :  { %v3308_v32 = vpack.c.bf16 %v404_v25, %v400_v24  ;;  %v470_v48 = vadd.f32 %v469_v45, %v3231_v21  ;;  %v471_v51 = vpop.f32.mrb[15].mxu1  ;;  %v2376_v55 = vcombine.high %v495_v62, %v499_v38  ;;  %v2375_v53 = vcombine.low %v495_v62, %v499_v38  ;;  %v527_v26 = vld [vmem:[%s3821_s3 + $0x150] sm:$0xff]  ;;  %v540_v38 = vld [vmem:[%s3821_s3 + $0x1b8] sm:$0xff] }
 0x123   :  { %v3310_v34 = vpack.c.bf16 %v406_v29, %v402_v28  ;;  %v2400_v24 = vcombine.high %v519_v15, %v523_v17  ;;  %v2402_v25 = vcombine.high %v520_v18, %v524_v19  ;;  %v528_v28 = vld [vmem:[%s3821_s3 + $0x158] sm:$0xff]  ;;  %v2408_v33 = vcombine.high %v527_v26, %v531_v27  ;;  %v539_v62 = vld [vmem:[%s3821_s3 + $0x1b0] sm:$0xff] }
 0x124   :  { %v3351_v21 = vpack.c.bf16 %v470_v48, %v467_v42  ;;  %v532_v29 = vld [vmem:[%s3821_s3 + $0x178] sm:$0xff]  ;;  %v2407_v39 = vcombine.low %v527_v26, %v531_v27  ;;  %v2416_v42 = vcombine.high %v535_v36, %v539_v62  ;;  %v2418_v44 = vcombine.high %v536_v37, %v540_v38  ;;  %v543_v45 = vld [vmem:[%s3821_s3 + $0x1d0] sm:$0xff] }
 0x125   :  { %1561 = vmatprep.mubr.bf16.mxu0 %v3310_v34  ;;  %1707 = vmatprep.mubr.bf16.mxu1 %v3310_v34  ;;  %v2410_v35 = vcombine.high %v528_v28, %v532_v29  ;;  %v2409_v41 = vcombine.low %v528_v28, %v532_v29  ;;  %v548_v48 = vld [vmem:[%s3821_s3 + $0x1f8] sm:$0xff]  ;;  %v2415_v51 = vcombine.low %v535_v36, %v539_v62  ;;  %v567_v15 = vld [vmem:[%s3821_s3 + $0x290] sm:$0xff] }
 0x126   :  { %1562 = vmatmul.mubr.bf16.gmra.mrb[28].mxu0 %v3308_v32  ;;  %1708 = vmatmul.mubr.bf16.gmra.mrb[28].mxu1 %v3308_v32  ;;  %v571_v17 = vld [vmem:[%s3821_s3 + $0x2b0] sm:$0xff]  ;;  %v568_v18 = vld [vmem:[%s3821_s3 + $0x298] sm:$0xff] }
 0x127   :  { %1604 = vmatprep.mubr.bf16.mxu0 %v2792_v1  ;;  %1750 = vmatprep.mubr.bf16.mxu1 %v2792_v1  ;;  %v572_v19 = vld [vmem:[%s3821_s3 + $0x2b8] sm:$0xff]  ;;  %v575_v26 = vld [vmem:[%s3821_s3 + $0x2d0] sm:$0xff] }
 0x128   :  { %v579_v27 = vld [vmem:[%s3821_s3 + $0x2f0] sm:$0xff]  ;;  %v576_v28 = vld [vmem:[%s3821_s3 + $0x2d8] sm:$0xff] }
 0x129   :  { %v580_v29 = vld [vmem:[%s3821_s3 + $0x2f8] sm:$0xff]  ;;  %v583_v36 = vld [vmem:[%s3821_s3 + $0x310] sm:$0xff] }
 0x12a   :  { %v587_v62 = vld [vmem:[%s3821_s3 + $0x330] sm:$0xff] }
 0x12e   :  { %2523 = vmatmul.mubr.msk.bf16.vlgmr.msra.gmra.mrb[16].mxu0 %vm322_vm0, %v3269_v52  ;;  %2527 = vmatmul.mubr.msk.bf16.vlgmr.msra.gmra.mrb[16].mxu1 %vm322_vm0, %v3269_v52 }
 0x12f   :  { %1792 = vmatpush1.bf16.msra.mxu0 %v2367_v46  ;;  %1938 = vmatpush1.bf16.msra.mxu1 %v2369_v47  ;;  %v547_v46 = vld [vmem:[%s3821_s3 + $0x1f0] sm:$0xff]  ;;  %v544_v47 = vld [vmem:[%s3821_s3 + $0x1d8] sm:$0xff] }
 0x130   :  { %1793 = vmatprep.subr.bf16.mxu0 %v2376_v55  ;;  %1939 = vmatprep.subr.bf16.mxu1 %v2378_v58  ;;  %v2417_v55 = vcombine.low %v536_v37, %v540_v38  ;;  %v551_v58 = vld [vmem:[%s3821_s3 + $0x210] sm:$0xff]  ;;  %v2424_v61 = vcombine.high %v543_v45, %v547_v46  ;;  %v2426_v63 = vcombine.high %v544_v47, %v548_v48  ;;  %v584_v37 = vld [vmem:[%s3821_s3 + $0x318] sm:$0xff] }
 0x131   :  { %1614 = vmatprep.mubr.bf16.mxu0 %v2792_v1  ;;  %1760 = vmatprep.mubr.bf16.mxu1 %v2792_v1  ;;  %v588_v38 = vld [vmem:[%s3821_s3 + $0x338] sm:$0xff] }
 0x133   :  { %1794 = vmatpush1.bf16.msra.mxu0 %v2375_v53  ;;  %1940 = vmatpush1.bf16.msra.mxu1 %v2377_v54  ;;  %v556_v53 = vld [vmem:[%s3821_s3 + $0x238] sm:$0xff]  ;;  %v2423_v54 = vcombine.low %v543_v45, %v547_v46  ;;  %v591_v45 = vld [vmem:[%s3821_s3 + $0x350] sm:$0xff] }
 0x134   :  { %1795 = vmatprep.subr.bf16.mxu0 %v2384_v0  ;;  %1941 = vmatprep.subr.bf16.mxu1 %v2386_v2  ;;  %v2425_v0 = vcombine.low %v544_v47, %v548_v48  ;;  %v2432_v2 = vcombine.high %v551_v58, %v555_v49  ;;  %v2434_v3 = vcombine.high %v552_v50, %v556_v53  ;;  %v595_v46 = vld [vmem:[%s3821_s3 + $0x370] sm:$0xff]  ;;  %v592_v47 = vld [vmem:[%s3821_s3 + $0x358] sm:$0xff] }
 0x135   :  { %v596_v48 = vld [vmem:[%s3821_s3 + $0x378] sm:$0xff] }
 0x136   :  { %2524 = vmatmul.mubr.msk.bf16.gmra.mrb[20].mxu0 %vm322_vm0, %v3299_v20  ;;  %2528 = vmatmul.mubr.msk.bf16.gmra.mrb[20].mxu1 %vm322_vm0, %v3299_v20 }
 0x137   :  { %1796 = vmatpush1.bf16.msra.mxu0 %v2383_v7  ;;  %1942 = vmatpush1.bf16.msra.mxu1 %v2385_v8  ;;  %v2431_v7 = vcombine.low %v551_v58, %v555_v49  ;;  %v2433_v8 = vcombine.low %v552_v50, %v556_v53  ;;  %v2472_v58 = vcombine.high %v591_v45, %v595_v46  ;;  %v603_v49 = vld [vmem:[%s3821_s3 + $0x3b0] sm:$0xff]  ;;  %v600_v50 = vld [vmem:[%s3821_s3 + $0x398] sm:$0xff] }
 0x138   :  { %1797 = vmatprep.subr.bf16.mxu0 %v2392_v9  ;;  %1943 = vmatprep.subr.bf16.mxu1 %v2394_v10  ;;  %v2440_v9 = vcombine.high %v559_v4, %v563_v5  ;;  %v604_v53 = vld [vmem:[%s3821_s3 + $0x3b8] sm:$0xff] }
 0x139   :  { %1624 = vmatprep.mubr.bf16.mxu0 %v2792_v1  ;;  %1770 = vmatprep.mubr.bf16.mxu1 %v2792_v1 }
 0x13b   :  { %1798 = vmatpush1.bf16.msra.mxu0 %v2391_v22  ;;  %1944 = vmatpush1.bf16.msra.mxu1 %v2393_v23  ;;  %v2439_v22 = vcombine.low %v559_v4, %v563_v5  ;;  %v607_v4 = vld [vmem:[%s3821_s3 + $0x3d0] sm:$0xff] }
 0x13c   :  { %1799 = vmatprep.subr.bf16.mxu0 %v2400_v24  ;;  %1945 = vmatprep.subr.bf16.mxu1 %v2402_v25  ;;  %v2448_v24 = vcombine.high %v567_v15, %v571_v17  ;;  %v2450_v25 = vcombine.high %v568_v18, %v572_v19  ;;  %v611_v5 = vld [vmem:[%s3821_s3 + $0x3f0] sm:$0xff] }
 0x13e   :  { %2525 = vmatmul.mubr.msk.bf16.gmra.mrb[24].mxu0 %vm322_vm0, %v3315_v60  ;;  %2529 = vmatmul.mubr.msk.bf16.gmra.mrb[24].mxu1 %vm322_vm0, %v3315_v60 }
 0x13f   :  { %1800 = vmatpush1.bf16.msra.mxu0 %v2399_v30  ;;  %1946 = vmatpush1.bf16.msra.mxu1 %v2401_v31  ;;  %v2447_v30 = vcombine.low %v567_v15, %v571_v17  ;;  %v2449_v31 = vcombine.low %v568_v18, %v572_v19  ;;  %v615_v15 = vld [vmem:[%s3821_s3 + $0x410] sm:$0xff]  ;;  %v616_v18 = vld [vmem:[%s3821_s3 + $0x418] sm:$0xff] }
 0x140   :  { %1801 = vmatprep.subr.bf16.mxu0 %v2408_v33  ;;  %1947 = vmatprep.subr.bf16.mxu1 %v2410_v35  ;;  %v2456_v33 = vcombine.high %v575_v26, %v579_v27  ;;  %v2458_v35 = vcombine.high %v576_v28, %v580_v29  ;;  %v619_v17 = vld [vmem:[%s3821_s3 + $0x430] sm:$0xff]  ;;  %v620_v19 = vld [vmem:[%s3821_s3 + $0x438] sm:$0xff] }
 0x141   :  { %1634 = vmatprep.mubr.bf16.mxu0 %v2792_v1  ;;  %1780 = vmatprep.mubr.bf16.mxu1 %v2792_v1 }
 0x143   :  { %1802 = vmatpush1.bf16.msra.mxu0 %v2407_v39  ;;  %1948 = vmatpush1.bf16.msra.mxu1 %v2409_v41  ;;  %v2455_v39 = vcombine.low %v575_v26, %v579_v27  ;;  %v2457_v41 = vcombine.low %v576_v28, %v580_v29  ;;  %v623_v26 = vld [vmem:[%s3821_s3 + $0x450] sm:$0xff]  ;;  %v624_v28 = vld [vmem:[%s3821_s3 + $0x458] sm:$0xff] }
 0x144   :  { %1803 = vmatprep.subr.bf16.mxu0 %v2416_v42  ;;  %1949 = vmatprep.subr.bf16.mxu1 %v2418_v44  ;;  %v2464_v42 = vcombine.high %v583_v36, %v587_v62  ;;  %v2466_v44 = vcombine.high %v584_v37, %v588_v38  ;;  %v627_v27 = vld [vmem:[%s3821_s3 + $0x470] sm:$0xff]  ;;  %v628_v29 = vld [vmem:[%s3821_s3 + $0x478] sm:$0xff] }
 0x146   :  { %2526 = vmatmul.mubr.msk.bf16.gmra.mrb[28].mxu0 %vm322_vm0, %v3351_v21  ;;  %2530 = vmatmul.mubr.msk.bf16.gmra.mrb[28].mxu1 %vm322_vm0, %v3351_v21 }
 0x147   :  { %1804 = vmatpush1.bf16.msra.mxu0 %v2415_v51  ;;  %1950 = vmatpush1.bf16.msra.mxu1 %v2417_v55  ;;  %v2463_v51 = vcombine.low %v583_v36, %v587_v62  ;;  %v2465_v55 = vcombine.low %v584_v37, %v588_v38  ;;  %v631_v36 = vld [vmem:[%s3821_s3 + $0x490] sm:$0xff]  ;;  %v632_v37 = vld [vmem:[%s3821_s3 + $0x498] sm:$0xff] }
 0x148   :  { %1823 = vmatprep.mubr.bf16.mxu0 %v3213_v13  ;;  %1969 = vmatprep.mubr.bf16.mxu1 %v3213_v13  ;;  %v564_v13 = vld [vmem:[%s3821_s3 + $0x278] sm:$0xff]  ;;  %v635_v62 = vld [vmem:[%s3821_s3 + $0x4b0] sm:$0xff] }
 0x149   :  { %1805 = vmatprep.subr.bf16.mxu0 %v2424_v61  ;;  %1951 = vmatprep.subr.bf16.mxu1 %v2426_v63  ;;  %v2442_v10 = vcombine.high %v560_v6, %v564_v13  ;;  %v2441_v23 = vcombine.low %v560_v6, %v564_v13  ;;  %v2474_v61 = vcombine.high %v592_v47, %v596_v48  ;;  %v599_v63 = vld [vmem:[%s3821_s3 + $0x390] sm:$0xff]  ;;  %v608_v6 = vld [vmem:[%s3821_s3 + $0x3d8] sm:$0xff] }
 0x14a   :  { %v612_v13 = vld [vmem:[%s3821_s3 + $0x3f8] sm:$0xff] }
 0x14b   :  { %1806 = vmatpush1.bf16.msra.mxu0 %v2423_v54  ;;  %1952 = vmatpush1.bf16.msra.mxu1 %v2425_v0  ;;  %v2471_v54 = vcombine.low %v591_v45, %v595_v46  ;;  %v2473_v0 = vcombine.low %v592_v47, %v596_v48  ;;  %v636_v38 = vld [vmem:[%s3821_s3 + $0x4b8] sm:$0xff]  ;;  %v643_v45 = vld [vmem:[%s3821_s3 + $0x4f0] sm:$0xff]  ;;  %v2511_v47 = vcombine.low %v631_v36, %v635_v62 }
 0x14c   :  { %1807 = vmatprep.subr.bf16.mxu0 %v2432_v2  ;;  %1953 = vmatprep.subr.bf16.mxu1 %v2434_v3  ;;  %v2480_v2 = vcombine.high %v599_v63, %v603_v49  ;;  %v2482_v3 = vcombine.high %v600_v50, %v604_v53  ;;  %v640_v46 = vld [vmem:[%s3821_s3 + $0x4d8] sm:$0xff]  ;;  %v2513_v48 = vcombine.low %v632_v37, %v636_v38 }
 0x14f   :  { %1808 = vmatpush1.bf16.msra.mxu0 %v2431_v7  ;;  %1954 = vmatpush1.bf16.msra.mxu1 %v2433_v8  ;;  %v2479_v7 = vcombine.low %v599_v63, %v603_v49  ;;  %v2481_v8 = vcombine.low %v600_v50, %v604_v53 }
 0x150   :  { %1809 = vmatprep.subr.bf16.mxu0 %v2440_v9  ;;  %1955 = vmatprep.subr.bf16.mxu1 %v2442_v10  ;;  %v2488_v9 = vcombine.high %v607_v4, %v611_v5  ;;  %v2490_v10 = vcombine.high %v608_v6, %v612_v13 }
 0x153   :  { %1810 = vmatpush1.bf16.msra.mxu0 %v2439_v22  ;;  %1956 = vmatpush1.bf16.msra.mxu1 %v2441_v23  ;;  %v2487_v22 = vcombine.low %v607_v4, %v611_v5  ;;  %v2489_v23 = vcombine.low %v608_v6, %v612_v13 }
 0x154   :  { %1811 = vmatprep.subr.bf16.mxu0 %v2448_v24  ;;  %1957 = vmatprep.subr.bf16.mxu1 %v2450_v25  ;;  %v2496_v24 = vcombine.high %v615_v15, %v619_v17  ;;  %v2498_v25 = vcombine.high %v616_v18, %v620_v19 }
 0x157   :  { %1812 = vmatpush1.bf16.msra.mxu0 %v2447_v30  ;;  %1958 = vmatpush1.bf16.msra.mxu1 %v2449_v31  ;;  %v2495_v30 = vcombine.low %v615_v15, %v619_v17  ;;  %v2497_v31 = vcombine.low %v616_v18, %v620_v19 }
 0x158   :  { %1813 = vmatprep.subr.bf16.mxu0 %v2456_v33  ;;  %1959 = vmatprep.subr.bf16.mxu1 %v2458_v35  ;;  %v2504_v33 = vcombine.high %v623_v26, %v627_v27  ;;  %v2506_v35 = vcombine.high %v624_v28, %v628_v29 }
 0x15b   :  { %1814 = vmatpush1.bf16.msra.mxu0 %v2455_v39  ;;  %1960 = vmatpush1.bf16.msra.mxu1 %v2457_v41  ;;  %v2503_v39 = vcombine.low %v623_v26, %v627_v27  ;;  %v2505_v41 = vcombine.low %v624_v28, %v628_v29 }
 0x15c   :  { %1815 = vmatprep.subr.bf16.mxu0 %v2464_v42  ;;  %1961 = vmatprep.subr.bf16.mxu1 %v2466_v44  ;;  %v2512_v42 = vcombine.high %v631_v36, %v635_v62  ;;  %v639_v44 = vld [vmem:[%s3821_s3 + $0x4d0] sm:$0xff] }
 0x15f   :  { %1816 = vmatpush1.bf16.msra.mxu0 %v2463_v51  ;;  %1962 = vmatpush1.bf16.msra.mxu1 %v2465_v55  ;;  %v2520_v51 = vcombine.high %v639_v44, %v643_v45 }
 0x160   :  { %1817 = vmatprep.subr.bf16.mxu0 %v2472_v58  ;;  %1963 = vmatprep.subr.bf16.mxu1 %v2474_v61  ;;  %v2519_v58 = vcombine.low %v639_v44, %v643_v45 }
 0x163   :  { %1818 = vmatpush1.bf16.msra.mxu0 %v2471_v54  ;;  %1964 = vmatpush1.bf16.msra.mxu1 %v2473_v0 }
 0x164   :  { %1819 = vmatprep.subr.bf16.mxu0 %v2480_v2  ;;  %1965 = vmatprep.subr.bf16.mxu1 %v2482_v3 }
 0x167   :  { %1820 = vmatpush1.bf16.msra.mxu0 %v2479_v7  ;;  %1966 = vmatpush1.bf16.msra.mxu1 %v2481_v8 }
 0x168   :  { %1821 = vmatprep.subr.bf16.mxu0 %v2488_v9  ;;  %1967 = vmatprep.subr.bf16.mxu1 %v2490_v10 }
 0x16b   :  { %1822 = vmatpush1.bf16.msra.mxu0 %v2487_v22  ;;  %1968 = vmatpush1.bf16.msra.mxu1 %v2489_v23 }
 0x16c   :  { %1864 = vmatprep.subr.bf16.mxu0 %v2496_v24  ;;  %2010 = vmatprep.subr.bf16.mxu1 %v2498_v25 }
 0x16e   :  { %1824 = vmatmul.mubr.bf16.vlgmr.msra.gmra.mrb[32].mxu0 %v3211_v12  ;;  %1970 = vmatmul.mubr.bf16.vlgmr.msra.gmra.mrb[32].mxu1 %v3211_v12  ;;  %v2514_v12 = vcombine.high %v632_v37, %v636_v38 }
 0x16f   :  { %1833 = vmatprep.mubr.bf16.mxu0 %v3254_v43  ;;  %1865 = vmatpush1.bf16.msra.mxu0 %v2495_v30 }
 0x170   :  { %1979 = vmatprep.mubr.bf16.mxu1 %v3254_v43  ;;  %2011 = vmatpush1.bf16.msra.mxu1 %v2497_v31  ;;  %v644_v43 = vld [vmem:[%s3821_s3 + $0x4f8] sm:$0xff] }
 0x171   :  { %1866 = vmatprep.subr.bf16.mxu0 %v2504_v33  ;;  %2012 = vmatprep.subr.bf16.mxu1 %v2506_v35  ;;  %v2522_v55 = vcombine.high %v640_v46, %v644_v43  ;;  %v2521_v61 = vcombine.low %v640_v46, %v644_v43 }
 0x173   :  { %1867 = vmatpush1.bf16.msra.mxu0 %v2503_v39 }
 0x174   :  { %2013 = vmatpush1.bf16.msra.mxu1 %v2505_v41  ;;  %1868 = vmatprep.subr.bf16.mxu0 %v2512_v42 }
 0x175   :  { %2014 = vmatprep.subr.bf16.mxu1 %v2514_v12 }
 0x176   :  { %1834 = vmatmul.mubr.bf16.gmra.mrb[36].mxu0 %v3252_v40  ;;  %1980 = vmatmul.mubr.bf16.gmra.mrb[36].mxu1 %v3252_v40  ;;  %v3622_v40 = vld [vmem:[%s3823_s4] sm:$0xff] }
 0x177   :  { %1843 = vmatprep.mubr.bf16.mxu0 %v3294_v16  ;;  %1989 = vmatprep.mubr.bf16.mxu1 %v3294_v16  ;;  %v3638_v16 = vrot.slane %v3622_v40, %v85_v59 }
 0x178   :  { %1869 = vmatpush1.bf16.msra.mxu0 %v2511_v47  ;;  %2015 = vmatpush1.bf16.msra.mxu1 %v2513_v48 }
 0x179   :  { %1870 = vmatprep.subr.bf16.mxu0 %v2520_v51  ;;  %2016 = vmatprep.subr.bf16.mxu1 %v2522_v55 }
 0x17c   :  { %1871 = vmatpush1.bf16.msra.mxu0 %v2519_v58  ;;  %2017 = vmatpush1.bf16.msra.mxu1 %v2521_v61 }
 0x17e   :  { %1844 = vmatmul.mubr.bf16.gmra.mrb[40].mxu0 %v3292_v14  ;;  %1990 = vmatmul.mubr.bf16.gmra.mrb[40].mxu1 %v3292_v14  ;;  %v3628_v14 = vrot.slane %v3622_v40, %v81_v57 }
 0x17f   :  { %1853 = vmatprep.mubr.bf16.mxu0 %v3310_v34  ;;  %1999 = vmatprep.mubr.bf16.mxu1 %v3310_v34 }
 0x186   :  { %1854 = vmatmul.mubr.bf16.gmra.mrb[44].mxu0 %v3308_v32  ;;  %2000 = vmatmul.mubr.bf16.gmra.mrb[44].mxu1 %v3308_v32 }
 0x187   :  { %1896 = vmatprep.mubr.bf16.mxu0 %v2792_v1  ;;  %2042 = vmatprep.mubr.bf16.mxu1 %v2792_v1 }
 0x18e   :  { %2531 = vmatmul.mubr.msk.bf16.vlgmr.msra.gmra.mrb[32].mxu0 %vm322_vm0, %v3269_v52  ;;  %2535 = vmatmul.mubr.msk.bf16.vlgmr.msra.gmra.mrb[32].mxu1 %vm322_vm0, %v3269_v52  ;;  %v661_v52 = vsub.s32 3, %v3179_v56 }
 0x18f   :  { %1906 = vmatprep.mubr.bf16.mxu0 %v2792_v1  ;;  %2052 = vmatprep.mubr.bf16.mxu1 %v2792_v1 }
 0x196   :  { %2532 = vmatmul.mubr.msk.bf16.gmra.mrb[36].mxu0 %vm322_vm0, %v3299_v20  ;;  %2536 = vmatmul.mubr.msk.bf16.gmra.mrb[36].mxu1 %vm322_vm0, %v3299_v20  ;;  %v3641_v20 = vrot.slane %v3622_v40, %v661_v52 }
 0x197   :  { %1916 = vmatprep.mubr.bf16.mxu0 %v2792_v1  ;;  %2062 = vmatprep.mubr.bf16.mxu1 %v2792_v1 }
 0x19e   :  { %2533 = vmatmul.mubr.msk.bf16.gmra.mrb[40].mxu0 %vm322_vm0, %v3315_v60  ;;  %2537 = vmatmul.mubr.msk.bf16.gmra.mrb[40].mxu1 %vm322_vm0, %v3315_v60 }
 0x19f   :  { %1926 = vmatprep.mubr.bf16.mxu0 %v2792_v1  ;;  %2072 = vmatprep.mubr.bf16.mxu1 %v2792_v1  ;;  %v3633_v1 = vrot.slane %v3622_v40, %v89_v11 }
 0x1a6   :  { %2534 = vmatmul.mubr.msk.bf16.gmra.mrb[44].mxu0 %vm322_vm0, %v3351_v21  ;;  %2538 = vmatmul.mubr.msk.bf16.gmra.mrb[44].mxu1 %vm322_vm0, %v3351_v21 }
 0x201   :  { %v1606_v32 = vpop.f32.mrb[16].mxu0  ;;  %v1752_v34 = vpop.f32.mrb[16].mxu1 }
 0x202   :  { %v2603_v60 = vadd.f32 %v1606_v32, %v3628_v14  ;;  %v2619_v57 = vadd.f32 %v1752_v34, %v3633_v1  ;;  %v1608_v21 = vpop.f32.mrb[17].mxu0  ;;  %v1754_v63 = vpop.f32.mrb[17].mxu1 }
 0x203   :  { %v2604_v49 = vadd.f32 %v1608_v21, %v3638_v16  ;;  %v2620_v11 = vadd.f32 %v1754_v63, %v3641_v20  ;;  %v1610_v50 = vpop.f32.mrb[18].mxu0  ;;  %v1756_v53 = vpop.f32.mrb[18].mxu1 }
 0x204   :  { %v2605_v59 = vadd.f32 %v1610_v50, %v3628_v14  ;;  %v2621_v54 = vadd.f32 %v1756_v53, %v3633_v1  ;;  %v1612_v0 = vpop.f32.mrb[19].mxu0  ;;  %v1758_v2 = vpop.f32.mrb[19].mxu1 }
 0x205   :  { %v2571_v3 = vpack.c.bf16 %v2604_v49, %v2603_v60  ;;  %v2572_v4 = vpack.c.bf16 %v2620_v11, %v2619_v57  ;;  %v2606_v5 = vadd.f32 %v1612_v0, %v3638_v16  ;;  %v2622_v6 = vadd.f32 %v1758_v2, %v3641_v20 }
 0x207   :  { %2275 = vst [vmem:[%s3824_s5] sm:$0xff] %v2571_v3  ;;  %2276 = vst [vmem:[%s3824_s5 + $0x8] sm:$0xff] %v2572_v4  ;;  %v2575_v13 = vpack.c.bf16 %v2606_v5, %v2605_v59  ;;  %v2576_v7 = vpack.c.bf16 %v2622_v6, %v2621_v54 }
 0x209   :  { %2279 = vst [vmem:[%s3824_s5 + $0x20] sm:$0xff] %v2575_v13  ;;  %2280 = vst [vmem:[%s3824_s5 + $0x28] sm:$0xff] %v2576_v7  ;;  %v1616_v8 = vpop.f32.mrb[20].mxu0  ;;  %v1762_v9 = vpop.f32.mrb[20].mxu1 }
 0x20a   :  { %v2607_v10 = vadd.f32 %v1616_v8, %v3628_v14  ;;  %v2623_v15 = vadd.f32 %v1762_v9, %v3633_v1  ;;  %v1618_v17 = vpop.f32.mrb[21].mxu0  ;;  %v1764_v18 = vpop.f32.mrb[21].mxu1  ;;  %v677_v9 = vsub.s32 7, %v3179_v56 }
 0x20b   :  { %v2608_v19 = vadd.f32 %v1618_v17, %v3638_v16  ;;  %v2624_v22 = vadd.f32 %v1764_v18, %v3641_v20  ;;  %v1620_v23 = vpop.f32.mrb[22].mxu0  ;;  %v1766_v24 = vpop.f32.mrb[22].mxu1 }
 0x20c   :  { %v2609_v25 = vadd.f32 %v1620_v23, %v3628_v14  ;;  %v2625_v26 = vadd.f32 %v1766_v24, %v3633_v1  ;;  %v1622_v27 = vpop.f32.mrb[23].mxu0  ;;  %v1768_v28 = vpop.f32.mrb[23].mxu1  ;;  %v3737_v18 = vrot.slane %v3622_v40, %v677_v9 }
 0x20d   :  { %v2579_v29 = vpack.c.bf16 %v2608_v19, %v2607_v10  ;;  %v2580_v30 = vpack.c.bf16 %v2624_v22, %v2623_v15  ;;  %v2610_v31 = vadd.f32 %v1622_v27, %v3638_v16  ;;  %v2626_v33 = vadd.f32 %v1768_v28, %v3641_v20 }
 0x20f   :  { %2283 = vst [vmem:[%s3824_s5 + $0x40] sm:$0xff] %v2579_v29  ;;  %2284 = vst [vmem:[%s3824_s5 + $0x48] sm:$0xff] %v2580_v30  ;;  %v2583_v35 = vpack.c.bf16 %v2610_v31, %v2609_v25  ;;  %v2584_v36 = vpack.c.bf16 %v2626_v33, %v2625_v26 }
 0x211   :  { %2287 = vst [vmem:[%s3824_s5 + $0x60] sm:$0xff] %v2583_v35  ;;  %2288 = vst [vmem:[%s3824_s5 + $0x68] sm:$0xff] %v2584_v36  ;;  %v1626_v62 = vpop.f32.mrb[24].mxu0  ;;  %v1772_v37 = vpop.f32.mrb[24].mxu1 }
 0x212   :  { %v2611_v38 = vadd.f32 %v1626_v62, %v3628_v14  ;;  %v2627_v39 = vadd.f32 %v1772_v37, %v3633_v1  ;;  %v1628_v41 = vpop.f32.mrb[25].mxu0  ;;  %v1774_v42 = vpop.f32.mrb[25].mxu1 }
 0x213   :  { %v2612_v12 = vadd.f32 %v1628_v41, %v3638_v16  ;;  %v2628_v44 = vadd.f32 %v1774_v42, %v3641_v20  ;;  %v1630_v45 = vpop.f32.mrb[26].mxu0  ;;  %v1776_v46 = vpop.f32.mrb[26].mxu1 }
 0x214   :  { %v2613_v43 = vadd.f32 %v1630_v45, %v3628_v14  ;;  %v2629_v47 = vadd.f32 %v1776_v46, %v3633_v1  ;;  %v1632_v48 = vpop.f32.mrb[27].mxu0  ;;  %v1778_v51 = vpop.f32.mrb[27].mxu1 }
 0x215   :  { %v2587_v55 = vpack.c.bf16 %v2612_v12, %v2611_v38  ;;  %v2588_v58 = vpack.c.bf16 %v2628_v44, %v2627_v39  ;;  %v2614_v61 = vadd.f32 %v1632_v48, %v3638_v16  ;;  %v2630_v52 = vadd.f32 %v1778_v51, %v3641_v20 }
 0x217   :  { %2291 = vst [vmem:[%s3824_s5 + $0x80] sm:$0xff] %v2587_v55  ;;  %2292 = vst [vmem:[%s3824_s5 + $0x88] sm:$0xff] %v2588_v58  ;;  %v2591_v32 = vpack.c.bf16 %v2614_v61, %v2613_v43  ;;  %v2592_v34 = vpack.c.bf16 %v2630_v52, %v2629_v47 }
 0x219   :  { %2295 = vst [vmem:[%s3824_s5 + $0xa0] sm:$0xff] %v2591_v32  ;;  %2296 = vst [vmem:[%s3824_s5 + $0xa8] sm:$0xff] %v2592_v34  ;;  %v1636_v60 = vpop.f32.mrb[28].mxu0  ;;  %v1782_v57 = vpop.f32.mrb[28].mxu1 }
 0x21a   :  { %v2615_v21 = vadd.f32 %v1636_v60, %v3628_v14  ;;  %v2631_v63 = vadd.f32 %v1782_v57, %v3633_v1  ;;  %v1638_v49 = vpop.f32.mrb[29].mxu0  ;;  %v1784_v11 = vpop.f32.mrb[29].mxu1 }
 0x21b   :  { %v2616_v50 = vadd.f32 %v1638_v49, %v3638_v16  ;;  %v2632_v53 = vadd.f32 %v1784_v11, %v3641_v20  ;;  %v1640_v59 = vpop.f32.mrb[30].mxu0  ;;  %v1786_v54 = vpop.f32.mrb[30].mxu1 }
 0x21c   :  { %v2617_v0 = vadd.f32 %v1640_v59, %v3628_v14  ;;  %v2633_v2 = vadd.f32 %v1786_v54, %v3633_v1  ;;  %v1642_v3 = vpop.f32.mrb[31].mxu0  ;;  %v1788_v4 = vpop.f32.mrb[31].mxu1  ;;  %v665_v1 = vsub.s32 4, %v3179_v56 }
 0x21d   :  { %v2595_v5 = vpack.c.bf16 %v2616_v50, %v2615_v21  ;;  %v2596_v6 = vpack.c.bf16 %v2632_v53, %v2631_v63  ;;  %v2618_v13 = vadd.f32 %v1642_v3, %v3638_v16  ;;  %v2634_v7 = vadd.f32 %v1788_v4, %v3641_v20 }
 0x21e   :  { %v673_v16 = vsub.s32 6, %v3179_v56  ;;  %v669_v20 = vsub.s32 5, %v3179_v56  ;;  %v3728_v10 = vrot.slane %v3622_v40, %v665_v1 }
 0x21f   :  { %2299 = vst [vmem:[%s3824_s5 + $0xc0] sm:$0xff] %v2595_v5  ;;  %2300 = vst [vmem:[%s3824_s5 + $0xc8] sm:$0xff] %v2596_v6  ;;  %v2599_v8 = vpack.c.bf16 %v2618_v13, %v2617_v0  ;;  %v2600_v14 = vpack.c.bf16 %v2634_v7, %v2633_v2 }
 0x220   :  { %v3731_v15 = vrot.slane %v3622_v40, %v673_v16  ;;  %v3734_v17 = vrot.slane %v3622_v40, %v669_v20 }
 0x221   :  { %2303 = vst [vmem:[%s3824_s5 + $0xe0] sm:$0xff] %v2599_v8  ;;  %2304 = vst [vmem:[%s3824_s5 + $0xe8] sm:$0xff] %v2600_v14 }
 0x261   :  { %v1898_v19 = vpop.f32.mrb[32].mxu0  ;;  %v2044_v22 = vpop.f32.mrb[32].mxu1 }
 0x262   :  { %v2635_v23 = vadd.f32 %v1898_v19, %v3728_v10  ;;  %v2651_v24 = vadd.f32 %v2044_v22, %v3731_v15  ;;  %v1900_v25 = vpop.f32.mrb[33].mxu0  ;;  %v2046_v56 = vpop.f32.mrb[33].mxu1 }
 0x263   :  { %v2636_v26 = vadd.f32 %v1900_v25, %v3734_v17  ;;  %v2652_v27 = vadd.f32 %v2046_v56, %v3737_v18  ;;  %v1902_v28 = vpop.f32.mrb[34].mxu0  ;;  %v2048_v29 = vpop.f32.mrb[34].mxu1 }
 0x264   :  { %v2637_v30 = vadd.f32 %v1902_v28, %v3728_v10  ;;  %v2653_v31 = vadd.f32 %v2048_v29, %v3731_v15  ;;  %v1904_v40 = vpop.f32.mrb[35].mxu0  ;;  %v2050_v33 = vpop.f32.mrb[35].mxu1 }
 0x265   :  { %v2573_v35 = vpack.c.bf16 %v2636_v26, %v2635_v23  ;;  %v2574_v36 = vpack.c.bf16 %v2652_v27, %v2651_v24  ;;  %v2638_v62 = vadd.f32 %v1904_v40, %v3734_v17  ;;  %v2654_v37 = vadd.f32 %v2050_v33, %v3737_v18 }
 0x267   :  { %2277 = vst [vmem:[%s3824_s5 + $0x10] sm:$0xff] %v2573_v35  ;;  %2278 = vst [vmem:[%s3824_s5 + $0x18] sm:$0xff] %v2574_v36  ;;  %v2577_v38 = vpack.c.bf16 %v2638_v62, %v2637_v30  ;;  %v2578_v39 = vpack.c.bf16 %v2654_v37, %v2653_v31 }
 0x269   :  { %2281 = vst [vmem:[%s3824_s5 + $0x30] sm:$0xff] %v2577_v38  ;;  %2282 = vst [vmem:[%s3824_s5 + $0x38] sm:$0xff] %v2578_v39  ;;  %v1908_v41 = vpop.f32.mrb[36].mxu0  ;;  %v2054_v42 = vpop.f32.mrb[36].mxu1 }
 0x26a   :  { %v2639_v12 = vadd.f32 %v1908_v41, %v3728_v10  ;;  %v2655_v44 = vadd.f32 %v2054_v42, %v3731_v15  ;;  %v1910_v45 = vpop.f32.mrb[37].mxu0  ;;  %v2056_v46 = vpop.f32.mrb[37].mxu1 }
 0x26b   :  { %v2640_v43 = vadd.f32 %v1910_v45, %v3734_v17  ;;  %v2656_v47 = vadd.f32 %v2056_v46, %v3737_v18  ;;  %v1912_v48 = vpop.f32.mrb[38].mxu0  ;;  %v2058_v51 = vpop.f32.mrb[38].mxu1 }
 0x26c   :  { %v2641_v55 = vadd.f32 %v1912_v48, %v3728_v10  ;;  %v2657_v58 = vadd.f32 %v2058_v51, %v3731_v15  ;;  %v1914_v61 = vpop.f32.mrb[39].mxu0  ;;  %v2060_v52 = vpop.f32.mrb[39].mxu1 }
 0x26d   :  { %v2581_v32 = vpack.c.bf16 %v2640_v43, %v2639_v12  ;;  %v2582_v34 = vpack.c.bf16 %v2656_v47, %v2655_v44  ;;  %v2642_v60 = vadd.f32 %v1914_v61, %v3734_v17  ;;  %v2658_v57 = vadd.f32 %v2060_v52, %v3737_v18 }
 0x26f   :  { %2285 = vst [vmem:[%s3824_s5 + $0x50] sm:$0xff] %v2581_v32  ;;  %2286 = vst [vmem:[%s3824_s5 + $0x58] sm:$0xff] %v2582_v34  ;;  %v2585_v21 = vpack.c.bf16 %v2642_v60, %v2641_v55  ;;  %v2586_v63 = vpack.c.bf16 %v2658_v57, %v2657_v58 }
 0x271   :  { %2289 = vst [vmem:[%s3824_s5 + $0x70] sm:$0xff] %v2585_v21  ;;  %2290 = vst [vmem:[%s3824_s5 + $0x78] sm:$0xff] %v2586_v63  ;;  %v1918_v49 = vpop.f32.mrb[40].mxu0  ;;  %v2064_v11 = vpop.f32.mrb[40].mxu1 }
 0x272   :  { %v2643_v50 = vadd.f32 %v1918_v49, %v3728_v10  ;;  %v2659_v53 = vadd.f32 %v2064_v11, %v3731_v15  ;;  %v1920_v59 = vpop.f32.mrb[41].mxu0  ;;  %v2066_v54 = vpop.f32.mrb[41].mxu1 }
 0x273   :  { %v2644_v0 = vadd.f32 %v1920_v59, %v3734_v17  ;;  %v2660_v2 = vadd.f32 %v2066_v54, %v3737_v18  ;;  %v1922_v3 = vpop.f32.mrb[42].mxu0  ;;  %v2068_v4 = vpop.f32.mrb[42].mxu1 }
 0x274   :  { %v2645_v5 = vadd.f32 %v1922_v3, %v3728_v10  ;;  %v2661_v6 = vadd.f32 %v2068_v4, %v3731_v15  ;;  %v1924_v13 = vpop.f32.mrb[43].mxu0  ;;  %v2070_v7 = vpop.f32.mrb[43].mxu1 }
 0x275   :  { %v2589_v8 = vpack.c.bf16 %v2644_v0, %v2643_v50  ;;  %v2590_v14 = vpack.c.bf16 %v2660_v2, %v2659_v53  ;;  %v2646_v1 = vadd.f32 %v1924_v13, %v3734_v17  ;;  %v2662_v16 = vadd.f32 %v2070_v7, %v3737_v18 }
 0x277   :  { %2293 = vst [vmem:[%s3824_s5 + $0x90] sm:$0xff] %v2589_v8  ;;  %2294 = vst [vmem:[%s3824_s5 + $0x98] sm:$0xff] %v2590_v14  ;;  %v2593_v20 = vpack.c.bf16 %v2646_v1, %v2645_v5  ;;  %v2594_v9 = vpack.c.bf16 %v2662_v16, %v2661_v6 }
 0x279   :  { %2297 = vst [vmem:[%s3824_s5 + $0xb0] sm:$0xff] %v2593_v20  ;;  %2298 = vst [vmem:[%s3824_s5 + $0xb8] sm:$0xff] %v2594_v9  ;;  %v1928_v19 = vpop.f32.mrb[44].mxu0  ;;  %v2074_v22 = vpop.f32.mrb[44].mxu1 }
 0x27a   :  { %v2647_v23 = vadd.f32 %v1928_v19, %v3728_v10  ;;  %v2663_v24 = vadd.f32 %v2074_v22, %v3731_v15  ;;  %v1930_v25 = vpop.f32.mrb[45].mxu0  ;;  %v2076_v56 = vpop.f32.mrb[45].mxu1 }
 0x27b   :  { %v2648_v26 = vadd.f32 %v1930_v25, %v3734_v17  ;;  %v2664_v27 = vadd.f32 %v2076_v56, %v3737_v18  ;;  %v1932_v28 = vpop.f32.mrb[46].mxu0  ;;  %v2078_v29 = vpop.f32.mrb[46].mxu1 }
 0x27c   :  { %v2649_v30 = vadd.f32 %v1932_v28, %v3728_v10  ;;  %v2665_v31 = vadd.f32 %v2078_v29, %v3731_v15  ;;  %v1934_v40 = vpop.f32.mrb[47].mxu0  ;;  %v2080_v33 = vpop.f32.mrb[47].mxu1 }
 0x27d   :  { %v2597_v35 = vpack.c.bf16 %v2648_v26, %v2647_v23  ;;  %v2598_v36 = vpack.c.bf16 %v2664_v27, %v2663_v24  ;;  %v2650_v62 = vadd.f32 %v1934_v40, %v3734_v17  ;;  %v2666_v37 = vadd.f32 %v2080_v33, %v3737_v18 }
 0x27f   :  { %2301 = vst [vmem:[%s3824_s5 + $0xd0] sm:$0xff] %v2597_v35  ;;  %2302 = vst [vmem:[%s3824_s5 + $0xd8] sm:$0xff] %v2598_v36  ;;  %v2601_v38 = vpack.c.bf16 %v2650_v62, %v2649_v30  ;;  %v2602_v10 = vpack.c.bf16 %v2666_v37, %v2665_v31 }
 0x281   :  { %2305 = vst [vmem:[%s3824_s5 + $0xf0] sm:$0xff] %v2601_v38  ;;  %2306 = vst [vmem:[%s3824_s5 + $0xf8] sm:$0xff] %v2602_v10 }

// kernel: net_forward.4
= control target key start
LH: loop header
LB: loop body
LE: loop exit
PB: predicated region body
PF: predicated region fallthrough
CT: control target
= control target key end

     0   :  { %v13557_v6 = vmov 0.0|0.0   ;;  %s13552_s0 = inlined_call_operand.vmem [shape: bf16[8,8,1024], index: 0, kind: input, shape index: {}, may-alias: {0,1}]   ;;  %s13553_s1 = inlined_call_operand.vmem [shape: bf16[8,8,1024], index: 1, kind: input, shape index: {}, may-alias: {0,1}]   ;;  %s13554_s2 = inlined_call_operand.vmem [shape: bf16[256,1024], index: 2, kind: input, shape index: {}]   ;;  %s13555_s3 = inlined_call_operand.vmem [shape: bf16[8,8,128], index: 3, kind: output, shape index: {0}]   ;;  %s13556_s4 = inlined_call_operand.vmem [shape: bf16[8,8,128], index: 4, kind: output, shape index: {1}]  }
   0x1   :  { %v148_v0 = vld [vmem:[%s13554_s2] sm:$0xff]  ;;  %948 = vmatprep.mubr.bf16.mxu0 %v13557_v6  ;;  %989 = vmatprep.mubr.bf16.mxu1 %v13557_v6  ;;  %v149_v10 = vld [vmem:[%s13554_s2 + $0x8] sm:$0xff] }
   0x2   :  { %v152_v1 = vld [vmem:[%s13554_s2 + $0x20] sm:$0xff]  ;;  %v153_v11 = vld [vmem:[%s13554_s2 + $0x28] sm:$0xff] }
   0x3   :  { %v156_v2 = vld [vmem:[%s13554_s2 + $0x40] sm:$0xff]  ;;  %v9720_v3 = vcombine.high %v148_v0, %v152_v1  ;;  %v9722_v4 = vcombine.low %v148_v0, %v152_v1  ;;  %v9747_v13 = vcombine.high %v149_v10, %v153_v11  ;;  %v9749_v14 = vcombine.low %v149_v10, %v153_v11  ;;  %v157_v15 = vld [vmem:[%s13554_s2 + $0x48] sm:$0xff] }
   0x4   :  { %v160_v5 = vld [vmem:[%s13554_s2 + $0x60] sm:$0xff]  ;;  %v161_v16 = vld [vmem:[%s13554_s2 + $0x68] sm:$0xff] }
   0x5   :  { %v9729_v7 = vcombine.high %v156_v2, %v160_v5  ;;  %v164_v8 = vld [vmem:[%s13554_s2 + $0x80] sm:$0xff]  ;;  %916 = vmatprep.subr.bf16.mxu0 %v9720_v3  ;;  %v9745_v12 = vcombine.low %v156_v2, %v160_v5  ;;  %v9760_v18 = vcombine.high %v157_v15, %v161_v16  ;;  %v165_v19 = vld [vmem:[%s13554_s2 + $0x88] sm:$0xff]  ;;  %957 = vmatprep.subr.bf16.mxu1 %v9747_v13 }
   0x6   :  { %v168_v9 = vld [vmem:[%s13554_s2 + $0xa0] sm:$0xff]  ;;  %917 = vmatpush1.bf16.msra.mxu0 %v9722_v4  ;;  %v169_v20 = vld [vmem:[%s13554_s2 + $0xa8] sm:$0xff]  ;;  %958 = vmatpush1.bf16.msra.mxu1 %v9749_v14  ;;  %v9776_v23 = vcombine.low %v157_v15, %v161_v16 }
   0x7   :  { %918 = vmatprep.subr.bf16.mxu0 %v9729_v7  ;;  %v9758_v17 = vcombine.high %v164_v8, %v168_v9  ;;  %v172_v21 = vld [vmem:[%s13554_s2 + $0xc0] sm:$0xff]  ;;  %v9779_v24 = vcombine.low %v164_v8, %v168_v9  ;;  %959 = vmatprep.subr.bf16.mxu1 %v9760_v18  ;;  %v9782_v25 = vcombine.high %v165_v19, %v169_v20  ;;  %v173_v27 = vld [vmem:[%s13554_s2 + $0xc8] sm:$0xff] }
   0x8   :  { %v176_v22 = vld [vmem:[%s13554_s2 + $0xe0] sm:$0xff]  ;;  %v177_v28 = vld [vmem:[%s13554_s2 + $0xe8] sm:$0xff]  ;;  %v9800_v31 = vcombine.low %v165_v19, %v169_v20 }
   0x9   :  { %v9785_v26 = vcombine.high %v172_v21, %v176_v22  ;;  %v180_v29 = vld [vmem:[%s13554_s2 + $0x100] sm:$0xff]  ;;  %v9803_v32 = vcombine.low %v172_v21, %v176_v22  ;;  %v9806_v33 = vcombine.high %v173_v27, %v177_v28  ;;  %v181_v35 = vld [vmem:[%s13554_s2 + $0x108] sm:$0xff]  ;;  %v9824_v39 = vcombine.low %v173_v27, %v177_v28 }
   0xa   :  { %919 = vmatpush1.bf16.msra.mxu0 %v9745_v12  ;;  %v184_v30 = vld [vmem:[%s13554_s2 + $0x120] sm:$0xff]  ;;  %960 = vmatpush1.bf16.msra.mxu1 %v9776_v23  ;;  %v185_v36 = vld [vmem:[%s13554_s2 + $0x128] sm:$0xff] }
   0xb   :  { %920 = vmatprep.subr.bf16.mxu0 %v9758_v17  ;;  %961 = vmatprep.subr.bf16.mxu1 %v9782_v25  ;;  %v9809_v34 = vcombine.high %v180_v29, %v184_v30  ;;  %v188_v37 = vld [vmem:[%s13554_s2 + $0x140] sm:$0xff]  ;;  %v9827_v40 = vcombine.low %v180_v29, %v184_v30  ;;  %v9830_v41 = vcombine.high %v181_v35, %v185_v36  ;;  %v189_v43 = vld [vmem:[%s13554_s2 + $0x148] sm:$0xff] }
   0xc   :  { %v192_v38 = vld [vmem:[%s13554_s2 + $0x160] sm:$0xff]  ;;  %v193_v44 = vld [vmem:[%s13554_s2 + $0x168] sm:$0xff]  ;;  %v9848_v47 = vcombine.low %v181_v35, %v185_v36 }
   0xd   :  { %v9833_v42 = vcombine.high %v188_v37, %v192_v38  ;;  %v196_v45 = vld [vmem:[%s13554_s2 + $0x180] sm:$0xff]  ;;  %v9851_v48 = vcombine.low %v188_v37, %v192_v38  ;;  %v9854_v49 = vcombine.high %v189_v43, %v193_v44  ;;  %v197_v51 = vld [vmem:[%s13554_s2 + $0x188] sm:$0xff]  ;;  %v9872_v55 = vcombine.low %v189_v43, %v193_v44 }
   0xe   :  { %921 = vmatpush1.bf16.msra.mxu0 %v9779_v24  ;;  %962 = vmatpush1.bf16.msra.mxu1 %v9800_v31  ;;  %v200_v46 = vld [vmem:[%s13554_s2 + $0x1a0] sm:$0xff]  ;;  %v201_v52 = vld [vmem:[%s13554_s2 + $0x1a8] sm:$0xff] }
   0xf   :  { %922 = vmatprep.subr.bf16.mxu0 %v9785_v26  ;;  %963 = vmatprep.subr.bf16.mxu1 %v9806_v33  ;;  %v9857_v50 = vcombine.high %v196_v45, %v200_v46  ;;  %v204_v53 = vld [vmem:[%s13554_s2 + $0x1c0] sm:$0xff]  ;;  %v9875_v56 = vcombine.low %v196_v45, %v200_v46  ;;  %v9878_v57 = vcombine.high %v197_v51, %v201_v52  ;;  %v205_v59 = vld [vmem:[%s13554_s2 + $0x1c8] sm:$0xff] }
  0x10   :  { %v208_v54 = vld [vmem:[%s13554_s2 + $0x1e0] sm:$0xff]  ;;  %v209_v60 = vld [vmem:[%s13554_s2 + $0x1e8] sm:$0xff]  ;;  %v9896_v63 = vcombine.low %v197_v51, %v201_v52 }
  0x11   :  { %v9881_v58 = vcombine.high %v204_v53, %v208_v54  ;;  %v212_v61 = vld [vmem:[%s13554_s2 + $0x200] sm:$0xff]  ;;  %v9899_v0 = vcombine.low %v204_v53, %v208_v54  ;;  %v9902_v1 = vcombine.high %v205_v59, %v209_v60  ;;  %v213_v5 = vld [vmem:[%s13554_s2 + $0x208] sm:$0xff]  ;;  %v9920_v11 = vcombine.low %v205_v59, %v209_v60 }
  0x12   :  { %923 = vmatpush1.bf16.msra.mxu0 %v9803_v32  ;;  %964 = vmatpush1.bf16.msra.mxu1 %v9824_v39  ;;  %v216_v62 = vld [vmem:[%s13554_s2 + $0x220] sm:$0xff]  ;;  %v217_v8 = vld [vmem:[%s13554_s2 + $0x228] sm:$0xff] }
  0x13   :  { %924 = vmatprep.subr.bf16.mxu0 %v9809_v34  ;;  %965 = vmatprep.subr.bf16.mxu1 %v9830_v41  ;;  %v9905_v2 = vcombine.high %v212_v61, %v216_v62  ;;  %v220_v9 = vld [vmem:[%s13554_s2 + $0x240] sm:$0xff]  ;;  %v9923_v15 = vcombine.low %v212_v61, %v216_v62  ;;  %v9926_v16 = vcombine.high %v213_v5, %v217_v8  ;;  %v221_v20 = vld [vmem:[%s13554_s2 + $0x248] sm:$0xff] }
  0x14   :  { %v224_v10 = vld [vmem:[%s13554_s2 + $0x260] sm:$0xff]  ;;  %v225_v21 = vld [vmem:[%s13554_s2 + $0x268] sm:$0xff]  ;;  %v9944_v28 = vcombine.low %v213_v5, %v217_v8 }
  0x15   :  { %v9929_v19 = vcombine.high %v220_v9, %v224_v10  ;;  %v228_v22 = vld [vmem:[%s13554_s2 + $0x280] sm:$0xff]  ;;  %v9947_v29 = vcombine.low %v220_v9, %v224_v10  ;;  %v9950_v30 = vcombine.high %v221_v20, %v225_v21  ;;  %v229_v36 = vld [vmem:[%s13554_s2 + $0x288] sm:$0xff]  ;;  %v9968_v44 = vcombine.low %v221_v20, %v225_v21 }
  0x16   :  { %925 = vmatpush1.bf16.msra.mxu0 %v9827_v40  ;;  %966 = vmatpush1.bf16.msra.mxu1 %v9848_v47  ;;  %v232_v27 = vld [vmem:[%s13554_s2 + $0x2a0] sm:$0xff]  ;;  %v233_v37 = vld [vmem:[%s13554_s2 + $0x2a8] sm:$0xff] }
  0x17   :  { %926 = vmatprep.subr.bf16.mxu0 %v9833_v42  ;;  %967 = vmatprep.subr.bf16.mxu1 %v9854_v49  ;;  %v9953_v35 = vcombine.high %v228_v22, %v232_v27  ;;  %v236_v38 = vld [vmem:[%s13554_s2 + $0x2c0] sm:$0xff]  ;;  %v9971_v45 = vcombine.low %v228_v22, %v232_v27  ;;  %v9974_v46 = vcombine.high %v229_v36, %v233_v37  ;;  %v237_v52 = vld [vmem:[%s13554_s2 + $0x2c8] sm:$0xff] }
  0x18   :  { %v240_v43 = vld [vmem:[%s13554_s2 + $0x2e0] sm:$0xff]  ;;  %v241_v53 = vld [vmem:[%s13554_s2 + $0x2e8] sm:$0xff]  ;;  %v9992_v60 = vcombine.low %v229_v36, %v233_v37 }
  0x19   :  { %v9977_v51 = vcombine.high %v236_v38, %v240_v43  ;;  %v244_v54 = vld [vmem:[%s13554_s2 + $0x300] sm:$0xff]  ;;  %v9995_v61 = vcombine.low %v236_v38, %v240_v43  ;;  %v9998_v62 = vcombine.high %v237_v52, %v241_v53  ;;  %v245_v8 = vld [vmem:[%s13554_s2 + $0x308] sm:$0xff]  ;;  %v10016_v21 = vcombine.low %v237_v52, %v241_v53 }
  0x1a   :  { %927 = vmatpush1.bf16.msra.mxu0 %v9851_v48  ;;  %968 = vmatpush1.bf16.msra.mxu1 %v9872_v55  ;;  %v248_v59 = vld [vmem:[%s13554_s2 + $0x320] sm:$0xff]  ;;  %v249_v9 = vld [vmem:[%s13554_s2 + $0x328] sm:$0xff] }
  0x1b   :  { %928 = vmatprep.subr.bf16.mxu0 %v9857_v50  ;;  %969 = vmatprep.subr.bf16.mxu1 %v9878_v57  ;;  %13855 = vst [vmem:[#allocation6_spill] sm:$0xff] %v9995_v61  ;;  %v10001_v5 = vcombine.high %v244_v54, %v248_v59  ;;  %v252_v10 = vld [vmem:[%s13554_s2 + $0x340] sm:$0xff]  ;;  %13857 = vst [vmem:[#allocation8_spill] sm:$0xff] %v10016_v21  ;;  %v10019_v22 = vcombine.low %v244_v54, %v248_v59  ;;  %v253_v37 = vld [vmem:[%s13554_s2 + $0x348] sm:$0xff] }
  0x1c   :  { %v256_v20 = vld [vmem:[%s13554_s2 + $0x360] sm:$0xff]  ;;  %v10022_v27 = vcombine.high %v245_v8, %v249_v9  ;;  %v257_v38 = vld [vmem:[%s13554_s2 + $0x368] sm:$0xff]  ;;  %v10040_v53 = vcombine.low %v245_v8, %v249_v9 }
  0x1d   :  { %13856 = vst [vmem:[#allocation7_spill] sm:$0xff] %v10001_v5  ;;  %13858 = vst [vmem:[#allocation9_spill] sm:$0xff] %v10019_v22  ;;  %v10025_v36 = vcombine.high %v252_v10, %v256_v20  ;;  %v260_v43 = vld [vmem:[%s13554_s2 + $0x380] sm:$0xff]  ;;  %v10043_v54 = vcombine.low %v252_v10, %v256_v20  ;;  %v10046_v59 = vcombine.high %v253_v37, %v257_v38  ;;  %v265_v8 = vld [vmem:[%s13554_s2 + $0x3a8] sm:$0xff] }
  0x1e   :  { %929 = vmatpush1.bf16.msra.mxu0 %v9875_v56  ;;  %970 = vmatpush1.bf16.msra.mxu1 %v9896_v63  ;;  %13859 = vst [vmem:[#allocation10_spill] sm:$0xff] %v10022_v27  ;;  %v264_v52 = vld [vmem:[%s13554_s2 + $0x3a0] sm:$0xff]  ;;  %13861 = vst [vmem:[#allocation12_spill] sm:$0xff] %v10040_v53  ;;  %v10064_v20 = vcombine.low %v253_v37, %v257_v38  ;;  %v273_v37 = vld [vmem:[%s13554_s2 + $0x3e8] sm:$0xff] }
  0x1f   :  { %930 = vmatprep.subr.bf16.mxu0 %v9881_v58  ;;  %971 = vmatprep.subr.bf16.mxu1 %v9902_v1  ;;  %13860 = vst [vmem:[#allocation11_spill] sm:$0xff] %v10025_v36  ;;  %13862 = vst [vmem:[#allocation13_spill] sm:$0xff] %v10043_v54  ;;  %v10049_v6 = vcombine.high %v260_v43, %v264_v52  ;;  %v268_v9 = vld [vmem:[%s13554_s2 + $0x3c0] sm:$0xff]  ;;  %v150_v38 = vld [vmem:[%s13554_s2 + $0x10] sm:$0xff] }
  0x20   :  { %13863 = vst [vmem:[#allocation14_spill] sm:$0xff] %v10046_v59  ;;  %v272_v10 = vld [vmem:[%s13554_s2 + $0x3e0] sm:$0xff]  ;;  %13865 = vst [vmem:[#allocation16_spill] sm:$0xff] %v10064_v20 }
  0x21   :  { %13864 = vst [vmem:[#allocation15_spill] sm:$0xff] %v10049_v6 }
  0x22   :  { %931 = vmatpush1.bf16.msra.mxu0 %v9899_v0  ;;  %972 = vmatpush1.bf16.msra.mxu1 %v9920_v11 }
  0x23   :  { %932 = vmatprep.subr.bf16.mxu0 %v9905_v2  ;;  %973 = vmatprep.subr.bf16.mxu1 %v9926_v16 }
  0x26   :  { %933 = vmatpush1.bf16.msra.mxu0 %v9923_v15  ;;  %974 = vmatpush1.bf16.msra.mxu1 %v9944_v28 }
  0x27   :  { %934 = vmatprep.subr.bf16.mxu0 %v9929_v19  ;;  %975 = vmatprep.subr.bf16.mxu1 %v9950_v30 }
  0x2a   :  { %935 = vmatpush1.bf16.msra.mxu0 %v9947_v29  ;;  %976 = vmatpush1.bf16.msra.mxu1 %v9968_v44 }
  0x2b   :  { %936 = vmatprep.subr.bf16.mxu0 %v9953_v35  ;;  %977 = vmatprep.subr.bf16.mxu1 %v9974_v46 }
  0x2e   :  { %937 = vmatpush1.bf16.msra.mxu0 %v9971_v45  ;;  %978 = vmatpush1.bf16.msra.mxu1 %v9992_v60 }
  0x2f   :  { %938 = vmatprep.subr.bf16.mxu0 %v9977_v51  ;;  %979 = vmatprep.subr.bf16.mxu1 %v9998_v62 }
  0x32   :  { %939 = vmatpush1.bf16.msra.mxu0 %v9995_v61  ;;  %980 = vmatpush1.bf16.msra.mxu1 %v10016_v21  ;;  %v269_v21 = vld [vmem:[%s13554_s2 + $0x3c8] sm:$0xff]  ;;  %v167_v61 = vld [vmem:[%s13554_s2 + $0x98] sm:$0xff] }
  0x33   :  { %940 = vmatprep.subr.bf16.mxu0 %v10001_v5  ;;  %981 = vmatprep.subr.bf16.mxu1 %v10022_v27  ;;  %v261_v5 = vld [vmem:[%s13554_s2 + $0x388] sm:$0xff]  ;;  %v10073_v27 = vcombine.high %v268_v9, %v272_v10 }
  0x35   :  { %13868 = vst [vmem:[#allocation19_spill] sm:$0xff] %v10073_v27 }
  0x36   :  { %941 = vmatpush1.bf16.msra.mxu0 %v10019_v22  ;;  %982 = vmatpush1.bf16.msra.mxu1 %v10040_v53  ;;  %v10070_v22 = vcombine.high %v261_v5, %v265_v8  ;;  %v151_v53 = vld [vmem:[%s13554_s2 + $0x18] sm:$0xff] }
  0x37   :  { %942 = vmatprep.subr.bf16.mxu0 %v10025_v36  ;;  %v10067_v36 = vcombine.low %v260_v43, %v264_v52  ;;  %983 = vmatprep.subr.bf16.mxu1 %v10046_v59  ;;  %v154_v43 = vld [vmem:[%s13554_s2 + $0x30] sm:$0xff]  ;;  %v10088_v52 = vcombine.low %v261_v5, %v265_v8  ;;  %v155_v5 = vld [vmem:[%s13554_s2 + $0x38] sm:$0xff] }
  0x38   :  { %13867 = vst [vmem:[#allocation18_spill] sm:$0xff] %v10070_v22  ;;  %v10097_v59 = vcombine.high %v150_v38, %v154_v43  ;;  %v158_v8 = vld [vmem:[%s13554_s2 + $0x50] sm:$0xff] }
  0x39   :  { %13866 = vst [vmem:[#allocation17_spill] sm:$0xff] %v10067_v36  ;;  %13869 = vst [vmem:[#allocation20_spill] sm:$0xff] %v10088_v52 }
  0x3a   :  { %943 = vmatpush1.bf16.msra.mxu0 %v10043_v54  ;;  %984 = vmatpush1.bf16.msra.mxu1 %v10064_v20  ;;  %v10094_v54 = vcombine.high %v269_v21, %v273_v37  ;;  %13872 = vst [vmem:[#allocation23_spill] sm:$0xff] %v10097_v59  ;;  %v159_v20 = vld [vmem:[%s13554_s2 + $0x58] sm:$0xff] }
  0x3b   :  { %944 = vmatprep.subr.bf16.mxu0 %v10049_v6  ;;  %v10091_v6 = vcombine.low %v268_v9, %v272_v10  ;;  %985 = vmatprep.subr.bf16.mxu1 %v10070_v22  ;;  %v162_v9 = vld [vmem:[%s13554_s2 + $0x70] sm:$0xff]  ;;  %v10112_v10 = vcombine.low %v269_v21, %v273_v37  ;;  %v163_v21 = vld [vmem:[%s13554_s2 + $0x78] sm:$0xff] }
  0x3c   :  { %13871 = vst [vmem:[#allocation22_spill] sm:$0xff] %v10094_v54  ;;  %v10121_v22 = vcombine.high %v158_v8, %v162_v9  ;;  %v166_v37 = vld [vmem:[%s13554_s2 + $0x90] sm:$0xff] }
  0x3d   :  { %13870 = vst [vmem:[#allocation21_spill] sm:$0xff] %v10091_v6  ;;  %13873 = vst [vmem:[#allocation24_spill] sm:$0xff] %v10112_v10 }
  0x3e   :  { %945 = vmatpush1.bf16.msra.mxu0 %v10067_v36  ;;  %986 = vmatpush1.bf16.msra.mxu1 %v10088_v52  ;;  %v10118_v36 = vcombine.high %v151_v53, %v155_v5  ;;  %13876 = vst [vmem:[#allocation27_spill] sm:$0xff] %v10121_v22 }
  0x3f   :  { %946 = vmatprep.subr.bf16.mxu0 %v10073_v27  ;;  %v10115_v27 = vcombine.low %v150_v38, %v154_v43  ;;  %987 = vmatprep.subr.bf16.mxu1 %v10094_v54  ;;  %v170_v38 = vld [vmem:[%s13554_s2 + $0xb0] sm:$0xff]  ;;  %v13877_v43 = vmov 0.0|0.0   ;;  %v10143_v54 = vcombine.high %v159_v20, %v163_v21 }
  0x40   :  { %13875 = vst [vmem:[#allocation26_spill] sm:$0xff] %v10118_v36  ;;  %v10146_v52 = vcombine.high %v166_v37, %v170_v38 }
  0x41   :  { %13874 = vst [vmem:[#allocation25_spill] sm:$0xff] %v10115_v27  ;;  %13880 = vst [vmem:[#allocation30_spill] sm:$0xff] %v10143_v54 }
  0x42   :  { %947 = vmatpush1.bf16.msra.mxu0 %v10091_v6  ;;  %988 = vmatpush1.bf16.msra.mxu1 %v10112_v10  ;;  %v10140_v6 = vcombine.low %v158_v8, %v162_v9  ;;  %13881 = vst [vmem:[#allocation31_spill] sm:$0xff] %v10146_v52  ;;  %v178_v8 = vld [vmem:[%s13554_s2 + $0xf0] sm:$0xff]  ;;  %v10163_v9 = vcombine.low %v159_v20, %v163_v21  ;;  %v179_v20 = vld [vmem:[%s13554_s2 + $0xf8] sm:$0xff] }
  0x43   :  { %998 = vmatprep.subr.bf16.mxu0 %v10097_v59  ;;  %v10137_v59 = vcombine.low %v151_v53, %v155_v5  ;;  %1039 = vmatprep.subr.bf16.mxu1 %v10118_v36  ;;  %v171_v53 = vld [vmem:[%s13554_s2 + $0xb8] sm:$0xff]  ;;  %v174_v5 = vld [vmem:[%s13554_s2 + $0xd0] sm:$0xff] }
  0x44   :  { %13879 = vst [vmem:[#allocation29_spill] sm:$0xff] %v10140_v6  ;;  %13882 = vst [vmem:[#allocation32_spill] sm:$0xff] %v10163_v9  ;;  %v10173_v36 = vcombine.high %v174_v5, %v178_v8  ;;  %v182_v21 = vld [vmem:[%s13554_s2 + $0x110] sm:$0xff]  ;;  %v183_v10 = vld [vmem:[%s13554_s2 + $0x118] sm:$0xff] }
  0x45   :  { %949 = vmatmul.mubr.bf16.vlgmr.msra.gmra.mrb[0].mxu0 %v13877_v43  ;;  %13878 = vst [vmem:[#allocation28_spill] sm:$0xff] %v10137_v59  ;;  %990 = vmatmul.mubr.bf16.vlgmr.msra.gmra.mrb[0].mxu1 %v13877_v43 }
  0x46   :  { %999 = vmatpush1.bf16.msra.mxu0 %v10115_v27  ;;  %1030 = vmatprep.mubr.bf16.mxu0 %v13877_v43  ;;  %v10170_v27 = vcombine.high %v167_v61, %v171_v53  ;;  %13885 = vst [vmem:[#allocation35_spill] sm:$0xff] %v10173_v36 }
  0x47   :  { %1000 = vmatprep.subr.bf16.mxu0 %v10121_v22  ;;  %1040 = vmatpush1.bf16.msra.mxu1 %v10137_v59  ;;  %v10167_v22 = vcombine.low %v166_v37, %v170_v38  ;;  %v175_v59 = vld [vmem:[%s13554_s2 + $0xd8] sm:$0xff]  ;;  %v186_v37 = vld [vmem:[%s13554_s2 + $0x130] sm:$0xff]  ;;  %v10188_v38 = vcombine.low %v167_v61, %v171_v53 }
  0x48   :  { %1071 = vmatprep.mubr.bf16.mxu1 %v13877_v43  ;;  %1041 = vmatprep.subr.bf16.mxu1 %v10143_v54  ;;  %13884 = vst [vmem:[#allocation34_spill] sm:$0xff] %v10170_v27  ;;  %v10197_v54 = vcombine.high %v182_v21, %v186_v37  ;;  %v187_v61 = vld [vmem:[%s13554_s2 + $0x138] sm:$0xff]  ;;  %v190_v53 = vld [vmem:[%s13554_s2 + $0x150] sm:$0xff] }
  0x49   :  { %13883 = vst [vmem:[#allocation33_spill] sm:$0xff] %v10167_v22  ;;  %13886 = vst [vmem:[#allocation36_spill] sm:$0xff] %v10188_v38 }
  0x4a   :  { %1001 = vmatpush1.bf16.msra.mxu0 %v10140_v6  ;;  %v10194_v6 = vcombine.high %v175_v59, %v179_v20  ;;  %13889 = vst [vmem:[#allocation39_spill] sm:$0xff] %v10197_v54 }
  0x4b   :  { %1002 = vmatprep.subr.bf16.mxu0 %v10146_v52  ;;  %1042 = vmatpush1.bf16.msra.mxu1 %v10163_v9  ;;  %v10191_v52 = vcombine.low %v174_v5, %v178_v8  ;;  %v194_v5 = vld [vmem:[%s13554_s2 + $0x170] sm:$0xff]  ;;  %v10212_v8 = vcombine.low %v175_v59, %v179_v20  ;;  %v191_v9 = vld [vmem:[%s13554_s2 + $0x158] sm:$0xff] }
  0x4c   :  { %1043 = vmatprep.subr.bf16.mxu1 %v10170_v27  ;;  %13888 = vst [vmem:[#allocation38_spill] sm:$0xff] %v10194_v6  ;;  %v10221_v27 = vcombine.high %v190_v53, %v194_v5  ;;  %v195_v59 = vld [vmem:[%s13554_s2 + $0x178] sm:$0xff]  ;;  %v198_v20 = vld [vmem:[%s13554_s2 + $0x190] sm:$0xff] }
  0x4d   :  { %13887 = vst [vmem:[#allocation37_spill] sm:$0xff] %v10191_v52  ;;  %13890 = vst [vmem:[#allocation40_spill] sm:$0xff] %v10212_v8 }
  0x4e   :  { %1003 = vmatpush1.bf16.msra.mxu0 %v10167_v22  ;;  %v10218_v22 = vcombine.high %v183_v10, %v187_v61  ;;  %13893 = vst [vmem:[#allocation43_spill] sm:$0xff] %v10221_v27 }
  0x4f   :  { %1004 = vmatprep.subr.bf16.mxu0 %v10173_v36  ;;  %1044 = vmatpush1.bf16.msra.mxu1 %v10188_v38  ;;  %v10215_v36 = vcombine.low %v182_v21, %v186_v37  ;;  %v202_v21 = vld [vmem:[%s13554_s2 + $0x1b0] sm:$0xff]  ;;  %v10236_v37 = vcombine.low %v183_v10, %v187_v61  ;;  %v199_v38 = vld [vmem:[%s13554_s2 + $0x198] sm:$0xff] }
  0x50   :  { %1045 = vmatprep.subr.bf16.mxu1 %v10194_v6  ;;  %13892 = vst [vmem:[#allocation42_spill] sm:$0xff] %v10218_v22  ;;  %v10245_v6 = vcombine.high %v198_v20, %v202_v21  ;;  %v203_v10 = vld [vmem:[%s13554_s2 + $0x1b8] sm:$0xff]  ;;  %v206_v61 = vld [vmem:[%s13554_s2 + $0x1d0] sm:$0xff] }
  0x51   :  { %13891 = vst [vmem:[#allocation41_spill] sm:$0xff] %v10215_v36  ;;  %13894 = vst [vmem:[#allocation44_spill] sm:$0xff] %v10236_v37 }
  0x52   :  { %1005 = vmatpush1.bf16.msra.mxu0 %v10191_v52  ;;  %v10242_v52 = vcombine.high %v191_v9, %v195_v59  ;;  %13897 = vst [vmem:[#allocation47_spill] sm:$0xff] %v10245_v6 }
  0x53   :  { %1006 = vmatprep.subr.bf16.mxu0 %v10197_v54  ;;  %1046 = vmatpush1.bf16.msra.mxu1 %v10212_v8  ;;  %v10239_v54 = vcombine.low %v190_v53, %v194_v5  ;;  %v210_v53 = vld [vmem:[%s13554_s2 + $0x1f0] sm:$0xff]  ;;  %v10260_v5 = vcombine.low %v191_v9, %v195_v59  ;;  %v207_v8 = vld [vmem:[%s13554_s2 + $0x1d8] sm:$0xff] }
  0x54   :  { %1047 = vmatprep.subr.bf16.mxu1 %v10218_v22  ;;  %13896 = vst [vmem:[#allocation46_spill] sm:$0xff] %v10242_v52  ;;  %v10269_v22 = vcombine.high %v206_v61, %v210_v53  ;;  %v211_v9 = vld [vmem:[%s13554_s2 + $0x1f8] sm:$0xff]  ;;  %v214_v59 = vld [vmem:[%s13554_s2 + $0x210] sm:$0xff] }
  0x55   :  { %13895 = vst [vmem:[#allocation45_spill] sm:$0xff] %v10239_v54  ;;  %13898 = vst [vmem:[#allocation48_spill] sm:$0xff] %v10260_v5 }
  0x56   :  { %1007 = vmatpush1.bf16.msra.mxu0 %v10215_v36  ;;  %v10266_v36 = vcombine.high %v199_v38, %v203_v10  ;;  %13901 = vst [vmem:[#allocation51_spill] sm:$0xff] %v10269_v22 }
  0x57   :  { %1008 = vmatprep.subr.bf16.mxu0 %v10221_v27  ;;  %1048 = vmatpush1.bf16.msra.mxu1 %v10236_v37  ;;  %v10263_v27 = vcombine.low %v198_v20, %v202_v21  ;;  %v218_v20 = vld [vmem:[%s13554_s2 + $0x230] sm:$0xff]  ;;  %v10284_v21 = vcombine.low %v199_v38, %v203_v10  ;;  %v215_v37 = vld [vmem:[%s13554_s2 + $0x218] sm:$0xff] }
  0x58   :  { %1049 = vmatprep.subr.bf16.mxu1 %v10242_v52  ;;  %13900 = vst [vmem:[#allocation50_spill] sm:$0xff] %v10266_v36  ;;  %v10293_v52 = vcombine.high %v214_v59, %v218_v20  ;;  %v219_v38 = vld [vmem:[%s13554_s2 + $0x238] sm:$0xff]  ;;  %v222_v10 = vld [vmem:[%s13554_s2 + $0x250] sm:$0xff] }
  0x59   :  { %13899 = vst [vmem:[#allocation49_spill] sm:$0xff] %v10263_v27  ;;  %13902 = vst [vmem:[#allocation52_spill] sm:$0xff] %v10284_v21 }
  0x5a   :  { %1009 = vmatpush1.bf16.msra.mxu0 %v10239_v54  ;;  %v10290_v54 = vcombine.high %v207_v8, %v211_v9  ;;  %13905 = vst [vmem:[#allocation55_spill] sm:$0xff] %v10293_v52 }
  0x5b   :  { %1010 = vmatprep.subr.bf16.mxu0 %v10245_v6  ;;  %1050 = vmatpush1.bf16.msra.mxu1 %v10260_v5  ;;  %v10287_v6 = vcombine.low %v206_v61, %v210_v53  ;;  %v226_v61 = vld [vmem:[%s13554_s2 + $0x270] sm:$0xff]  ;;  %v10308_v53 = vcombine.low %v207_v8, %v211_v9  ;;  %v223_v5 = vld [vmem:[%s13554_s2 + $0x258] sm:$0xff] }
  0x5c   :  { %1051 = vmatprep.subr.bf16.mxu1 %v10266_v36  ;;  %13904 = vst [vmem:[#allocation54_spill] sm:$0xff] %v10290_v54  ;;  %v10317_v36 = vcombine.high %v222_v10, %v226_v61  ;;  %v227_v8 = vld [vmem:[%s13554_s2 + $0x278] sm:$0xff]  ;;  %v230_v9 = vld [vmem:[%s13554_s2 + $0x290] sm:$0xff] }
  0x5d   :  { %13903 = vst [vmem:[#allocation53_spill] sm:$0xff] %v10287_v6  ;;  %13906 = vst [vmem:[#allocation56_spill] sm:$0xff] %v10308_v53 }
  0x5e   :  { %1011 = vmatpush1.bf16.msra.mxu0 %v10263_v27  ;;  %v10314_v27 = vcombine.high %v215_v37, %v219_v38  ;;  %13909 = vst [vmem:[#allocation59_spill] sm:$0xff] %v10317_v36 }
  0x5f   :  { %1012 = vmatprep.subr.bf16.mxu0 %v10269_v22  ;;  %1052 = vmatpush1.bf16.msra.mxu1 %v10284_v21  ;;  %v10311_v22 = vcombine.low %v214_v59, %v218_v20  ;;  %v234_v59 = vld [vmem:[%s13554_s2 + $0x2b0] sm:$0xff]  ;;  %v10332_v20 = vcombine.low %v215_v37, %v219_v38  ;;  %v231_v21 = vld [vmem:[%s13554_s2 + $0x298] sm:$0xff] }
  0x60   :  { %1053 = vmatprep.subr.bf16.mxu1 %v10290_v54  ;;  %13908 = vst [vmem:[#allocation58_spill] sm:$0xff] %v10314_v27  ;;  %v10341_v54 = vcombine.high %v230_v9, %v234_v59  ;;  %v235_v37 = vld [vmem:[%s13554_s2 + $0x2b8] sm:$0xff]  ;;  %v238_v38 = vld [vmem:[%s13554_s2 + $0x2d0] sm:$0xff] }
  0x61   :  { %13907 = vst [vmem:[#allocation57_spill] sm:$0xff] %v10311_v22  ;;  %13910 = vst [vmem:[#allocation60_spill] sm:$0xff] %v10332_v20 }
  0x62   :  { %1013 = vmatpush1.bf16.msra.mxu0 %v10287_v6  ;;  %v10338_v6 = vcombine.high %v223_v5, %v227_v8  ;;  %13913 = vst [vmem:[#allocation63_spill] sm:$0xff] %v10341_v54 }
  0x63   :  { %1014 = vmatprep.subr.bf16.mxu0 %v10293_v52  ;;  %1054 = vmatpush1.bf16.msra.mxu1 %v10308_v53  ;;  %v10335_v52 = vcombine.low %v222_v10, %v226_v61  ;;  %v242_v10 = vld [vmem:[%s13554_s2 + $0x2f0] sm:$0xff]  ;;  %v10356_v61 = vcombine.low %v223_v5, %v227_v8  ;;  %v239_v53 = vld [vmem:[%s13554_s2 + $0x2d8] sm:$0xff] }
  0x64   :  { %1055 = vmatprep.subr.bf16.mxu1 %v10314_v27  ;;  %13912 = vst [vmem:[#allocation62_spill] sm:$0xff] %v10338_v6  ;;  %v10365_v27 = vcombine.high %v238_v38, %v242_v10  ;;  %v243_v5 = vld [vmem:[%s13554_s2 + $0x2f8] sm:$0xff]  ;;  %v246_v8 = vld [vmem:[%s13554_s2 + $0x310] sm:$0xff] }
  0x65   :  { %13911 = vst [vmem:[#allocation61_spill] sm:$0xff] %v10335_v52  ;;  %13914 = vst [vmem:[#allocation64_spill] sm:$0xff] %v10356_v61 }
  0x66   :  { %1015 = vmatpush1.bf16.msra.mxu0 %v10311_v22  ;;  %v10362_v22 = vcombine.high %v231_v21, %v235_v37  ;;  %13917 = vst [vmem:[#allocation67_spill] sm:$0xff] %v10365_v27 }
  0x67   :  { %1016 = vmatprep.subr.bf16.mxu0 %v10317_v36  ;;  %1056 = vmatpush1.bf16.msra.mxu1 %v10332_v20  ;;  %v10359_v36 = vcombine.low %v230_v9, %v234_v59  ;;  %v250_v9 = vld [vmem:[%s13554_s2 + $0x330] sm:$0xff]  ;;  %v10380_v59 = vcombine.low %v231_v21, %v235_v37  ;;  %v247_v20 = vld [vmem:[%s13554_s2 + $0x318] sm:$0xff] }
  0x68   :  { %1057 = vmatprep.subr.bf16.mxu1 %v10338_v6  ;;  %13916 = vst [vmem:[#allocation66_spill] sm:$0xff] %v10362_v22  ;;  %v10389_v6 = vcombine.high %v246_v8, %v250_v9  ;;  %v251_v21 = vld [vmem:[%s13554_s2 + $0x338] sm:$0xff]  ;;  %v254_v37 = vld [vmem:[%s13554_s2 + $0x350] sm:$0xff] }
  0x69   :  { %13915 = vst [vmem:[#allocation65_spill] sm:$0xff] %v10359_v36  ;;  %13918 = vst [vmem:[#allocation68_spill] sm:$0xff] %v10380_v59 }
  0x6a   :  { %1017 = vmatpush1.bf16.msra.mxu0 %v10335_v52  ;;  %v10386_v52 = vcombine.high %v239_v53, %v243_v5  ;;  %13921 = vst [vmem:[#allocation71_spill] sm:$0xff] %v10389_v6 }
  0x6b   :  { %1018 = vmatprep.subr.bf16.mxu0 %v10341_v54  ;;  %1058 = vmatpush1.bf16.msra.mxu1 %v10356_v61  ;;  %v10383_v54 = vcombine.low %v238_v38, %v242_v10  ;;  %v258_v38 = vld [vmem:[%s13554_s2 + $0x370] sm:$0xff]  ;;  %v10404_v10 = vcombine.low %v239_v53, %v243_v5  ;;  %v255_v61 = vld [vmem:[%s13554_s2 + $0x358] sm:$0xff] }
  0x6c   :  { %1059 = vmatprep.subr.bf16.mxu1 %v10362_v22  ;;  %13920 = vst [vmem:[#allocation70_spill] sm:$0xff] %v10386_v52  ;;  %v10413_v22 = vcombine.high %v254_v37, %v258_v38  ;;  %v259_v53 = vld [vmem:[%s13554_s2 + $0x378] sm:$0xff]  ;;  %v262_v5 = vld [vmem:[%s13554_s2 + $0x390] sm:$0xff] }
  0x6d   :  { %13919 = vst [vmem:[#allocation69_spill] sm:$0xff] %v10383_v54  ;;  %13922 = vst [vmem:[#allocation72_spill] sm:$0xff] %v10404_v10 }
  0x6e   :  { %1019 = vmatpush1.bf16.msra.mxu0 %v10359_v36  ;;  %v10410_v36 = vcombine.high %v247_v20, %v251_v21  ;;  %13925 = vst [vmem:[#allocation75_spill] sm:$0xff] %v10413_v22 }
  0x6f   :  { %1020 = vmatprep.subr.bf16.mxu0 %v10365_v27  ;;  %1060 = vmatpush1.bf16.msra.mxu1 %v10380_v59  ;;  %v10407_v27 = vcombine.low %v246_v8, %v250_v9  ;;  %v266_v8 = vld [vmem:[%s13554_s2 + $0x3b0] sm:$0xff]  ;;  %v10428_v9 = vcombine.low %v247_v20, %v251_v21  ;;  %v263_v59 = vld [vmem:[%s13554_s2 + $0x398] sm:$0xff] }
  0x70   :  { %1061 = vmatprep.subr.bf16.mxu1 %v10386_v52  ;;  %13924 = vst [vmem:[#allocation74_spill] sm:$0xff] %v10410_v36  ;;  %v10437_v52 = vcombine.high %v262_v5, %v266_v8  ;;  %v267_v20 = vld [vmem:[%s13554_s2 + $0x3b8] sm:$0xff]  ;;  %v270_v21 = vld [vmem:[%s13554_s2 + $0x3d0] sm:$0xff] }
  0x71   :  { %13923 = vst [vmem:[#allocation73_spill] sm:$0xff] %v10407_v27 }
  0x72   :  { %1021 = vmatpush1.bf16.msra.mxu0 %v10383_v54  ;;  %v10434_v54 = vcombine.high %v255_v61, %v259_v53  ;;  %13926 = vst [vmem:[#allocation76_spill] sm:$0xff] %v10437_v52 }
  0x73   :  { %1022 = vmatprep.subr.bf16.mxu0 %v10389_v6  ;;  %1062 = vmatpush1.bf16.msra.mxu1 %v10404_v10  ;;  %v10431_v6 = vcombine.low %v254_v37, %v258_v38  ;;  %v274_v37 = vld [vmem:[%s13554_s2 + $0x3f0] sm:$0xff]  ;;  %v10452_v38 = vcombine.low %v255_v61, %v259_v53  ;;  %v271_v10 = vld [vmem:[%s13554_s2 + $0x3d8] sm:$0xff]  ;;  %v10470_v53 = vcombine.low %v263_v59, %v267_v20 }
  0x74   :  { %1063 = vmatprep.subr.bf16.mxu1 %v10410_v36  ;;  %v10461_v36 = vcombine.high %v270_v21, %v274_v37  ;;  %v275_v61 = vld [vmem:[%s13554_s2 + $0x3f8] sm:$0xff] }
  0x76   :  { %1023 = vmatpush1.bf16.msra.mxu0 %v10407_v27  ;;  %v10458_v27 = vcombine.high %v263_v59, %v267_v20 }
  0x77   :  { %1024 = vmatprep.subr.bf16.mxu0 %v10413_v22  ;;  %1064 = vmatpush1.bf16.msra.mxu1 %v10428_v9  ;;  %v10455_v22 = vcombine.low %v262_v5, %v266_v8  ;;  %v10473_v5 = vcombine.low %v270_v21, %v274_v37  ;;  %v10476_v8 = vcombine.high %v271_v10, %v275_v61 }
  0x78   :  { %1065 = vmatprep.subr.bf16.mxu1 %v10434_v54 }
  0x7a   :  { %1025 = vmatpush1.bf16.msra.mxu0 %v10431_v6 }
  0x7b   :  { %1026 = vmatprep.subr.bf16.mxu0 %v10437_v52  ;;  %1066 = vmatpush1.bf16.msra.mxu1 %v10452_v38  ;;  %v10480_v52 = vcombine.low %v271_v10, %v275_v61 }
  0x7c   :  { %1067 = vmatprep.subr.bf16.mxu1 %v10458_v27 }
  0x7e   :  { %1027 = vmatpush1.bf16.msra.mxu0 %v10455_v22 }
  0x7f   :  { %1028 = vmatprep.subr.bf16.mxu0 %v10461_v36  ;;  %1068 = vmatpush1.bf16.msra.mxu1 %v10470_v53 }
  0x80   :  { %1069 = vmatprep.subr.bf16.mxu1 %v10476_v8 }
  0x82   :  { %1029 = vmatpush1.bf16.msra.mxu0 %v10473_v5 }
  0x83   :  { %1932 = vmatprep.subr.bf16.mxu0 %v9720_v3  ;;  %1070 = vmatpush1.bf16.msra.mxu1 %v10480_v52  ;;  %v13927_v3 = vld [vmem:[#allocation6_spill] sm:$0xff] }
  0x84   :  { %1973 = vmatprep.subr.bf16.mxu1 %v9747_v13  ;;  %v13931_v13 = vld [vmem:[#allocation9_spill] sm:$0xff] }
  0x85   :  { %1031 = vmatmul.mubr.bf16.vlgmr.msra.gmra.mrb[4].mxu0 %v13877_v43 }
  0x86   :  { %1933 = vmatpush1.bf16.msra.mxu0 %v9722_v4  ;;  %1072 = vmatmul.mubr.bf16.vlgmr.msra.gmra.mrb[4].mxu1 %v13877_v43  ;;  %v13928_v4 = vld [vmem:[#allocation7_spill] sm:$0xff] }
  0x87   :  { %1934 = vmatprep.subr.bf16.mxu0 %v9729_v7  ;;  %1974 = vmatpush1.bf16.msra.mxu1 %v9749_v14  ;;  %v13929_v7 = vld [vmem:[#allocation8_spill] sm:$0xff]  ;;  %v13932_v14 = vld [vmem:[#allocation11_spill] sm:$0xff] }
  0x88   :  { %1975 = vmatprep.subr.bf16.mxu1 %v9760_v18  ;;  %v13934_v18 = vld [vmem:[#allocation14_spill] sm:$0xff] }
  0x8a   :  { %1935 = vmatpush1.bf16.msra.mxu0 %v9745_v12  ;;  %v13930_v12 = vld [vmem:[#allocation10_spill] sm:$0xff] }
  0x8b   :  { %1936 = vmatprep.subr.bf16.mxu0 %v9758_v17  ;;  %1976 = vmatpush1.bf16.msra.mxu1 %v9776_v23  ;;  %v13933_v17 = vld [vmem:[#allocation12_spill] sm:$0xff]  ;;  %v13935_v23 = vld [vmem:[#allocation13_spill] sm:$0xff] }
  0x8c   :  { %1977 = vmatprep.subr.bf16.mxu1 %v9782_v25  ;;  %v13937_v25 = vld [vmem:[#allocation16_spill] sm:$0xff] }
  0x8e   :  { %1937 = vmatpush1.bf16.msra.mxu0 %v9779_v24  ;;  %v13936_v24 = vld [vmem:[#allocation15_spill] sm:$0xff] }
  0x8f   :  { %1938 = vmatprep.subr.bf16.mxu0 %v9785_v26  ;;  %1978 = vmatpush1.bf16.msra.mxu1 %v9800_v31  ;;  %v13938_v26 = vld [vmem:[#allocation18_spill] sm:$0xff]  ;;  %v13939_v31 = vld [vmem:[#allocation17_spill] sm:$0xff] }
  0x90   :  { %1979 = vmatprep.subr.bf16.mxu1 %v9806_v33  ;;  %v13941_v33 = vld [vmem:[#allocation20_spill] sm:$0xff] }
  0x92   :  { %1939 = vmatpush1.bf16.msra.mxu0 %v9803_v32  ;;  %v13940_v32 = vld [vmem:[#allocation19_spill] sm:$0xff] }
  0x93   :  { %1940 = vmatprep.subr.bf16.mxu0 %v9809_v34  ;;  %1980 = vmatpush1.bf16.msra.mxu1 %v9824_v39  ;;  %v13942_v34 = vld [vmem:[#allocation22_spill] sm:$0xff]  ;;  %v13943_v39 = vld [vmem:[#allocation21_spill] sm:$0xff] }
  0x94   :  { %1981 = vmatprep.subr.bf16.mxu1 %v9830_v41  ;;  %v13945_v41 = vld [vmem:[#allocation24_spill] sm:$0xff] }
  0x96   :  { %1941 = vmatpush1.bf16.msra.mxu0 %v9827_v40  ;;  %v13944_v40 = vld [vmem:[#allocation23_spill] sm:$0xff] }
  0x97   :  { %1942 = vmatprep.subr.bf16.mxu0 %v9833_v42  ;;  %1982 = vmatpush1.bf16.msra.mxu1 %v9848_v47  ;;  %v13946_v42 = vld [vmem:[#allocation26_spill] sm:$0xff] }
  0x98   :  { %1983 = vmatprep.subr.bf16.mxu1 %v9854_v49  ;;  %v24_v47 = vld [vmem:[%s13552_s0] sm:$0xff] }
  0x99   :  { %v1083_v49 = vunpack.c.h.bf16 %v24_v47 }
  0x9a   :  { %1943 = vmatpush1.bf16.msra.mxu0 %v9851_v48  ;;  %v1082_v48 = vunpack.c.l.bf16 %v24_v47 }
  0x9b   :  { %1944 = vmatprep.subr.bf16.mxu0 %v9857_v50  ;;  %1984 = vmatpush1.bf16.msra.mxu1 %v9872_v55  ;;  %v26_v55 = vld [vmem:[%s13552_s0 + $0x8] sm:$0xff] }
  0x9c   :  { %1985 = vmatprep.subr.bf16.mxu1 %v9878_v57 }
  0x9e   :  { %1945 = vmatpush1.bf16.msra.mxu0 %v9875_v56 }
  0x9f   :  { %1946 = vmatprep.subr.bf16.mxu0 %v9881_v58  ;;  %1986 = vmatpush1.bf16.msra.mxu1 %v9896_v63 }
  0xa0   :  { %1987 = vmatprep.subr.bf16.mxu1 %v9902_v1 }
  0xa2   :  { %1947 = vmatpush1.bf16.msra.mxu0 %v9899_v0 }
  0xa3   :  { %1948 = vmatprep.subr.bf16.mxu0 %v9905_v2  ;;  %1988 = vmatpush1.bf16.msra.mxu1 %v9920_v11  ;;  %v1085_v11 = vunpack.c.h.bf16 %v26_v55 }
  0xa4   :  { %1989 = vmatprep.subr.bf16.mxu1 %v9926_v16 }
  0xa6   :  { %1949 = vmatpush1.bf16.msra.mxu0 %v9923_v15 }
  0xa7   :  { %1950 = vmatprep.subr.bf16.mxu0 %v9929_v19  ;;  %1990 = vmatpush1.bf16.msra.mxu1 %v9944_v28 }
  0xa8   :  { %1991 = vmatprep.subr.bf16.mxu1 %v9950_v30  ;;  %v1084_v30 = vunpack.c.l.bf16 %v26_v55 }
  0xaa   :  { %1951 = vmatpush1.bf16.msra.mxu0 %v9947_v29 }
  0xab   :  { %1952 = vmatprep.subr.bf16.mxu0 %v9953_v35  ;;  %1992 = vmatpush1.bf16.msra.mxu1 %v9968_v44 }
  0xac   :  { %1993 = vmatprep.subr.bf16.mxu1 %v9974_v46 }
  0xae   :  { %1953 = vmatpush1.bf16.msra.mxu0 %v9971_v45 }
  0xaf   :  { %1954 = vmatprep.subr.bf16.mxu0 %v9977_v51  ;;  %1994 = vmatpush1.bf16.msra.mxu1 %v9992_v60 }
  0xb0   :  { %1995 = vmatprep.subr.bf16.mxu1 %v9998_v62 }
  0xb2   :  { %1955 = vmatpush1.bf16.msra.mxu0 %v13927_v3 }
  0xb3   :  { %1956 = vmatprep.subr.bf16.mxu0 %v13928_v4  ;;  %1996 = vmatpush1.bf16.msra.mxu1 %v13929_v7 }
  0xb4   :  { %1997 = vmatprep.subr.bf16.mxu1 %v13930_v12 }
  0xb6   :  { %1957 = vmatpush1.bf16.msra.mxu0 %v13931_v13  ;;  %v8340_v13 = vld [vmem:[%s13553_s1 + $0xf0] sm:$0xff] }
  0xb7   :  { %1958 = vmatprep.subr.bf16.mxu0 %v13932_v14  ;;  %1998 = vmatpush1.bf16.msra.mxu1 %v13933_v17  ;;  %v1093_v14 = vunpack.c.l.bf16 %v8340_v13  ;;  %v1094_v17 = vunpack.c.h.bf16 %v8340_v13  ;;  %v13961_v13 = vld [vmem:[#allocation39_spill] sm:$0xff] }
  0xb8   :  { %1999 = vmatprep.subr.bf16.mxu1 %v13934_v18 }
  0xba   :  { %1959 = vmatpush1.bf16.msra.mxu0 %v13935_v23  ;;  %v8341_v23 = vld [vmem:[%s13553_s1 + $0xf8] sm:$0xff] }
  0xbb   :  { %1960 = vmatprep.subr.bf16.mxu0 %v13936_v24  ;;  %2000 = vmatpush1.bf16.msra.mxu1 %v13937_v25 }
  0xbc   :  { %2001 = vmatprep.subr.bf16.mxu1 %v13938_v26 }
  0xbe   :  { %1961 = vmatpush1.bf16.msra.mxu0 %v13939_v31 }
  0xbf   :  { %1962 = vmatprep.subr.bf16.mxu0 %v13940_v32  ;;  %2002 = vmatpush1.bf16.msra.mxu1 %v13941_v33 }
  0xc0   :  { %2003 = vmatprep.subr.bf16.mxu1 %v13942_v34 }
  0xc2   :  { %1963 = vmatpush1.bf16.msra.mxu0 %v13943_v39  ;;  %v1096_v39 = vunpack.c.h.bf16 %v8341_v23 }
  0xc3   :  { %2014 = vmatprep.subr.bf16.mxu0 %v13944_v40  ;;  %2004 = vmatpush1.bf16.msra.mxu1 %v13945_v41 }
  0xc4   :  { %2055 = vmatprep.subr.bf16.mxu1 %v13946_v42 }
 0x118   :  { %v950_v50 = vpop.f32.mrb[0].mxu0  ;;  %v991_v2 = vpop.f32.mrb[0].mxu1 }
 0x119   :  { %v1086_v56 = vadd.f32 %v1082_v48, %v950_v50  ;;  %v952_v57 = vpop.f32.mrb[1].mxu0  ;;  %v993_v16 = vpop.f32.mrb[1].mxu1  ;;  %v1088_v44 = vadd.f32 %v1084_v30, %v991_v2 }
 0x11a   :  { %v1087_v58 = vadd.f32 %v1083_v49, %v952_v57  ;;  %v954_v63 = vpop.f32.mrb[2].mxu0  ;;  %v995_v19 = vpop.f32.mrb[2].mxu1  ;;  %v1089_v29 = vadd.f32 %v1085_v11, %v993_v16  ;;  %v1095_v49 = vunpack.c.l.bf16 %v8341_v23  ;;  %v13965_v23 = vld [vmem:[#allocation43_spill] sm:$0xff] }
 0x11b   :  { %v8470_v0 = vmul.f32 -1.442695, %v1086_v56  ;;  %v955_v1 = vpop.f32.mrb[3].mxu0  ;;  %v996_v28 = vpop.f32.mrb[3].mxu1 }
 0x11c   :  { %v8471_v15 = vmul.f32 -1.442695, %v1087_v58  ;;  %v8472_v35 = vmul.f32 -1.442695, %v1089_v29 }
 0x11d   :  { %9429 = vpow2.f32 %v8470_v0 }
 0x11e   :  { %9431 = vpow2.f32 %v8471_v15 }
 0x11f   :  { %9433 = vpow2.f32 %v8472_v35 }
 0x120   :  { %9435 = vtanh.f32 %v1088_v44 }
 0x127   :  { %v9430_v45 = vpop.eup %9429 }
 0x128   :  { %v9432_v46 = vpop.eup %9431  ;;  %v1104_v51 = vadd.f32 1.0, %v9430_v45  ;;  %v13947_v45 = vld [vmem:[#allocation25_spill] sm:$0xff] }
 0x129   :  { %v1110_v60 = vadd.f32 1.0, %v9432_v46  ;;  %v9434_v62 = vpop.eup %9433  ;;  %v13948_v46 = vld [vmem:[#allocation28_spill] sm:$0xff] }
 0x12a   :  { %9437 = vrcp.f32 %v1104_v51  ;;  %v9436_v43 = vpop.eup %9435  ;;  %v1117_v10 = vadd.f32 1.0, %v9434_v62  ;;  %v13949_v51 = vld [vmem:[#allocation27_spill] sm:$0xff]  ;;  %v13951_v62 = vld [vmem:[#allocation29_spill] sm:$0xff] }
 0x12b   :  { %9439 = vrcp.f32 %v1110_v60  ;;  %v13950_v60 = vld [vmem:[#allocation30_spill] sm:$0xff] }
 0x12c   :  { %9441 = vrcp.f32 %v1117_v10  ;;  %v13954_v10 = vld [vmem:[#allocation34_spill] sm:$0xff] }
 0x134   :  { %v9438_v59 = vpop.eup %9437 }
 0x135   :  { %v9440_v20 = vpop.eup %9439  ;;  %v1122_v21 = vmul.f32 %v9438_v59, %v9436_v43  ;;  %v13952_v43 = vld [vmem:[#allocation32_spill] sm:$0xff]  ;;  %v13953_v59 = vld [vmem:[#allocation31_spill] sm:$0xff] }
 0x136   :  { %v1121_v37 = vmul.f32 0.0, %v9440_v20  ;;  %v9442_v3 = vpop.eup %9441  ;;  %v13955_v20 = vld [vmem:[#allocation33_spill] sm:$0xff] }
 0x138   :  { %v10559_v61 = vadd.f32 %v1122_v21, %v1121_v37  ;;  %v13956_v21 = vld [vmem:[#allocation36_spill] sm:$0xff]  ;;  %v13957_v37 = vld [vmem:[#allocation35_spill] sm:$0xff] }
 0x13a   :  { %9443 = vtanh.f32 %v10559_v61 }
 0x144   :  { %v9444_v4 = vpop.eup %9443 }
 0x145   :  { %v1125_v7 = vmul.f32 %v9444_v4, %v9442_v3  ;;  %v13958_v3 = vld [vmem:[#allocation38_spill] sm:$0xff]  ;;  %v13959_v4 = vld [vmem:[#allocation37_spill] sm:$0xff] }
 0x147   :  { %v10562_v12 = vpack.c.bf16 %v1125_v7, %v1125_v7  ;;  %v13960_v7 = vld [vmem:[#allocation40_spill] sm:$0xff] }
 0x149   :  { %1156 = vst [vmem:[%s13555_s3] sm:$0xf] %v10562_v12 }
 0x158   :  { %v1032_v18 = vpop.f32.mrb[4].mxu0 }
 0x159   :  { %v1097_v24 = vadd.f32 %v1093_v14, %v1032_v18  ;;  %v1034_v25 = vpop.f32.mrb[5].mxu0  ;;  %v1073_v34 = vpop.f32.mrb[4].mxu1  ;;  %v13962_v14 = vld [vmem:[#allocation42_spill] sm:$0xff]  ;;  %v13964_v18 = vld [vmem:[#allocation44_spill] sm:$0xff] }
 0x15a   :  { %v1098_v26 = vadd.f32 %v1094_v17, %v1034_v25  ;;  %v1036_v31 = vpop.f32.mrb[6].mxu0  ;;  %v1075_v41 = vpop.f32.mrb[5].mxu1  ;;  %v1099_v55 = vadd.f32 %v1095_v49, %v1073_v34  ;;  %v13963_v17 = vld [vmem:[#allocation41_spill] sm:$0xff]  ;;  %v13972_v34 = vld [vmem:[#allocation52_spill] sm:$0xff] }
 0x15b   :  { %v8473_v32 = vmul.f32 -1.442695, %v1097_v24  ;;  %v1037_v33 = vpop.f32.mrb[7].mxu0  ;;  %v1077_v42 = vpop.f32.mrb[6].mxu1  ;;  %v1100_v48 = vadd.f32 %v1096_v39, %v1075_v41  ;;  %v13966_v24 = vld [vmem:[#allocation46_spill] sm:$0xff]  ;;  %v13967_v25 = vld [vmem:[#allocation45_spill] sm:$0xff] }
 0x15c   :  { %v8474_v40 = vmul.f32 -1.442695, %v1098_v26  ;;  %v1078_v47 = vpop.f32.mrb[7].mxu1  ;;  %v13968_v26 = vld [vmem:[#allocation48_spill] sm:$0xff]  ;;  %v13969_v31 = vld [vmem:[#allocation47_spill] sm:$0xff]  ;;  %v13971_v33 = vld [vmem:[#allocation49_spill] sm:$0xff] }
 0x15d   :  { %9445 = vpow2.f32 %v8473_v32  ;;  %v8475_v50 = vmul.f32 -1.442695, %v1100_v48  ;;  %v13970_v32 = vld [vmem:[#allocation50_spill] sm:$0xff]  ;;  %v13973_v39 = vld [vmem:[#allocation51_spill] sm:$0xff]  ;;  %v13975_v41 = vld [vmem:[#allocation53_spill] sm:$0xff] }
 0x15e   :  { %9447 = vpow2.f32 %v8474_v40  ;;  %v13974_v40 = vld [vmem:[#allocation54_spill] sm:$0xff]  ;;  %v13976_v42 = vld [vmem:[#allocation56_spill] sm:$0xff]  ;;  %v13977_v47 = vld [vmem:[#allocation55_spill] sm:$0xff] }
 0x15f   :  { %9449 = vpow2.f32 %v8475_v50  ;;  %v13978_v48 = vld [vmem:[#allocation58_spill] sm:$0xff]  ;;  %v13979_v49 = vld [vmem:[#allocation57_spill] sm:$0xff]  ;;  %v13980_v50 = vld [vmem:[#allocation60_spill] sm:$0xff] }
 0x160   :  { %9451 = vtanh.f32 %v1099_v55  ;;  %v13981_v55 = vld [vmem:[#allocation59_spill] sm:$0xff] }
 0x167   :  { %v9446_v56 = vpop.eup %9445 }
 0x168   :  { %v9448_v57 = vpop.eup %9447  ;;  %v1129_v58 = vadd.f32 1.0, %v9446_v56  ;;  %v13982_v56 = vld [vmem:[#allocation62_spill] sm:$0xff] }
 0x169   :  { %v1135_v63 = vadd.f32 1.0, %v9448_v57  ;;  %v9450_v0 = vpop.eup %9449  ;;  %v13983_v57 = vld [vmem:[#allocation61_spill] sm:$0xff] }
 0x16a   :  { %9453 = vrcp.f32 %v1129_v58  ;;  %v9452_v1 = vpop.eup %9451  ;;  %v1142_v11 = vadd.f32 1.0, %v9450_v0  ;;  %v13984_v58 = vld [vmem:[#allocation64_spill] sm:$0xff]  ;;  %v13986_v0 = vld [vmem:[#allocation66_spill] sm:$0xff] }
 0x16b   :  { %9455 = vrcp.f32 %v1135_v63  ;;  %v13985_v63 = vld [vmem:[#allocation63_spill] sm:$0xff] }
 0x16c   :  { %9457 = vrcp.f32 %v1142_v11  ;;  %v13989_v11 = vld [vmem:[#allocation67_spill] sm:$0xff] }
 0x174   :  { %v9454_v2 = vpop.eup %9453 }
 0x175   :  { %v9456_v15 = vpop.eup %9455  ;;  %v1147_v16 = vmul.f32 %v9454_v2, %v9452_v1  ;;  %v13987_v1 = vld [vmem:[#allocation65_spill] sm:$0xff]  ;;  %v13988_v2 = vld [vmem:[#allocation68_spill] sm:$0xff] }
 0x176   :  { %v1146_v19 = vmul.f32 0.0, %v9456_v15  ;;  %v9458_v29 = vpop.eup %9457  ;;  %v13990_v15 = vld [vmem:[#allocation70_spill] sm:$0xff] }
 0x178   :  { %v10574_v28 = vadd.f32 %v1147_v16, %v1146_v19  ;;  %v13991_v16 = vld [vmem:[#allocation69_spill] sm:$0xff]  ;;  %v13992_v19 = vld [vmem:[#allocation72_spill] sm:$0xff] }
 0x17a   :  { %9459 = vtanh.f32 %v10574_v28 }
 0x184   :  { %v9460_v30 = vpop.eup %9459 }
 0x185   :  { %v1150_v35 = vmul.f32 %v9460_v30, %v9458_v29  ;;  %v13993_v29 = vld [vmem:[#allocation71_spill] sm:$0xff]  ;;  %v13994_v30 = vld [vmem:[#allocation74_spill] sm:$0xff] }
 0x187   :  { %v1157_v44 = vpack.c.bf16 %v1150_v35, %v1150_v35  ;;  %v13995_v35 = vld [vmem:[#allocation73_spill] sm:$0xff] }
 0x189   :  { %8476 = vst [vmem:[%s13556_s4 + $0x1c] sm:$0xf] %v1157_v44  ;;  %1964 = vmatprep.mubr.bf16.mxu0 %v1157_v44  ;;  %2005 = vmatprep.mubr.bf16.mxu1 %v1157_v44 }
 0x18a   :  { %1965 = vmatmul.mubr.bf16.vlgmr.msra.gmra.mrb[8].mxu0 %v10562_v12  ;;  %2006 = vmatmul.mubr.bf16.vlgmr.msra.gmra.mrb[8].mxu1 %v10562_v12 }
 0x18b   :  { %2015 = vmatpush1.bf16.msra.mxu0 %v13947_v45  ;;  %2056 = vmatpush1.bf16.msra.mxu1 %v13948_v46  ;;  %v13997_v45 = vld [vmem:[#allocation76_spill] sm:$0xff]  ;;  %v2195_v46 = vld [vmem:[%s13554_s2 + $0x68] sm:$0xff] }
 0x18c   :  { %2046 = vmatprep.mubr.bf16.mxu0 %v1157_v44  ;;  %2087 = vmatprep.mubr.bf16.mxu1 %v1157_v44  ;;  %v13996_v44 = vld [vmem:[#allocation75_spill] sm:$0xff] }
 0x18d   :  { %2016 = vmatprep.subr.bf16.mxu0 %v13949_v51  ;;  %2057 = vmatprep.subr.bf16.mxu1 %v13950_v60  ;;  %v2198_v51 = vld [vmem:[%s13554_s2 + $0x80] sm:$0xff] }
 0x18f   :  { %2017 = vmatpush1.bf16.msra.mxu0 %v13951_v62  ;;  %2058 = vmatpush1.bf16.msra.mxu1 %v13952_v43  ;;  %v2202_v62 = vld [vmem:[%s13554_s2 + $0xa0] sm:$0xff]  ;;  %v2199_v43 = vld [vmem:[%s13554_s2 + $0x88] sm:$0xff] }
 0x190   :  { %2018 = vmatprep.subr.bf16.mxu0 %v13953_v59  ;;  %2059 = vmatprep.subr.bf16.mxu1 %v13954_v10  ;;  %v2203_v59 = vld [vmem:[%s13554_s2 + $0xa8] sm:$0xff] }
 0x193   :  { %2019 = vmatpush1.bf16.msra.mxu0 %v13955_v20  ;;  %2060 = vmatpush1.bf16.msra.mxu1 %v13956_v21  ;;  %v10703_v21 = vcombine.high %v2198_v51, %v2202_v62 }
 0x194   :  { %2020 = vmatprep.subr.bf16.mxu0 %v13957_v37  ;;  %2061 = vmatprep.subr.bf16.mxu1 %v13958_v3  ;;  %v10706_v37 = vcombine.high %v2199_v43, %v2203_v59  ;;  %v2206_v3 = vld [vmem:[%s13554_s2 + $0xc0] sm:$0xff] }
 0x197   :  { %2021 = vmatpush1.bf16.msra.mxu0 %v13959_v4  ;;  %2062 = vmatpush1.bf16.msra.mxu1 %v13960_v7  ;;  %v2210_v4 = vld [vmem:[%s13554_s2 + $0xe0] sm:$0xff]  ;;  %v2207_v7 = vld [vmem:[%s13554_s2 + $0xc8] sm:$0xff] }
 0x198   :  { %2022 = vmatprep.subr.bf16.mxu0 %v13961_v13  ;;  %2063 = vmatprep.subr.bf16.mxu1 %v13962_v14  ;;  %v2211_v13 = vld [vmem:[%s13554_s2 + $0xe8] sm:$0xff]  ;;  %v10721_v14 = vcombine.low %v2198_v51, %v2202_v62 }
 0x19b   :  { %2023 = vmatpush1.bf16.msra.mxu0 %v13963_v17  ;;  %2064 = vmatpush1.bf16.msra.mxu1 %v13964_v18  ;;  %v10725_v17 = vcombine.low %v2199_v43, %v2203_v59  ;;  %v10727_v18 = vcombine.high %v2206_v3, %v2210_v4  ;;  %v2254_v43 = vld [vmem:[%s13554_s2 + $0x240] sm:$0xff] }
 0x19c   :  { %2024 = vmatprep.subr.bf16.mxu0 %v13965_v23  ;;  %2065 = vmatprep.subr.bf16.mxu1 %v13966_v24  ;;  %v10730_v23 = vcombine.high %v2207_v7, %v2211_v13  ;;  %v10733_v24 = vcombine.low %v2206_v3, %v2210_v4  ;;  %v2258_v59 = vld [vmem:[%s13554_s2 + $0x260] sm:$0xff]  ;;  %v2255_v3 = vld [vmem:[%s13554_s2 + $0x248] sm:$0xff] }
 0x19d   :  { %v10871_v4 = vcombine.high %v2254_v43, %v2258_v59 }
 0x19f   :  { %2025 = vmatpush1.bf16.msra.mxu0 %v13967_v25  ;;  %2066 = vmatpush1.bf16.msra.mxu1 %v13968_v26  ;;  %v10737_v25 = vcombine.low %v2207_v7, %v2211_v13  ;;  %v2214_v26 = vld [vmem:[%s13554_s2 + $0x100] sm:$0xff]  ;;  %v2259_v7 = vld [vmem:[%s13554_s2 + $0x268] sm:$0xff]  ;;  %v10876_v13 = vcombine.low %v2254_v43, %v2258_v59 }
 0x1a0   :  { %2026 = vmatprep.subr.bf16.mxu0 %v13969_v31  ;;  %2067 = vmatprep.subr.bf16.mxu1 %v13970_v32  ;;  %v2218_v31 = vld [vmem:[%s13554_s2 + $0x120] sm:$0xff]  ;;  %v2215_v32 = vld [vmem:[%s13554_s2 + $0x108] sm:$0xff] }
 0x1a1   :  { %13998 = vst [vmem:[#allocation6_spill] sm:$0xff] %v10876_v13  ;;  %v2279_v43 = vld [vmem:[%s13554_s2 + $0x308] sm:$0xff] }
 0x1a3   :  { %2027 = vmatpush1.bf16.msra.mxu0 %v13971_v33  ;;  %2068 = vmatpush1.bf16.msra.mxu1 %v13972_v34  ;;  %v10751_v33 = vcombine.high %v2214_v26, %v2218_v31  ;;  %v2219_v34 = vld [vmem:[%s13554_s2 + $0x128] sm:$0xff] }
 0x1a4   :  { %2028 = vmatprep.subr.bf16.mxu0 %v13973_v39  ;;  %2069 = vmatprep.subr.bf16.mxu1 %v13974_v40  ;;  %v10756_v39 = vcombine.low %v2214_v26, %v2218_v31  ;;  %v10758_v40 = vcombine.low %v2215_v32, %v2219_v34  ;;  %v10878_v26 = vcombine.low %v2255_v3, %v2259_v7 }
 0x1a5   :  { %v10880_v31 = vcombine.high %v2255_v3, %v2259_v7  ;;  %v2283_v3 = vld [vmem:[%s13554_s2 + $0x328] sm:$0xff] }
 0x1a6   :  { %13999 = vst [vmem:[#allocation7_spill] sm:$0xff] %v10878_v26 }
 0x1a7   :  { %2029 = vmatpush1.bf16.msra.mxu0 %v13975_v41  ;;  %2070 = vmatpush1.bf16.msra.mxu1 %v13976_v42  ;;  %v10760_v41 = vcombine.high %v2215_v32, %v2219_v34  ;;  %v2222_v42 = vld [vmem:[%s13554_s2 + $0x140] sm:$0xff] }
 0x1a8   :  { %2030 = vmatprep.subr.bf16.mxu0 %v13977_v47  ;;  %2071 = vmatprep.subr.bf16.mxu1 %v13978_v48  ;;  %v2226_v47 = vld [vmem:[%s13554_s2 + $0x160] sm:$0xff]  ;;  %v2223_v48 = vld [vmem:[%s13554_s2 + $0x148] sm:$0xff] }
 0x1a9   :  { %v2262_v32 = vld [vmem:[%s13554_s2 + $0x280] sm:$0xff] }
 0x1aa   :  { %v2266_v34 = vld [vmem:[%s13554_s2 + $0x2a0] sm:$0xff] }
 0x1ab   :  { %2031 = vmatpush1.bf16.msra.mxu0 %v13979_v49  ;;  %2072 = vmatpush1.bf16.msra.mxu1 %v13980_v50  ;;  %v10775_v49 = vcombine.high %v2222_v42, %v2226_v47  ;;  %v2227_v50 = vld [vmem:[%s13554_s2 + $0x168] sm:$0xff] }
 0x1ac   :  { %2032 = vmatprep.subr.bf16.mxu0 %v13981_v55  ;;  %2073 = vmatprep.subr.bf16.mxu1 %v13982_v56  ;;  %v10780_v55 = vcombine.low %v2222_v42, %v2226_v47  ;;  %v10782_v56 = vcombine.low %v2223_v48, %v2227_v50  ;;  %v2263_v42 = vld [vmem:[%s13554_s2 + $0x288] sm:$0xff]  ;;  %v10895_v47 = vcombine.high %v2262_v32, %v2266_v34 }
 0x1ae   :  { %14000 = vst [vmem:[#allocation8_spill] sm:$0xff] %v10895_v47 }
 0x1af   :  { %2033 = vmatpush1.bf16.msra.mxu0 %v13983_v57  ;;  %2074 = vmatpush1.bf16.msra.mxu1 %v13984_v58  ;;  %v10784_v57 = vcombine.high %v2223_v48, %v2227_v50  ;;  %v2230_v58 = vld [vmem:[%s13554_s2 + $0x180] sm:$0xff]  ;;  %v2267_v48 = vld [vmem:[%s13554_s2 + $0x2a8] sm:$0xff]  ;;  %v10900_v50 = vcombine.low %v2262_v32, %v2266_v34  ;;  %v10950_v32 = vcombine.low %v2279_v43, %v2283_v3 }
 0x1b0   :  { %2034 = vmatprep.subr.bf16.mxu0 %v13985_v63  ;;  %2075 = vmatprep.subr.bf16.mxu1 %v13986_v0  ;;  %v2234_v63 = vld [vmem:[%s13554_s2 + $0x1a0] sm:$0xff]  ;;  %v2231_v0 = vld [vmem:[%s13554_s2 + $0x188] sm:$0xff]  ;;  %v10952_v34 = vcombine.high %v2279_v43, %v2283_v3 }
 0x1b1   :  { %14001 = vst [vmem:[#allocation10_spill] sm:$0xff] %v10900_v50  ;;  %14010 = vst [vmem:[#allocation17_spill] sm:$0xff] %v10950_v32 }
 0x1b2   :  { %14011 = vst [vmem:[#allocation19_spill] sm:$0xff] %v10952_v34 }
 0x1b3   :  { %2035 = vmatpush1.bf16.msra.mxu0 %v13987_v1  ;;  %2076 = vmatpush1.bf16.msra.mxu1 %v13988_v2  ;;  %v10799_v1 = vcombine.high %v2230_v58, %v2234_v63  ;;  %v2235_v2 = vld [vmem:[%s13554_s2 + $0x1a8] sm:$0xff] }
 0x1b4   :  { %2036 = vmatprep.subr.bf16.mxu0 %v13989_v11  ;;  %2077 = vmatprep.subr.bf16.mxu1 %v13990_v15  ;;  %v10804_v11 = vcombine.low %v2230_v58, %v2234_v63  ;;  %v10806_v15 = vcombine.low %v2231_v0, %v2235_v2  ;;  %v10902_v58 = vcombine.low %v2263_v42, %v2267_v48 }
 0x1b5   :  { %v10904_v63 = vcombine.high %v2263_v42, %v2267_v48  ;;  %v2286_v42 = vld [vmem:[%s13554_s2 + $0x340] sm:$0xff] }
 0x1b6   :  { %14002 = vst [vmem:[#allocation9_spill] sm:$0xff] %v10902_v58  ;;  %v2290_v48 = vld [vmem:[%s13554_s2 + $0x360] sm:$0xff] }
 0x1b7   :  { %2037 = vmatpush1.bf16.msra.mxu0 %v13991_v16  ;;  %2078 = vmatpush1.bf16.msra.mxu1 %v13992_v19  ;;  %v10808_v16 = vcombine.high %v2231_v0, %v2235_v2  ;;  %v2238_v19 = vld [vmem:[%s13554_s2 + $0x1c0] sm:$0xff]  ;;  %14003 = vst [vmem:[#allocation11_spill] sm:$0xff] %v10904_v63 }
 0x1b8   :  { %2038 = vmatprep.subr.bf16.mxu0 %v13993_v29  ;;  %2079 = vmatprep.subr.bf16.mxu1 %v13994_v30  ;;  %v2242_v29 = vld [vmem:[%s13554_s2 + $0x1e0] sm:$0xff]  ;;  %v2239_v30 = vld [vmem:[%s13554_s2 + $0x1c8] sm:$0xff] }
 0x1b9   :  { %v2270_v0 = vld [vmem:[%s13554_s2 + $0x2c0] sm:$0xff] }
 0x1ba   :  { %v2274_v2 = vld [vmem:[%s13554_s2 + $0x2e0] sm:$0xff] }
 0x1bb   :  { %2039 = vmatpush1.bf16.msra.mxu0 %v13995_v35  ;;  %2080 = vmatpush1.bf16.msra.mxu1 %v10428_v9  ;;  %v2190_v9 = vld [vmem:[%s13554_s2 + $0x40] sm:$0xff]  ;;  %v10823_v35 = vcombine.high %v2238_v19, %v2242_v29 }
 0x1bc   :  { %2040 = vmatprep.subr.bf16.mxu0 %v13996_v44  ;;  %2081 = vmatprep.subr.bf16.mxu1 %v10434_v54  ;;  %v2243_v44 = vld [vmem:[%s13554_s2 + $0x1e8] sm:$0xff] }
 0x1bf   :  { %2041 = vmatpush1.bf16.msra.mxu0 %v10431_v6  ;;  %2082 = vmatpush1.bf16.msra.mxu1 %v10452_v38  ;;  %v2182_v6 = vld [vmem:[%s13554_s2] sm:$0xff] }
 0x1c0   :  { %2042 = vmatprep.subr.bf16.mxu0 %v13997_v45  ;;  %2083 = vmatprep.subr.bf16.mxu1 %v10458_v27  ;;  %v2183_v27 = vld [vmem:[%s13554_s2 + $0x8] sm:$0xff]  ;;  %v2194_v38 = vld [vmem:[%s13554_s2 + $0x60] sm:$0xff]  ;;  %v10828_v45 = vcombine.low %v2238_v19, %v2242_v29  ;;  %v10919_v29 = vcombine.high %v2270_v0, %v2274_v2 }
 0x1c1   :  { %v10697_v10 = vcombine.low %v2190_v9, %v2194_v38  ;;  %v2271_v19 = vld [vmem:[%s13554_s2 + $0x2c8] sm:$0xff] }
 0x1c2   :  { %14004 = vst [vmem:[#allocation12_spill] sm:$0xff] %v10919_v29 }
 0x1c3   :  { %2043 = vmatpush1.bf16.msra.mxu0 %v10455_v22  ;;  %2084 = vmatpush1.bf16.msra.mxu1 %v10470_v53  ;;  %v2186_v22 = vld [vmem:[%s13554_s2 + $0x20] sm:$0xff] }
 0x1c4   :  { %2044 = vmatprep.subr.bf16.mxu0 %v10461_v36  ;;  %2085 = vmatprep.subr.bf16.mxu1 %v10476_v8  ;;  %v10655_v36 = vcombine.low %v2182_v6, %v2186_v22  ;;  %v10657_v54 = vcombine.high %v2182_v6, %v2186_v22  ;;  %v10672_v8 = vcombine.high %v2190_v9, %v2194_v38  ;;  %v2247_v9 = vld [vmem:[%s13554_s2 + $0x208] sm:$0xff] }
 0x1c5   :  { %v10830_v6 = vcombine.low %v2239_v30, %v2243_v44  ;;  %v10832_v22 = vcombine.high %v2239_v30, %v2243_v44  ;;  %v2275_v30 = vld [vmem:[%s13554_s2 + $0x2e8] sm:$0xff]  ;;  %v10924_v44 = vcombine.low %v2270_v0, %v2274_v2  ;;  %v10966_v2 = vcombine.low %v2286_v42, %v2290_v48 }
 0x1c6   :  { %v2287_v0 = vld [vmem:[%s13554_s2 + $0x348] sm:$0xff] }
 0x1c7   :  { %2045 = vmatpush1.bf16.msra.mxu0 %v10473_v5  ;;  %2086 = vmatpush1.bf16.msra.mxu1 %v10480_v52  ;;  %v2187_v52 = vld [vmem:[%s13554_s2 + $0x28] sm:$0xff]  ;;  %14005 = vst [vmem:[#allocation14_spill] sm:$0xff] %v10924_v44  ;;  %14012 = vst [vmem:[#allocation20_spill] sm:$0xff] %v10966_v2 }
 0x1c8   :  { %v10668_v53 = vcombine.low %v2183_v27, %v2187_v52  ;;  %v10670_v5 = vcombine.high %v2183_v27, %v2187_v52  ;;  %2950 = vmatprep.subr.bf16.mxu0 %v10657_v54  ;;  %v2246_v27 = vld [vmem:[%s13554_s2 + $0x200] sm:$0xff] }
 0x1c9   :  { %v2250_v52 = vld [vmem:[%s13554_s2 + $0x220] sm:$0xff] }
 0x1ca   :  { %2047 = vmatmul.mubr.bf16.vlgmr.msra.gmra.mrb[12].mxu0 %v10562_v12  ;;  %2088 = vmatmul.mubr.bf16.vlgmr.msra.gmra.mrb[12].mxu1 %v10562_v12  ;;  %v2191_v12 = vld [vmem:[%s13554_s2 + $0x48] sm:$0xff]  ;;  %v10847_v38 = vcombine.high %v2246_v27, %v2250_v52 }
 0x1cb   :  { %v10684_v60 = vcombine.high %v2191_v12, %v2195_v46  ;;  %2991 = vmatprep.subr.bf16.mxu1 %v10670_v5  ;;  %2951 = vmatpush1.bf16.msra.mxu0 %v10655_v36  ;;  %v10701_v20 = vcombine.low %v2191_v12, %v2195_v46  ;;  %v2251_v12 = vld [vmem:[%s13554_s2 + $0x228] sm:$0xff]  ;;  %v10852_v46 = vcombine.low %v2246_v27, %v2250_v52 }
 0x1cc   :  { %2992 = vmatpush1.bf16.msra.mxu1 %v10668_v53  ;;  %2952 = vmatprep.subr.bf16.mxu0 %v10672_v8  ;;  %v10854_v51 = vcombine.low %v2247_v9, %v2251_v12  ;;  %v10856_v62 = vcombine.high %v2247_v9, %v2251_v12  ;;  %v10926_v27 = vcombine.low %v2271_v19, %v2275_v30  ;;  %v2278_v9 = vld [vmem:[%s13554_s2 + $0x300] sm:$0xff] }
 0x1cd   :  { %2993 = vmatprep.subr.bf16.mxu1 %v10684_v60  ;;  %v10928_v52 = vcombine.high %v2271_v19, %v2275_v30  ;;  %v2282_v12 = vld [vmem:[%s13554_s2 + $0x320] sm:$0xff]  ;;  %v10968_v19 = vcombine.high %v2286_v42, %v2290_v48  ;;  %v2291_v30 = vld [vmem:[%s13554_s2 + $0x368] sm:$0xff] }
 0x1ce   :  { %14006 = vst [vmem:[#allocation13_spill] sm:$0xff] %v10926_v27  ;;  %v10943_v59 = vcombine.high %v2278_v9, %v2282_v12  ;;  %v10948_v7 = vcombine.low %v2278_v9, %v2282_v12  ;;  %v2294_v9 = vld [vmem:[%s13554_s2 + $0x380] sm:$0xff]  ;;  %v10980_v43 = vcombine.low %v2287_v0, %v2291_v30  ;;  %v10982_v3 = vcombine.high %v2287_v0, %v2291_v30  ;;  %v2295_v48 = vld [vmem:[%s13554_s2 + $0x388] sm:$0xff] }
 0x1cf   :  { %2953 = vmatpush1.bf16.msra.mxu0 %v10697_v10  ;;  %14007 = vst [vmem:[#allocation15_spill] sm:$0xff] %v10928_v52  ;;  %14013 = vst [vmem:[#allocation22_spill] sm:$0xff] %v10968_v19  ;;  %v2298_v12 = vld [vmem:[%s13554_s2 + $0x3a0] sm:$0xff]  ;;  %v2303_v30 = vld [vmem:[%s13554_s2 + $0x3c8] sm:$0xff] }
 0x1d0   :  { %2994 = vmatpush1.bf16.msra.mxu1 %v10701_v20  ;;  %2954 = vmatprep.subr.bf16.mxu0 %v10703_v21  ;;  %14008 = vst [vmem:[#allocation16_spill] sm:$0xff] %v10943_v59  ;;  %14009 = vst [vmem:[#allocation18_spill] sm:$0xff] %v10948_v7  ;;  %v10984_v42 = vcombine.high %v2294_v9, %v2298_v12  ;;  %v2306_v0 = vld [vmem:[%s13554_s2 + $0x3e0] sm:$0xff] }
 0x1d1   :  { %2995 = vmatprep.subr.bf16.mxu1 %v10706_v37  ;;  %14014 = vst [vmem:[#allocation21_spill] sm:$0xff] %v10980_v43  ;;  %14015 = vst [vmem:[#allocation23_spill] sm:$0xff] %v10982_v3 }
 0x1d2   :  { %14016 = vst [vmem:[#allocation24_spill] sm:$0xff] %v10984_v42 }
 0x1d3   :  { %2955 = vmatpush1.bf16.msra.mxu0 %v10721_v14 }
 0x1d4   :  { %2996 = vmatpush1.bf16.msra.mxu1 %v10725_v17  ;;  %2956 = vmatprep.subr.bf16.mxu0 %v10727_v18 }
 0x1d5   :  { %2997 = vmatprep.subr.bf16.mxu1 %v10730_v23 }
 0x1d7   :  { %2957 = vmatpush1.bf16.msra.mxu0 %v10733_v24 }
 0x1d8   :  { %2998 = vmatpush1.bf16.msra.mxu1 %v10737_v25  ;;  %2958 = vmatprep.subr.bf16.mxu0 %v10751_v33 }
 0x1d9   :  { %2999 = vmatprep.subr.bf16.mxu1 %v10760_v41 }
 0x1db   :  { %2959 = vmatpush1.bf16.msra.mxu0 %v10756_v39 }
 0x1dc   :  { %3000 = vmatpush1.bf16.msra.mxu1 %v10758_v40  ;;  %2960 = vmatprep.subr.bf16.mxu0 %v10775_v49 }
 0x1dd   :  { %3001 = vmatprep.subr.bf16.mxu1 %v10784_v57 }
 0x1df   :  { %2961 = vmatpush1.bf16.msra.mxu0 %v10780_v55 }
 0x1e0   :  { %3002 = vmatpush1.bf16.msra.mxu1 %v10782_v56  ;;  %2962 = vmatprep.subr.bf16.mxu0 %v10799_v1 }
 0x1e1   :  { %3003 = vmatprep.subr.bf16.mxu1 %v10808_v16 }
 0x1e3   :  { %2963 = vmatpush1.bf16.msra.mxu0 %v10804_v11 }
 0x1e4   :  { %3004 = vmatpush1.bf16.msra.mxu1 %v10806_v15  ;;  %2964 = vmatprep.subr.bf16.mxu0 %v10823_v35 }
 0x1e5   :  { %3005 = vmatprep.subr.bf16.mxu1 %v10832_v22 }
 0x1e7   :  { %2965 = vmatpush1.bf16.msra.mxu0 %v10828_v45 }
 0x1e8   :  { %3006 = vmatpush1.bf16.msra.mxu1 %v10830_v6  ;;  %2966 = vmatprep.subr.bf16.mxu0 %v10847_v38 }
 0x1e9   :  { %3007 = vmatprep.subr.bf16.mxu1 %v10856_v62 }
 0x1eb   :  { %2967 = vmatpush1.bf16.msra.mxu0 %v10852_v46 }
 0x1ec   :  { %3008 = vmatpush1.bf16.msra.mxu1 %v10854_v51  ;;  %2968 = vmatprep.subr.bf16.mxu0 %v10871_v4 }
 0x1ed   :  { %3009 = vmatprep.subr.bf16.mxu1 %v10880_v31 }
 0x1ef   :  { %2969 = vmatpush1.bf16.msra.mxu0 %v10876_v13 }
 0x1f0   :  { %3010 = vmatpush1.bf16.msra.mxu1 %v10878_v26  ;;  %2970 = vmatprep.subr.bf16.mxu0 %v10895_v47 }
 0x1f1   :  { %3011 = vmatprep.subr.bf16.mxu1 %v10904_v63 }
 0x1f3   :  { %2971 = vmatpush1.bf16.msra.mxu0 %v10900_v50 }
 0x1f4   :  { %3012 = vmatpush1.bf16.msra.mxu1 %v10902_v58  ;;  %2972 = vmatprep.subr.bf16.mxu0 %v10919_v29 }
 0x1f5   :  { %3013 = vmatprep.subr.bf16.mxu1 %v10928_v52 }
 0x1f7   :  { %2973 = vmatpush1.bf16.msra.mxu0 %v10924_v44 }
 0x1f8   :  { %3014 = vmatpush1.bf16.msra.mxu1 %v10926_v27  ;;  %2974 = vmatprep.subr.bf16.mxu0 %v10943_v59  ;;  %v11009_v59 = vcombine.low %v2294_v9, %v2298_v12  ;;  %v2188_v12 = vld [vmem:[%s13554_s2 + $0x30] sm:$0xff] }
 0x1f9   :  { %3015 = vmatprep.subr.bf16.mxu1 %v10952_v34 }
 0x1fa   :  { %14018 = vst [vmem:[#allocation25_spill] sm:$0xff] %v11009_v59 }
 0x1fb   :  { %2975 = vmatpush1.bf16.msra.mxu0 %v10948_v7  ;;  %v2299_v7 = vld [vmem:[%s13554_s2 + $0x3a8] sm:$0xff] }
 0x1fc   :  { %3016 = vmatpush1.bf16.msra.mxu1 %v10950_v32  ;;  %2976 = vmatprep.subr.bf16.mxu0 %v10968_v19  ;;  %v10993_v34 = vcombine.high %v2295_v48, %v2299_v7  ;;  %v2302_v32 = vld [vmem:[%s13554_s2 + $0x3c0] sm:$0xff]  ;;  %v2307_v19 = vld [vmem:[%s13554_s2 + $0x3e8] sm:$0xff]  ;;  %v11013_v27 = vcombine.low %v2295_v48, %v2299_v7  ;;  %v2184_v7 = vld [vmem:[%s13554_s2 + $0x10] sm:$0xff] }
 0x1fd   :  { %3017 = vmatprep.subr.bf16.mxu1 %v10982_v3  ;;  %v11015_v44 = vcombine.high %v2302_v32, %v2306_v0  ;;  %v11018_v3 = vcombine.high %v2303_v30, %v2307_v19  ;;  %v11021_v52 = vcombine.low %v2302_v32, %v2306_v0  ;;  %v11025_v9 = vcombine.low %v2303_v30, %v2307_v19  ;;  %v2185_v32 = vld [vmem:[%s13554_s2 + $0x18] sm:$0xff] }
 0x1fe   :  { %14017 = vst [vmem:[#allocation26_spill] sm:$0xff] %v10993_v34  ;;  %14019 = vst [vmem:[#allocation28_spill] sm:$0xff] %v11013_v27  ;;  %v11039_v19 = vcombine.high %v2184_v7, %v2188_v12  ;;  %v2189_v48 = vld [vmem:[%s13554_s2 + $0x38] sm:$0xff]  ;;  %v11044_v0 = vcombine.low %v2184_v7, %v2188_v12  ;;  %v30_v7 = vld [vmem:[%s13552_s0 + $0x28] sm:$0xff] }
 0x1ff   :  { %2977 = vmatpush1.bf16.msra.mxu0 %v10966_v2  ;;  %14020 = vst [vmem:[#allocation27_spill] sm:$0xff] %v11015_v44  ;;  %14021 = vst [vmem:[#allocation30_spill] sm:$0xff] %v11018_v3  ;;  %v11046_v30 = vcombine.low %v2185_v32, %v2189_v48  ;;  %v2102_v58 = vunpack.c.h.bf16 %v30_v7  ;;  %v2101_v50 = vunpack.c.l.bf16 %v30_v7 }
 0x200   :  { %3018 = vmatpush1.bf16.msra.mxu1 %v10980_v43  ;;  %2978 = vmatprep.subr.bf16.mxu0 %v10984_v42  ;;  %14022 = vst [vmem:[#allocation29_spill] sm:$0xff] %v11021_v52  ;;  %14023 = vst [vmem:[#allocation32_spill] sm:$0xff] %v11025_v9 }
 0x201   :  { %3019 = vmatprep.subr.bf16.mxu1 %v10993_v34  ;;  %14024 = vst [vmem:[#allocation31_spill] sm:$0xff] %v11039_v19 }
 0x203   :  { %2979 = vmatpush1.bf16.msra.mxu0 %v11009_v59 }
 0x204   :  { %3020 = vmatpush1.bf16.msra.mxu1 %v11013_v27  ;;  %2980 = vmatprep.subr.bf16.mxu0 %v11015_v44 }
 0x205   :  { %3021 = vmatprep.subr.bf16.mxu1 %v11018_v3 }
 0x207   :  { %2981 = vmatpush1.bf16.msra.mxu0 %v11021_v52  ;;  %v11048_v52 = vcombine.high %v2185_v32, %v2189_v48 }
 0x208   :  { %3022 = vmatpush1.bf16.msra.mxu1 %v11025_v9  ;;  %3032 = vmatprep.subr.bf16.mxu0 %v11039_v19  ;;  %v28_v9 = vld [vmem:[%s13552_s0 + $0x20] sm:$0xff] }
 0x209   :  { %14025 = vst [vmem:[#allocation34_spill] sm:$0xff] %v11048_v52  ;;  %3073 = vmatprep.subr.bf16.mxu1 %v11048_v52  ;;  %v2099_v3 = vunpack.c.l.bf16 %v28_v9  ;;  %v2100_v44 = vunpack.c.h.bf16 %v28_v9 }
 0x25d   :  { %v1966_v27 = vpop.f32.mrb[8].mxu0  ;;  %v2007_v59 = vpop.f32.mrb[8].mxu1 }
 0x25e   :  { %v2103_v34 = vadd.f32 %v2099_v3, %v1966_v27  ;;  %v1968_v12 = vpop.f32.mrb[9].mxu0  ;;  %v2009_v32 = vpop.f32.mrb[9].mxu1  ;;  %v2105_v27 = vadd.f32 %v2101_v50, %v2007_v59 }
 0x25f   :  { %v2104_v48 = vadd.f32 %v2100_v44, %v1968_v12  ;;  %v1970_v42 = vpop.f32.mrb[10].mxu0  ;;  %v2011_v19 = vpop.f32.mrb[10].mxu1  ;;  %v2106_v9 = vadd.f32 %v2102_v58, %v2009_v32  ;;  %v8339_v32 = vld [vmem:[%s13553_s1 + $0xd8] sm:$0xff] }
 0x260   :  { %v8605_v43 = vmul.f32 -1.442695, %v2103_v34  ;;  %v1971_v52 = vpop.f32.mrb[11].mxu0  ;;  %v2012_v2 = vpop.f32.mrb[11].mxu1 }
 0x261   :  { %v8606_v29 = vmul.f32 -1.442695, %v2104_v48  ;;  %v8607_v63 = vmul.f32 -1.442695, %v2106_v9 }
 0x262   :  { %9461 = vpow2.f32 %v8605_v43 }
 0x263   :  { %9463 = vpow2.f32 %v8606_v29 }
 0x264   :  { %9465 = vpow2.f32 %v8607_v63 }
 0x265   :  { %9467 = vtanh.f32 %v2105_v27 }
 0x26c   :  { %v9462_v3 = vpop.eup %9461 }
 0x26d   :  { %v9464_v47 = vpop.eup %9463  ;;  %v2121_v26 = vadd.f32 1.0, %v9462_v3 }
 0x26e   :  { %v2127_v13 = vadd.f32 1.0, %v9464_v47  ;;  %v9466_v44 = vpop.eup %9465 }
 0x26f   :  { %9469 = vrcp.f32 %v2121_v26  ;;  %v9468_v34 = vpop.eup %9467  ;;  %v2134_v19 = vadd.f32 1.0, %v9466_v44 }
 0x270   :  { %9471 = vrcp.f32 %v2127_v13  ;;  %v8338_v13 = vld [vmem:[%s13553_s1 + $0xd0] sm:$0xff] }
 0x271   :  { %9473 = vrcp.f32 %v2134_v19  ;;  %v2111_v26 = vunpack.c.h.bf16 %v8338_v13  ;;  %v2113_v19 = vunpack.c.h.bf16 %v8339_v32 }
 0x279   :  { %v9470_v52 = vpop.eup %9469 }
 0x27a   :  { %v9472_v2 = vpop.eup %9471  ;;  %v2139_v42 = vmul.f32 %v9470_v52, %v9468_v34 }
 0x27b   :  { %v2138_v29 = vmul.f32 %v9472_v2, %v10559_v61  ;;  %v9474_v50 = vpop.eup %9473  ;;  %v2110_v61 = vunpack.c.l.bf16 %v8338_v13 }
 0x27d   :  { %v11059_v58 = vadd.f32 %v2139_v42, %v2138_v29 }
 0x27f   :  { %14026 = vst [vmem:[#allocation33_spill] sm:$0xff] %v11059_v58  ;;  %9475 = vtanh.f32 %v11059_v58 }
 0x289   :  { %v9476_v59 = vpop.eup %9475 }
 0x28a   :  { %v2142_v63 = vmul.f32 %v9476_v59, %v9474_v50  ;;  %v2112_v50 = vunpack.c.l.bf16 %v8339_v32 }
 0x28c   :  { %v11062_v43 = vpack.c.bf16 %v2142_v63, %v2142_v63 }
 0x28e   :  { %8611 = vst [vmem:[%s13555_s3 + $0x4] sm:$0xf] %v11062_v43 }
 0x29d   :  { %v2048_v47 = vpop.f32.mrb[12].mxu0  ;;  %v2089_v7 = vpop.f32.mrb[12].mxu1 }
 0x29e   :  { %v2114_v12 = vadd.f32 %v2110_v61, %v2048_v47  ;;  %v2050_v48 = vpop.f32.mrb[13].mxu0  ;;  %v2091_v9 = vpop.f32.mrb[13].mxu1  ;;  %v2116_v63 = vadd.f32 %v2112_v50, %v2089_v7 }
 0x29f   :  { %v2115_v27 = vadd.f32 %v2111_v26, %v2050_v48  ;;  %v2052_v3 = vpop.f32.mrb[14].mxu0  ;;  %v2093_v44 = vpop.f32.mrb[14].mxu1  ;;  %v2117_v29 = vadd.f32 %v2113_v19, %v2091_v9 }
 0x2a0   :  { %v8608_v34 = vmul.f32 -1.442695, %v2114_v12  ;;  %v2053_v52 = vpop.f32.mrb[15].mxu0  ;;  %v2094_v2 = vpop.f32.mrb[15].mxu1 }
 0x2a1   :  { %v8609_v42 = vmul.f32 -1.442695, %v2115_v27  ;;  %v8610_v59 = vmul.f32 -1.442695, %v2117_v29  ;;  %v2196_v2 = vld [vmem:[%s13554_s2 + $0x70] sm:$0xff] }
 0x2a2   :  { %9477 = vpow2.f32 %v8608_v34  ;;  %v2200_v29 = vld [vmem:[%s13554_s2 + $0x90] sm:$0xff] }
 0x2a3   :  { %9479 = vpow2.f32 %v8609_v42  ;;  %v2197_v42 = vld [vmem:[%s13554_s2 + $0x78] sm:$0xff] }
 0x2a4   :  { %9481 = vpow2.f32 %v8610_v59 }
 0x2a5   :  { %9483 = vtanh.f32 %v2116_v63  ;;  %v2204_v63 = vld [vmem:[%s13554_s2 + $0xb0] sm:$0xff] }
 0x2ac   :  { %v9478_v13 = vpop.eup %9477 }
 0x2ad   :  { %v9480_v61 = vpop.eup %9479  ;;  %v2146_v47 = vadd.f32 1.0, %v9478_v13  ;;  %v2201_v13 = vld [vmem:[%s13554_s2 + $0x98] sm:$0xff] }
 0x2ae   :  { %v2152_v58 = vadd.f32 1.0, %v9480_v61  ;;  %v9482_v26 = vpop.eup %9481  ;;  %v2205_v61 = vld [vmem:[%s13554_s2 + $0xb8] sm:$0xff] }
 0x2af   :  { %9485 = vrcp.f32 %v2146_v47  ;;  %v9484_v12 = vpop.eup %9483  ;;  %v2159_v44 = vadd.f32 1.0, %v9482_v26 }
 0x2b0   :  { %9487 = vrcp.f32 %v2152_v58  ;;  %v2192_v58 = vld [vmem:[%s13554_s2 + $0x50] sm:$0xff] }
 0x2b1   :  { %9489 = vrcp.f32 %v2159_v44  ;;  %v11096_v50 = vcombine.high %v2192_v58, %v2196_v2  ;;  %v11113_v47 = vcombine.low %v2192_v58, %v2196_v2  ;;  %v2209_v44 = vld [vmem:[%s13554_s2 + $0xd8] sm:$0xff]  ;;  %v2216_v2 = vld [vmem:[%s13554_s2 + $0x110] sm:$0xff] }
 0x2b9   :  { %v9486_v48 = vpop.eup %9485 }
 0x2ba   :  { %v9488_v3 = vpop.eup %9487  ;;  %v2164_v27 = vmul.f32 %v9486_v48, %v9484_v12  ;;  %v11117_v12 = vcombine.high %v2200_v29, %v2204_v63  ;;  %v11119_v48 = vcombine.high %v2201_v13, %v2205_v61 }
 0x2bb   :  { %v2163_v34 = vmul.f32 %v9488_v3, %v10574_v28  ;;  %v9490_v7 = vpop.eup %9489  ;;  %v2193_v28 = vld [vmem:[%s13554_s2 + $0x58] sm:$0xff]  ;;  %v2208_v3 = vld [vmem:[%s13554_s2 + $0xd0] sm:$0xff] }
 0x2bc   :  { %v11098_v59 = vcombine.high %v2193_v28, %v2197_v42  ;;  %v11115_v26 = vcombine.low %v2193_v28, %v2197_v42  ;;  %14027 = vst [vmem:[#allocation36_spill] sm:$0xff] %v11119_v48  ;;  %v2220_v28 = vld [vmem:[%s13554_s2 + $0x130] sm:$0xff]  ;;  %v2217_v42 = vld [vmem:[%s13554_s2 + $0x118] sm:$0xff] }
 0x2bd   :  { %v11075_v9 = vadd.f32 %v2164_v27, %v2163_v34  ;;  %v2212_v27 = vld [vmem:[%s13554_s2 + $0xf0] sm:$0xff]  ;;  %v2213_v34 = vld [vmem:[%s13554_s2 + $0xf8] sm:$0xff] }
 0x2be   :  { %v11145_v58 = vcombine.high %v2209_v44, %v2213_v34 }
 0x2bf   :  { %9491 = vtanh.f32 %v11075_v9 }
 0x2c0   :  { %14031 = vst [vmem:[#allocation40_spill] sm:$0xff] %v11145_v58 }
 0x2c9   :  { %v9492_v32 = vpop.eup %9491 }
 0x2ca   :  { %v2167_v52 = vmul.f32 %v9492_v32, %v9490_v7  ;;  %v11137_v7 = vcombine.low %v2200_v29, %v2204_v63  ;;  %v11139_v32 = vcombine.low %v2201_v13, %v2205_v61  ;;  %v11161_v29 = vcombine.low %v2208_v3, %v2212_v27 }
 0x2cb   :  { %v11163_v63 = vcombine.low %v2209_v44, %v2213_v34  ;;  %v11167_v13 = vcombine.high %v2216_v2, %v2220_v28  ;;  %v11185_v44 = vcombine.low %v2216_v2, %v2220_v28  ;;  %v2233_v2 = vld [vmem:[%s13554_s2 + $0x198] sm:$0xff] }
 0x2cc   :  { %v2175_v19 = vpack.c.bf16 %v2167_v52, %v2167_v52  ;;  %14028 = vst [vmem:[#allocation35_spill] sm:$0xff] %v11137_v7  ;;  %14029 = vst [vmem:[#allocation38_spill] sm:$0xff] %v11139_v32  ;;  %v11143_v52 = vcombine.high %v2208_v3, %v2212_v27  ;;  %v2225_v3 = vld [vmem:[%s13554_s2 + $0x158] sm:$0xff] }
 0x2cd   :  { %14032 = vst [vmem:[#allocation39_spill] sm:$0xff] %v11161_v29  ;;  %14033 = vst [vmem:[#allocation42_spill] sm:$0xff] %v11163_v63  ;;  %v2229_v27 = vld [vmem:[%s13554_s2 + $0x178] sm:$0xff] }
 0x2ce   :  { %8612 = vst [vmem:[%s13556_s4 + $0x18] sm:$0xf] %v2175_v19  ;;  %2982 = vmatprep.mubr.bf16.mxu0 %v2175_v19  ;;  %3023 = vmatprep.mubr.bf16.mxu1 %v2175_v19  ;;  %14030 = vst [vmem:[#allocation37_spill] sm:$0xff] %v11143_v52  ;;  %v2237_v28 = vld [vmem:[%s13554_s2 + $0x1b8] sm:$0xff] }
 0x2cf   :  { %2983 = vmatmul.mubr.bf16.vlgmr.msra.gmra.mrb[16].mxu0 %v11062_v43  ;;  %3024 = vmatmul.mubr.bf16.vlgmr.msra.gmra.mrb[16].mxu1 %v11062_v43  ;;  %14034 = vst [vmem:[#allocation41_spill] sm:$0xff] %v11167_v13  ;;  %14036 = vst [vmem:[#allocation43_spill] sm:$0xff] %v11185_v44 }
 0x2d0   :  { %3033 = vmatpush1.bf16.msra.mxu0 %v11044_v0  ;;  %3074 = vmatpush1.bf16.msra.mxu1 %v11046_v30 }
 0x2d1   :  { %3064 = vmatprep.mubr.bf16.mxu0 %v2175_v19  ;;  %3105 = vmatprep.mubr.bf16.mxu1 %v2175_v19  ;;  %v2221_v19 = vld [vmem:[%s13554_s2 + $0x138] sm:$0xff] }
 0x2d2   :  { %3034 = vmatprep.subr.bf16.mxu0 %v11096_v50  ;;  %3075 = vmatprep.subr.bf16.mxu1 %v11098_v59  ;;  %v11169_v61 = vcombine.high %v2217_v42, %v2221_v19  ;;  %v11187_v34 = vcombine.low %v2217_v42, %v2221_v19  ;;  %v11211_v19 = vcombine.low %v2225_v3, %v2229_v27 }
 0x2d4   :  { %3035 = vmatpush1.bf16.msra.mxu0 %v11113_v47  ;;  %3076 = vmatpush1.bf16.msra.mxu1 %v11115_v26  ;;  %14035 = vst [vmem:[#allocation44_spill] sm:$0xff] %v11169_v61  ;;  %14037 = vst [vmem:[#allocation46_spill] sm:$0xff] %v11187_v34 }
 0x2d5   :  { %3036 = vmatprep.subr.bf16.mxu0 %v11117_v12  ;;  %3077 = vmatprep.subr.bf16.mxu1 %v11119_v48  ;;  %v2224_v48 = vld [vmem:[%s13554_s2 + $0x150] sm:$0xff]  ;;  %14041 = vst [vmem:[#allocation50_spill] sm:$0xff] %v11211_v19 }
 0x2d8   :  { %3037 = vmatpush1.bf16.msra.mxu0 %v11137_v7  ;;  %3078 = vmatpush1.bf16.msra.mxu1 %v11139_v32  ;;  %v2228_v32 = vld [vmem:[%s13554_s2 + $0x170] sm:$0xff] }
 0x2d9   :  { %3038 = vmatprep.subr.bf16.mxu0 %v11143_v52  ;;  %3079 = vmatprep.subr.bf16.mxu1 %v11145_v58  ;;  %v11191_v58 = vcombine.high %v2224_v48, %v2228_v32  ;;  %v11193_v52 = vcombine.high %v2225_v3, %v2229_v27  ;;  %v2232_v7 = vld [vmem:[%s13554_s2 + $0x190] sm:$0xff]  ;;  %v11209_v42 = vcombine.low %v2224_v48, %v2228_v32  ;;  %v2241_v48 = vld [vmem:[%s13554_s2 + $0x1d8] sm:$0xff] }
 0x2da   :  { %v2245_v32 = vld [vmem:[%s13554_s2 + $0x1f8] sm:$0xff]  ;;  %v11235_v27 = vcombine.low %v2233_v2, %v2237_v28 }
 0x2db   :  { %14038 = vst [vmem:[#allocation45_spill] sm:$0xff] %v11191_v58  ;;  %14039 = vst [vmem:[#allocation48_spill] sm:$0xff] %v11193_v52 }
 0x2dc   :  { %3039 = vmatpush1.bf16.msra.mxu0 %v11161_v29  ;;  %3080 = vmatpush1.bf16.msra.mxu1 %v11163_v63  ;;  %v2236_v63 = vld [vmem:[%s13554_s2 + $0x1b0] sm:$0xff]  ;;  %14040 = vst [vmem:[#allocation47_spill] sm:$0xff] %v11209_v42  ;;  %14045 = vst [vmem:[#allocation54_spill] sm:$0xff] %v11235_v27 }
 0x2dd   :  { %3040 = vmatprep.subr.bf16.mxu0 %v11167_v13  ;;  %3081 = vmatprep.subr.bf16.mxu1 %v11169_v61  ;;  %v11215_v61 = vcombine.high %v2232_v7, %v2236_v63  ;;  %v11217_v13 = vcombine.high %v2233_v2, %v2237_v28  ;;  %v2240_v29 = vld [vmem:[%s13554_s2 + $0x1d0] sm:$0xff]  ;;  %v11233_v3 = vcombine.low %v2232_v7, %v2236_v63  ;;  %v2249_v7 = vld [vmem:[%s13554_s2 + $0x218] sm:$0xff] }
 0x2de   :  { %v2253_v63 = vld [vmem:[%s13554_s2 + $0x238] sm:$0xff]  ;;  %v11259_v28 = vcombine.low %v2241_v48, %v2245_v32 }
 0x2df   :  { %14042 = vst [vmem:[#allocation49_spill] sm:$0xff] %v11215_v61  ;;  %14043 = vst [vmem:[#allocation52_spill] sm:$0xff] %v11217_v13 }
 0x2e0   :  { %3041 = vmatpush1.bf16.msra.mxu0 %v11185_v44  ;;  %3082 = vmatpush1.bf16.msra.mxu1 %v11187_v34  ;;  %v2244_v34 = vld [vmem:[%s13554_s2 + $0x1f0] sm:$0xff]  ;;  %14044 = vst [vmem:[#allocation51_spill] sm:$0xff] %v11233_v3  ;;  %14049 = vst [vmem:[#allocation58_spill] sm:$0xff] %v11259_v28 }
 0x2e1   :  { %3042 = vmatprep.subr.bf16.mxu0 %v11191_v58  ;;  %3083 = vmatprep.subr.bf16.mxu1 %v11193_v52  ;;  %v11239_v52 = vcombine.high %v2240_v29, %v2244_v34  ;;  %v11241_v58 = vcombine.high %v2241_v48, %v2245_v32  ;;  %v2248_v44 = vld [vmem:[%s13554_s2 + $0x210] sm:$0xff]  ;;  %v11257_v2 = vcombine.low %v2240_v29, %v2244_v34  ;;  %v2257_v29 = vld [vmem:[%s13554_s2 + $0x258] sm:$0xff] }
 0x2e2   :  { %v2261_v34 = vld [vmem:[%s13554_s2 + $0x278] sm:$0xff]  ;;  %v11283_v32 = vcombine.low %v2249_v7, %v2253_v63 }
 0x2e3   :  { %14046 = vst [vmem:[#allocation53_spill] sm:$0xff] %v11239_v52  ;;  %14047 = vst [vmem:[#allocation56_spill] sm:$0xff] %v11241_v58 }
 0x2e4   :  { %3043 = vmatpush1.bf16.msra.mxu0 %v11209_v42  ;;  %3084 = vmatpush1.bf16.msra.mxu1 %v11211_v19  ;;  %v2252_v19 = vld [vmem:[%s13554_s2 + $0x230] sm:$0xff]  ;;  %14048 = vst [vmem:[#allocation55_spill] sm:$0xff] %v11257_v2  ;;  %14053 = vst [vmem:[#allocation62_spill] sm:$0xff] %v11283_v32 }
 0x2e5   :  { %3044 = vmatprep.subr.bf16.mxu0 %v11215_v61  ;;  %3085 = vmatprep.subr.bf16.mxu1 %v11217_v13  ;;  %v11263_v13 = vcombine.high %v2248_v44, %v2252_v19  ;;  %v11265_v61 = vcombine.high %v2249_v7, %v2253_v63  ;;  %v2256_v42 = vld [vmem:[%s13554_s2 + $0x250] sm:$0xff]  ;;  %v11281_v48 = vcombine.low %v2248_v44, %v2252_v19  ;;  %v2265_v44 = vld [vmem:[%s13554_s2 + $0x298] sm:$0xff] }
 0x2e6   :  { %v2269_v19 = vld [vmem:[%s13554_s2 + $0x2b8] sm:$0xff]  ;;  %v11307_v63 = vcombine.low %v2257_v29, %v2261_v34 }
 0x2e7   :  { %14050 = vst [vmem:[#allocation57_spill] sm:$0xff] %v11263_v13  ;;  %14051 = vst [vmem:[#allocation60_spill] sm:$0xff] %v11265_v61 }
 0x2e8   :  { %3045 = vmatpush1.bf16.msra.mxu0 %v11233_v3  ;;  %3086 = vmatpush1.bf16.msra.mxu1 %v11235_v27  ;;  %v2260_v27 = vld [vmem:[%s13554_s2 + $0x270] sm:$0xff]  ;;  %14052 = vst [vmem:[#allocation59_spill] sm:$0xff] %v11281_v48  ;;  %14057 = vst [vmem:[#allocation66_spill] sm:$0xff] %v11307_v63 }
 0x2e9   :  { %3046 = vmatprep.subr.bf16.mxu0 %v11239_v52  ;;  %3087 = vmatprep.subr.bf16.mxu1 %v11241_v58  ;;  %v11287_v58 = vcombine.high %v2256_v42, %v2260_v27  ;;  %v11289_v52 = vcombine.high %v2257_v29, %v2261_v34  ;;  %v2264_v3 = vld [vmem:[%s13554_s2 + $0x290] sm:$0xff]  ;;  %v11305_v7 = vcombine.low %v2256_v42, %v2260_v27  ;;  %v2273_v42 = vld [vmem:[%s13554_s2 + $0x2d8] sm:$0xff] }
 0x2ea   :  { %v2277_v27 = vld [vmem:[%s13554_s2 + $0x2f8] sm:$0xff]  ;;  %v11331_v34 = vcombine.low %v2265_v44, %v2269_v19 }
 0x2eb   :  { %14054 = vst [vmem:[#allocation61_spill] sm:$0xff] %v11287_v58  ;;  %14055 = vst [vmem:[#allocation64_spill] sm:$0xff] %v11289_v52 }
 0x2ec   :  { %3047 = vmatpush1.bf16.msra.mxu0 %v11257_v2  ;;  %3088 = vmatpush1.bf16.msra.mxu1 %v11259_v28  ;;  %v2268_v28 = vld [vmem:[%s13554_s2 + $0x2b0] sm:$0xff]  ;;  %14056 = vst [vmem:[#allocation63_spill] sm:$0xff] %v11305_v7  ;;  %14061 = vst [vmem:[#allocation70_spill] sm:$0xff] %v11331_v34 }
 0x2ed   :  { %3048 = vmatprep.subr.bf16.mxu0 %v11263_v13  ;;  %3089 = vmatprep.subr.bf16.mxu1 %v11265_v61  ;;  %v11311_v61 = vcombine.high %v2264_v3, %v2268_v28  ;;  %v11313_v13 = vcombine.high %v2265_v44, %v2269_v19  ;;  %v2272_v2 = vld [vmem:[%s13554_s2 + $0x2d0] sm:$0xff]  ;;  %v11329_v29 = vcombine.low %v2264_v3, %v2268_v28  ;;  %v2281_v3 = vld [vmem:[%s13554_s2 + $0x318] sm:$0xff] }
 0x2ee   :  { %v2285_v28 = vld [vmem:[%s13554_s2 + $0x338] sm:$0xff]  ;;  %v11355_v19 = vcombine.low %v2273_v42, %v2277_v27 }
 0x2ef   :  { %14058 = vst [vmem:[#allocation65_spill] sm:$0xff] %v11311_v61  ;;  %14059 = vst [vmem:[#allocation68_spill] sm:$0xff] %v11313_v13 }
 0x2f0   :  { %3049 = vmatpush1.bf16.msra.mxu0 %v11281_v48  ;;  %3090 = vmatpush1.bf16.msra.mxu1 %v11283_v32  ;;  %v2276_v32 = vld [vmem:[%s13554_s2 + $0x2f0] sm:$0xff]  ;;  %14060 = vst [vmem:[#allocation67_spill] sm:$0xff] %v11329_v29  ;;  %14065 = vst [vmem:[#allocation74_spill] sm:$0xff] %v11355_v19 }
 0x2f1   :  { %3050 = vmatprep.subr.bf16.mxu0 %v11287_v58  ;;  %3091 = vmatprep.subr.bf16.mxu1 %v11289_v52  ;;  %v11335_v52 = vcombine.high %v2272_v2, %v2276_v32  ;;  %v11337_v58 = vcombine.high %v2273_v42, %v2277_v27  ;;  %v2280_v48 = vld [vmem:[%s13554_s2 + $0x310] sm:$0xff]  ;;  %v11353_v44 = vcombine.low %v2272_v2, %v2276_v32  ;;  %v2289_v2 = vld [vmem:[%s13554_s2 + $0x358] sm:$0xff] }
 0x2f2   :  { %v2293_v32 = vld [vmem:[%s13554_s2 + $0x378] sm:$0xff]  ;;  %v11379_v27 = vcombine.low %v2281_v3, %v2285_v28 }
 0x2f3   :  { %14062 = vst [vmem:[#allocation69_spill] sm:$0xff] %v11335_v52  ;;  %14063 = vst [vmem:[#allocation72_spill] sm:$0xff] %v11337_v58 }
 0x2f4   :  { %3051 = vmatpush1.bf16.msra.mxu0 %v11305_v7  ;;  %3092 = vmatpush1.bf16.msra.mxu1 %v11307_v63  ;;  %v2284_v63 = vld [vmem:[%s13554_s2 + $0x330] sm:$0xff]  ;;  %14064 = vst [vmem:[#allocation71_spill] sm:$0xff] %v11353_v44  ;;  %14069 = vst [vmem:[#allocation77_spill] sm:$0xff] %v11379_v27 }
 0x2f5   :  { %3052 = vmatprep.subr.bf16.mxu0 %v11311_v61  ;;  %3093 = vmatprep.subr.bf16.mxu1 %v11313_v13  ;;  %v11359_v13 = vcombine.high %v2280_v48, %v2284_v63  ;;  %v11361_v61 = vcombine.high %v2281_v3, %v2285_v28  ;;  %v2288_v7 = vld [vmem:[%s13554_s2 + $0x350] sm:$0xff]  ;;  %v11377_v42 = vcombine.low %v2280_v48, %v2284_v63  ;;  %v2297_v48 = vld [vmem:[%s13554_s2 + $0x398] sm:$0xff] }
 0x2f6   :  { %v2301_v63 = vld [vmem:[%s13554_s2 + $0x3b8] sm:$0xff]  ;;  %v11403_v28 = vcombine.low %v2289_v2, %v2293_v32 }
 0x2f7   :  { %14066 = vst [vmem:[#allocation73_spill] sm:$0xff] %v11359_v13  ;;  %14067 = vst [vmem:[#allocation75_spill] sm:$0xff] %v11361_v61 }
 0x2f8   :  { %3053 = vmatpush1.bf16.msra.mxu0 %v11329_v29  ;;  %3094 = vmatpush1.bf16.msra.mxu1 %v11331_v34  ;;  %v2292_v34 = vld [vmem:[%s13554_s2 + $0x370] sm:$0xff]  ;;  %14068 = vst [vmem:[#allocation76_spill] sm:$0xff] %v11377_v42 }
 0x2f9   :  { %3054 = vmatprep.subr.bf16.mxu0 %v11335_v52  ;;  %3095 = vmatprep.subr.bf16.mxu1 %v11337_v58  ;;  %v11383_v58 = vcombine.high %v2288_v7, %v2292_v34  ;;  %v11385_v52 = vcombine.high %v2289_v2, %v2293_v32  ;;  %v2296_v29 = vld [vmem:[%s13554_s2 + $0x390] sm:$0xff]  ;;  %v11401_v3 = vcombine.low %v2288_v7, %v2292_v34  ;;  %v2305_v7 = vld [vmem:[%s13554_s2 + $0x3d8] sm:$0xff] }
 0x2fa   :  { %v2309_v34 = vld [vmem:[%s13554_s2 + $0x3f8] sm:$0xff]  ;;  %v11427_v32 = vcombine.low %v2297_v48, %v2301_v63 }
 0x2fb   :  { %14070 = vst [vmem:[#allocation78_spill] sm:$0xff] %v11383_v58  ;;  %14071 = vst [vmem:[#allocation79_spill] sm:$0xff] %v11385_v52 }
 0x2fc   :  { %3055 = vmatpush1.bf16.msra.mxu0 %v11353_v44  ;;  %3096 = vmatpush1.bf16.msra.mxu1 %v11355_v19  ;;  %v2300_v19 = vld [vmem:[%s13554_s2 + $0x3b0] sm:$0xff]  ;;  %14072 = vst [vmem:[#allocation80_spill] sm:$0xff] %v11401_v3 }
 0x2fd   :  { %3056 = vmatprep.subr.bf16.mxu0 %v11359_v13  ;;  %3097 = vmatprep.subr.bf16.mxu1 %v11361_v61  ;;  %v11407_v61 = vcombine.high %v2296_v29, %v2300_v19  ;;  %v11409_v13 = vcombine.high %v2297_v48, %v2301_v63  ;;  %v2304_v44 = vld [vmem:[%s13554_s2 + $0x3d0] sm:$0xff]  ;;  %v11425_v2 = vcombine.low %v2296_v29, %v2300_v19 }
 0x300   :  { %3057 = vmatpush1.bf16.msra.mxu0 %v11377_v42  ;;  %3098 = vmatpush1.bf16.msra.mxu1 %v11379_v27  ;;  %v2308_v27 = vld [vmem:[%s13554_s2 + $0x3f0] sm:$0xff] }
 0x301   :  { %3058 = vmatprep.subr.bf16.mxu0 %v11383_v58  ;;  %3099 = vmatprep.subr.bf16.mxu1 %v11385_v52  ;;  %v11431_v52 = vcombine.high %v2304_v44, %v2308_v27  ;;  %v11433_v58 = vcombine.high %v2305_v7, %v2309_v34  ;;  %v11437_v42 = vcombine.low %v2304_v44, %v2308_v27 }
 0x304   :  { %3059 = vmatpush1.bf16.msra.mxu0 %v11401_v3  ;;  %3100 = vmatpush1.bf16.msra.mxu1 %v11403_v28  ;;  %v11439_v3 = vcombine.low %v2305_v7, %v2309_v34 }
 0x305   :  { %3060 = vmatprep.subr.bf16.mxu0 %v11407_v61  ;;  %3101 = vmatprep.subr.bf16.mxu1 %v11409_v13 }
 0x308   :  { %3061 = vmatpush1.bf16.msra.mxu0 %v11425_v2  ;;  %3102 = vmatpush1.bf16.msra.mxu1 %v11427_v32 }
 0x309   :  { %3062 = vmatprep.subr.bf16.mxu0 %v11431_v52  ;;  %3103 = vmatprep.subr.bf16.mxu1 %v11433_v58 }
 0x30c   :  { %3063 = vmatpush1.bf16.msra.mxu0 %v11437_v42  ;;  %3104 = vmatpush1.bf16.msra.mxu1 %v11439_v3 }
 0x30d   :  { %3968 = vmatprep.subr.bf16.mxu0 %v10657_v54  ;;  %4009 = vmatprep.subr.bf16.mxu1 %v10670_v5  ;;  %v14074_v54 = vld [vmem:[#allocation7_spill] sm:$0xff] }
 0x30e   :  { %v14076_v5 = vld [vmem:[#allocation11_spill] sm:$0xff] }
 0x30f   :  { %3065 = vmatmul.mubr.bf16.vlgmr.msra.gmra.mrb[20].mxu0 %v11062_v43  ;;  %3106 = vmatmul.mubr.bf16.vlgmr.msra.gmra.mrb[20].mxu1 %v11062_v43 }
 0x310   :  { %3969 = vmatpush1.bf16.msra.mxu0 %v10655_v36  ;;  %4010 = vmatpush1.bf16.msra.mxu1 %v10668_v53  ;;  %v14073_v36 = vld [vmem:[#allocation6_spill] sm:$0xff]  ;;  %v14075_v53 = vld [vmem:[#allocation8_spill] sm:$0xff] }
 0x311   :  { %3970 = vmatprep.subr.bf16.mxu0 %v10672_v8  ;;  %4011 = vmatprep.subr.bf16.mxu1 %v10684_v60  ;;  %v14077_v8 = vld [vmem:[#allocation10_spill] sm:$0xff]  ;;  %v14078_v60 = vld [vmem:[#allocation9_spill] sm:$0xff] }
 0x314   :  { %3971 = vmatpush1.bf16.msra.mxu0 %v10697_v10  ;;  %4012 = vmatpush1.bf16.msra.mxu1 %v10701_v20  ;;  %v14079_v10 = vld [vmem:[#allocation12_spill] sm:$0xff]  ;;  %v14080_v20 = vld [vmem:[#allocation15_spill] sm:$0xff] }
 0x315   :  { %3972 = vmatprep.subr.bf16.mxu0 %v10703_v21  ;;  %4013 = vmatprep.subr.bf16.mxu1 %v10706_v37  ;;  %v14081_v21 = vld [vmem:[#allocation14_spill] sm:$0xff]  ;;  %v14082_v37 = vld [vmem:[#allocation13_spill] sm:$0xff] }
 0x318   :  { %3973 = vmatpush1.bf16.msra.mxu0 %v10721_v14  ;;  %4014 = vmatpush1.bf16.msra.mxu1 %v10725_v17  ;;  %v14083_v14 = vld [vmem:[#allocation16_spill] sm:$0xff]  ;;  %v14084_v17 = vld [vmem:[#allocation19_spill] sm:$0xff] }
 0x319   :  { %3974 = vmatprep.subr.bf16.mxu0 %v10727_v18  ;;  %4015 = vmatprep.subr.bf16.mxu1 %v10730_v23  ;;  %v14085_v18 = vld [vmem:[#allocation18_spill] sm:$0xff]  ;;  %v14086_v23 = vld [vmem:[#allocation17_spill] sm:$0xff] }
 0x31c   :  { %3975 = vmatpush1.bf16.msra.mxu0 %v10733_v24  ;;  %4016 = vmatpush1.bf16.msra.mxu1 %v10737_v25  ;;  %v14087_v24 = vld [vmem:[#allocation22_spill] sm:$0xff]  ;;  %v14088_v25 = vld [vmem:[#allocation23_spill] sm:$0xff] }
 0x31d   :  { %3976 = vmatprep.subr.bf16.mxu0 %v10751_v33  ;;  %4017 = vmatprep.subr.bf16.mxu1 %v10760_v41  ;;  %v14089_v33 = vld [vmem:[#allocation20_spill] sm:$0xff]  ;;  %v14092_v41 = vld [vmem:[#allocation26_spill] sm:$0xff] }
 0x320   :  { %3977 = vmatpush1.bf16.msra.mxu0 %v10756_v39  ;;  %4018 = vmatpush1.bf16.msra.mxu1 %v10758_v40  ;;  %v14090_v39 = vld [vmem:[#allocation21_spill] sm:$0xff]  ;;  %v14091_v40 = vld [vmem:[#allocation24_spill] sm:$0xff] }
 0x321   :  { %3978 = vmatprep.subr.bf16.mxu0 %v10775_v49  ;;  %4019 = vmatprep.subr.bf16.mxu1 %v10784_v57  ;;  %v14093_v49 = vld [vmem:[#allocation25_spill] sm:$0xff]  ;;  %v14096_v57 = vld [vmem:[#allocation30_spill] sm:$0xff] }
 0x324   :  { %3979 = vmatpush1.bf16.msra.mxu0 %v10780_v55  ;;  %4020 = vmatpush1.bf16.msra.mxu1 %v10782_v56  ;;  %v14094_v55 = vld [vmem:[#allocation28_spill] sm:$0xff]  ;;  %v14095_v56 = vld [vmem:[#allocation27_spill] sm:$0xff] }
 0x325   :  { %3980 = vmatprep.subr.bf16.mxu0 %v10799_v1  ;;  %4021 = vmatprep.subr.bf16.mxu1 %v10808_v16  ;;  %v14097_v1 = vld [vmem:[#allocation29_spill] sm:$0xff]  ;;  %v14100_v16 = vld [vmem:[#allocation34_spill] sm:$0xff] }
 0x328   :  { %3981 = vmatpush1.bf16.msra.mxu0 %v10804_v11  ;;  %4022 = vmatpush1.bf16.msra.mxu1 %v10806_v15  ;;  %v14098_v11 = vld [vmem:[#allocation32_spill] sm:$0xff]  ;;  %v14099_v15 = vld [vmem:[#allocation31_spill] sm:$0xff] }
 0x329   :  { %3982 = vmatprep.subr.bf16.mxu0 %v10823_v35  ;;  %4023 = vmatprep.subr.bf16.mxu1 %v10832_v22  ;;  %v32_v35 = vld [vmem:[%s13552_s0 + $0x40] sm:$0xff] }
 0x32c   :  { %3983 = vmatpush1.bf16.msra.mxu0 %v10828_v45  ;;  %4024 = vmatpush1.bf16.msra.mxu1 %v10830_v6  ;;  %v3117_v45 = vunpack.c.l.bf16 %v32_v35  ;;  %v3118_v6 = vunpack.c.h.bf16 %v32_v35 }
 0x32d   :  { %3984 = vmatprep.subr.bf16.mxu0 %v10847_v38  ;;  %4025 = vmatprep.subr.bf16.mxu1 %v10856_v62 }
 0x330   :  { %3985 = vmatpush1.bf16.msra.mxu0 %v10852_v46  ;;  %4026 = vmatpush1.bf16.msra.mxu1 %v10854_v51  ;;  %v34_v51 = vld [vmem:[%s13552_s0 + $0x48] sm:$0xff] }
 0x331   :  { %3986 = vmatprep.subr.bf16.mxu0 %v10871_v4  ;;  %4027 = vmatprep.subr.bf16.mxu1 %v10880_v31  ;;  %v3120_v63 = vunpack.c.h.bf16 %v34_v51  ;;  %v3119_v34 = vunpack.c.l.bf16 %v34_v51 }
 0x334   :  { %3987 = vmatpush1.bf16.msra.mxu0 %v14073_v36  ;;  %4028 = vmatpush1.bf16.msra.mxu1 %v14074_v54 }
 0x335   :  { %3988 = vmatprep.subr.bf16.mxu0 %v14075_v53  ;;  %4029 = vmatprep.subr.bf16.mxu1 %v14076_v5 }
 0x338   :  { %3989 = vmatpush1.bf16.msra.mxu0 %v14077_v8  ;;  %4030 = vmatpush1.bf16.msra.mxu1 %v14078_v60 }
 0x339   :  { %3990 = vmatprep.subr.bf16.mxu0 %v14079_v10  ;;  %4031 = vmatprep.subr.bf16.mxu1 %v14080_v20 }
 0x33c   :  { %3991 = vmatpush1.bf16.msra.mxu0 %v14081_v21  ;;  %4032 = vmatpush1.bf16.msra.mxu1 %v14082_v37 }
 0x33d   :  { %3992 = vmatprep.subr.bf16.mxu0 %v14083_v14  ;;  %4033 = vmatprep.subr.bf16.mxu1 %v14084_v17 }
 0x340   :  { %3993 = vmatpush1.bf16.msra.mxu0 %v14085_v18  ;;  %4034 = vmatpush1.bf16.msra.mxu1 %v14086_v23  ;;  %v14101_v18 = vld [vmem:[#allocation33_spill] sm:$0xff] }
 0x341   :  { %3994 = vmatprep.subr.bf16.mxu0 %v14087_v24  ;;  %4035 = vmatprep.subr.bf16.mxu1 %v14088_v25 }
 0x344   :  { %3995 = vmatpush1.bf16.msra.mxu0 %v14089_v33  ;;  %4036 = vmatpush1.bf16.msra.mxu1 %v14090_v39 }
 0x345   :  { %3996 = vmatprep.subr.bf16.mxu0 %v14091_v40  ;;  %4037 = vmatprep.subr.bf16.mxu1 %v14092_v41  ;;  %v8336_v41 = vld [vmem:[%s13553_s1 + $0xb0] sm:$0xff] }
 0x348   :  { %3997 = vmatpush1.bf16.msra.mxu0 %v14093_v49  ;;  %4038 = vmatpush1.bf16.msra.mxu1 %v14094_v55  ;;  %v3128_v49 = vunpack.c.l.bf16 %v8336_v41  ;;  %v3129_v55 = vunpack.c.h.bf16 %v8336_v41  ;;  %v14118_v41 = vld [vmem:[#allocation52_spill] sm:$0xff] }
 0x349   :  { %3998 = vmatprep.subr.bf16.mxu0 %v14095_v56  ;;  %4039 = vmatprep.subr.bf16.mxu1 %v14096_v57 }
 0x34c   :  { %3999 = vmatpush1.bf16.msra.mxu0 %v14097_v1  ;;  %4040 = vmatpush1.bf16.msra.mxu1 %v14098_v11  ;;  %v8337_v11 = vld [vmem:[%s13553_s1 + $0xb8] sm:$0xff] }
 0x34d   :  { %4050 = vmatprep.subr.bf16.mxu0 %v14099_v15  ;;  %4091 = vmatprep.subr.bf16.mxu1 %v14100_v16 }
 0x3a2   :  { %v2984_v22 = vpop.f32.mrb[16].mxu0  ;;  %v3025_v38 = vpop.f32.mrb[16].mxu1 }
 0x3a3   :  { %v3121_v46 = vadd.f32 %v3117_v45, %v2984_v22  ;;  %v2986_v62 = vpop.f32.mrb[17].mxu0  ;;  %v3027_v4 = vpop.f32.mrb[17].mxu1  ;;  %v3123_v54 = vadd.f32 %v3119_v34, %v3025_v38 }
 0x3a4   :  { %v3122_v31 = vadd.f32 %v3118_v6, %v2986_v62  ;;  %v2988_v43 = vpop.f32.mrb[18].mxu0  ;;  %v3029_v29 = vpop.f32.mrb[18].mxu1  ;;  %v3124_v7 = vadd.f32 %v3120_v63, %v3027_v4  ;;  %v3131_v62 = vunpack.c.h.bf16 %v8337_v11 }
 0x3a5   :  { %v8741_v44 = vmul.f32 -1.442695, %v3121_v46  ;;  %v2989_v19 = vpop.f32.mrb[19].mxu0  ;;  %v3030_v27 = vpop.f32.mrb[19].mxu1 }
 0x3a6   :  { %v8742_v48 = vmul.f32 -1.442695, %v3122_v31  ;;  %v8743_v36 = vmul.f32 -1.442695, %v3124_v7  ;;  %v3130_v31 = vunpack.c.l.bf16 %v8337_v11  ;;  %v14124_v11 = vld [vmem:[#allocation58_spill] sm:$0xff] }
 0x3a7   :  { %9493 = vpow2.f32 %v8741_v44 }
 0x3a8   :  { %9495 = vpow2.f32 %v8742_v48 }
 0x3a9   :  { %9497 = vpow2.f32 %v8743_v36 }
 0x3aa   :  { %9499 = vtanh.f32 %v3123_v54 }
 0x3b1   :  { %v9494_v53 = vpop.eup %9493 }
 0x3b2   :  { %v9496_v5 = vpop.eup %9495  ;;  %v3139_v8 = vadd.f32 1.0, %v9494_v53 }
 0x3b3   :  { %v3145_v60 = vadd.f32 1.0, %v9496_v5  ;;  %v9498_v10 = vpop.eup %9497 }
 0x3b4   :  { %9501 = vrcp.f32 %v3139_v8  ;;  %v9500_v20 = vpop.eup %9499  ;;  %v3152_v17 = vadd.f32 1.0, %v9498_v10 }
 0x3b5   :  { %9503 = vrcp.f32 %v3145_v60 }
 0x3b6   :  { %9505 = vrcp.f32 %v3152_v17  ;;  %v14107_v17 = vld [vmem:[#allocation39_spill] sm:$0xff] }
 0x3be   :  { %v9502_v21 = vpop.eup %9501 }
 0x3bf   :  { %v9504_v37 = vpop.eup %9503  ;;  %v3157_v14 = vmul.f32 %v9502_v21, %v9500_v20 }
 0x3c0   :  { %v3156_v23 = vmul.f32 %v9504_v37, %v14101_v18  ;;  %v9506_v25 = vpop.eup %9505  ;;  %v14103_v37 = vld [vmem:[#allocation35_spill] sm:$0xff]  ;;  %v14113_v18 = vld [vmem:[#allocation45_spill] sm:$0xff] }
 0x3c2   :  { %v11520_v24 = vadd.f32 %v3157_v14, %v3156_v23  ;;  %v14104_v14 = vld [vmem:[#allocation38_spill] sm:$0xff]  ;;  %v14114_v23 = vld [vmem:[#allocation48_spill] sm:$0xff] }
 0x3c4   :  { %9507 = vtanh.f32 %v11520_v24 }
 0x3ce   :  { %v9508_v33 = vpop.eup %9507 }
 0x3cf   :  { %v3160_v39 = vmul.f32 %v9508_v33, %v9506_v25  ;;  %v14115_v25 = vld [vmem:[#allocation47_spill] sm:$0xff]  ;;  %v14116_v33 = vld [vmem:[#allocation50_spill] sm:$0xff] }
 0x3d1   :  { %v11523_v40 = vpack.c.bf16 %v3160_v39, %v3160_v39  ;;  %v14117_v39 = vld [vmem:[#allocation49_spill] sm:$0xff] }
 0x3d3   :  { %8747 = vst [vmem:[%s13555_s3 + $0x8] sm:$0xf] %v11523_v40 }
 0x3e2   :  { %v3066_v56 = vpop.f32.mrb[20].mxu0  ;;  %v3107_v57 = vpop.f32.mrb[20].mxu1 }
 0x3e3   :  { %v3132_v1 = vadd.f32 %v3128_v49, %v3066_v56  ;;  %v3068_v15 = vpop.f32.mrb[21].mxu0  ;;  %v3109_v16 = vpop.f32.mrb[21].mxu1  ;;  %v3134_v29 = vadd.f32 %v3130_v31, %v3107_v57  ;;  %v14119_v49 = vld [vmem:[#allocation51_spill] sm:$0xff]  ;;  %v14121_v56 = vld [vmem:[#allocation53_spill] sm:$0xff]  ;;  %v14122_v57 = vld [vmem:[#allocation56_spill] sm:$0xff] }
 0x3e4   :  { %v3133_v35 = vadd.f32 %v3129_v55, %v3068_v15  ;;  %v3070_v45 = vpop.f32.mrb[22].mxu0  ;;  %v3111_v6 = vpop.f32.mrb[22].mxu1  ;;  %v3135_v4 = vadd.f32 %v3131_v62, %v3109_v16  ;;  %v14120_v55 = vld [vmem:[#allocation54_spill] sm:$0xff]  ;;  %v14125_v15 = vld [vmem:[#allocation57_spill] sm:$0xff]  ;;  %v14126_v16 = vld [vmem:[#allocation60_spill] sm:$0xff] }
 0x3e5   :  { %v8744_v22 = vmul.f32 -1.442695, %v3132_v1  ;;  %v3071_v38 = vpop.f32.mrb[23].mxu0  ;;  %v3112_v46 = vpop.f32.mrb[23].mxu1  ;;  %v14123_v1 = vld [vmem:[#allocation55_spill] sm:$0xff]  ;;  %v14128_v45 = vld [vmem:[#allocation62_spill] sm:$0xff] }
 0x3e6   :  { %v8745_v51 = vmul.f32 -1.442695, %v3133_v35  ;;  %v8746_v43 = vmul.f32 -1.442695, %v3135_v4  ;;  %v14127_v35 = vld [vmem:[#allocation59_spill] sm:$0xff]  ;;  %v14129_v6 = vld [vmem:[#allocation61_spill] sm:$0xff] }
 0x3e7   :  { %9509 = vpow2.f32 %v8744_v22  ;;  %v14130_v22 = vld [vmem:[#allocation64_spill] sm:$0xff]  ;;  %v14131_v38 = vld [vmem:[#allocation63_spill] sm:$0xff]  ;;  %v14132_v46 = vld [vmem:[#allocation66_spill] sm:$0xff] }
 0x3e8   :  { %9511 = vpow2.f32 %v8745_v51  ;;  %v14133_v51 = vld [vmem:[#allocation65_spill] sm:$0xff]  ;;  %v14134_v62 = vld [vmem:[#allocation68_spill] sm:$0xff]  ;;  %v14135_v4 = vld [vmem:[#allocation67_spill] sm:$0xff] }
 0x3e9   :  { %9513 = vpow2.f32 %v8746_v43  ;;  %v14136_v31 = vld [vmem:[#allocation70_spill] sm:$0xff]  ;;  %v14137_v43 = vld [vmem:[#allocation69_spill] sm:$0xff] }
 0x3ea   :  { %9515 = vtanh.f32 %v3134_v29  ;;  %v14138_v29 = vld [vmem:[#allocation72_spill] sm:$0xff] }
 0x3f1   :  { %v9510_v44 = vpop.eup %9509 }
 0x3f2   :  { %v9512_v19 = vpop.eup %9511  ;;  %v3164_v27 = vadd.f32 1.0, %v9510_v44  ;;  %v14139_v44 = vld [vmem:[#allocation71_spill] sm:$0xff] }
 0x3f3   :  { %v3170_v48 = vadd.f32 1.0, %v9512_v19  ;;  %v9514_v63 = vpop.eup %9513  ;;  %v14140_v19 = vld [vmem:[#allocation74_spill] sm:$0xff] }
 0x3f4   :  { %9517 = vrcp.f32 %v3164_v27  ;;  %v9516_v7 = vpop.eup %9515  ;;  %v3177_v53 = vadd.f32 1.0, %v9514_v63  ;;  %v14141_v27 = vld [vmem:[#allocation73_spill] sm:$0xff]  ;;  %v14143_v63 = vld [vmem:[#allocation76_spill] sm:$0xff] }
 0x3f5   :  { %9519 = vrcp.f32 %v3170_v48  ;;  %v14142_v48 = vld [vmem:[#allocation75_spill] sm:$0xff] }
 0x3f6   :  { %9521 = vrcp.f32 %v3177_v53 }
 0x3fe   :  { %v9518_v34 = vpop.eup %9517 }
 0x3ff   :  { %v9520_v36 = vpop.eup %9519  ;;  %v3182_v54 = vmul.f32 %v9518_v34, %v9516_v7  ;;  %v14144_v7 = vld [vmem:[#allocation77_spill] sm:$0xff]  ;;  %v14145_v34 = vld [vmem:[#allocation78_spill] sm:$0xff] }
 0x400   :  { %v3181_v5 = vmul.f32 %v9520_v36, %v11075_v9  ;;  %v9522_v60 = vpop.eup %9521  ;;  %v14102_v9 = vld [vmem:[#allocation36_spill] sm:$0xff]  ;;  %v14146_v36 = vld [vmem:[#allocation79_spill] sm:$0xff] }
 0x402   :  { %v11536_v8 = vadd.f32 %v3182_v54, %v3181_v5  ;;  %v14147_v54 = vld [vmem:[#allocation80_spill] sm:$0xff]  ;;  %v4227_v5 = vld [vmem:[%s13554_s2 + $0x48] sm:$0xff] }
 0x404   :  { %9523 = vtanh.f32 %v11536_v8 }
 0x40e   :  { %v9524_v10 = vpop.eup %9523 }
 0x40f   :  { %v3185_v20 = vmul.f32 %v9524_v10, %v9522_v60  ;;  %v4231_v60 = vld [vmem:[%s13554_s2 + $0x68] sm:$0xff]  ;;  %v4234_v10 = vld [vmem:[%s13554_s2 + $0x80] sm:$0xff] }
 0x411   :  { %v3193_v21 = vpack.c.bf16 %v3185_v20, %v3185_v20  ;;  %v11646_v20 = vcombine.high %v4227_v5, %v4231_v60 }
 0x413   :  { %8748 = vst [vmem:[%s13556_s4 + $0x14] sm:$0xf] %v3193_v21  ;;  %4000 = vmatprep.mubr.bf16.mxu0 %v3193_v21  ;;  %4041 = vmatprep.mubr.bf16.mxu1 %v3193_v21 }
 0x414   :  { %4001 = vmatmul.mubr.bf16.vlgmr.msra.gmra.mrb[24].mxu0 %v11523_v40  ;;  %4042 = vmatmul.mubr.bf16.vlgmr.msra.gmra.mrb[24].mxu1 %v11523_v40 }
 0x415   :  { %4051 = vmatpush1.bf16.msra.mxu0 %v11044_v0  ;;  %4092 = vmatpush1.bf16.msra.mxu1 %v11046_v30  ;;  %v14105_v0 = vld [vmem:[#allocation37_spill] sm:$0xff]  ;;  %v14106_v30 = vld [vmem:[#allocation40_spill] sm:$0xff] }
 0x416   :  { %4082 = vmatprep.mubr.bf16.mxu0 %v3193_v21  ;;  %4123 = vmatprep.mubr.bf16.mxu1 %v3193_v21  ;;  %v4238_v21 = vld [vmem:[%s13554_s2 + $0xa0] sm:$0xff] }
 0x417   :  { %4052 = vmatprep.subr.bf16.mxu0 %v11096_v50  ;;  %4093 = vmatprep.subr.bf16.mxu1 %v11098_v59  ;;  %v14108_v50 = vld [vmem:[#allocation42_spill] sm:$0xff]  ;;  %v14109_v59 = vld [vmem:[#allocation41_spill] sm:$0xff] }
 0x419   :  { %4053 = vmatpush1.bf16.msra.mxu0 %v11113_v47  ;;  %4094 = vmatpush1.bf16.msra.mxu1 %v11115_v26  ;;  %v14110_v47 = vld [vmem:[#allocation44_spill] sm:$0xff]  ;;  %v14111_v26 = vld [vmem:[#allocation43_spill] sm:$0xff] }
 0x41a   :  { %4054 = vmatprep.subr.bf16.mxu0 %v11117_v12  ;;  %4095 = vmatprep.subr.bf16.mxu1 %v14102_v9  ;;  %v14112_v12 = vld [vmem:[#allocation46_spill] sm:$0xff]  ;;  %v4235_v9 = vld [vmem:[%s13554_s2 + $0x88] sm:$0xff] }
 0x41d   :  { %4055 = vmatpush1.bf16.msra.mxu0 %v14103_v37  ;;  %4096 = vmatpush1.bf16.msra.mxu1 %v14104_v14  ;;  %v4239_v37 = vld [vmem:[%s13554_s2 + $0xa8] sm:$0xff] }
 0x41e   :  { %4056 = vmatprep.subr.bf16.mxu0 %v14105_v0  ;;  %4097 = vmatprep.subr.bf16.mxu1 %v14106_v30  ;;  %v11663_v0 = vcombine.low %v4227_v5, %v4231_v60  ;;  %v11665_v30 = vcombine.high %v4234_v10, %v4238_v21  ;;  %v4287_v5 = vld [vmem:[%s13554_s2 + $0x228] sm:$0xff] }
 0x421   :  { %4057 = vmatpush1.bf16.msra.mxu0 %v14107_v17  ;;  %4098 = vmatpush1.bf16.msra.mxu1 %v14108_v50  ;;  %v11668_v17 = vcombine.high %v4235_v9, %v4239_v37  ;;  %v4242_v50 = vld [vmem:[%s13554_s2 + $0xc0] sm:$0xff] }
 0x422   :  { %4058 = vmatprep.subr.bf16.mxu0 %v14109_v59  ;;  %4099 = vmatprep.subr.bf16.mxu1 %v14110_v47  ;;  %v4246_v59 = vld [vmem:[%s13554_s2 + $0xe0] sm:$0xff]  ;;  %v4243_v47 = vld [vmem:[%s13554_s2 + $0xc8] sm:$0xff] }
 0x425   :  { %4059 = vmatpush1.bf16.msra.mxu0 %v14111_v26  ;;  %4100 = vmatpush1.bf16.msra.mxu1 %v14112_v12  ;;  %v4247_v26 = vld [vmem:[%s13554_s2 + $0xe8] sm:$0xff]  ;;  %v11683_v12 = vcombine.low %v4234_v10, %v4238_v21 }
 0x426   :  { %4060 = vmatprep.subr.bf16.mxu0 %v14113_v18  ;;  %4101 = vmatprep.subr.bf16.mxu1 %v14114_v23  ;;  %v11687_v18 = vcombine.low %v4235_v9, %v4239_v37  ;;  %v11689_v23 = vcombine.high %v4242_v50, %v4246_v59  ;;  %v4290_v9 = vld [vmem:[%s13554_s2 + $0x240] sm:$0xff] }
 0x427   :  { %v4294_v37 = vld [vmem:[%s13554_s2 + $0x260] sm:$0xff] }
 0x429   :  { %4061 = vmatpush1.bf16.msra.mxu0 %v14115_v25  ;;  %4102 = vmatpush1.bf16.msra.mxu1 %v14116_v33  ;;  %v11692_v25 = vcombine.high %v4243_v47, %v4247_v26  ;;  %v11695_v33 = vcombine.low %v4242_v50, %v4246_v59  ;;  %v4291_v50 = vld [vmem:[%s13554_s2 + $0x248] sm:$0xff]  ;;  %v11833_v59 = vcombine.high %v4290_v9, %v4294_v37 }
 0x42a   :  { %4062 = vmatprep.subr.bf16.mxu0 %v14117_v39  ;;  %4103 = vmatprep.subr.bf16.mxu1 %v14118_v41  ;;  %v11699_v39 = vcombine.low %v4243_v47, %v4247_v26  ;;  %v4250_v41 = vld [vmem:[%s13554_s2 + $0x100] sm:$0xff]  ;;  %v4295_v47 = vld [vmem:[%s13554_s2 + $0x268] sm:$0xff]  ;;  %v11838_v26 = vcombine.low %v4290_v9, %v4294_v37 }
 0x42b   :  { %v4315_v9 = vld [vmem:[%s13554_s2 + $0x308] sm:$0xff] }
 0x42c   :  { %14148 = vst [vmem:[#allocation6_spill] sm:$0xff] %v11838_v26 }
 0x42d   :  { %4063 = vmatpush1.bf16.msra.mxu0 %v14119_v49  ;;  %4104 = vmatpush1.bf16.msra.mxu1 %v14120_v55  ;;  %v4254_v49 = vld [vmem:[%s13554_s2 + $0x120] sm:$0xff]  ;;  %v4251_v55 = vld [vmem:[%s13554_s2 + $0x108] sm:$0xff] }
 0x42e   :  { %4064 = vmatprep.subr.bf16.mxu0 %v14121_v56  ;;  %4105 = vmatprep.subr.bf16.mxu1 %v14122_v57  ;;  %v11713_v56 = vcombine.high %v4250_v41, %v4254_v49  ;;  %v4255_v57 = vld [vmem:[%s13554_s2 + $0x128] sm:$0xff] }
 0x431   :  { %4065 = vmatpush1.bf16.msra.mxu0 %v14123_v1  ;;  %4106 = vmatpush1.bf16.msra.mxu1 %v14124_v11  ;;  %v11718_v1 = vcombine.low %v4250_v41, %v4254_v49  ;;  %v11720_v11 = vcombine.low %v4251_v55, %v4255_v57  ;;  %v11840_v41 = vcombine.low %v4291_v50, %v4295_v47 }
 0x432   :  { %4066 = vmatprep.subr.bf16.mxu0 %v14125_v15  ;;  %4107 = vmatprep.subr.bf16.mxu1 %v14126_v16  ;;  %v11722_v15 = vcombine.high %v4251_v55, %v4255_v57  ;;  %v4258_v16 = vld [vmem:[%s13554_s2 + $0x140] sm:$0xff]  ;;  %v11842_v49 = vcombine.high %v4291_v50, %v4295_v47  ;;  %v4319_v50 = vld [vmem:[%s13554_s2 + $0x328] sm:$0xff] }
 0x433   :  { %14149 = vst [vmem:[#allocation7_spill] sm:$0xff] %v11840_v41  ;;  %v4298_v55 = vld [vmem:[%s13554_s2 + $0x280] sm:$0xff] }
 0x434   :  { %v4302_v57 = vld [vmem:[%s13554_s2 + $0x2a0] sm:$0xff] }
 0x435   :  { %4067 = vmatpush1.bf16.msra.mxu0 %v14127_v35  ;;  %4108 = vmatpush1.bf16.msra.mxu1 %v14128_v45  ;;  %v4262_v35 = vld [vmem:[%s13554_s2 + $0x160] sm:$0xff]  ;;  %v4259_v45 = vld [vmem:[%s13554_s2 + $0x148] sm:$0xff] }
 0x436   :  { %4068 = vmatprep.subr.bf16.mxu0 %v14129_v6  ;;  %4109 = vmatprep.subr.bf16.mxu1 %v14130_v22  ;;  %v11737_v6 = vcombine.high %v4258_v16, %v4262_v35  ;;  %v4263_v22 = vld [vmem:[%s13554_s2 + $0x168] sm:$0xff] }
 0x439   :  { %4069 = vmatpush1.bf16.msra.mxu0 %v14131_v38  ;;  %4110 = vmatpush1.bf16.msra.mxu1 %v14132_v46  ;;  %v11742_v38 = vcombine.low %v4258_v16, %v4262_v35  ;;  %v11744_v46 = vcombine.low %v4259_v45, %v4263_v22  ;;  %v4299_v16 = vld [vmem:[%s13554_s2 + $0x288] sm:$0xff]  ;;  %v11857_v35 = vcombine.high %v4298_v55, %v4302_v57 }
 0x43a   :  { %4070 = vmatprep.subr.bf16.mxu0 %v14133_v51  ;;  %4111 = vmatprep.subr.bf16.mxu1 %v14134_v62  ;;  %v11746_v51 = vcombine.high %v4259_v45, %v4263_v22  ;;  %v4266_v62 = vld [vmem:[%s13554_s2 + $0x180] sm:$0xff]  ;;  %v4303_v45 = vld [vmem:[%s13554_s2 + $0x2a8] sm:$0xff]  ;;  %v11862_v22 = vcombine.low %v4298_v55, %v4302_v57  ;;  %v11912_v55 = vcombine.low %v4315_v9, %v4319_v50 }
 0x43b   :  { %14150 = vst [vmem:[#allocation8_spill] sm:$0xff] %v11857_v35  ;;  %v11914_v57 = vcombine.high %v4315_v9, %v4319_v50 }
 0x43c   :  { %14151 = vst [vmem:[#allocation11_spill] sm:$0xff] %v11862_v22  ;;  %14160 = vst [vmem:[#allocation18_spill] sm:$0xff] %v11912_v55 }
 0x43d   :  { %4071 = vmatpush1.bf16.msra.mxu0 %v14135_v4  ;;  %4112 = vmatpush1.bf16.msra.mxu1 %v14136_v31  ;;  %v4270_v4 = vld [vmem:[%s13554_s2 + $0x1a0] sm:$0xff]  ;;  %v4267_v31 = vld [vmem:[%s13554_s2 + $0x188] sm:$0xff]  ;;  %14161 = vst [vmem:[#allocation17_spill] sm:$0xff] %v11914_v57 }
 0x43e   :  { %4072 = vmatprep.subr.bf16.mxu0 %v14137_v43  ;;  %4113 = vmatprep.subr.bf16.mxu1 %v14138_v29  ;;  %v11761_v43 = vcombine.high %v4266_v62, %v4270_v4  ;;  %v4271_v29 = vld [vmem:[%s13554_s2 + $0x1a8] sm:$0xff] }
 0x441   :  { %4073 = vmatpush1.bf16.msra.mxu0 %v14139_v44  ;;  %4114 = vmatpush1.bf16.msra.mxu1 %v14140_v19  ;;  %v11766_v44 = vcombine.low %v4266_v62, %v4270_v4  ;;  %v11768_v19 = vcombine.low %v4267_v31, %v4271_v29  ;;  %v11864_v62 = vcombine.low %v4299_v16, %v4303_v45 }
 0x442   :  { %4074 = vmatprep.subr.bf16.mxu0 %v14141_v27  ;;  %4115 = vmatprep.subr.bf16.mxu1 %v14142_v48  ;;  %v11770_v27 = vcombine.high %v4267_v31, %v4271_v29  ;;  %v4274_v48 = vld [vmem:[%s13554_s2 + $0x1c0] sm:$0xff]  ;;  %v11866_v4 = vcombine.high %v4299_v16, %v4303_v45 }
 0x443   :  { %14152 = vst [vmem:[#allocation10_spill] sm:$0xff] %v11864_v62  ;;  %v4306_v31 = vld [vmem:[%s13554_s2 + $0x2c0] sm:$0xff] }
 0x444   :  { %14153 = vst [vmem:[#allocation9_spill] sm:$0xff] %v11866_v4  ;;  %v4310_v29 = vld [vmem:[%s13554_s2 + $0x2e0] sm:$0xff] }
 0x445   :  { %4075 = vmatpush1.bf16.msra.mxu0 %v14143_v63  ;;  %4116 = vmatpush1.bf16.msra.mxu1 %v14144_v7  ;;  %v4278_v63 = vld [vmem:[%s13554_s2 + $0x1e0] sm:$0xff]  ;;  %v4275_v7 = vld [vmem:[%s13554_s2 + $0x1c8] sm:$0xff] }
 0x446   :  { %4076 = vmatprep.subr.bf16.mxu0 %v14145_v34  ;;  %4117 = vmatprep.subr.bf16.mxu1 %v14146_v36  ;;  %v11785_v34 = vcombine.high %v4274_v48, %v4278_v63  ;;  %v4279_v36 = vld [vmem:[%s13554_s2 + $0x1e8] sm:$0xff]  ;;  %v4322_v16 = vld [vmem:[%s13554_s2 + $0x340] sm:$0xff] }
 0x447   :  { %v4326_v45 = vld [vmem:[%s13554_s2 + $0x360] sm:$0xff] }
 0x449   :  { %4077 = vmatpush1.bf16.msra.mxu0 %v14147_v54  ;;  %4118 = vmatpush1.bf16.msra.mxu1 %v11403_v28  ;;  %v4226_v28 = vld [vmem:[%s13554_s2 + $0x40] sm:$0xff]  ;;  %v11790_v54 = vcombine.low %v4274_v48, %v4278_v63  ;;  %v4307_v48 = vld [vmem:[%s13554_s2 + $0x2c8] sm:$0xff]  ;;  %v11881_v63 = vcombine.high %v4306_v31, %v4310_v29 }
 0x44a   :  { %4078 = vmatprep.subr.bf16.mxu0 %v11407_v61  ;;  %4119 = vmatprep.subr.bf16.mxu1 %v11409_v13  ;;  %v4218_v13 = vld [vmem:[%s13554_s2] sm:$0xff] }
 0x44b   :  { %v4222_v61 = vld [vmem:[%s13554_s2 + $0x20] sm:$0xff]  ;;  %14154 = vst [vmem:[#allocation12_spill] sm:$0xff] %v11881_v63 }
 0x44d   :  { %4079 = vmatpush1.bf16.msra.mxu0 %v11425_v2  ;;  %4120 = vmatpush1.bf16.msra.mxu1 %v11427_v32  ;;  %v4230_v2 = vld [vmem:[%s13554_s2 + $0x60] sm:$0xff] }
 0x44e   :  { %4080 = vmatprep.subr.bf16.mxu0 %v11431_v52  ;;  %4121 = vmatprep.subr.bf16.mxu1 %v11433_v58  ;;  %v4219_v52 = vld [vmem:[%s13554_s2 + $0x8] sm:$0xff]  ;;  %v11617_v58 = vcombine.low %v4218_v13, %v4222_v61  ;;  %v11634_v53 = vcombine.high %v4226_v28, %v4230_v2  ;;  %v11659_v14 = vcombine.low %v4226_v28, %v4230_v2 }
 0x44f   :  { %v4283_v28 = vld [vmem:[%s13554_s2 + $0x208] sm:$0xff] }
 0x450   :  { %v11816_v10 = vcombine.low %v4283_v28, %v4287_v5  ;;  %v11818_v21 = vcombine.high %v4283_v28, %v4287_v5  ;;  %v4314_v28 = vld [vmem:[%s13554_s2 + $0x300] sm:$0xff] }
 0x451   :  { %4081 = vmatpush1.bf16.msra.mxu0 %v11437_v42  ;;  %4122 = vmatpush1.bf16.msra.mxu1 %v11439_v3  ;;  %v11619_v42 = vcombine.high %v4218_v13, %v4222_v61  ;;  %v4223_v3 = vld [vmem:[%s13554_s2 + $0x28] sm:$0xff]  ;;  %v11792_v13 = vcombine.low %v4275_v7, %v4279_v36  ;;  %v11794_v61 = vcombine.high %v4275_v7, %v4279_v36  ;;  %v4318_v5 = vld [vmem:[%s13554_s2 + $0x320] sm:$0xff] }
 0x452   :  { %v11630_v32 = vcombine.low %v4219_v52, %v4223_v3  ;;  %v4311_v7 = vld [vmem:[%s13554_s2 + $0x2e8] sm:$0xff]  ;;  %v11886_v36 = vcombine.low %v4306_v31, %v4310_v29  ;;  %v11905_v37 = vcombine.high %v4314_v28, %v4318_v5  ;;  %v11910_v47 = vcombine.low %v4314_v28, %v4318_v5  ;;  %v4330_v28 = vld [vmem:[%s13554_s2 + $0x380] sm:$0xff] }
 0x453   :  { %4986 = vmatprep.subr.bf16.mxu0 %v11619_v42  ;;  %v4323_v31 = vld [vmem:[%s13554_s2 + $0x348] sm:$0xff]  ;;  %v11928_v29 = vcombine.low %v4322_v16, %v4326_v45  ;;  %v4334_v5 = vld [vmem:[%s13554_s2 + $0x3a0] sm:$0xff] }
 0x454   :  { %4083 = vmatmul.mubr.bf16.vlgmr.msra.gmra.mrb[28].mxu0 %v11523_v40  ;;  %4124 = vmatmul.mubr.bf16.vlgmr.msra.gmra.mrb[28].mxu1 %v11523_v40  ;;  %v11632_v40 = vcombine.high %v4219_v52, %v4223_v3  ;;  %v4282_v52 = vld [vmem:[%s13554_s2 + $0x200] sm:$0xff]  ;;  %14155 = vst [vmem:[#allocation15_spill] sm:$0xff] %v11886_v36  ;;  %14158 = vst [vmem:[#allocation16_spill] sm:$0xff] %v11905_v37 }
 0x455   :  { %4987 = vmatpush1.bf16.msra.mxu0 %v11617_v58  ;;  %v4286_v3 = vld [vmem:[%s13554_s2 + $0x220] sm:$0xff]  ;;  %14159 = vst [vmem:[#allocation19_spill] sm:$0xff] %v11910_v47  ;;  %14162 = vst [vmem:[#allocation22_spill] sm:$0xff] %v11928_v29 }
 0x456   :  { %5027 = vmatprep.subr.bf16.mxu1 %v11632_v40  ;;  %4988 = vmatprep.subr.bf16.mxu0 %v11634_v53  ;;  %v11809_v2 = vcombine.high %v4282_v52, %v4286_v3  ;;  %v11814_v60 = vcombine.low %v4282_v52, %v4286_v3  ;;  %v11888_v52 = vcombine.low %v4307_v48, %v4311_v7 }
 0x457   :  { %5028 = vmatpush1.bf16.msra.mxu1 %v11630_v32  ;;  %v11890_v3 = vcombine.high %v4307_v48, %v4311_v7  ;;  %v11930_v48 = vcombine.high %v4322_v16, %v4326_v45  ;;  %v4327_v7 = vld [vmem:[%s13554_s2 + $0x368] sm:$0xff]  ;;  %v11946_v16 = vcombine.high %v4330_v28, %v4334_v5 }
 0x458   :  { %5029 = vmatprep.subr.bf16.mxu1 %v11646_v20  ;;  %14156 = vst [vmem:[#allocation14_spill] sm:$0xff] %v11888_v52  ;;  %v11942_v9 = vcombine.low %v4323_v31, %v4327_v7  ;;  %v11944_v50 = vcombine.high %v4323_v31, %v4327_v7  ;;  %v4331_v45 = vld [vmem:[%s13554_s2 + $0x388] sm:$0xff]  ;;  %v4342_v31 = vld [vmem:[%s13554_s2 + $0x3e0] sm:$0xff] }
 0x459   :  { %4989 = vmatpush1.bf16.msra.mxu0 %v11659_v14  ;;  %14157 = vst [vmem:[#allocation13_spill] sm:$0xff] %v11890_v3  ;;  %14163 = vst [vmem:[#allocation23_spill] sm:$0xff] %v11930_v48  ;;  %v4339_v7 = vld [vmem:[%s13554_s2 + $0x3c8] sm:$0xff] }
 0x45a   :  { %4990 = vmatprep.subr.bf16.mxu0 %v11665_v30  ;;  %14164 = vst [vmem:[#allocation20_spill] sm:$0xff] %v11942_v9  ;;  %14165 = vst [vmem:[#allocation21_spill] sm:$0xff] %v11944_v50 }
 0x45b   :  { %5030 = vmatpush1.bf16.msra.mxu1 %v11663_v0  ;;  %14166 = vst [vmem:[#allocation24_spill] sm:$0xff] %v11946_v16 }
 0x45c   :  { %5031 = vmatprep.subr.bf16.mxu1 %v11668_v17 }
 0x45d   :  { %4991 = vmatpush1.bf16.msra.mxu0 %v11683_v12 }
 0x45e   :  { %4992 = vmatprep.subr.bf16.mxu0 %v11689_v23 }
 0x45f   :  { %5032 = vmatpush1.bf16.msra.mxu1 %v11687_v18 }
 0x460   :  { %5033 = vmatprep.subr.bf16.mxu1 %v11692_v25 }
 0x461   :  { %4993 = vmatpush1.bf16.msra.mxu0 %v11695_v33 }
 0x462   :  { %4994 = vmatprep.subr.bf16.mxu0 %v11713_v56 }
 0x463   :  { %5034 = vmatpush1.bf16.msra.mxu1 %v11699_v39 }
 0x464   :  { %5035 = vmatprep.subr.bf16.mxu1 %v11722_v15 }
 0x465   :  { %4995 = vmatpush1.bf16.msra.mxu0 %v11718_v1 }
 0x466   :  { %4996 = vmatprep.subr.bf16.mxu0 %v11737_v6 }
 0x467   :  { %5036 = vmatpush1.bf16.msra.mxu1 %v11720_v11 }
 0x468   :  { %5037 = vmatprep.subr.bf16.mxu1 %v11746_v51 }
 0x469   :  { %4997 = vmatpush1.bf16.msra.mxu0 %v11742_v38 }
 0x46a   :  { %4998 = vmatprep.subr.bf16.mxu0 %v11761_v43 }
 0x46b   :  { %5038 = vmatpush1.bf16.msra.mxu1 %v11744_v46 }
 0x46c   :  { %5039 = vmatprep.subr.bf16.mxu1 %v11770_v27 }
 0x46d   :  { %4999 = vmatpush1.bf16.msra.mxu0 %v11766_v44 }
 0x46e   :  { %5000 = vmatprep.subr.bf16.mxu0 %v11785_v34 }
 0x46f   :  { %5040 = vmatpush1.bf16.msra.mxu1 %v11768_v19 }
 0x470   :  { %5041 = vmatprep.subr.bf16.mxu1 %v11794_v61 }
 0x471   :  { %5001 = vmatpush1.bf16.msra.mxu0 %v11790_v54 }
 0x472   :  { %5002 = vmatprep.subr.bf16.mxu0 %v11809_v2 }
 0x473   :  { %5042 = vmatpush1.bf16.msra.mxu1 %v11792_v13 }
 0x474   :  { %5043 = vmatprep.subr.bf16.mxu1 %v11818_v21 }
 0x475   :  { %5003 = vmatpush1.bf16.msra.mxu0 %v11814_v60 }
 0x476   :  { %5004 = vmatprep.subr.bf16.mxu0 %v11833_v59 }
 0x477   :  { %5044 = vmatpush1.bf16.msra.mxu1 %v11816_v10 }
 0x478   :  { %5045 = vmatprep.subr.bf16.mxu1 %v11842_v49 }
 0x479   :  { %5005 = vmatpush1.bf16.msra.mxu0 %v11838_v26 }
 0x47a   :  { %5006 = vmatprep.subr.bf16.mxu0 %v11857_v35 }
 0x47b   :  { %5046 = vmatpush1.bf16.msra.mxu1 %v11840_v41 }
 0x47c   :  { %5047 = vmatprep.subr.bf16.mxu1 %v11866_v4 }
 0x47d   :  { %5007 = vmatpush1.bf16.msra.mxu0 %v11862_v22 }
 0x47e   :  { %5008 = vmatprep.subr.bf16.mxu0 %v11881_v63 }
 0x47f   :  { %5048 = vmatpush1.bf16.msra.mxu1 %v11864_v62 }
 0x480   :  { %5049 = vmatprep.subr.bf16.mxu1 %v11890_v3 }
 0x481   :  { %5009 = vmatpush1.bf16.msra.mxu0 %v11886_v36 }
 0x482   :  { %5010 = vmatprep.subr.bf16.mxu0 %v11905_v37  ;;  %v11971_v37 = vcombine.low %v4330_v28, %v4334_v5  ;;  %v4224_v5 = vld [vmem:[%s13554_s2 + $0x30] sm:$0xff] }
 0x483   :  { %5050 = vmatpush1.bf16.msra.mxu1 %v11888_v52 }
 0x484   :  { %5051 = vmatprep.subr.bf16.mxu1 %v11914_v57  ;;  %14168 = vst [vmem:[#allocation25_spill] sm:$0xff] %v11971_v37 }
 0x485   :  { %5011 = vmatpush1.bf16.msra.mxu0 %v11910_v47  ;;  %v4335_v47 = vld [vmem:[%s13554_s2 + $0x3a8] sm:$0xff] }
 0x486   :  { %5012 = vmatprep.subr.bf16.mxu0 %v11930_v48  ;;  %v11955_v57 = vcombine.high %v4331_v45, %v4335_v47  ;;  %v4343_v48 = vld [vmem:[%s13554_s2 + $0x3e8] sm:$0xff]  ;;  %v11975_v52 = vcombine.low %v4331_v45, %v4335_v47  ;;  %v4220_v47 = vld [vmem:[%s13554_s2 + $0x10] sm:$0xff]  ;;  %v4225_v45 = vld [vmem:[%s13554_s2 + $0x38] sm:$0xff] }
 0x487   :  { %5052 = vmatpush1.bf16.msra.mxu1 %v11912_v55  ;;  %v4338_v55 = vld [vmem:[%s13554_s2 + $0x3c0] sm:$0xff]  ;;  %v11987_v28 = vcombine.low %v4339_v7, %v4343_v48 }
 0x488   :  { %14167 = vst [vmem:[#allocation26_spill] sm:$0xff] %v11955_v57  ;;  %5053 = vmatprep.subr.bf16.mxu1 %v11944_v50  ;;  %14169 = vst [vmem:[#allocation28_spill] sm:$0xff] %v11975_v52  ;;  %v11977_v36 = vcombine.high %v4338_v55, %v4342_v31  ;;  %v11980_v50 = vcombine.high %v4339_v7, %v4343_v48  ;;  %v11983_v3 = vcombine.low %v4338_v55, %v4342_v31  ;;  %v4221_v55 = vld [vmem:[%s13554_s2 + $0x18] sm:$0xff] }
 0x489   :  { %5013 = vmatpush1.bf16.msra.mxu0 %v11928_v29  ;;  %14173 = vst [vmem:[#allocation32_spill] sm:$0xff] %v11987_v28  ;;  %v12001_v48 = vcombine.high %v4220_v47, %v4224_v5  ;;  %v12006_v31 = vcombine.low %v4220_v47, %v4224_v5  ;;  %v12008_v7 = vcombine.low %v4221_v55, %v4225_v45  ;;  %v38_v47 = vld [vmem:[%s13552_s0 + $0x68] sm:$0xff] }
 0x48a   :  { %5014 = vmatprep.subr.bf16.mxu0 %v11946_v16  ;;  %14170 = vst [vmem:[#allocation27_spill] sm:$0xff] %v11977_v36  ;;  %14171 = vst [vmem:[#allocation30_spill] sm:$0xff] %v11980_v50  ;;  %v4138_v62 = vunpack.c.h.bf16 %v38_v47  ;;  %v4137_v22 = vunpack.c.l.bf16 %v38_v47 }
 0x48b   :  { %5054 = vmatpush1.bf16.msra.mxu1 %v11942_v9  ;;  %14172 = vst [vmem:[#allocation29_spill] sm:$0xff] %v11983_v3  ;;  %14174 = vst [vmem:[#allocation31_spill] sm:$0xff] %v12001_v48 }
 0x48c   :  { %5055 = vmatprep.subr.bf16.mxu1 %v11955_v57 }
 0x48d   :  { %5015 = vmatpush1.bf16.msra.mxu0 %v11971_v37 }
 0x48e   :  { %5016 = vmatprep.subr.bf16.mxu0 %v11977_v36 }
 0x48f   :  { %5056 = vmatpush1.bf16.msra.mxu1 %v11975_v52 }
 0x490   :  { %5057 = vmatprep.subr.bf16.mxu1 %v11980_v50 }
 0x491   :  { %5017 = vmatpush1.bf16.msra.mxu0 %v11983_v3  ;;  %v12010_v3 = vcombine.high %v4221_v55, %v4225_v45 }
 0x492   :  { %5068 = vmatprep.subr.bf16.mxu0 %v12001_v48 }
 0x493   :  { %5058 = vmatpush1.bf16.msra.mxu1 %v11987_v28  ;;  %14175 = vst [vmem:[#allocation34_spill] sm:$0xff] %v12010_v3  ;;  %v36_v28 = vld [vmem:[%s13552_s0 + $0x60] sm:$0xff] }
 0x494   :  { %5109 = vmatprep.subr.bf16.mxu1 %v12010_v3  ;;  %v4135_v50 = vunpack.c.l.bf16 %v36_v28  ;;  %v4136_v36 = vunpack.c.h.bf16 %v36_v28 }
 0x4e7   :  { %v4002_v52 = vpop.f32.mrb[24].mxu0  ;;  %v4043_v37 = vpop.f32.mrb[24].mxu1 }
 0x4e8   :  { %v4139_v57 = vadd.f32 %v4135_v50, %v4002_v52  ;;  %v4004_v5 = vpop.f32.mrb[25].mxu0  ;;  %v4045_v55 = vpop.f32.mrb[25].mxu1  ;;  %v4141_v52 = vadd.f32 %v4137_v22, %v4043_v37 }
 0x4e9   :  { %v4140_v45 = vadd.f32 %v4136_v36, %v4004_v5  ;;  %v4006_v16 = vpop.f32.mrb[26].mxu0  ;;  %v4047_v48 = vpop.f32.mrb[26].mxu1  ;;  %v4142_v28 = vadd.f32 %v4138_v62, %v4045_v55  ;;  %v8335_v55 = vld [vmem:[%s13553_s1 + $0x98] sm:$0xff] }
 0x4ea   :  { %v8877_v9 = vmul.f32 -1.442695, %v4139_v57  ;;  %v4007_v3 = vpop.f32.mrb[27].mxu0  ;;  %v4048_v29 = vpop.f32.mrb[27].mxu1 }
 0x4eb   :  { %v8878_v63 = vmul.f32 -1.442695, %v4140_v45  ;;  %v8879_v4 = vmul.f32 -1.442695, %v4142_v28 }
 0x4ec   :  { %9525 = vpow2.f32 %v8877_v9 }
 0x4ed   :  { %9527 = vpow2.f32 %v8878_v63 }
 0x4ee   :  { %9529 = vpow2.f32 %v8879_v4 }
 0x4ef   :  { %9531 = vtanh.f32 %v4141_v52 }
 0x4f6   :  { %v9526_v50 = vpop.eup %9525 }
 0x4f7   :  { %v9528_v35 = vpop.eup %9527  ;;  %v4157_v41 = vadd.f32 1.0, %v9526_v50 }
 0x4f8   :  { %v4163_v26 = vadd.f32 1.0, %v9528_v35  ;;  %v9530_v36 = vpop.eup %9529 }
 0x4f9   :  { %9533 = vrcp.f32 %v4157_v41  ;;  %v9532_v57 = vpop.eup %9531  ;;  %v4170_v48 = vadd.f32 1.0, %v9530_v36 }
 0x4fa   :  { %9535 = vrcp.f32 %v4163_v26  ;;  %v8334_v26 = vld [vmem:[%s13553_s1 + $0x90] sm:$0xff] }
 0x4fb   :  { %9537 = vrcp.f32 %v4170_v48  ;;  %v4147_v41 = vunpack.c.h.bf16 %v8334_v26  ;;  %v4149_v48 = vunpack.c.h.bf16 %v8335_v55 }
 0x503   :  { %v9534_v3 = vpop.eup %9533 }
 0x504   :  { %v9536_v29 = vpop.eup %9535  ;;  %v4175_v16 = vmul.f32 %v9534_v3, %v9532_v57 }
 0x505   :  { %v4174_v63 = vmul.f32 %v9536_v29, %v11520_v24  ;;  %v9538_v22 = vpop.eup %9537  ;;  %v4146_v24 = vunpack.c.l.bf16 %v8334_v26 }
 0x507   :  { %v12021_v62 = vadd.f32 %v4175_v16, %v4174_v63 }
 0x509   :  { %14176 = vst [vmem:[#allocation33_spill] sm:$0xff] %v12021_v62  ;;  %9539 = vtanh.f32 %v12021_v62 }
 0x513   :  { %v9540_v37 = vpop.eup %9539 }
 0x514   :  { %v4178_v4 = vmul.f32 %v9540_v37, %v9538_v22  ;;  %v4148_v22 = vunpack.c.l.bf16 %v8335_v55 }
 0x516   :  { %v12024_v9 = vpack.c.bf16 %v4178_v4, %v4178_v4 }
 0x518   :  { %8883 = vst [vmem:[%s13555_s3 + $0xc] sm:$0xf] %v12024_v9 }
 0x527   :  { %v4084_v35 = vpop.f32.mrb[28].mxu0  ;;  %v4125_v47 = vpop.f32.mrb[28].mxu1 }
 0x528   :  { %v4150_v5 = vadd.f32 %v4146_v24, %v4084_v35  ;;  %v4086_v45 = vpop.f32.mrb[29].mxu0  ;;  %v4127_v28 = vpop.f32.mrb[29].mxu1  ;;  %v4152_v4 = vadd.f32 %v4148_v22, %v4125_v47 }
 0x529   :  { %v4151_v52 = vadd.f32 %v4147_v41, %v4086_v45  ;;  %v4088_v50 = vpop.f32.mrb[30].mxu0  ;;  %v4129_v36 = vpop.f32.mrb[30].mxu1  ;;  %v4153_v63 = vadd.f32 %v4149_v48, %v4127_v28 }
 0x52a   :  { %v8880_v57 = vmul.f32 -1.442695, %v4150_v5  ;;  %v4089_v3 = vpop.f32.mrb[31].mxu0  ;;  %v4130_v29 = vpop.f32.mrb[31].mxu1 }
 0x52b   :  { %v8881_v16 = vmul.f32 -1.442695, %v4151_v52  ;;  %v8882_v37 = vmul.f32 -1.442695, %v4153_v63  ;;  %v4232_v29 = vld [vmem:[%s13554_s2 + $0x70] sm:$0xff] }
 0x52c   :  { %9541 = vpow2.f32 %v8880_v57  ;;  %v4236_v63 = vld [vmem:[%s13554_s2 + $0x90] sm:$0xff] }
 0x52d   :  { %9543 = vpow2.f32 %v8881_v16  ;;  %v4233_v16 = vld [vmem:[%s13554_s2 + $0x78] sm:$0xff] }
 0x52e   :  { %9545 = vpow2.f32 %v8882_v37 }
 0x52f   :  { %9547 = vtanh.f32 %v4152_v4  ;;  %v4240_v4 = vld [vmem:[%s13554_s2 + $0xb0] sm:$0xff] }
 0x536   :  { %v9542_v26 = vpop.eup %9541 }
 0x537   :  { %v9544_v24 = vpop.eup %9543  ;;  %v4182_v35 = vadd.f32 1.0, %v9542_v26  ;;  %v4237_v26 = vld [vmem:[%s13554_s2 + $0x98] sm:$0xff] }
 0x538   :  { %v4188_v62 = vadd.f32 1.0, %v9544_v24  ;;  %v9546_v41 = vpop.eup %9545  ;;  %v4241_v24 = vld [vmem:[%s13554_s2 + $0xb8] sm:$0xff] }
 0x539   :  { %9549 = vrcp.f32 %v4182_v35  ;;  %v9548_v5 = vpop.eup %9547  ;;  %v4195_v36 = vadd.f32 1.0, %v9546_v41 }
 0x53a   :  { %9551 = vrcp.f32 %v4188_v62  ;;  %v4228_v62 = vld [vmem:[%s13554_s2 + $0x50] sm:$0xff] }
 0x53b   :  { %9553 = vrcp.f32 %v4195_v36  ;;  %v12058_v22 = vcombine.high %v4228_v62, %v4232_v29  ;;  %v12075_v35 = vcombine.low %v4228_v62, %v4232_v29  ;;  %v4245_v36 = vld [vmem:[%s13554_s2 + $0xd8] sm:$0xff]  ;;  %v4252_v29 = vld [vmem:[%s13554_s2 + $0x110] sm:$0xff] }
 0x543   :  { %v9550_v45 = vpop.eup %9549 }
 0x544   :  { %v9552_v50 = vpop.eup %9551  ;;  %v4200_v52 = vmul.f32 %v9550_v45, %v9548_v5  ;;  %v12079_v5 = vcombine.high %v4236_v63, %v4240_v4  ;;  %v12081_v45 = vcombine.high %v4237_v26, %v4241_v24 }
 0x545   :  { %v4199_v57 = vmul.f32 %v9552_v50, %v11536_v8  ;;  %v9554_v47 = vpop.eup %9553  ;;  %v4229_v8 = vld [vmem:[%s13554_s2 + $0x58] sm:$0xff]  ;;  %v4244_v50 = vld [vmem:[%s13554_s2 + $0xd0] sm:$0xff] }
 0x546   :  { %v12060_v37 = vcombine.high %v4229_v8, %v4233_v16  ;;  %v12077_v41 = vcombine.low %v4229_v8, %v4233_v16  ;;  %14177 = vst [vmem:[#allocation36_spill] sm:$0xff] %v12081_v45  ;;  %v4256_v8 = vld [vmem:[%s13554_s2 + $0x130] sm:$0xff]  ;;  %v4253_v16 = vld [vmem:[%s13554_s2 + $0x118] sm:$0xff] }
 0x547   :  { %v12037_v28 = vadd.f32 %v4200_v52, %v4199_v57  ;;  %v4248_v52 = vld [vmem:[%s13554_s2 + $0xf0] sm:$0xff]  ;;  %v4249_v57 = vld [vmem:[%s13554_s2 + $0xf8] sm:$0xff] }
 0x548   :  { %v12107_v62 = vcombine.high %v4245_v36, %v4249_v57 }
 0x549   :  { %9555 = vtanh.f32 %v12037_v28 }
 0x54a   :  { %14181 = vst [vmem:[#allocation40_spill] sm:$0xff] %v12107_v62 }
 0x553   :  { %v9556_v55 = vpop.eup %9555 }
 0x554   :  { %v4203_v3 = vmul.f32 %v9556_v55, %v9554_v47  ;;  %v12099_v47 = vcombine.low %v4236_v63, %v4240_v4  ;;  %v12101_v55 = vcombine.low %v4237_v26, %v4241_v24  ;;  %v12123_v63 = vcombine.low %v4244_v50, %v4248_v52 }
 0x555   :  { %v12125_v4 = vcombine.low %v4245_v36, %v4249_v57  ;;  %v12129_v26 = vcombine.high %v4252_v29, %v4256_v8  ;;  %v12147_v36 = vcombine.low %v4252_v29, %v4256_v8  ;;  %v4269_v29 = vld [vmem:[%s13554_s2 + $0x198] sm:$0xff] }
 0x556   :  { %v4211_v48 = vpack.c.bf16 %v4203_v3, %v4203_v3  ;;  %14178 = vst [vmem:[#allocation35_spill] sm:$0xff] %v12099_v47  ;;  %14179 = vst [vmem:[#allocation38_spill] sm:$0xff] %v12101_v55  ;;  %v12105_v3 = vcombine.high %v4244_v50, %v4248_v52  ;;  %v4261_v50 = vld [vmem:[%s13554_s2 + $0x158] sm:$0xff] }
 0x557   :  { %14182 = vst [vmem:[#allocation39_spill] sm:$0xff] %v12123_v63  ;;  %14183 = vst [vmem:[#allocation42_spill] sm:$0xff] %v12125_v4  ;;  %v4265_v52 = vld [vmem:[%s13554_s2 + $0x178] sm:$0xff] }
 0x558   :  { %8884 = vst [vmem:[%s13556_s4 + $0x10] sm:$0xf] %v4211_v48  ;;  %5018 = vmatprep.mubr.bf16.mxu0 %v4211_v48  ;;  %5059 = vmatprep.mubr.bf16.mxu1 %v4211_v48  ;;  %14180 = vst [vmem:[#allocation37_spill] sm:$0xff] %v12105_v3  ;;  %v4273_v8 = vld [vmem:[%s13554_s2 + $0x1b8] sm:$0xff] }
 0x559   :  { %5019 = vmatmul.mubr.bf16.vlgmr.msra.gmra.mrb[32].mxu0 %v12024_v9  ;;  %5060 = vmatmul.mubr.bf16.vlgmr.msra.gmra.mrb[32].mxu1 %v12024_v9  ;;  %14184 = vst [vmem:[#allocation41_spill] sm:$0xff] %v12129_v26  ;;  %14186 = vst [vmem:[#allocation43_spill] sm:$0xff] %v12147_v36 }
 0x55a   :  { %5069 = vmatpush1.bf16.msra.mxu0 %v12006_v31  ;;  %5110 = vmatpush1.bf16.msra.mxu1 %v12008_v7 }
 0x55b   :  { %5100 = vmatprep.mubr.bf16.mxu0 %v4211_v48  ;;  %5141 = vmatprep.mubr.bf16.mxu1 %v4211_v48  ;;  %v4257_v48 = vld [vmem:[%s13554_s2 + $0x138] sm:$0xff] }
 0x55c   :  { %5070 = vmatprep.subr.bf16.mxu0 %v12058_v22  ;;  %5111 = vmatprep.subr.bf16.mxu1 %v12060_v37  ;;  %v12131_v24 = vcombine.high %v4253_v16, %v4257_v48  ;;  %v12149_v57 = vcombine.low %v4253_v16, %v4257_v48  ;;  %v12173_v48 = vcombine.low %v4261_v50, %v4265_v52 }
 0x55e   :  { %5071 = vmatpush1.bf16.msra.mxu0 %v12075_v35  ;;  %5112 = vmatpush1.bf16.msra.mxu1 %v12077_v41  ;;  %14185 = vst [vmem:[#allocation44_spill] sm:$0xff] %v12131_v24  ;;  %14187 = vst [vmem:[#allocation46_spill] sm:$0xff] %v12149_v57 }
 0x55f   :  { %5072 = vmatprep.subr.bf16.mxu0 %v12079_v5  ;;  %5113 = vmatprep.subr.bf16.mxu1 %v12081_v45  ;;  %v4260_v45 = vld [vmem:[%s13554_s2 + $0x150] sm:$0xff]  ;;  %14191 = vst [vmem:[#allocation50_spill] sm:$0xff] %v12173_v48 }
 0x562   :  { %5073 = vmatpush1.bf16.msra.mxu0 %v12099_v47  ;;  %5114 = vmatpush1.bf16.msra.mxu1 %v12101_v55  ;;  %v4264_v55 = vld [vmem:[%s13554_s2 + $0x170] sm:$0xff] }
 0x563   :  { %5074 = vmatprep.subr.bf16.mxu0 %v12105_v3  ;;  %5115 = vmatprep.subr.bf16.mxu1 %v12107_v62  ;;  %v12153_v62 = vcombine.high %v4260_v45, %v4264_v55  ;;  %v12155_v3 = vcombine.high %v4261_v50, %v4265_v52  ;;  %v4268_v47 = vld [vmem:[%s13554_s2 + $0x190] sm:$0xff]  ;;  %v12171_v16 = vcombine.low %v4260_v45, %v4264_v55  ;;  %v4277_v45 = vld [vmem:[%s13554_s2 + $0x1d8] sm:$0xff] }
 0x564   :  { %v4281_v55 = vld [vmem:[%s13554_s2 + $0x1f8] sm:$0xff]  ;;  %v12197_v52 = vcombine.low %v4269_v29, %v4273_v8 }
 0x565   :  { %14188 = vst [vmem:[#allocation45_spill] sm:$0xff] %v12153_v62  ;;  %14189 = vst [vmem:[#allocation48_spill] sm:$0xff] %v12155_v3 }
 0x566   :  { %5075 = vmatpush1.bf16.msra.mxu0 %v12123_v63  ;;  %5116 = vmatpush1.bf16.msra.mxu1 %v12125_v4  ;;  %v4272_v4 = vld [vmem:[%s13554_s2 + $0x1b0] sm:$0xff]  ;;  %14190 = vst [vmem:[#allocation47_spill] sm:$0xff] %v12171_v16  ;;  %14195 = vst [vmem:[#allocation54_spill] sm:$0xff] %v12197_v52 }
 0x567   :  { %5076 = vmatprep.subr.bf16.mxu0 %v12129_v26  ;;  %5117 = vmatprep.subr.bf16.mxu1 %v12131_v24  ;;  %v12177_v24 = vcombine.high %v4268_v47, %v4272_v4  ;;  %v12179_v26 = vcombine.high %v4269_v29, %v4273_v8  ;;  %v4276_v63 = vld [vmem:[%s13554_s2 + $0x1d0] sm:$0xff]  ;;  %v12195_v50 = vcombine.low %v4268_v47, %v4272_v4  ;;  %v4285_v47 = vld [vmem:[%s13554_s2 + $0x218] sm:$0xff] }
 0x568   :  { %v4289_v4 = vld [vmem:[%s13554_s2 + $0x238] sm:$0xff]  ;;  %v12221_v8 = vcombine.low %v4277_v45, %v4281_v55 }
 0x569   :  { %14192 = vst [vmem:[#allocation49_spill] sm:$0xff] %v12177_v24  ;;  %14193 = vst [vmem:[#allocation52_spill] sm:$0xff] %v12179_v26 }
 0x56a   :  { %5077 = vmatpush1.bf16.msra.mxu0 %v12147_v36  ;;  %5118 = vmatpush1.bf16.msra.mxu1 %v12149_v57  ;;  %v4280_v57 = vld [vmem:[%s13554_s2 + $0x1f0] sm:$0xff]  ;;  %14194 = vst [vmem:[#allocation51_spill] sm:$0xff] %v12195_v50  ;;  %14199 = vst [vmem:[#allocation58_spill] sm:$0xff] %v12221_v8 }
 0x56b   :  { %5078 = vmatprep.subr.bf16.mxu0 %v12153_v62  ;;  %5119 = vmatprep.subr.bf16.mxu1 %v12155_v3  ;;  %v12201_v3 = vcombine.high %v4276_v63, %v4280_v57  ;;  %v12203_v62 = vcombine.high %v4277_v45, %v4281_v55  ;;  %v4284_v36 = vld [vmem:[%s13554_s2 + $0x210] sm:$0xff]  ;;  %v12219_v29 = vcombine.low %v4276_v63, %v4280_v57  ;;  %v4293_v63 = vld [vmem:[%s13554_s2 + $0x258] sm:$0xff] }
 0x56c   :  { %v4297_v57 = vld [vmem:[%s13554_s2 + $0x278] sm:$0xff]  ;;  %v12245_v55 = vcombine.low %v4285_v47, %v4289_v4 }
 0x56d   :  { %14196 = vst [vmem:[#allocation53_spill] sm:$0xff] %v12201_v3  ;;  %14197 = vst [vmem:[#allocation56_spill] sm:$0xff] %v12203_v62 }
 0x56e   :  { %5079 = vmatpush1.bf16.msra.mxu0 %v12171_v16  ;;  %5120 = vmatpush1.bf16.msra.mxu1 %v12173_v48  ;;  %v4288_v48 = vld [vmem:[%s13554_s2 + $0x230] sm:$0xff]  ;;  %14198 = vst [vmem:[#allocation55_spill] sm:$0xff] %v12219_v29  ;;  %14203 = vst [vmem:[#allocation62_spill] sm:$0xff] %v12245_v55 }
 0x56f   :  { %5080 = vmatprep.subr.bf16.mxu0 %v12177_v24  ;;  %5121 = vmatprep.subr.bf16.mxu1 %v12179_v26  ;;  %v12225_v26 = vcombine.high %v4284_v36, %v4288_v48  ;;  %v12227_v24 = vcombine.high %v4285_v47, %v4289_v4  ;;  %v4292_v16 = vld [vmem:[%s13554_s2 + $0x250] sm:$0xff]  ;;  %v12243_v45 = vcombine.low %v4284_v36, %v4288_v48  ;;  %v4301_v36 = vld [vmem:[%s13554_s2 + $0x298] sm:$0xff] }
 0x570   :  { %v4305_v48 = vld [vmem:[%s13554_s2 + $0x2b8] sm:$0xff]  ;;  %v12269_v4 = vcombine.low %v4293_v63, %v4297_v57 }
 0x571   :  { %14200 = vst [vmem:[#allocation57_spill] sm:$0xff] %v12225_v26  ;;  %14201 = vst [vmem:[#allocation60_spill] sm:$0xff] %v12227_v24 }
 0x572   :  { %5081 = vmatpush1.bf16.msra.mxu0 %v12195_v50  ;;  %5122 = vmatpush1.bf16.msra.mxu1 %v12197_v52  ;;  %v4296_v52 = vld [vmem:[%s13554_s2 + $0x270] sm:$0xff]  ;;  %14202 = vst [vmem:[#allocation59_spill] sm:$0xff] %v12243_v45  ;;  %14207 = vst [vmem:[#allocation66_spill] sm:$0xff] %v12269_v4 }
 0x573   :  { %5082 = vmatprep.subr.bf16.mxu0 %v12201_v3  ;;  %5123 = vmatprep.subr.bf16.mxu1 %v12203_v62  ;;  %v12249_v62 = vcombine.high %v4292_v16, %v4296_v52  ;;  %v12251_v3 = vcombine.high %v4293_v63, %v4297_v57  ;;  %v4300_v50 = vld [vmem:[%s13554_s2 + $0x290] sm:$0xff]  ;;  %v12267_v47 = vcombine.low %v4292_v16, %v4296_v52  ;;  %v4309_v16 = vld [vmem:[%s13554_s2 + $0x2d8] sm:$0xff] }
 0x574   :  { %v4313_v52 = vld [vmem:[%s13554_s2 + $0x2f8] sm:$0xff]  ;;  %v12293_v57 = vcombine.low %v4301_v36, %v4305_v48 }
 0x575   :  { %14204 = vst [vmem:[#allocation61_spill] sm:$0xff] %v12249_v62  ;;  %14205 = vst [vmem:[#allocation64_spill] sm:$0xff] %v12251_v3 }
 0x576   :  { %5083 = vmatpush1.bf16.msra.mxu0 %v12219_v29  ;;  %5124 = vmatpush1.bf16.msra.mxu1 %v12221_v8  ;;  %v4304_v8 = vld [vmem:[%s13554_s2 + $0x2b0] sm:$0xff]  ;;  %14206 = vst [vmem:[#allocation63_spill] sm:$0xff] %v12267_v47  ;;  %14211 = vst [vmem:[#allocation70_spill] sm:$0xff] %v12293_v57 }
 0x577   :  { %5084 = vmatprep.subr.bf16.mxu0 %v12225_v26  ;;  %5125 = vmatprep.subr.bf16.mxu1 %v12227_v24  ;;  %v12273_v24 = vcombine.high %v4300_v50, %v4304_v8  ;;  %v12275_v26 = vcombine.high %v4301_v36, %v4305_v48  ;;  %v4308_v29 = vld [vmem:[%s13554_s2 + $0x2d0] sm:$0xff]  ;;  %v12291_v63 = vcombine.low %v4300_v50, %v4304_v8  ;;  %v4317_v50 = vld [vmem:[%s13554_s2 + $0x318] sm:$0xff] }
 0x578   :  { %v4321_v8 = vld [vmem:[%s13554_s2 + $0x338] sm:$0xff]  ;;  %v12317_v48 = vcombine.low %v4309_v16, %v4313_v52 }
 0x579   :  { %14208 = vst [vmem:[#allocation65_spill] sm:$0xff] %v12273_v24  ;;  %14209 = vst [vmem:[#allocation68_spill] sm:$0xff] %v12275_v26 }
 0x57a   :  { %5085 = vmatpush1.bf16.msra.mxu0 %v12243_v45  ;;  %5126 = vmatpush1.bf16.msra.mxu1 %v12245_v55  ;;  %v4312_v55 = vld [vmem:[%s13554_s2 + $0x2f0] sm:$0xff]  ;;  %14210 = vst [vmem:[#allocation67_spill] sm:$0xff] %v12291_v63  ;;  %14215 = vst [vmem:[#allocation74_spill] sm:$0xff] %v12317_v48 }
 0x57b   :  { %5086 = vmatprep.subr.bf16.mxu0 %v12249_v62  ;;  %5127 = vmatprep.subr.bf16.mxu1 %v12251_v3  ;;  %v12297_v3 = vcombine.high %v4308_v29, %v4312_v55  ;;  %v12299_v62 = vcombine.high %v4309_v16, %v4313_v52  ;;  %v4316_v45 = vld [vmem:[%s13554_s2 + $0x310] sm:$0xff]  ;;  %v12315_v36 = vcombine.low %v4308_v29, %v4312_v55  ;;  %v4325_v29 = vld [vmem:[%s13554_s2 + $0x358] sm:$0xff] }
 0x57c   :  { %v4329_v55 = vld [vmem:[%s13554_s2 + $0x378] sm:$0xff]  ;;  %v12341_v52 = vcombine.low %v4317_v50, %v4321_v8 }
 0x57d   :  { %14212 = vst [vmem:[#allocation69_spill] sm:$0xff] %v12297_v3  ;;  %14213 = vst [vmem:[#allocation72_spill] sm:$0xff] %v12299_v62 }
 0x57e   :  { %5087 = vmatpush1.bf16.msra.mxu0 %v12267_v47  ;;  %5128 = vmatpush1.bf16.msra.mxu1 %v12269_v4  ;;  %v4320_v4 = vld [vmem:[%s13554_s2 + $0x330] sm:$0xff]  ;;  %14214 = vst [vmem:[#allocation71_spill] sm:$0xff] %v12315_v36  ;;  %14219 = vst [vmem:[#allocation77_spill] sm:$0xff] %v12341_v52 }
 0x57f   :  { %5088 = vmatprep.subr.bf16.mxu0 %v12273_v24  ;;  %5129 = vmatprep.subr.bf16.mxu1 %v12275_v26  ;;  %v12321_v26 = vcombine.high %v4316_v45, %v4320_v4  ;;  %v12323_v24 = vcombine.high %v4317_v50, %v4321_v8  ;;  %v4324_v47 = vld [vmem:[%s13554_s2 + $0x350] sm:$0xff]  ;;  %v12339_v16 = vcombine.low %v4316_v45, %v4320_v4  ;;  %v4333_v45 = vld [vmem:[%s13554_s2 + $0x398] sm:$0xff] }
 0x580   :  { %v4337_v4 = vld [vmem:[%s13554_s2 + $0x3b8] sm:$0xff]  ;;  %v12365_v8 = vcombine.low %v4325_v29, %v4329_v55 }
 0x581   :  { %14216 = vst [vmem:[#allocation73_spill] sm:$0xff] %v12321_v26  ;;  %14217 = vst [vmem:[#allocation75_spill] sm:$0xff] %v12323_v24 }
 0x582   :  { %5089 = vmatpush1.bf16.msra.mxu0 %v12291_v63  ;;  %5130 = vmatpush1.bf16.msra.mxu1 %v12293_v57  ;;  %v4328_v57 = vld [vmem:[%s13554_s2 + $0x370] sm:$0xff]  ;;  %14218 = vst [vmem:[#allocation76_spill] sm:$0xff] %v12339_v16 }
 0x583   :  { %5090 = vmatprep.subr.bf16.mxu0 %v12297_v3  ;;  %5131 = vmatprep.subr.bf16.mxu1 %v12299_v62  ;;  %v12345_v62 = vcombine.high %v4324_v47, %v4328_v57  ;;  %v12347_v3 = vcombine.high %v4325_v29, %v4329_v55  ;;  %v4332_v63 = vld [vmem:[%s13554_s2 + $0x390] sm:$0xff]  ;;  %v12363_v50 = vcombine.low %v4324_v47, %v4328_v57  ;;  %v4341_v47 = vld [vmem:[%s13554_s2 + $0x3d8] sm:$0xff] }
 0x584   :  { %v4345_v57 = vld [vmem:[%s13554_s2 + $0x3f8] sm:$0xff]  ;;  %v12389_v55 = vcombine.low %v4333_v45, %v4337_v4 }
 0x585   :  { %14220 = vst [vmem:[#allocation78_spill] sm:$0xff] %v12345_v62  ;;  %14221 = vst [vmem:[#allocation79_spill] sm:$0xff] %v12347_v3 }
 0x586   :  { %5091 = vmatpush1.bf16.msra.mxu0 %v12315_v36  ;;  %5132 = vmatpush1.bf16.msra.mxu1 %v12317_v48  ;;  %v4336_v48 = vld [vmem:[%s13554_s2 + $0x3b0] sm:$0xff]  ;;  %14222 = vst [vmem:[#allocation80_spill] sm:$0xff] %v12363_v50 }
 0x587   :  { %5092 = vmatprep.subr.bf16.mxu0 %v12321_v26  ;;  %5133 = vmatprep.subr.bf16.mxu1 %v12323_v24  ;;  %v12369_v24 = vcombine.high %v4332_v63, %v4336_v48  ;;  %v12371_v26 = vcombine.high %v4333_v45, %v4337_v4  ;;  %v4340_v36 = vld [vmem:[%s13554_s2 + $0x3d0] sm:$0xff]  ;;  %v12387_v29 = vcombine.low %v4332_v63, %v4336_v48 }
 0x58a   :  { %5093 = vmatpush1.bf16.msra.mxu0 %v12339_v16  ;;  %5134 = vmatpush1.bf16.msra.mxu1 %v12341_v52  ;;  %v4344_v52 = vld [vmem:[%s13554_s2 + $0x3f0] sm:$0xff] }
 0x58b   :  { %5094 = vmatprep.subr.bf16.mxu0 %v12345_v62  ;;  %5135 = vmatprep.subr.bf16.mxu1 %v12347_v3  ;;  %v12393_v3 = vcombine.high %v4340_v36, %v4344_v52  ;;  %v12395_v62 = vcombine.high %v4341_v47, %v4345_v57  ;;  %v12399_v16 = vcombine.low %v4340_v36, %v4344_v52 }
 0x58e   :  { %5095 = vmatpush1.bf16.msra.mxu0 %v12363_v50  ;;  %5136 = vmatpush1.bf16.msra.mxu1 %v12365_v8  ;;  %v12401_v50 = vcombine.low %v4341_v47, %v4345_v57 }
 0x58f   :  { %5096 = vmatprep.subr.bf16.mxu0 %v12369_v24  ;;  %5137 = vmatprep.subr.bf16.mxu1 %v12371_v26 }
 0x592   :  { %5097 = vmatpush1.bf16.msra.mxu0 %v12387_v29  ;;  %5138 = vmatpush1.bf16.msra.mxu1 %v12389_v55 }
 0x593   :  { %5098 = vmatprep.subr.bf16.mxu0 %v12393_v3  ;;  %5139 = vmatprep.subr.bf16.mxu1 %v12395_v62 }
 0x596   :  { %5099 = vmatpush1.bf16.msra.mxu0 %v12399_v16  ;;  %5140 = vmatpush1.bf16.msra.mxu1 %v12401_v50 }
 0x597   :  { %6004 = vmatprep.subr.bf16.mxu0 %v11619_v42  ;;  %6045 = vmatprep.subr.bf16.mxu1 %v11632_v40  ;;  %v14224_v42 = vld [vmem:[#allocation7_spill] sm:$0xff]  ;;  %v14226_v40 = vld [vmem:[#allocation9_spill] sm:$0xff] }
 0x599   :  { %5101 = vmatmul.mubr.bf16.vlgmr.msra.gmra.mrb[36].mxu0 %v12024_v9  ;;  %5142 = vmatmul.mubr.bf16.vlgmr.msra.gmra.mrb[36].mxu1 %v12024_v9 }
 0x59a   :  { %6005 = vmatpush1.bf16.msra.mxu0 %v11617_v58  ;;  %6046 = vmatpush1.bf16.msra.mxu1 %v11630_v32  ;;  %v14223_v58 = vld [vmem:[#allocation6_spill] sm:$0xff]  ;;  %v14225_v32 = vld [vmem:[#allocation8_spill] sm:$0xff] }
 0x59b   :  { %6006 = vmatprep.subr.bf16.mxu0 %v11634_v53  ;;  %6047 = vmatprep.subr.bf16.mxu1 %v11646_v20  ;;  %v14227_v53 = vld [vmem:[#allocation11_spill] sm:$0xff]  ;;  %v14228_v20 = vld [vmem:[#allocation10_spill] sm:$0xff] }
 0x59e   :  { %6007 = vmatpush1.bf16.msra.mxu0 %v11659_v14  ;;  %6048 = vmatpush1.bf16.msra.mxu1 %v11663_v0  ;;  %v14229_v14 = vld [vmem:[#allocation12_spill] sm:$0xff]  ;;  %v14230_v0 = vld [vmem:[#allocation13_spill] sm:$0xff] }
 0x59f   :  { %6008 = vmatprep.subr.bf16.mxu0 %v11665_v30  ;;  %6049 = vmatprep.subr.bf16.mxu1 %v11668_v17  ;;  %v14231_v30 = vld [vmem:[#allocation15_spill] sm:$0xff]  ;;  %v14232_v17 = vld [vmem:[#allocation14_spill] sm:$0xff] }
 0x5a2   :  { %6009 = vmatpush1.bf16.msra.mxu0 %v11683_v12  ;;  %6050 = vmatpush1.bf16.msra.mxu1 %v11687_v18  ;;  %v14233_v12 = vld [vmem:[#allocation16_spill] sm:$0xff]  ;;  %v14234_v18 = vld [vmem:[#allocation17_spill] sm:$0xff] }
 0x5a3   :  { %6010 = vmatprep.subr.bf16.mxu0 %v11689_v23  ;;  %6051 = vmatprep.subr.bf16.mxu1 %v11692_v25  ;;  %v14235_v23 = vld [vmem:[#allocation19_spill] sm:$0xff]  ;;  %v14236_v25 = vld [vmem:[#allocation18_spill] sm:$0xff] }
 0x5a6   :  { %6011 = vmatpush1.bf16.msra.mxu0 %v11695_v33  ;;  %6052 = vmatpush1.bf16.msra.mxu1 %v11699_v39  ;;  %v14237_v33 = vld [vmem:[#allocation23_spill] sm:$0xff]  ;;  %v14238_v39 = vld [vmem:[#allocation21_spill] sm:$0xff] }
 0x5a7   :  { %6012 = vmatprep.subr.bf16.mxu0 %v11713_v56  ;;  %6053 = vmatprep.subr.bf16.mxu1 %v11722_v15  ;;  %v14239_v56 = vld [vmem:[#allocation22_spill] sm:$0xff] }
 0x5a8   :  { %v14242_v15 = vld [vmem:[#allocation26_spill] sm:$0xff] }
 0x5aa   :  { %6013 = vmatpush1.bf16.msra.mxu0 %v11718_v1  ;;  %6054 = vmatpush1.bf16.msra.mxu1 %v11720_v11  ;;  %v14240_v1 = vld [vmem:[#allocation20_spill] sm:$0xff] }
 0x5ab   :  { %6014 = vmatprep.subr.bf16.mxu0 %v11737_v6  ;;  %6055 = vmatprep.subr.bf16.mxu1 %v11746_v51  ;;  %v14241_v11 = vld [vmem:[#allocation24_spill] sm:$0xff]  ;;  %v14243_v6 = vld [vmem:[#allocation25_spill] sm:$0xff]  ;;  %v14246_v51 = vld [vmem:[#allocation30_spill] sm:$0xff] }
 0x5ae   :  { %6015 = vmatpush1.bf16.msra.mxu0 %v11742_v38  ;;  %6056 = vmatpush1.bf16.msra.mxu1 %v11744_v46  ;;  %v14244_v38 = vld [vmem:[#allocation28_spill] sm:$0xff]  ;;  %v14245_v46 = vld [vmem:[#allocation27_spill] sm:$0xff] }
 0x5af   :  { %6016 = vmatprep.subr.bf16.mxu0 %v11761_v43  ;;  %6057 = vmatprep.subr.bf16.mxu1 %v11770_v27  ;;  %v14247_v43 = vld [vmem:[#allocation29_spill] sm:$0xff]  ;;  %v14250_v27 = vld [vmem:[#allocation34_spill] sm:$0xff] }
 0x5b2   :  { %6017 = vmatpush1.bf16.msra.mxu0 %v11766_v44  ;;  %6058 = vmatpush1.bf16.msra.mxu1 %v11768_v19  ;;  %v14248_v44 = vld [vmem:[#allocation32_spill] sm:$0xff]  ;;  %v14249_v19 = vld [vmem:[#allocation31_spill] sm:$0xff] }
 0x5b3   :  { %6018 = vmatprep.subr.bf16.mxu0 %v11785_v34  ;;  %6059 = vmatprep.subr.bf16.mxu1 %v11794_v61  ;;  %v40_v34 = vld [vmem:[%s13552_s0 + $0x80] sm:$0xff] }
 0x5b6   :  { %6019 = vmatpush1.bf16.msra.mxu0 %v11790_v54  ;;  %6060 = vmatpush1.bf16.msra.mxu1 %v11792_v13  ;;  %v5153_v54 = vunpack.c.l.bf16 %v40_v34  ;;  %v5154_v13 = vunpack.c.h.bf16 %v40_v34 }
 0x5b7   :  { %6020 = vmatprep.subr.bf16.mxu0 %v11809_v2  ;;  %6061 = vmatprep.subr.bf16.mxu1 %v11818_v21 }
 0x5ba   :  { %6021 = vmatpush1.bf16.msra.mxu0 %v11814_v60  ;;  %6062 = vmatpush1.bf16.msra.mxu1 %v11816_v10  ;;  %v42_v10 = vld [vmem:[%s13552_s0 + $0x88] sm:$0xff] }
 0x5bb   :  { %6022 = vmatprep.subr.bf16.mxu0 %v11833_v59  ;;  %6063 = vmatprep.subr.bf16.mxu1 %v11842_v49  ;;  %v5156_v4 = vunpack.c.h.bf16 %v42_v10  ;;  %v5155_v57 = vunpack.c.l.bf16 %v42_v10 }
 0x5be   :  { %6023 = vmatpush1.bf16.msra.mxu0 %v14223_v58  ;;  %6064 = vmatpush1.bf16.msra.mxu1 %v14224_v42 }
 0x5bf   :  { %6024 = vmatprep.subr.bf16.mxu0 %v14225_v32  ;;  %6065 = vmatprep.subr.bf16.mxu1 %v14226_v40 }
 0x5c2   :  { %6025 = vmatpush1.bf16.msra.mxu0 %v14227_v53  ;;  %6066 = vmatpush1.bf16.msra.mxu1 %v14228_v20 }
 0x5c3   :  { %6026 = vmatprep.subr.bf16.mxu0 %v14229_v14  ;;  %6067 = vmatprep.subr.bf16.mxu1 %v14230_v0 }
 0x5c6   :  { %6027 = vmatpush1.bf16.msra.mxu0 %v14231_v30  ;;  %6068 = vmatpush1.bf16.msra.mxu1 %v14232_v17 }
 0x5c7   :  { %6028 = vmatprep.subr.bf16.mxu0 %v14233_v12  ;;  %6069 = vmatprep.subr.bf16.mxu1 %v14234_v18 }
 0x5ca   :  { %6029 = vmatpush1.bf16.msra.mxu0 %v14235_v23  ;;  %6070 = vmatpush1.bf16.msra.mxu1 %v14236_v25  ;;  %v14251_v23 = vld [vmem:[#allocation33_spill] sm:$0xff] }
 0x5cb   :  { %6030 = vmatprep.subr.bf16.mxu0 %v14237_v33  ;;  %6071 = vmatprep.subr.bf16.mxu1 %v14238_v39 }
 0x5ce   :  { %6031 = vmatpush1.bf16.msra.mxu0 %v14239_v56  ;;  %6072 = vmatpush1.bf16.msra.mxu1 %v14240_v1 }
 0x5cf   :  { %6032 = vmatprep.subr.bf16.mxu0 %v14241_v11  ;;  %6073 = vmatprep.subr.bf16.mxu1 %v14242_v15  ;;  %v8332_v15 = vld [vmem:[%s13553_s1 + $0x70] sm:$0xff] }
 0x5d2   :  { %6033 = vmatpush1.bf16.msra.mxu0 %v14243_v6  ;;  %6074 = vmatpush1.bf16.msra.mxu1 %v14244_v38  ;;  %v5164_v6 = vunpack.c.l.bf16 %v8332_v15  ;;  %v5165_v38 = vunpack.c.h.bf16 %v8332_v15  ;;  %v14268_v15 = vld [vmem:[#allocation52_spill] sm:$0xff] }
 0x5d3   :  { %6034 = vmatprep.subr.bf16.mxu0 %v14245_v46  ;;  %6075 = vmatprep.subr.bf16.mxu1 %v14246_v51 }
 0x5d6   :  { %6035 = vmatpush1.bf16.msra.mxu0 %v14247_v43  ;;  %6076 = vmatpush1.bf16.msra.mxu1 %v14248_v44  ;;  %v8333_v44 = vld [vmem:[%s13553_s1 + $0x78] sm:$0xff] }
 0x5d7   :  { %6086 = vmatprep.subr.bf16.mxu0 %v14249_v19  ;;  %6127 = vmatprep.subr.bf16.mxu1 %v14250_v27 }
 0x62c   :  { %v5020_v61 = vpop.f32.mrb[32].mxu0  ;;  %v5061_v2 = vpop.f32.mrb[32].mxu1 }
 0x62d   :  { %v5157_v60 = vadd.f32 %v5153_v54, %v5020_v61  ;;  %v5022_v21 = vpop.f32.mrb[33].mxu0  ;;  %v5063_v59 = vpop.f32.mrb[33].mxu1  ;;  %v5159_v42 = vadd.f32 %v5155_v57, %v5061_v2 }
 0x62e   :  { %v5158_v49 = vadd.f32 %v5154_v13, %v5022_v21  ;;  %v5024_v9 = vpop.f32.mrb[34].mxu0  ;;  %v5065_v63 = vpop.f32.mrb[34].mxu1  ;;  %v5160_v47 = vadd.f32 %v5156_v4, %v5063_v59  ;;  %v5167_v21 = vunpack.c.h.bf16 %v8333_v44 }
 0x62f   :  { %v9013_v36 = vmul.f32 -1.442695, %v5157_v60  ;;  %v5025_v48 = vpop.f32.mrb[35].mxu0  ;;  %v5066_v52 = vpop.f32.mrb[35].mxu1 }
 0x630   :  { %v9014_v45 = vmul.f32 -1.442695, %v5158_v49  ;;  %v9015_v58 = vmul.f32 -1.442695, %v5160_v47  ;;  %v5166_v49 = vunpack.c.l.bf16 %v8333_v44  ;;  %v14274_v44 = vld [vmem:[#allocation58_spill] sm:$0xff] }
 0x631   :  { %9557 = vpow2.f32 %v9013_v36 }
 0x632   :  { %9559 = vpow2.f32 %v9014_v45 }
 0x633   :  { %9561 = vpow2.f32 %v9015_v58 }
 0x634   :  { %9563 = vtanh.f32 %v5159_v42 }
 0x63b   :  { %v9558_v32 = vpop.eup %9557 }
 0x63c   :  { %v9560_v40 = vpop.eup %9559  ;;  %v5175_v53 = vadd.f32 1.0, %v9558_v32 }
 0x63d   :  { %v5181_v20 = vadd.f32 1.0, %v9560_v40  ;;  %v9562_v14 = vpop.eup %9561 }
 0x63e   :  { %9565 = vrcp.f32 %v5175_v53  ;;  %v9564_v0 = vpop.eup %9563  ;;  %v5188_v18 = vadd.f32 1.0, %v9562_v14 }
 0x63f   :  { %9567 = vrcp.f32 %v5181_v20 }
 0x640   :  { %9569 = vrcp.f32 %v5188_v18  ;;  %v14257_v18 = vld [vmem:[#allocation39_spill] sm:$0xff] }
 0x648   :  { %v9566_v30 = vpop.eup %9565 }
 0x649   :  { %v9568_v17 = vpop.eup %9567  ;;  %v5193_v12 = vmul.f32 %v9566_v30, %v9564_v0 }
 0x64a   :  { %v5192_v25 = vmul.f32 %v9568_v17, %v14251_v23  ;;  %v9570_v39 = vpop.eup %9569  ;;  %v14253_v17 = vld [vmem:[#allocation35_spill] sm:$0xff]  ;;  %v14263_v23 = vld [vmem:[#allocation45_spill] sm:$0xff] }
 0x64c   :  { %v12482_v33 = vadd.f32 %v5193_v12, %v5192_v25  ;;  %v14254_v12 = vld [vmem:[#allocation38_spill] sm:$0xff]  ;;  %v14264_v25 = vld [vmem:[#allocation48_spill] sm:$0xff] }
 0x64e   :  { %9571 = vtanh.f32 %v12482_v33 }
 0x658   :  { %v9572_v56 = vpop.eup %9571 }
 0x659   :  { %v5196_v1 = vmul.f32 %v9572_v56, %v9570_v39  ;;  %v14265_v39 = vld [vmem:[#allocation47_spill] sm:$0xff]  ;;  %v14266_v56 = vld [vmem:[#allocation50_spill] sm:$0xff] }
 0x65b   :  { %v12485_v11 = vpack.c.bf16 %v5196_v1, %v5196_v1  ;;  %v14267_v1 = vld [vmem:[#allocation49_spill] sm:$0xff] }
 0x65d   :  { %9019 = vst [vmem:[%s13555_s3 + $0x10] sm:$0xf] %v12485_v11 }
 0x66c   :  { %v5102_v46 = vpop.f32.mrb[36].mxu0  ;;  %v5143_v51 = vpop.f32.mrb[36].mxu1 }
 0x66d   :  { %v5168_v43 = vadd.f32 %v5164_v6, %v5102_v46  ;;  %v5104_v19 = vpop.f32.mrb[37].mxu0  ;;  %v5145_v27 = vpop.f32.mrb[37].mxu1  ;;  %v5170_v63 = vadd.f32 %v5166_v49, %v5143_v51  ;;  %v14269_v6 = vld [vmem:[#allocation51_spill] sm:$0xff]  ;;  %v14271_v46 = vld [vmem:[#allocation53_spill] sm:$0xff]  ;;  %v14272_v51 = vld [vmem:[#allocation56_spill] sm:$0xff] }
 0x66e   :  { %v5169_v34 = vadd.f32 %v5165_v38, %v5104_v19  ;;  %v5106_v54 = vpop.f32.mrb[38].mxu0  ;;  %v5147_v13 = vpop.f32.mrb[38].mxu1  ;;  %v5171_v59 = vadd.f32 %v5167_v21, %v5145_v27  ;;  %v14270_v38 = vld [vmem:[#allocation54_spill] sm:$0xff]  ;;  %v14275_v19 = vld [vmem:[#allocation57_spill] sm:$0xff]  ;;  %v14276_v27 = vld [vmem:[#allocation60_spill] sm:$0xff] }
 0x66f   :  { %v9016_v61 = vmul.f32 -1.442695, %v5168_v43  ;;  %v5107_v2 = vpop.f32.mrb[39].mxu0  ;;  %v5148_v60 = vpop.f32.mrb[39].mxu1  ;;  %v14273_v43 = vld [vmem:[#allocation55_spill] sm:$0xff]  ;;  %v14278_v54 = vld [vmem:[#allocation62_spill] sm:$0xff] }
 0x670   :  { %v9017_v10 = vmul.f32 -1.442695, %v5169_v34  ;;  %v9018_v9 = vmul.f32 -1.442695, %v5171_v59  ;;  %v14277_v34 = vld [vmem:[#allocation59_spill] sm:$0xff]  ;;  %v14279_v13 = vld [vmem:[#allocation61_spill] sm:$0xff] }
 0x671   :  { %9573 = vpow2.f32 %v9016_v61  ;;  %v14280_v61 = vld [vmem:[#allocation64_spill] sm:$0xff]  ;;  %v14281_v2 = vld [vmem:[#allocation63_spill] sm:$0xff]  ;;  %v14282_v60 = vld [vmem:[#allocation66_spill] sm:$0xff] }
 0x672   :  { %9575 = vpow2.f32 %v9017_v10  ;;  %v14283_v10 = vld [vmem:[#allocation65_spill] sm:$0xff]  ;;  %v14284_v21 = vld [vmem:[#allocation68_spill] sm:$0xff]  ;;  %v14285_v59 = vld [vmem:[#allocation67_spill] sm:$0xff] }
 0x673   :  { %9577 = vpow2.f32 %v9018_v9  ;;  %v14286_v49 = vld [vmem:[#allocation70_spill] sm:$0xff]  ;;  %v14287_v9 = vld [vmem:[#allocation69_spill] sm:$0xff] }
 0x674   :  { %9579 = vtanh.f32 %v5170_v63  ;;  %v14288_v63 = vld [vmem:[#allocation72_spill] sm:$0xff] }
 0x67b   :  { %v9574_v36 = vpop.eup %9573 }
 0x67c   :  { %v9576_v48 = vpop.eup %9575  ;;  %v5200_v52 = vadd.f32 1.0, %v9574_v36  ;;  %v14289_v36 = vld [vmem:[#allocation71_spill] sm:$0xff] }
 0x67d   :  { %v5206_v45 = vadd.f32 1.0, %v9576_v48  ;;  %v9578_v4 = vpop.eup %9577  ;;  %v14290_v48 = vld [vmem:[#allocation74_spill] sm:$0xff] }
 0x67e   :  { %9581 = vrcp.f32 %v5200_v52  ;;  %v9580_v47 = vpop.eup %9579  ;;  %v5213_v32 = vadd.f32 1.0, %v9578_v4  ;;  %v14291_v52 = vld [vmem:[#allocation73_spill] sm:$0xff]  ;;  %v14293_v4 = vld [vmem:[#allocation76_spill] sm:$0xff] }
 0x67f   :  { %9583 = vrcp.f32 %v5206_v45  ;;  %v14292_v45 = vld [vmem:[#allocation75_spill] sm:$0xff] }
 0x680   :  { %9585 = vrcp.f32 %v5213_v32 }
 0x688   :  { %v9582_v57 = vpop.eup %9581 }
 0x689   :  { %v9584_v58 = vpop.eup %9583  ;;  %v5218_v42 = vmul.f32 %v9582_v57, %v9580_v47  ;;  %v14294_v47 = vld [vmem:[#allocation77_spill] sm:$0xff]  ;;  %v14295_v57 = vld [vmem:[#allocation78_spill] sm:$0xff] }
 0x68a   :  { %v5217_v40 = vmul.f32 %v9584_v58, %v12037_v28  ;;  %v9586_v20 = vpop.eup %9585  ;;  %v14252_v28 = vld [vmem:[#allocation36_spill] sm:$0xff]  ;;  %v14296_v58 = vld [vmem:[#allocation79_spill] sm:$0xff] }
 0x68c   :  { %v12498_v53 = vadd.f32 %v5218_v42, %v5217_v40  ;;  %v14297_v42 = vld [vmem:[#allocation80_spill] sm:$0xff]  ;;  %v6263_v40 = vld [vmem:[%s13554_s2 + $0x48] sm:$0xff] }
 0x68e   :  { %9587 = vtanh.f32 %v12498_v53 }
 0x698   :  { %v9588_v14 = vpop.eup %9587 }
 0x699   :  { %v5221_v0 = vmul.f32 %v9588_v14, %v9586_v20  ;;  %v6267_v20 = vld [vmem:[%s13554_s2 + $0x68] sm:$0xff]  ;;  %v6270_v14 = vld [vmem:[%s13554_s2 + $0x80] sm:$0xff] }
 0x69b   :  { %v5229_v30 = vpack.c.bf16 %v5221_v0, %v5221_v0  ;;  %v12608_v0 = vcombine.high %v6263_v40, %v6267_v20 }
 0x69d   :  { %9020 = vst [vmem:[%s13556_s4 + $0xc] sm:$0xf] %v5229_v30  ;;  %6036 = vmatprep.mubr.bf16.mxu0 %v5229_v30  ;;  %6077 = vmatprep.mubr.bf16.mxu1 %v5229_v30 }
 0x69e   :  { %6037 = vmatmul.mubr.bf16.vlgmr.msra.gmra.mrb[40].mxu0 %v12485_v11  ;;  %6078 = vmatmul.mubr.bf16.vlgmr.msra.gmra.mrb[40].mxu1 %v12485_v11 }
 0x69f   :  { %6087 = vmatpush1.bf16.msra.mxu0 %v12006_v31  ;;  %6128 = vmatpush1.bf16.msra.mxu1 %v12008_v7  ;;  %v14255_v31 = vld [vmem:[#allocation37_spill] sm:$0xff]  ;;  %v14256_v7 = vld [vmem:[#allocation40_spill] sm:$0xff] }
 0x6a0   :  { %6118 = vmatprep.mubr.bf16.mxu0 %v5229_v30  ;;  %6159 = vmatprep.mubr.bf16.mxu1 %v5229_v30  ;;  %v6274_v30 = vld [vmem:[%s13554_s2 + $0xa0] sm:$0xff] }
 0x6a1   :  { %6088 = vmatprep.subr.bf16.mxu0 %v12058_v22  ;;  %6129 = vmatprep.subr.bf16.mxu1 %v12060_v37  ;;  %v14258_v22 = vld [vmem:[#allocation42_spill] sm:$0xff]  ;;  %v14259_v37 = vld [vmem:[#allocation41_spill] sm:$0xff] }
 0x6a3   :  { %6089 = vmatpush1.bf16.msra.mxu0 %v12075_v35  ;;  %6130 = vmatpush1.bf16.msra.mxu1 %v12077_v41  ;;  %v14260_v35 = vld [vmem:[#allocation44_spill] sm:$0xff]  ;;  %v14261_v41 = vld [vmem:[#allocation43_spill] sm:$0xff] }
 0x6a4   :  { %6090 = vmatprep.subr.bf16.mxu0 %v12079_v5  ;;  %6131 = vmatprep.subr.bf16.mxu1 %v14252_v28  ;;  %v14262_v5 = vld [vmem:[#allocation46_spill] sm:$0xff]  ;;  %v6271_v28 = vld [vmem:[%s13554_s2 + $0x88] sm:$0xff] }
 0x6a7   :  { %6091 = vmatpush1.bf16.msra.mxu0 %v14253_v17  ;;  %6132 = vmatpush1.bf16.msra.mxu1 %v14254_v12  ;;  %v6275_v17 = vld [vmem:[%s13554_s2 + $0xa8] sm:$0xff] }
 0x6a8   :  { %6092 = vmatprep.subr.bf16.mxu0 %v14255_v31  ;;  %6133 = vmatprep.subr.bf16.mxu1 %v14256_v7  ;;  %v12625_v31 = vcombine.low %v6263_v40, %v6267_v20  ;;  %v12627_v7 = vcombine.high %v6270_v14, %v6274_v30  ;;  %v6323_v40 = vld [vmem:[%s13554_s2 + $0x228] sm:$0xff] }
 0x6ab   :  { %6093 = vmatpush1.bf16.msra.mxu0 %v14257_v18  ;;  %6134 = vmatpush1.bf16.msra.mxu1 %v14258_v22  ;;  %v12630_v18 = vcombine.high %v6271_v28, %v6275_v17  ;;  %v6278_v22 = vld [vmem:[%s13554_s2 + $0xc0] sm:$0xff] }
 0x6ac   :  { %6094 = vmatprep.subr.bf16.mxu0 %v14259_v37  ;;  %6135 = vmatprep.subr.bf16.mxu1 %v14260_v35  ;;  %v6282_v37 = vld [vmem:[%s13554_s2 + $0xe0] sm:$0xff]  ;;  %v6279_v35 = vld [vmem:[%s13554_s2 + $0xc8] sm:$0xff] }
 0x6af   :  { %6095 = vmatpush1.bf16.msra.mxu0 %v14261_v41  ;;  %6136 = vmatpush1.bf16.msra.mxu1 %v14262_v5  ;;  %v6283_v41 = vld [vmem:[%s13554_s2 + $0xe8] sm:$0xff]  ;;  %v12645_v5 = vcombine.low %v6270_v14, %v6274_v30 }
 0x6b0   :  { %6096 = vmatprep.subr.bf16.mxu0 %v14263_v23  ;;  %6137 = vmatprep.subr.bf16.mxu1 %v14264_v25  ;;  %v12649_v23 = vcombine.low %v6271_v28, %v6275_v17  ;;  %v12651_v25 = vcombine.high %v6278_v22, %v6282_v37  ;;  %v6326_v28 = vld [vmem:[%s13554_s2 + $0x240] sm:$0xff] }
 0x6b1   :  { %v6330_v17 = vld [vmem:[%s13554_s2 + $0x260] sm:$0xff] }
 0x6b3   :  { %6097 = vmatpush1.bf16.msra.mxu0 %v14265_v39  ;;  %6138 = vmatpush1.bf16.msra.mxu1 %v14266_v56  ;;  %v12654_v39 = vcombine.high %v6279_v35, %v6283_v41  ;;  %v12657_v56 = vcombine.low %v6278_v22, %v6282_v37  ;;  %v6327_v22 = vld [vmem:[%s13554_s2 + $0x248] sm:$0xff]  ;;  %v12795_v37 = vcombine.high %v6326_v28, %v6330_v17 }
 0x6b4   :  { %6098 = vmatprep.subr.bf16.mxu0 %v14267_v1  ;;  %6139 = vmatprep.subr.bf16.mxu1 %v14268_v15  ;;  %v12661_v1 = vcombine.low %v6279_v35, %v6283_v41  ;;  %v6286_v15 = vld [vmem:[%s13554_s2 + $0x100] sm:$0xff]  ;;  %v6331_v35 = vld [vmem:[%s13554_s2 + $0x268] sm:$0xff]  ;;  %v12800_v41 = vcombine.low %v6326_v28, %v6330_v17 }
 0x6b5   :  { %v6351_v28 = vld [vmem:[%s13554_s2 + $0x308] sm:$0xff] }
 0x6b6   :  { %14298 = vst [vmem:[#allocation6_spill] sm:$0xff] %v12800_v41 }
 0x6b7   :  { %6099 = vmatpush1.bf16.msra.mxu0 %v14269_v6  ;;  %6140 = vmatpush1.bf16.msra.mxu1 %v14270_v38  ;;  %v6290_v6 = vld [vmem:[%s13554_s2 + $0x120] sm:$0xff]  ;;  %v6287_v38 = vld [vmem:[%s13554_s2 + $0x108] sm:$0xff] }
 0x6b8   :  { %6100 = vmatprep.subr.bf16.mxu0 %v14271_v46  ;;  %6141 = vmatprep.subr.bf16.mxu1 %v14272_v51  ;;  %v12675_v46 = vcombine.high %v6286_v15, %v6290_v6  ;;  %v6291_v51 = vld [vmem:[%s13554_s2 + $0x128] sm:$0xff] }
 0x6bb   :  { %6101 = vmatpush1.bf16.msra.mxu0 %v14273_v43  ;;  %6142 = vmatpush1.bf16.msra.mxu1 %v14274_v44  ;;  %v12680_v43 = vcombine.low %v6286_v15, %v6290_v6  ;;  %v12682_v44 = vcombine.low %v6287_v38, %v6291_v51  ;;  %v12802_v15 = vcombine.low %v6327_v22, %v6331_v35 }
 0x6bc   :  { %6102 = vmatprep.subr.bf16.mxu0 %v14275_v19  ;;  %6143 = vmatprep.subr.bf16.mxu1 %v14276_v27  ;;  %v12684_v19 = vcombine.high %v6287_v38, %v6291_v51  ;;  %v6294_v27 = vld [vmem:[%s13554_s2 + $0x140] sm:$0xff]  ;;  %v12804_v6 = vcombine.high %v6327_v22, %v6331_v35  ;;  %v6355_v22 = vld [vmem:[%s13554_s2 + $0x328] sm:$0xff] }
 0x6bd   :  { %14299 = vst [vmem:[#allocation7_spill] sm:$0xff] %v12802_v15  ;;  %v6334_v38 = vld [vmem:[%s13554_s2 + $0x280] sm:$0xff] }
 0x6be   :  { %v6338_v51 = vld [vmem:[%s13554_s2 + $0x2a0] sm:$0xff] }
 0x6bf   :  { %6103 = vmatpush1.bf16.msra.mxu0 %v14277_v34  ;;  %6144 = vmatpush1.bf16.msra.mxu1 %v14278_v54  ;;  %v6298_v34 = vld [vmem:[%s13554_s2 + $0x160] sm:$0xff]  ;;  %v6295_v54 = vld [vmem:[%s13554_s2 + $0x148] sm:$0xff] }
 0x6c0   :  { %6104 = vmatprep.subr.bf16.mxu0 %v14279_v13  ;;  %6145 = vmatprep.subr.bf16.mxu1 %v14280_v61  ;;  %v12699_v13 = vcombine.high %v6294_v27, %v6298_v34  ;;  %v6299_v61 = vld [vmem:[%s13554_s2 + $0x168] sm:$0xff] }
 0x6c3   :  { %6105 = vmatpush1.bf16.msra.mxu0 %v14281_v2  ;;  %6146 = vmatpush1.bf16.msra.mxu1 %v14282_v60  ;;  %v12704_v2 = vcombine.low %v6294_v27, %v6298_v34  ;;  %v12706_v60 = vcombine.low %v6295_v54, %v6299_v61  ;;  %v6335_v27 = vld [vmem:[%s13554_s2 + $0x288] sm:$0xff]  ;;  %v12819_v34 = vcombine.high %v6334_v38, %v6338_v51 }
 0x6c4   :  { %6106 = vmatprep.subr.bf16.mxu0 %v14283_v10  ;;  %6147 = vmatprep.subr.bf16.mxu1 %v14284_v21  ;;  %v12708_v10 = vcombine.high %v6295_v54, %v6299_v61  ;;  %v6302_v21 = vld [vmem:[%s13554_s2 + $0x180] sm:$0xff]  ;;  %v6339_v54 = vld [vmem:[%s13554_s2 + $0x2a8] sm:$0xff]  ;;  %v12824_v61 = vcombine.low %v6334_v38, %v6338_v51  ;;  %v12874_v38 = vcombine.low %v6351_v28, %v6355_v22 }
 0x6c5   :  { %14300 = vst [vmem:[#allocation8_spill] sm:$0xff] %v12819_v34  ;;  %v12876_v51 = vcombine.high %v6351_v28, %v6355_v22 }
 0x6c6   :  { %14301 = vst [vmem:[#allocation9_spill] sm:$0xff] %v12824_v61  ;;  %14310 = vst [vmem:[#allocation19_spill] sm:$0xff] %v12874_v38 }
 0x6c7   :  { %6107 = vmatpush1.bf16.msra.mxu0 %v14285_v59  ;;  %6148 = vmatpush1.bf16.msra.mxu1 %v14286_v49  ;;  %v6306_v59 = vld [vmem:[%s13554_s2 + $0x1a0] sm:$0xff]  ;;  %v6303_v49 = vld [vmem:[%s13554_s2 + $0x188] sm:$0xff]  ;;  %14311 = vst [vmem:[#allocation18_spill] sm:$0xff] %v12876_v51 }
 0x6c8   :  { %6108 = vmatprep.subr.bf16.mxu0 %v14287_v9  ;;  %6149 = vmatprep.subr.bf16.mxu1 %v14288_v63  ;;  %v12723_v9 = vcombine.high %v6302_v21, %v6306_v59  ;;  %v6307_v63 = vld [vmem:[%s13554_s2 + $0x1a8] sm:$0xff] }
 0x6cb   :  { %6109 = vmatpush1.bf16.msra.mxu0 %v14289_v36  ;;  %6150 = vmatpush1.bf16.msra.mxu1 %v14290_v48  ;;  %v12728_v36 = vcombine.low %v6302_v21, %v6306_v59  ;;  %v12730_v48 = vcombine.low %v6303_v49, %v6307_v63  ;;  %v12826_v21 = vcombine.low %v6335_v27, %v6339_v54 }
 0x6cc   :  { %6110 = vmatprep.subr.bf16.mxu0 %v14291_v52  ;;  %6151 = vmatprep.subr.bf16.mxu1 %v14292_v45  ;;  %v12732_v52 = vcombine.high %v6303_v49, %v6307_v63  ;;  %v6310_v45 = vld [vmem:[%s13554_s2 + $0x1c0] sm:$0xff]  ;;  %v12828_v59 = vcombine.high %v6335_v27, %v6339_v54 }
 0x6cd   :  { %14302 = vst [vmem:[#allocation11_spill] sm:$0xff] %v12826_v21  ;;  %v6342_v49 = vld [vmem:[%s13554_s2 + $0x2c0] sm:$0xff] }
 0x6ce   :  { %14303 = vst [vmem:[#allocation10_spill] sm:$0xff] %v12828_v59  ;;  %v6346_v63 = vld [vmem:[%s13554_s2 + $0x2e0] sm:$0xff] }
 0x6cf   :  { %6111 = vmatpush1.bf16.msra.mxu0 %v14293_v4  ;;  %6152 = vmatpush1.bf16.msra.mxu1 %v14294_v47  ;;  %v6314_v4 = vld [vmem:[%s13554_s2 + $0x1e0] sm:$0xff]  ;;  %v6311_v47 = vld [vmem:[%s13554_s2 + $0x1c8] sm:$0xff] }
 0x6d0   :  { %6112 = vmatprep.subr.bf16.mxu0 %v14295_v57  ;;  %6153 = vmatprep.subr.bf16.mxu1 %v14296_v58  ;;  %v12747_v57 = vcombine.high %v6310_v45, %v6314_v4  ;;  %v6315_v58 = vld [vmem:[%s13554_s2 + $0x1e8] sm:$0xff]  ;;  %v6358_v27 = vld [vmem:[%s13554_s2 + $0x340] sm:$0xff] }
 0x6d1   :  { %v6362_v54 = vld [vmem:[%s13554_s2 + $0x360] sm:$0xff] }
 0x6d3   :  { %6113 = vmatpush1.bf16.msra.mxu0 %v14297_v42  ;;  %6154 = vmatpush1.bf16.msra.mxu1 %v12365_v8  ;;  %v6262_v8 = vld [vmem:[%s13554_s2 + $0x40] sm:$0xff]  ;;  %v12752_v42 = vcombine.low %v6310_v45, %v6314_v4  ;;  %v6343_v45 = vld [vmem:[%s13554_s2 + $0x2c8] sm:$0xff]  ;;  %v12843_v4 = vcombine.high %v6342_v49, %v6346_v63 }
 0x6d4   :  { %6114 = vmatprep.subr.bf16.mxu0 %v12369_v24  ;;  %6155 = vmatprep.subr.bf16.mxu1 %v12371_v26  ;;  %v6254_v26 = vld [vmem:[%s13554_s2] sm:$0xff] }
 0x6d5   :  { %v6258_v24 = vld [vmem:[%s13554_s2 + $0x20] sm:$0xff]  ;;  %14304 = vst [vmem:[#allocation12_spill] sm:$0xff] %v12843_v4 }
 0x6d7   :  { %6115 = vmatpush1.bf16.msra.mxu0 %v12387_v29  ;;  %6156 = vmatpush1.bf16.msra.mxu1 %v12389_v55  ;;  %v6266_v29 = vld [vmem:[%s13554_s2 + $0x60] sm:$0xff] }
 0x6d8   :  { %6116 = vmatprep.subr.bf16.mxu0 %v12393_v3  ;;  %6157 = vmatprep.subr.bf16.mxu1 %v12395_v62  ;;  %v6255_v3 = vld [vmem:[%s13554_s2 + $0x8] sm:$0xff]  ;;  %v12579_v62 = vcombine.low %v6254_v26, %v6258_v24  ;;  %v12596_v32 = vcombine.high %v6262_v8, %v6266_v29  ;;  %v12621_v12 = vcombine.low %v6262_v8, %v6266_v29 }
 0x6d9   :  { %v6319_v8 = vld [vmem:[%s13554_s2 + $0x208] sm:$0xff] }
 0x6da   :  { %v12778_v14 = vcombine.low %v6319_v8, %v6323_v40  ;;  %v12780_v30 = vcombine.high %v6319_v8, %v6323_v40  ;;  %v6350_v8 = vld [vmem:[%s13554_s2 + $0x300] sm:$0xff] }
 0x6db   :  { %6117 = vmatpush1.bf16.msra.mxu0 %v12399_v16  ;;  %6158 = vmatpush1.bf16.msra.mxu1 %v12401_v50  ;;  %v12581_v16 = vcombine.high %v6254_v26, %v6258_v24  ;;  %v6259_v50 = vld [vmem:[%s13554_s2 + $0x28] sm:$0xff]  ;;  %v12754_v26 = vcombine.low %v6311_v47, %v6315_v58  ;;  %v12756_v24 = vcombine.high %v6311_v47, %v6315_v58  ;;  %v6354_v40 = vld [vmem:[%s13554_s2 + $0x320] sm:$0xff] }
 0x6dc   :  { %v12592_v55 = vcombine.low %v6255_v3, %v6259_v50  ;;  %v6347_v47 = vld [vmem:[%s13554_s2 + $0x2e8] sm:$0xff]  ;;  %v12848_v58 = vcombine.low %v6342_v49, %v6346_v63  ;;  %v12867_v17 = vcombine.high %v6350_v8, %v6354_v40  ;;  %v12872_v35 = vcombine.low %v6350_v8, %v6354_v40  ;;  %v6366_v8 = vld [vmem:[%s13554_s2 + $0x380] sm:$0xff] }
 0x6dd   :  { %7022 = vmatprep.subr.bf16.mxu0 %v12581_v16  ;;  %v6359_v49 = vld [vmem:[%s13554_s2 + $0x348] sm:$0xff]  ;;  %v12890_v63 = vcombine.low %v6358_v27, %v6362_v54  ;;  %v6370_v40 = vld [vmem:[%s13554_s2 + $0x3a0] sm:$0xff] }
 0x6de   :  { %6119 = vmatmul.mubr.bf16.vlgmr.msra.gmra.mrb[44].mxu0 %v12485_v11  ;;  %6160 = vmatmul.mubr.bf16.vlgmr.msra.gmra.mrb[44].mxu1 %v12485_v11  ;;  %v12594_v11 = vcombine.high %v6255_v3, %v6259_v50  ;;  %v6318_v3 = vld [vmem:[%s13554_s2 + $0x200] sm:$0xff]  ;;  %14305 = vst [vmem:[#allocation13_spill] sm:$0xff] %v12848_v58  ;;  %14308 = vst [vmem:[#allocation16_spill] sm:$0xff] %v12867_v17 }
 0x6df   :  { %7023 = vmatpush1.bf16.msra.mxu0 %v12579_v62  ;;  %v6322_v50 = vld [vmem:[%s13554_s2 + $0x220] sm:$0xff]  ;;  %14309 = vst [vmem:[#allocation17_spill] sm:$0xff] %v12872_v35  ;;  %14312 = vst [vmem:[#allocation23_spill] sm:$0xff] %v12890_v63 }
 0x6e0   :  { %7063 = vmatprep.subr.bf16.mxu1 %v12594_v11  ;;  %7024 = vmatprep.subr.bf16.mxu0 %v12596_v32  ;;  %v12771_v29 = vcombine.high %v6318_v3, %v6322_v50  ;;  %v12776_v20 = vcombine.low %v6318_v3, %v6322_v50  ;;  %v12850_v3 = vcombine.low %v6343_v45, %v6347_v47 }
 0x6e1   :  { %7064 = vmatpush1.bf16.msra.mxu1 %v12592_v55  ;;  %v12852_v50 = vcombine.high %v6343_v45, %v6347_v47  ;;  %v12892_v45 = vcombine.high %v6358_v27, %v6362_v54  ;;  %v6363_v47 = vld [vmem:[%s13554_s2 + $0x368] sm:$0xff]  ;;  %v12908_v27 = vcombine.high %v6366_v8, %v6370_v40 }
 0x6e2   :  { %7065 = vmatprep.subr.bf16.mxu1 %v12608_v0  ;;  %14306 = vst [vmem:[#allocation15_spill] sm:$0xff] %v12850_v3  ;;  %v12904_v28 = vcombine.low %v6359_v49, %v6363_v47  ;;  %v12906_v22 = vcombine.high %v6359_v49, %v6363_v47  ;;  %v6367_v54 = vld [vmem:[%s13554_s2 + $0x388] sm:$0xff]  ;;  %v6378_v49 = vld [vmem:[%s13554_s2 + $0x3e0] sm:$0xff] }
 0x6e3   :  { %7025 = vmatpush1.bf16.msra.mxu0 %v12621_v12  ;;  %14307 = vst [vmem:[#allocation14_spill] sm:$0xff] %v12852_v50  ;;  %14313 = vst [vmem:[#allocation21_spill] sm:$0xff] %v12892_v45  ;;  %v6375_v47 = vld [vmem:[%s13554_s2 + $0x3c8] sm:$0xff] }
 0x6e4   :  { %7026 = vmatprep.subr.bf16.mxu0 %v12627_v7  ;;  %14314 = vst [vmem:[#allocation22_spill] sm:$0xff] %v12904_v28  ;;  %14315 = vst [vmem:[#allocation20_spill] sm:$0xff] %v12906_v22 }
 0x6e5   :  { %7066 = vmatpush1.bf16.msra.mxu1 %v12625_v31  ;;  %14316 = vst [vmem:[#allocation24_spill] sm:$0xff] %v12908_v27 }
 0x6e6   :  { %7067 = vmatprep.subr.bf16.mxu1 %v12630_v18 }
 0x6e7   :  { %7027 = vmatpush1.bf16.msra.mxu0 %v12645_v5 }
 0x6e8   :  { %7028 = vmatprep.subr.bf16.mxu0 %v12651_v25 }
 0x6e9   :  { %7068 = vmatpush1.bf16.msra.mxu1 %v12649_v23 }
 0x6ea   :  { %7069 = vmatprep.subr.bf16.mxu1 %v12654_v39 }
 0x6eb   :  { %7029 = vmatpush1.bf16.msra.mxu0 %v12657_v56 }
 0x6ec   :  { %7030 = vmatprep.subr.bf16.mxu0 %v12675_v46 }
 0x6ed   :  { %7070 = vmatpush1.bf16.msra.mxu1 %v12661_v1 }
 0x6ee   :  { %7071 = vmatprep.subr.bf16.mxu1 %v12684_v19 }
 0x6ef   :  { %7031 = vmatpush1.bf16.msra.mxu0 %v12680_v43 }
 0x6f0   :  { %7032 = vmatprep.subr.bf16.mxu0 %v12699_v13 }
 0x6f1   :  { %7072 = vmatpush1.bf16.msra.mxu1 %v12682_v44 }
 0x6f2   :  { %7073 = vmatprep.subr.bf16.mxu1 %v12708_v10 }
 0x6f3   :  { %7033 = vmatpush1.bf16.msra.mxu0 %v12704_v2 }
 0x6f4   :  { %7034 = vmatprep.subr.bf16.mxu0 %v12723_v9 }
 0x6f5   :  { %7074 = vmatpush1.bf16.msra.mxu1 %v12706_v60 }
 0x6f6   :  { %7075 = vmatprep.subr.bf16.mxu1 %v12732_v52 }
 0x6f7   :  { %7035 = vmatpush1.bf16.msra.mxu0 %v12728_v36 }
 0x6f8   :  { %7036 = vmatprep.subr.bf16.mxu0 %v12747_v57 }
 0x6f9   :  { %7076 = vmatpush1.bf16.msra.mxu1 %v12730_v48 }
 0x6fa   :  { %7077 = vmatprep.subr.bf16.mxu1 %v12756_v24 }
 0x6fb   :  { %7037 = vmatpush1.bf16.msra.mxu0 %v12752_v42 }
 0x6fc   :  { %7038 = vmatprep.subr.bf16.mxu0 %v12771_v29 }
 0x6fd   :  { %7078 = vmatpush1.bf16.msra.mxu1 %v12754_v26 }
 0x6fe   :  { %7079 = vmatprep.subr.bf16.mxu1 %v12780_v30 }
 0x6ff   :  { %7039 = vmatpush1.bf16.msra.mxu0 %v12776_v20 }
 0x700   :  { %7040 = vmatprep.subr.bf16.mxu0 %v12795_v37 }
 0x701   :  { %7080 = vmatpush1.bf16.msra.mxu1 %v12778_v14 }
 0x702   :  { %7081 = vmatprep.subr.bf16.mxu1 %v12804_v6 }
 0x703   :  { %7041 = vmatpush1.bf16.msra.mxu0 %v12800_v41 }
 0x704   :  { %7042 = vmatprep.subr.bf16.mxu0 %v12819_v34 }
 0x705   :  { %7082 = vmatpush1.bf16.msra.mxu1 %v12802_v15 }
 0x706   :  { %7083 = vmatprep.subr.bf16.mxu1 %v12828_v59 }
 0x707   :  { %7043 = vmatpush1.bf16.msra.mxu0 %v12824_v61 }
 0x708   :  { %7044 = vmatprep.subr.bf16.mxu0 %v12843_v4 }
 0x709   :  { %7084 = vmatpush1.bf16.msra.mxu1 %v12826_v21 }
 0x70a   :  { %7085 = vmatprep.subr.bf16.mxu1 %v12852_v50 }
 0x70b   :  { %7045 = vmatpush1.bf16.msra.mxu0 %v12848_v58 }
 0x70c   :  { %7046 = vmatprep.subr.bf16.mxu0 %v12867_v17  ;;  %v12933_v17 = vcombine.low %v6366_v8, %v6370_v40  ;;  %v6260_v40 = vld [vmem:[%s13554_s2 + $0x30] sm:$0xff] }
 0x70d   :  { %7086 = vmatpush1.bf16.msra.mxu1 %v12850_v3 }
 0x70e   :  { %7087 = vmatprep.subr.bf16.mxu1 %v12876_v51  ;;  %14318 = vst [vmem:[#allocation25_spill] sm:$0xff] %v12933_v17 }
 0x70f   :  { %7047 = vmatpush1.bf16.msra.mxu0 %v12872_v35  ;;  %v6371_v35 = vld [vmem:[%s13554_s2 + $0x3a8] sm:$0xff] }
 0x710   :  { %7048 = vmatprep.subr.bf16.mxu0 %v12892_v45  ;;  %v12917_v51 = vcombine.high %v6367_v54, %v6371_v35  ;;  %v6379_v45 = vld [vmem:[%s13554_s2 + $0x3e8] sm:$0xff]  ;;  %v12937_v3 = vcombine.low %v6367_v54, %v6371_v35  ;;  %v6256_v35 = vld [vmem:[%s13554_s2 + $0x10] sm:$0xff]  ;;  %v6261_v54 = vld [vmem:[%s13554_s2 + $0x38] sm:$0xff] }
 0x711   :  { %7088 = vmatpush1.bf16.msra.mxu1 %v12874_v38  ;;  %v6374_v38 = vld [vmem:[%s13554_s2 + $0x3c0] sm:$0xff]  ;;  %v12949_v8 = vcombine.low %v6375_v47, %v6379_v45 }
 0x712   :  { %14317 = vst [vmem:[#allocation26_spill] sm:$0xff] %v12917_v51  ;;  %7089 = vmatprep.subr.bf16.mxu1 %v12906_v22  ;;  %14319 = vst [vmem:[#allocation28_spill] sm:$0xff] %v12937_v3  ;;  %v12939_v58 = vcombine.high %v6374_v38, %v6378_v49  ;;  %v12942_v22 = vcombine.high %v6375_v47, %v6379_v45  ;;  %v12945_v50 = vcombine.low %v6374_v38, %v6378_v49  ;;  %v6257_v38 = vld [vmem:[%s13554_s2 + $0x18] sm:$0xff] }
 0x713   :  { %7049 = vmatpush1.bf16.msra.mxu0 %v12890_v63  ;;  %14323 = vst [vmem:[#allocation32_spill] sm:$0xff] %v12949_v8  ;;  %v12963_v45 = vcombine.high %v6256_v35, %v6260_v40  ;;  %v12968_v49 = vcombine.low %v6256_v35, %v6260_v40  ;;  %v12970_v47 = vcombine.low %v6257_v38, %v6261_v54  ;;  %v46_v35 = vld [vmem:[%s13552_s0 + $0xa8] sm:$0xff] }
 0x714   :  { %7050 = vmatprep.subr.bf16.mxu0 %v12908_v27  ;;  %14320 = vst [vmem:[#allocation27_spill] sm:$0xff] %v12939_v58  ;;  %14321 = vst [vmem:[#allocation30_spill] sm:$0xff] %v12942_v22  ;;  %v6174_v21 = vunpack.c.h.bf16 %v46_v35  ;;  %v6173_v61 = vunpack.c.l.bf16 %v46_v35 }
 0x715   :  { %7090 = vmatpush1.bf16.msra.mxu1 %v12904_v28  ;;  %14322 = vst [vmem:[#allocation29_spill] sm:$0xff] %v12945_v50  ;;  %14324 = vst [vmem:[#allocation31_spill] sm:$0xff] %v12963_v45 }
 0x716   :  { %7091 = vmatprep.subr.bf16.mxu1 %v12917_v51 }
 0x717   :  { %7051 = vmatpush1.bf16.msra.mxu0 %v12933_v17 }
 0x718   :  { %7052 = vmatprep.subr.bf16.mxu0 %v12939_v58 }
 0x719   :  { %7092 = vmatpush1.bf16.msra.mxu1 %v12937_v3 }
 0x71a   :  { %7093 = vmatprep.subr.bf16.mxu1 %v12942_v22 }
 0x71b   :  { %7053 = vmatpush1.bf16.msra.mxu0 %v12945_v50  ;;  %v12972_v50 = vcombine.high %v6257_v38, %v6261_v54 }
 0x71c   :  { %7104 = vmatprep.subr.bf16.mxu0 %v12963_v45 }
 0x71d   :  { %7094 = vmatpush1.bf16.msra.mxu1 %v12949_v8  ;;  %14325 = vst [vmem:[#allocation34_spill] sm:$0xff] %v12972_v50  ;;  %v44_v8 = vld [vmem:[%s13552_s0 + $0xa0] sm:$0xff] }
 0x71e   :  { %7145 = vmatprep.subr.bf16.mxu1 %v12972_v50  ;;  %v6171_v22 = vunpack.c.l.bf16 %v44_v8  ;;  %v6172_v58 = vunpack.c.h.bf16 %v44_v8 }
 0x771   :  { %v6038_v3 = vpop.f32.mrb[40].mxu0  ;;  %v6079_v17 = vpop.f32.mrb[40].mxu1 }
 0x772   :  { %v6175_v51 = vadd.f32 %v6171_v22, %v6038_v3  ;;  %v6040_v40 = vpop.f32.mrb[41].mxu0  ;;  %v6081_v38 = vpop.f32.mrb[41].mxu1  ;;  %v6177_v3 = vadd.f32 %v6173_v61, %v6079_v17 }
 0x773   :  { %v6176_v54 = vadd.f32 %v6172_v58, %v6040_v40  ;;  %v6042_v27 = vpop.f32.mrb[42].mxu0  ;;  %v6083_v45 = vpop.f32.mrb[42].mxu1  ;;  %v6178_v8 = vadd.f32 %v6174_v21, %v6081_v38  ;;  %v8331_v38 = vld [vmem:[%s13553_s1 + $0x58] sm:$0xff] }
 0x774   :  { %v9149_v28 = vmul.f32 -1.442695, %v6175_v51  ;;  %v6043_v50 = vpop.f32.mrb[43].mxu0  ;;  %v6084_v63 = vpop.f32.mrb[43].mxu1 }
 0x775   :  { %v9150_v4 = vmul.f32 -1.442695, %v6176_v54  ;;  %v9151_v59 = vmul.f32 -1.442695, %v6178_v8 }
 0x776   :  { %9589 = vpow2.f32 %v9149_v28 }
 0x777   :  { %9591 = vpow2.f32 %v9150_v4 }
 0x778   :  { %9593 = vpow2.f32 %v9151_v59 }
 0x779   :  { %9595 = vtanh.f32 %v6177_v3 }
 0x780   :  { %v9590_v22 = vpop.eup %9589 }
 0x781   :  { %v9592_v34 = vpop.eup %9591  ;;  %v6193_v15 = vadd.f32 1.0, %v9590_v22 }
 0x782   :  { %v6199_v41 = vadd.f32 1.0, %v9592_v34  ;;  %v9594_v58 = vpop.eup %9593 }
 0x783   :  { %9597 = vrcp.f32 %v6193_v15  ;;  %v9596_v51 = vpop.eup %9595  ;;  %v6206_v45 = vadd.f32 1.0, %v9594_v58 }
 0x784   :  { %9599 = vrcp.f32 %v6199_v41  ;;  %v8330_v41 = vld [vmem:[%s13553_s1 + $0x50] sm:$0xff] }
 0x785   :  { %9601 = vrcp.f32 %v6206_v45  ;;  %v6183_v15 = vunpack.c.h.bf16 %v8330_v41  ;;  %v6185_v45 = vunpack.c.h.bf16 %v8331_v38 }
 0x78d   :  { %v9598_v50 = vpop.eup %9597 }
 0x78e   :  { %v9600_v63 = vpop.eup %9599  ;;  %v6211_v27 = vmul.f32 %v9598_v50, %v9596_v51 }
 0x78f   :  { %v6210_v4 = vmul.f32 %v9600_v63, %v12482_v33  ;;  %v9602_v61 = vpop.eup %9601  ;;  %v6182_v33 = vunpack.c.l.bf16 %v8330_v41 }
 0x791   :  { %v12983_v21 = vadd.f32 %v6211_v27, %v6210_v4 }
 0x793   :  { %14326 = vst [vmem:[#allocation33_spill] sm:$0xff] %v12983_v21  ;;  %9603 = vtanh.f32 %v12983_v21 }
 0x79d   :  { %v9604_v17 = vpop.eup %9603 }
 0x79e   :  { %v6214_v59 = vmul.f32 %v9604_v17, %v9602_v61  ;;  %v6184_v61 = vunpack.c.l.bf16 %v8331_v38 }
 0x7a0   :  { %v12986_v28 = vpack.c.bf16 %v6214_v59, %v6214_v59 }
 0x7a2   :  { %9155 = vst [vmem:[%s13555_s3 + $0x14] sm:$0xf] %v12986_v28 }
 0x7b1   :  { %v6120_v34 = vpop.f32.mrb[44].mxu0  ;;  %v6161_v35 = vpop.f32.mrb[44].mxu1 }
 0x7b2   :  { %v6186_v40 = vadd.f32 %v6182_v33, %v6120_v34  ;;  %v6122_v54 = vpop.f32.mrb[45].mxu0  ;;  %v6163_v8 = vpop.f32.mrb[45].mxu1  ;;  %v6188_v59 = vadd.f32 %v6184_v61, %v6161_v35 }
 0x7b3   :  { %v6187_v3 = vadd.f32 %v6183_v15, %v6122_v54  ;;  %v6124_v22 = vpop.f32.mrb[46].mxu0  ;;  %v6165_v58 = vpop.f32.mrb[46].mxu1  ;;  %v6189_v4 = vadd.f32 %v6185_v45, %v6163_v8 }
 0x7b4   :  { %v9152_v51 = vmul.f32 -1.442695, %v6186_v40  ;;  %v6125_v50 = vpop.f32.mrb[47].mxu0  ;;  %v6166_v63 = vpop.f32.mrb[47].mxu1 }
 0x7b5   :  { %v9153_v27 = vmul.f32 -1.442695, %v6187_v3  ;;  %v9154_v17 = vmul.f32 -1.442695, %v6189_v4  ;;  %v6268_v63 = vld [vmem:[%s13554_s2 + $0x70] sm:$0xff] }
 0x7b6   :  { %9605 = vpow2.f32 %v9152_v51  ;;  %v6272_v4 = vld [vmem:[%s13554_s2 + $0x90] sm:$0xff] }
 0x7b7   :  { %9607 = vpow2.f32 %v9153_v27  ;;  %v6269_v27 = vld [vmem:[%s13554_s2 + $0x78] sm:$0xff] }
 0x7b8   :  { %9609 = vpow2.f32 %v9154_v17 }
 0x7b9   :  { %9611 = vtanh.f32 %v6188_v59  ;;  %v6276_v59 = vld [vmem:[%s13554_s2 + $0xb0] sm:$0xff] }
 0x7c0   :  { %v9606_v41 = vpop.eup %9605 }
 0x7c1   :  { %v9608_v33 = vpop.eup %9607  ;;  %v6218_v34 = vadd.f32 1.0, %v9606_v41  ;;  %v6273_v41 = vld [vmem:[%s13554_s2 + $0x98] sm:$0xff] }
 0x7c2   :  { %v6224_v21 = vadd.f32 1.0, %v9608_v33  ;;  %v9610_v15 = vpop.eup %9609  ;;  %v6277_v33 = vld [vmem:[%s13554_s2 + $0xb8] sm:$0xff] }
 0x7c3   :  { %9613 = vrcp.f32 %v6218_v34  ;;  %v9612_v40 = vpop.eup %9611  ;;  %v6231_v58 = vadd.f32 1.0, %v9610_v15 }
 0x7c4   :  { %9615 = vrcp.f32 %v6224_v21  ;;  %v6264_v21 = vld [vmem:[%s13554_s2 + $0x50] sm:$0xff] }
 0x7c5   :  { %9617 = vrcp.f32 %v6231_v58  ;;  %v13020_v61 = vcombine.high %v6264_v21, %v6268_v63  ;;  %v13037_v34 = vcombine.low %v6264_v21, %v6268_v63  ;;  %v6281_v58 = vld [vmem:[%s13554_s2 + $0xd8] sm:$0xff]  ;;  %v6288_v63 = vld [vmem:[%s13554_s2 + $0x110] sm:$0xff] }
 0x7cd   :  { %v9614_v54 = vpop.eup %9613 }
 0x7ce   :  { %v9616_v22 = vpop.eup %9615  ;;  %v6236_v3 = vmul.f32 %v9614_v54, %v9612_v40  ;;  %v13041_v40 = vcombine.high %v6272_v4, %v6276_v59  ;;  %v13043_v54 = vcombine.high %v6273_v41, %v6277_v33 }
 0x7cf   :  { %v6235_v51 = vmul.f32 %v9616_v22, %v12498_v53  ;;  %v9618_v35 = vpop.eup %9617  ;;  %v6265_v53 = vld [vmem:[%s13554_s2 + $0x58] sm:$0xff]  ;;  %v6280_v22 = vld [vmem:[%s13554_s2 + $0xd0] sm:$0xff] }
 0x7d0   :  { %v13022_v17 = vcombine.high %v6265_v53, %v6269_v27  ;;  %v13039_v15 = vcombine.low %v6265_v53, %v6269_v27  ;;  %14327 = vst [vmem:[#allocation36_spill] sm:$0xff] %v13043_v54  ;;  %v6292_v53 = vld [vmem:[%s13554_s2 + $0x130] sm:$0xff]  ;;  %v6289_v27 = vld [vmem:[%s13554_s2 + $0x118] sm:$0xff] }
 0x7d1   :  { %v12999_v8 = vadd.f32 %v6236_v3, %v6235_v51  ;;  %v6284_v3 = vld [vmem:[%s13554_s2 + $0xf0] sm:$0xff]  ;;  %v6285_v51 = vld [vmem:[%s13554_s2 + $0xf8] sm:$0xff] }
 0x7d2   :  { %v13069_v21 = vcombine.high %v6281_v58, %v6285_v51 }
 0x7d3   :  { %9619 = vtanh.f32 %v12999_v8 }
 0x7d4   :  { %14331 = vst [vmem:[#allocation40_spill] sm:$0xff] %v13069_v21 }
 0x7dd   :  { %v9620_v38 = vpop.eup %9619 }
 0x7de   :  { %v6239_v50 = vmul.f32 %v9620_v38, %v9618_v35  ;;  %v13061_v35 = vcombine.low %v6272_v4, %v6276_v59  ;;  %v13063_v38 = vcombine.low %v6273_v41, %v6277_v33  ;;  %v13085_v4 = vcombine.low %v6280_v22, %v6284_v3 }
 0x7df   :  { %v13087_v59 = vcombine.low %v6281_v58, %v6285_v51  ;;  %v13091_v41 = vcombine.high %v6288_v63, %v6292_v53  ;;  %v13109_v58 = vcombine.low %v6288_v63, %v6292_v53  ;;  %v6305_v63 = vld [vmem:[%s13554_s2 + $0x198] sm:$0xff] }
 0x7e0   :  { %v6247_v45 = vpack.c.bf16 %v6239_v50, %v6239_v50  ;;  %14328 = vst [vmem:[#allocation35_spill] sm:$0xff] %v13061_v35  ;;  %14329 = vst [vmem:[#allocation38_spill] sm:$0xff] %v13063_v38  ;;  %v13067_v50 = vcombine.high %v6280_v22, %v6284_v3  ;;  %v6297_v22 = vld [vmem:[%s13554_s2 + $0x158] sm:$0xff] }
 0x7e1   :  { %14332 = vst [vmem:[#allocation39_spill] sm:$0xff] %v13085_v4  ;;  %14333 = vst [vmem:[#allocation42_spill] sm:$0xff] %v13087_v59  ;;  %v6301_v3 = vld [vmem:[%s13554_s2 + $0x178] sm:$0xff] }
 0x7e2   :  { %9156 = vst [vmem:[%s13556_s4 + $0x8] sm:$0xf] %v6247_v45  ;;  %7054 = vmatprep.mubr.bf16.mxu0 %v6247_v45  ;;  %7095 = vmatprep.mubr.bf16.mxu1 %v6247_v45  ;;  %14330 = vst [vmem:[#allocation37_spill] sm:$0xff] %v13067_v50  ;;  %v6309_v53 = vld [vmem:[%s13554_s2 + $0x1b8] sm:$0xff] }
 0x7e3   :  { %7055 = vmatmul.mubr.bf16.vlgmr.msra.gmra.mrb[48].mxu0 %v12986_v28  ;;  %7096 = vmatmul.mubr.bf16.vlgmr.msra.gmra.mrb[48].mxu1 %v12986_v28  ;;  %14334 = vst [vmem:[#allocation41_spill] sm:$0xff] %v13091_v41  ;;  %14336 = vst [vmem:[#allocation43_spill] sm:$0xff] %v13109_v58 }
 0x7e4   :  { %7105 = vmatpush1.bf16.msra.mxu0 %v12968_v49  ;;  %7146 = vmatpush1.bf16.msra.mxu1 %v12970_v47 }
 0x7e5   :  { %7136 = vmatprep.mubr.bf16.mxu0 %v6247_v45  ;;  %7177 = vmatprep.mubr.bf16.mxu1 %v6247_v45  ;;  %v6293_v45 = vld [vmem:[%s13554_s2 + $0x138] sm:$0xff] }
 0x7e6   :  { %7106 = vmatprep.subr.bf16.mxu0 %v13020_v61  ;;  %7147 = vmatprep.subr.bf16.mxu1 %v13022_v17  ;;  %v13093_v33 = vcombine.high %v6289_v27, %v6293_v45  ;;  %v13111_v51 = vcombine.low %v6289_v27, %v6293_v45  ;;  %v13135_v45 = vcombine.low %v6297_v22, %v6301_v3 }
 0x7e8   :  { %7107 = vmatpush1.bf16.msra.mxu0 %v13037_v34  ;;  %7148 = vmatpush1.bf16.msra.mxu1 %v13039_v15  ;;  %14335 = vst [vmem:[#allocation44_spill] sm:$0xff] %v13093_v33  ;;  %14337 = vst [vmem:[#allocation46_spill] sm:$0xff] %v13111_v51 }
 0x7e9   :  { %7108 = vmatprep.subr.bf16.mxu0 %v13041_v40  ;;  %7149 = vmatprep.subr.bf16.mxu1 %v13043_v54  ;;  %v6296_v54 = vld [vmem:[%s13554_s2 + $0x150] sm:$0xff]  ;;  %14341 = vst [vmem:[#allocation50_spill] sm:$0xff] %v13135_v45 }
 0x7ec   :  { %7109 = vmatpush1.bf16.msra.mxu0 %v13061_v35  ;;  %7150 = vmatpush1.bf16.msra.mxu1 %v13063_v38  ;;  %v6300_v38 = vld [vmem:[%s13554_s2 + $0x170] sm:$0xff] }
 0x7ed   :  { %7110 = vmatprep.subr.bf16.mxu0 %v13067_v50  ;;  %7151 = vmatprep.subr.bf16.mxu1 %v13069_v21  ;;  %v13115_v21 = vcombine.high %v6296_v54, %v6300_v38  ;;  %v13117_v50 = vcombine.high %v6297_v22, %v6301_v3  ;;  %v6304_v35 = vld [vmem:[%s13554_s2 + $0x190] sm:$0xff]  ;;  %v13133_v27 = vcombine.low %v6296_v54, %v6300_v38  ;;  %v6313_v54 = vld [vmem:[%s13554_s2 + $0x1d8] sm:$0xff] }
 0x7ee   :  { %v6317_v38 = vld [vmem:[%s13554_s2 + $0x1f8] sm:$0xff]  ;;  %v13159_v3 = vcombine.low %v6305_v63, %v6309_v53 }
 0x7ef   :  { %14338 = vst [vmem:[#allocation45_spill] sm:$0xff] %v13115_v21  ;;  %14339 = vst [vmem:[#allocation48_spill] sm:$0xff] %v13117_v50 }
 0x7f0   :  { %7111 = vmatpush1.bf16.msra.mxu0 %v13085_v4  ;;  %7152 = vmatpush1.bf16.msra.mxu1 %v13087_v59  ;;  %v6308_v59 = vld [vmem:[%s13554_s2 + $0x1b0] sm:$0xff]  ;;  %14340 = vst [vmem:[#allocation47_spill] sm:$0xff] %v13133_v27  ;;  %14345 = vst [vmem:[#allocation54_spill] sm:$0xff] %v13159_v3 }
 0x7f1   :  { %7112 = vmatprep.subr.bf16.mxu0 %v13091_v41  ;;  %7153 = vmatprep.subr.bf16.mxu1 %v13093_v33  ;;  %v13139_v33 = vcombine.high %v6304_v35, %v6308_v59  ;;  %v13141_v41 = vcombine.high %v6305_v63, %v6309_v53  ;;  %v6312_v4 = vld [vmem:[%s13554_s2 + $0x1d0] sm:$0xff]  ;;  %v13157_v22 = vcombine.low %v6304_v35, %v6308_v59  ;;  %v6321_v35 = vld [vmem:[%s13554_s2 + $0x218] sm:$0xff] }
 0x7f2   :  { %v6325_v59 = vld [vmem:[%s13554_s2 + $0x238] sm:$0xff]  ;;  %v13183_v53 = vcombine.low %v6313_v54, %v6317_v38 }
 0x7f3   :  { %14342 = vst [vmem:[#allocation49_spill] sm:$0xff] %v13139_v33  ;;  %14343 = vst [vmem:[#allocation52_spill] sm:$0xff] %v13141_v41 }
 0x7f4   :  { %7113 = vmatpush1.bf16.msra.mxu0 %v13109_v58  ;;  %7154 = vmatpush1.bf16.msra.mxu1 %v13111_v51  ;;  %v6316_v51 = vld [vmem:[%s13554_s2 + $0x1f0] sm:$0xff]  ;;  %14344 = vst [vmem:[#allocation51_spill] sm:$0xff] %v13157_v22  ;;  %14349 = vst [vmem:[#allocation58_spill] sm:$0xff] %v13183_v53 }
 0x7f5   :  { %7114 = vmatprep.subr.bf16.mxu0 %v13115_v21  ;;  %7155 = vmatprep.subr.bf16.mxu1 %v13117_v50  ;;  %v13163_v50 = vcombine.high %v6312_v4, %v6316_v51  ;;  %v13165_v21 = vcombine.high %v6313_v54, %v6317_v38  ;;  %v6320_v58 = vld [vmem:[%s13554_s2 + $0x210] sm:$0xff]  ;;  %v13181_v63 = vcombine.low %v6312_v4, %v6316_v51  ;;  %v6329_v4 = vld [vmem:[%s13554_s2 + $0x258] sm:$0xff] }
 0x7f6   :  { %v6333_v51 = vld [vmem:[%s13554_s2 + $0x278] sm:$0xff]  ;;  %v13207_v38 = vcombine.low %v6321_v35, %v6325_v59 }
 0x7f7   :  { %14346 = vst [vmem:[#allocation53_spill] sm:$0xff] %v13163_v50  ;;  %14347 = vst [vmem:[#allocation56_spill] sm:$0xff] %v13165_v21 }
 0x7f8   :  { %7115 = vmatpush1.bf16.msra.mxu0 %v13133_v27  ;;  %7156 = vmatpush1.bf16.msra.mxu1 %v13135_v45  ;;  %v6324_v45 = vld [vmem:[%s13554_s2 + $0x230] sm:$0xff]  ;;  %14348 = vst [vmem:[#allocation55_spill] sm:$0xff] %v13181_v63  ;;  %14353 = vst [vmem:[#allocation62_spill] sm:$0xff] %v13207_v38 }
 0x7f9   :  { %7116 = vmatprep.subr.bf16.mxu0 %v13139_v33  ;;  %7157 = vmatprep.subr.bf16.mxu1 %v13141_v41  ;;  %v13187_v41 = vcombine.high %v6320_v58, %v6324_v45  ;;  %v13189_v33 = vcombine.high %v6321_v35, %v6325_v59  ;;  %v6328_v27 = vld [vmem:[%s13554_s2 + $0x250] sm:$0xff]  ;;  %v13205_v54 = vcombine.low %v6320_v58, %v6324_v45  ;;  %v6337_v58 = vld [vmem:[%s13554_s2 + $0x298] sm:$0xff] }
 0x7fa   :  { %v6341_v45 = vld [vmem:[%s13554_s2 + $0x2b8] sm:$0xff]  ;;  %v13231_v59 = vcombine.low %v6329_v4, %v6333_v51 }
 0x7fb   :  { %14350 = vst [vmem:[#allocation57_spill] sm:$0xff] %v13187_v41  ;;  %14351 = vst [vmem:[#allocation60_spill] sm:$0xff] %v13189_v33 }
 0x7fc   :  { %7117 = vmatpush1.bf16.msra.mxu0 %v13157_v22  ;;  %7158 = vmatpush1.bf16.msra.mxu1 %v13159_v3  ;;  %v6332_v3 = vld [vmem:[%s13554_s2 + $0x270] sm:$0xff]  ;;  %14352 = vst [vmem:[#allocation59_spill] sm:$0xff] %v13205_v54  ;;  %14357 = vst [vmem:[#allocation66_spill] sm:$0xff] %v13231_v59 }
 0x7fd   :  { %7118 = vmatprep.subr.bf16.mxu0 %v13163_v50  ;;  %7159 = vmatprep.subr.bf16.mxu1 %v13165_v21  ;;  %v13211_v21 = vcombine.high %v6328_v27, %v6332_v3  ;;  %v13213_v50 = vcombine.high %v6329_v4, %v6333_v51  ;;  %v6336_v22 = vld [vmem:[%s13554_s2 + $0x290] sm:$0xff]  ;;  %v13229_v35 = vcombine.low %v6328_v27, %v6332_v3  ;;  %v6345_v27 = vld [vmem:[%s13554_s2 + $0x2d8] sm:$0xff] }
 0x7fe   :  { %v6349_v3 = vld [vmem:[%s13554_s2 + $0x2f8] sm:$0xff]  ;;  %v13255_v51 = vcombine.low %v6337_v58, %v6341_v45 }
 0x7ff   :  { %14354 = vst [vmem:[#allocation61_spill] sm:$0xff] %v13211_v21  ;;  %14355 = vst [vmem:[#allocation64_spill] sm:$0xff] %v13213_v50 }
 0x800   :  { %7119 = vmatpush1.bf16.msra.mxu0 %v13181_v63  ;;  %7160 = vmatpush1.bf16.msra.mxu1 %v13183_v53  ;;  %v6340_v53 = vld [vmem:[%s13554_s2 + $0x2b0] sm:$0xff]  ;;  %14356 = vst [vmem:[#allocation63_spill] sm:$0xff] %v13229_v35  ;;  %14361 = vst [vmem:[#allocation70_spill] sm:$0xff] %v13255_v51 }
 0x801   :  { %7120 = vmatprep.subr.bf16.mxu0 %v13187_v41  ;;  %7161 = vmatprep.subr.bf16.mxu1 %v13189_v33  ;;  %v13235_v33 = vcombine.high %v6336_v22, %v6340_v53  ;;  %v13237_v41 = vcombine.high %v6337_v58, %v6341_v45  ;;  %v6344_v63 = vld [vmem:[%s13554_s2 + $0x2d0] sm:$0xff]  ;;  %v13253_v4 = vcombine.low %v6336_v22, %v6340_v53  ;;  %v6353_v22 = vld [vmem:[%s13554_s2 + $0x318] sm:$0xff] }
 0x802   :  { %v6357_v53 = vld [vmem:[%s13554_s2 + $0x338] sm:$0xff]  ;;  %v13279_v45 = vcombine.low %v6345_v27, %v6349_v3 }
 0x803   :  { %14358 = vst [vmem:[#allocation65_spill] sm:$0xff] %v13235_v33  ;;  %14359 = vst [vmem:[#allocation68_spill] sm:$0xff] %v13237_v41 }
 0x804   :  { %7121 = vmatpush1.bf16.msra.mxu0 %v13205_v54  ;;  %7162 = vmatpush1.bf16.msra.mxu1 %v13207_v38  ;;  %v6348_v38 = vld [vmem:[%s13554_s2 + $0x2f0] sm:$0xff]  ;;  %14360 = vst [vmem:[#allocation67_spill] sm:$0xff] %v13253_v4  ;;  %14365 = vst [vmem:[#allocation74_spill] sm:$0xff] %v13279_v45 }
 0x805   :  { %7122 = vmatprep.subr.bf16.mxu0 %v13211_v21  ;;  %7163 = vmatprep.subr.bf16.mxu1 %v13213_v50  ;;  %v13259_v50 = vcombine.high %v6344_v63, %v6348_v38  ;;  %v13261_v21 = vcombine.high %v6345_v27, %v6349_v3  ;;  %v6352_v54 = vld [vmem:[%s13554_s2 + $0x310] sm:$0xff]  ;;  %v13277_v58 = vcombine.low %v6344_v63, %v6348_v38  ;;  %v6361_v63 = vld [vmem:[%s13554_s2 + $0x358] sm:$0xff] }
 0x806   :  { %v6365_v38 = vld [vmem:[%s13554_s2 + $0x378] sm:$0xff]  ;;  %v13303_v3 = vcombine.low %v6353_v22, %v6357_v53 }
 0x807   :  { %14362 = vst [vmem:[#allocation69_spill] sm:$0xff] %v13259_v50  ;;  %14363 = vst [vmem:[#allocation72_spill] sm:$0xff] %v13261_v21 }
 0x808   :  { %7123 = vmatpush1.bf16.msra.mxu0 %v13229_v35  ;;  %7164 = vmatpush1.bf16.msra.mxu1 %v13231_v59  ;;  %v6356_v59 = vld [vmem:[%s13554_s2 + $0x330] sm:$0xff]  ;;  %14364 = vst [vmem:[#allocation71_spill] sm:$0xff] %v13277_v58  ;;  %14369 = vst [vmem:[#allocation77_spill] sm:$0xff] %v13303_v3 }
 0x809   :  { %7124 = vmatprep.subr.bf16.mxu0 %v13235_v33  ;;  %7165 = vmatprep.subr.bf16.mxu1 %v13237_v41  ;;  %v13283_v41 = vcombine.high %v6352_v54, %v6356_v59  ;;  %v13285_v33 = vcombine.high %v6353_v22, %v6357_v53  ;;  %v6360_v35 = vld [vmem:[%s13554_s2 + $0x350] sm:$0xff]  ;;  %v13301_v27 = vcombine.low %v6352_v54, %v6356_v59  ;;  %v6369_v54 = vld [vmem:[%s13554_s2 + $0x398] sm:$0xff] }
 0x80a   :  { %v6373_v59 = vld [vmem:[%s13554_s2 + $0x3b8] sm:$0xff]  ;;  %v13327_v53 = vcombine.low %v6361_v63, %v6365_v38 }
 0x80b   :  { %14366 = vst [vmem:[#allocation73_spill] sm:$0xff] %v13283_v41  ;;  %14367 = vst [vmem:[#allocation75_spill] sm:$0xff] %v13285_v33 }
 0x80c   :  { %7125 = vmatpush1.bf16.msra.mxu0 %v13253_v4  ;;  %7166 = vmatpush1.bf16.msra.mxu1 %v13255_v51  ;;  %v6364_v51 = vld [vmem:[%s13554_s2 + $0x370] sm:$0xff]  ;;  %14368 = vst [vmem:[#allocation76_spill] sm:$0xff] %v13301_v27 }
 0x80d   :  { %7126 = vmatprep.subr.bf16.mxu0 %v13259_v50  ;;  %7167 = vmatprep.subr.bf16.mxu1 %v13261_v21  ;;  %v13307_v21 = vcombine.high %v6360_v35, %v6364_v51  ;;  %v13309_v50 = vcombine.high %v6361_v63, %v6365_v38  ;;  %v6368_v4 = vld [vmem:[%s13554_s2 + $0x390] sm:$0xff]  ;;  %v13325_v22 = vcombine.low %v6360_v35, %v6364_v51  ;;  %v6377_v35 = vld [vmem:[%s13554_s2 + $0x3d8] sm:$0xff] }
 0x80e   :  { %v6381_v51 = vld [vmem:[%s13554_s2 + $0x3f8] sm:$0xff]  ;;  %v13351_v38 = vcombine.low %v6369_v54, %v6373_v59 }
 0x80f   :  { %14370 = vst [vmem:[#allocation78_spill] sm:$0xff] %v13307_v21  ;;  %14371 = vst [vmem:[#allocation79_spill] sm:$0xff] %v13309_v50 }
 0x810   :  { %7127 = vmatpush1.bf16.msra.mxu0 %v13277_v58  ;;  %7168 = vmatpush1.bf16.msra.mxu1 %v13279_v45  ;;  %v6372_v45 = vld [vmem:[%s13554_s2 + $0x3b0] sm:$0xff]  ;;  %14372 = vst [vmem:[#allocation80_spill] sm:$0xff] %v13325_v22 }
 0x811   :  { %7128 = vmatprep.subr.bf16.mxu0 %v13283_v41  ;;  %7169 = vmatprep.subr.bf16.mxu1 %v13285_v33  ;;  %v13331_v33 = vcombine.high %v6368_v4, %v6372_v45  ;;  %v13333_v41 = vcombine.high %v6369_v54, %v6373_v59  ;;  %v6376_v58 = vld [vmem:[%s13554_s2 + $0x3d0] sm:$0xff]  ;;  %v13349_v63 = vcombine.low %v6368_v4, %v6372_v45 }
 0x814   :  { %7129 = vmatpush1.bf16.msra.mxu0 %v13301_v27  ;;  %7170 = vmatpush1.bf16.msra.mxu1 %v13303_v3  ;;  %v6380_v3 = vld [vmem:[%s13554_s2 + $0x3f0] sm:$0xff] }
 0x815   :  { %7130 = vmatprep.subr.bf16.mxu0 %v13307_v21  ;;  %7171 = vmatprep.subr.bf16.mxu1 %v13309_v50  ;;  %v13355_v50 = vcombine.high %v6376_v58, %v6380_v3  ;;  %v13357_v21 = vcombine.high %v6377_v35, %v6381_v51  ;;  %v13361_v27 = vcombine.low %v6376_v58, %v6380_v3 }
 0x818   :  { %7131 = vmatpush1.bf16.msra.mxu0 %v13325_v22  ;;  %7172 = vmatpush1.bf16.msra.mxu1 %v13327_v53  ;;  %v13363_v22 = vcombine.low %v6377_v35, %v6381_v51 }
 0x819   :  { %7132 = vmatprep.subr.bf16.mxu0 %v13331_v33  ;;  %7173 = vmatprep.subr.bf16.mxu1 %v13333_v41 }
 0x81c   :  { %7133 = vmatpush1.bf16.msra.mxu0 %v13349_v63  ;;  %7174 = vmatpush1.bf16.msra.mxu1 %v13351_v38 }
 0x81d   :  { %7134 = vmatprep.subr.bf16.mxu0 %v13355_v50  ;;  %7175 = vmatprep.subr.bf16.mxu1 %v13357_v21 }
 0x820   :  { %7135 = vmatpush1.bf16.msra.mxu0 %v13361_v27  ;;  %7176 = vmatpush1.bf16.msra.mxu1 %v13363_v22 }
 0x821   :  { %8040 = vmatprep.subr.bf16.mxu0 %v12581_v16  ;;  %8081 = vmatprep.subr.bf16.mxu1 %v12594_v11  ;;  %v14374_v16 = vld [vmem:[#allocation7_spill] sm:$0xff]  ;;  %v14376_v11 = vld [vmem:[#allocation10_spill] sm:$0xff] }
 0x823   :  { %7137 = vmatmul.mubr.bf16.vlgmr.msra.gmra.mrb[52].mxu0 %v12986_v28  ;;  %7178 = vmatmul.mubr.bf16.vlgmr.msra.gmra.mrb[52].mxu1 %v12986_v28 }
 0x824   :  { %8041 = vmatpush1.bf16.msra.mxu0 %v12579_v62  ;;  %8082 = vmatpush1.bf16.msra.mxu1 %v12592_v55  ;;  %v14373_v62 = vld [vmem:[#allocation6_spill] sm:$0xff]  ;;  %v14375_v55 = vld [vmem:[#allocation8_spill] sm:$0xff] }
 0x825   :  { %8042 = vmatprep.subr.bf16.mxu0 %v12596_v32  ;;  %8083 = vmatprep.subr.bf16.mxu1 %v12608_v0  ;;  %v14377_v32 = vld [vmem:[#allocation9_spill] sm:$0xff]  ;;  %v14378_v0 = vld [vmem:[#allocation11_spill] sm:$0xff] }
 0x828   :  { %8043 = vmatpush1.bf16.msra.mxu0 %v12621_v12  ;;  %8084 = vmatpush1.bf16.msra.mxu1 %v12625_v31  ;;  %v14379_v12 = vld [vmem:[#allocation12_spill] sm:$0xff]  ;;  %v14380_v31 = vld [vmem:[#allocation14_spill] sm:$0xff] }
 0x829   :  { %8044 = vmatprep.subr.bf16.mxu0 %v12627_v7  ;;  %8085 = vmatprep.subr.bf16.mxu1 %v12630_v18  ;;  %v14381_v7 = vld [vmem:[#allocation13_spill] sm:$0xff]  ;;  %v14382_v18 = vld [vmem:[#allocation15_spill] sm:$0xff] }
 0x82c   :  { %8045 = vmatpush1.bf16.msra.mxu0 %v12645_v5  ;;  %8086 = vmatpush1.bf16.msra.mxu1 %v12649_v23  ;;  %v14383_v5 = vld [vmem:[#allocation16_spill] sm:$0xff]  ;;  %v14384_v23 = vld [vmem:[#allocation18_spill] sm:$0xff] }
 0x82d   :  { %8046 = vmatprep.subr.bf16.mxu0 %v12651_v25  ;;  %8087 = vmatprep.subr.bf16.mxu1 %v12654_v39  ;;  %v14385_v25 = vld [vmem:[#allocation17_spill] sm:$0xff]  ;;  %v14386_v39 = vld [vmem:[#allocation19_spill] sm:$0xff] }
 0x830   :  { %8047 = vmatpush1.bf16.msra.mxu0 %v12657_v56  ;;  %8088 = vmatpush1.bf16.msra.mxu1 %v12661_v1  ;;  %v14387_v56 = vld [vmem:[#allocation21_spill] sm:$0xff]  ;;  %v14388_v1 = vld [vmem:[#allocation20_spill] sm:$0xff] }
 0x831   :  { %8048 = vmatprep.subr.bf16.mxu0 %v12675_v46  ;;  %8089 = vmatprep.subr.bf16.mxu1 %v12684_v19  ;;  %v14389_v46 = vld [vmem:[#allocation23_spill] sm:$0xff]  ;;  %v14392_v19 = vld [vmem:[#allocation26_spill] sm:$0xff] }
 0x834   :  { %8049 = vmatpush1.bf16.msra.mxu0 %v12680_v43  ;;  %8090 = vmatpush1.bf16.msra.mxu1 %v12682_v44  ;;  %v14390_v43 = vld [vmem:[#allocation22_spill] sm:$0xff]  ;;  %v14391_v44 = vld [vmem:[#allocation24_spill] sm:$0xff] }
 0x835   :  { %8050 = vmatprep.subr.bf16.mxu0 %v12699_v13  ;;  %8091 = vmatprep.subr.bf16.mxu1 %v12708_v10  ;;  %v14393_v13 = vld [vmem:[#allocation25_spill] sm:$0xff]  ;;  %v14396_v10 = vld [vmem:[#allocation30_spill] sm:$0xff] }
 0x838   :  { %8051 = vmatpush1.bf16.msra.mxu0 %v12704_v2  ;;  %8092 = vmatpush1.bf16.msra.mxu1 %v12706_v60  ;;  %v14394_v2 = vld [vmem:[#allocation28_spill] sm:$0xff]  ;;  %v14395_v60 = vld [vmem:[#allocation27_spill] sm:$0xff] }
 0x839   :  { %8052 = vmatprep.subr.bf16.mxu0 %v12723_v9  ;;  %8093 = vmatprep.subr.bf16.mxu1 %v12732_v52  ;;  %v14397_v9 = vld [vmem:[#allocation29_spill] sm:$0xff]  ;;  %v14400_v52 = vld [vmem:[#allocation34_spill] sm:$0xff] }
 0x83c   :  { %8053 = vmatpush1.bf16.msra.mxu0 %v12728_v36  ;;  %8094 = vmatpush1.bf16.msra.mxu1 %v12730_v48  ;;  %v14398_v36 = vld [vmem:[#allocation32_spill] sm:$0xff]  ;;  %v14399_v48 = vld [vmem:[#allocation31_spill] sm:$0xff] }
 0x83d   :  { %8054 = vmatprep.subr.bf16.mxu0 %v12747_v57  ;;  %8095 = vmatprep.subr.bf16.mxu1 %v12756_v24  ;;  %v48_v57 = vld [vmem:[%s13552_s0 + $0xc0] sm:$0xff] }
 0x840   :  { %8055 = vmatpush1.bf16.msra.mxu0 %v12752_v42  ;;  %8096 = vmatpush1.bf16.msra.mxu1 %v12754_v26  ;;  %v7189_v42 = vunpack.c.l.bf16 %v48_v57  ;;  %v7190_v26 = vunpack.c.h.bf16 %v48_v57 }
 0x841   :  { %8056 = vmatprep.subr.bf16.mxu0 %v12771_v29  ;;  %8097 = vmatprep.subr.bf16.mxu1 %v12780_v30 }
 0x844   :  { %8057 = vmatpush1.bf16.msra.mxu0 %v12776_v20  ;;  %8098 = vmatpush1.bf16.msra.mxu1 %v12778_v14  ;;  %v50_v14 = vld [vmem:[%s13552_s0 + $0xc8] sm:$0xff] }
 0x845   :  { %8058 = vmatprep.subr.bf16.mxu0 %v12795_v37  ;;  %8099 = vmatprep.subr.bf16.mxu1 %v12804_v6  ;;  %v7192_v59 = vunpack.c.h.bf16 %v50_v14  ;;  %v7191_v51 = vunpack.c.l.bf16 %v50_v14 }
 0x848   :  { %8059 = vmatpush1.bf16.msra.mxu0 %v14373_v62  ;;  %8100 = vmatpush1.bf16.msra.mxu1 %v14374_v16 }
 0x849   :  { %8060 = vmatprep.subr.bf16.mxu0 %v14375_v55  ;;  %8101 = vmatprep.subr.bf16.mxu1 %v14376_v11 }
 0x84c   :  { %8061 = vmatpush1.bf16.msra.mxu0 %v14377_v32  ;;  %8102 = vmatpush1.bf16.msra.mxu1 %v14378_v0 }
 0x84d   :  { %8062 = vmatprep.subr.bf16.mxu0 %v14379_v12  ;;  %8103 = vmatprep.subr.bf16.mxu1 %v14380_v31 }
 0x850   :  { %8063 = vmatpush1.bf16.msra.mxu0 %v14381_v7  ;;  %8104 = vmatpush1.bf16.msra.mxu1 %v14382_v18 }
 0x851   :  { %8064 = vmatprep.subr.bf16.mxu0 %v14383_v5  ;;  %8105 = vmatprep.subr.bf16.mxu1 %v14384_v23 }
 0x854   :  { %8065 = vmatpush1.bf16.msra.mxu0 %v14385_v25  ;;  %8106 = vmatpush1.bf16.msra.mxu1 %v14386_v39  ;;  %v14401_v25 = vld [vmem:[#allocation33_spill] sm:$0xff] }
 0x855   :  { %8066 = vmatprep.subr.bf16.mxu0 %v14387_v56  ;;  %8107 = vmatprep.subr.bf16.mxu1 %v14388_v1 }
 0x858   :  { %8067 = vmatpush1.bf16.msra.mxu0 %v14389_v46  ;;  %8108 = vmatpush1.bf16.msra.mxu1 %v14390_v43 }
 0x859   :  { %8068 = vmatprep.subr.bf16.mxu0 %v14391_v44  ;;  %8109 = vmatprep.subr.bf16.mxu1 %v14392_v19  ;;  %v8328_v19 = vld [vmem:[%s13553_s1 + $0x30] sm:$0xff] }
 0x85c   :  { %8069 = vmatpush1.bf16.msra.mxu0 %v14393_v13  ;;  %8110 = vmatpush1.bf16.msra.mxu1 %v14394_v2  ;;  %v7200_v13 = vunpack.c.l.bf16 %v8328_v19  ;;  %v7201_v2 = vunpack.c.h.bf16 %v8328_v19  ;;  %v14418_v19 = vld [vmem:[#allocation52_spill] sm:$0xff] }
 0x85d   :  { %8070 = vmatprep.subr.bf16.mxu0 %v14395_v60  ;;  %8111 = vmatprep.subr.bf16.mxu1 %v14396_v10 }
 0x860   :  { %8071 = vmatpush1.bf16.msra.mxu0 %v14397_v9  ;;  %8112 = vmatpush1.bf16.msra.mxu1 %v14398_v36  ;;  %v8329_v36 = vld [vmem:[%s13553_s1 + $0x38] sm:$0xff] }
 0x861   :  { %8122 = vmatprep.subr.bf16.mxu0 %v14399_v48  ;;  %8163 = vmatprep.subr.bf16.mxu1 %v14400_v52 }
 0x8b6   :  { %v7056_v24 = vpop.f32.mrb[48].mxu0  ;;  %v7097_v29 = vpop.f32.mrb[48].mxu1 }
 0x8b7   :  { %v7193_v20 = vadd.f32 %v7189_v42, %v7056_v24  ;;  %v7058_v30 = vpop.f32.mrb[49].mxu0  ;;  %v7099_v37 = vpop.f32.mrb[49].mxu1  ;;  %v7195_v16 = vadd.f32 %v7191_v51, %v7097_v29 }
 0x8b8   :  { %v7194_v6 = vadd.f32 %v7190_v26, %v7058_v30  ;;  %v7060_v28 = vpop.f32.mrb[50].mxu0  ;;  %v7101_v4 = vpop.f32.mrb[50].mxu1  ;;  %v7196_v35 = vadd.f32 %v7192_v59, %v7099_v37  ;;  %v7203_v30 = vunpack.c.h.bf16 %v8329_v36 }
 0x8b9   :  { %v9285_v58 = vmul.f32 -1.442695, %v7193_v20  ;;  %v7061_v45 = vpop.f32.mrb[51].mxu0  ;;  %v7102_v3 = vpop.f32.mrb[51].mxu1 }
 0x8ba   :  { %v9286_v54 = vmul.f32 -1.442695, %v7194_v6  ;;  %v9287_v62 = vmul.f32 -1.442695, %v7196_v35  ;;  %v7202_v6 = vunpack.c.l.bf16 %v8329_v36  ;;  %v14424_v36 = vld [vmem:[#allocation58_spill] sm:$0xff] }
 0x8bb   :  { %9621 = vpow2.f32 %v9285_v58 }
 0x8bc   :  { %9623 = vpow2.f32 %v9286_v54 }
 0x8bd   :  { %9625 = vpow2.f32 %v9287_v62 }
 0x8be   :  { %9627 = vtanh.f32 %v7195_v16 }
 0x8c5   :  { %v9622_v55 = vpop.eup %9621 }
 0x8c6   :  { %v9624_v11 = vpop.eup %9623  ;;  %v7211_v32 = vadd.f32 1.0, %v9622_v55 }
 0x8c7   :  { %v7217_v0 = vadd.f32 1.0, %v9624_v11  ;;  %v9626_v12 = vpop.eup %9625 }
 0x8c8   :  { %9629 = vrcp.f32 %v7211_v32  ;;  %v9628_v31 = vpop.eup %9627  ;;  %v7224_v23 = vadd.f32 1.0, %v9626_v12 }
 0x8c9   :  { %9631 = vrcp.f32 %v7217_v0 }
 0x8ca   :  { %9633 = vrcp.f32 %v7224_v23  ;;  %v14407_v23 = vld [vmem:[#allocation39_spill] sm:$0xff] }
 0x8d2   :  { %v9630_v7 = vpop.eup %9629 }
 0x8d3   :  { %v9632_v18 = vpop.eup %9631  ;;  %v7229_v5 = vmul.f32 %v9630_v7, %v9628_v31 }
 0x8d4   :  { %v7228_v39 = vmul.f32 %v9632_v18, %v14401_v25  ;;  %v9634_v1 = vpop.eup %9633  ;;  %v14403_v18 = vld [vmem:[#allocation35_spill] sm:$0xff]  ;;  %v14413_v25 = vld [vmem:[#allocation45_spill] sm:$0xff] }
 0x8d6   :  { %v13444_v56 = vadd.f32 %v7229_v5, %v7228_v39  ;;  %v14404_v5 = vld [vmem:[#allocation38_spill] sm:$0xff]  ;;  %v14414_v39 = vld [vmem:[#allocation48_spill] sm:$0xff] }
 0x8d8   :  { %9635 = vtanh.f32 %v13444_v56 }
 0x8e2   :  { %v9636_v46 = vpop.eup %9635 }
 0x8e3   :  { %v7232_v43 = vmul.f32 %v9636_v46, %v9634_v1  ;;  %v14415_v1 = vld [vmem:[#allocation47_spill] sm:$0xff]  ;;  %v14416_v46 = vld [vmem:[#allocation50_spill] sm:$0xff] }
 0x8e5   :  { %v13447_v44 = vpack.c.bf16 %v7232_v43, %v7232_v43  ;;  %v14417_v43 = vld [vmem:[#allocation49_spill] sm:$0xff] }
 0x8e7   :  { %9291 = vst [vmem:[%s13555_s3 + $0x18] sm:$0xf] %v13447_v44 }
 0x8f6   :  { %v7138_v60 = vpop.f32.mrb[52].mxu0  ;;  %v7179_v10 = vpop.f32.mrb[52].mxu1 }
 0x8f7   :  { %v7204_v9 = vadd.f32 %v7200_v13, %v7138_v60  ;;  %v7140_v48 = vpop.f32.mrb[53].mxu0  ;;  %v7181_v52 = vpop.f32.mrb[53].mxu1  ;;  %v7206_v4 = vadd.f32 %v7202_v6, %v7179_v10  ;;  %v14419_v13 = vld [vmem:[#allocation51_spill] sm:$0xff]  ;;  %v14421_v60 = vld [vmem:[#allocation53_spill] sm:$0xff]  ;;  %v14422_v10 = vld [vmem:[#allocation56_spill] sm:$0xff] }
 0x8f8   :  { %v7205_v57 = vadd.f32 %v7201_v2, %v7140_v48  ;;  %v7142_v42 = vpop.f32.mrb[54].mxu0  ;;  %v7183_v26 = vpop.f32.mrb[54].mxu1  ;;  %v7207_v37 = vadd.f32 %v7203_v30, %v7181_v52  ;;  %v14420_v2 = vld [vmem:[#allocation54_spill] sm:$0xff]  ;;  %v14425_v48 = vld [vmem:[#allocation57_spill] sm:$0xff]  ;;  %v14426_v52 = vld [vmem:[#allocation60_spill] sm:$0xff] }
 0x8f9   :  { %v9288_v24 = vmul.f32 -1.442695, %v7204_v9  ;;  %v7143_v29 = vpop.f32.mrb[55].mxu0  ;;  %v7184_v20 = vpop.f32.mrb[55].mxu1  ;;  %v14423_v9 = vld [vmem:[#allocation55_spill] sm:$0xff]  ;;  %v14428_v42 = vld [vmem:[#allocation62_spill] sm:$0xff] }
 0x8fa   :  { %v9289_v14 = vmul.f32 -1.442695, %v7205_v57  ;;  %v9290_v28 = vmul.f32 -1.442695, %v7207_v37  ;;  %v14427_v57 = vld [vmem:[#allocation59_spill] sm:$0xff]  ;;  %v14429_v26 = vld [vmem:[#allocation61_spill] sm:$0xff] }
 0x8fb   :  { %9637 = vpow2.f32 %v9288_v24  ;;  %v14430_v24 = vld [vmem:[#allocation64_spill] sm:$0xff]  ;;  %v14431_v29 = vld [vmem:[#allocation63_spill] sm:$0xff]  ;;  %v14432_v20 = vld [vmem:[#allocation66_spill] sm:$0xff] }
 0x8fc   :  { %9639 = vpow2.f32 %v9289_v14  ;;  %v14433_v14 = vld [vmem:[#allocation65_spill] sm:$0xff]  ;;  %v14434_v30 = vld [vmem:[#allocation68_spill] sm:$0xff]  ;;  %v14435_v37 = vld [vmem:[#allocation67_spill] sm:$0xff] }
 0x8fd   :  { %9641 = vpow2.f32 %v9290_v28  ;;  %v14436_v6 = vld [vmem:[#allocation70_spill] sm:$0xff]  ;;  %v14437_v28 = vld [vmem:[#allocation69_spill] sm:$0xff] }
 0x8fe   :  { %9643 = vtanh.f32 %v7206_v4  ;;  %v14438_v4 = vld [vmem:[#allocation72_spill] sm:$0xff] }
 0x905   :  { %v9638_v58 = vpop.eup %9637 }
 0x906   :  { %v9640_v45 = vpop.eup %9639  ;;  %v7236_v3 = vadd.f32 1.0, %v9638_v58  ;;  %v14439_v58 = vld [vmem:[#allocation71_spill] sm:$0xff] }
 0x907   :  { %v7242_v54 = vadd.f32 1.0, %v9640_v45  ;;  %v9642_v59 = vpop.eup %9641  ;;  %v14440_v45 = vld [vmem:[#allocation74_spill] sm:$0xff] }
 0x908   :  { %9645 = vrcp.f32 %v7236_v3  ;;  %v9644_v35 = vpop.eup %9643  ;;  %v7249_v55 = vadd.f32 1.0, %v9642_v59  ;;  %v14441_v3 = vld [vmem:[#allocation73_spill] sm:$0xff]  ;;  %v14443_v59 = vld [vmem:[#allocation76_spill] sm:$0xff] }
 0x909   :  { %9647 = vrcp.f32 %v7242_v54  ;;  %v14442_v54 = vld [vmem:[#allocation75_spill] sm:$0xff] }
 0x90a   :  { %9649 = vrcp.f32 %v7249_v55 }
 0x912   :  { %v9646_v51 = vpop.eup %9645 }
 0x913   :  { %v9648_v62 = vpop.eup %9647  ;;  %v7254_v16 = vmul.f32 %v9646_v51, %v9644_v35  ;;  %v14444_v35 = vld [vmem:[#allocation77_spill] sm:$0xff]  ;;  %v14445_v51 = vld [vmem:[#allocation78_spill] sm:$0xff] }
 0x914   :  { %v7253_v11 = vmul.f32 %v9648_v62, %v12999_v8  ;;  %v9650_v0 = vpop.eup %9649  ;;  %v14402_v8 = vld [vmem:[#allocation36_spill] sm:$0xff]  ;;  %v14446_v62 = vld [vmem:[#allocation79_spill] sm:$0xff] }
 0x916   :  { %v13460_v32 = vadd.f32 %v7254_v16, %v7253_v11  ;;  %v14447_v16 = vld [vmem:[#allocation80_spill] sm:$0xff] }
 0x918   :  { %9651 = vtanh.f32 %v13460_v32 }
 0x922   :  { %v9652_v12 = vpop.eup %9651 }
 0x923   :  { %v7257_v31 = vmul.f32 %v9652_v12, %v9650_v0 }
 0x925   :  { %v7265_v7 = vpack.c.bf16 %v7257_v31, %v7257_v31 }
 0x927   :  { %9292 = vst [vmem:[%s13556_s4 + $0x4] sm:$0xf] %v7265_v7  ;;  %8072 = vmatprep.mubr.bf16.mxu0 %v7265_v7  ;;  %8113 = vmatprep.mubr.bf16.mxu1 %v7265_v7 }
 0x928   :  { %8073 = vmatmul.mubr.bf16.vlgmr.msra.gmra.mrb[56].mxu0 %v13447_v44  ;;  %8114 = vmatmul.mubr.bf16.vlgmr.msra.gmra.mrb[56].mxu1 %v13447_v44 }
 0x929   :  { %8123 = vmatpush1.bf16.msra.mxu0 %v12968_v49  ;;  %8164 = vmatpush1.bf16.msra.mxu1 %v12970_v47  ;;  %v14405_v49 = vld [vmem:[#allocation37_spill] sm:$0xff]  ;;  %v14406_v47 = vld [vmem:[#allocation40_spill] sm:$0xff] }
 0x92a   :  { %8154 = vmatprep.mubr.bf16.mxu0 %v7265_v7  ;;  %8195 = vmatprep.mubr.bf16.mxu1 %v7265_v7 }
 0x92b   :  { %8124 = vmatprep.subr.bf16.mxu0 %v13020_v61  ;;  %8165 = vmatprep.subr.bf16.mxu1 %v13022_v17  ;;  %v14408_v61 = vld [vmem:[#allocation42_spill] sm:$0xff]  ;;  %v14409_v17 = vld [vmem:[#allocation41_spill] sm:$0xff] }
 0x92d   :  { %8125 = vmatpush1.bf16.msra.mxu0 %v13037_v34  ;;  %8166 = vmatpush1.bf16.msra.mxu1 %v13039_v15  ;;  %v14410_v34 = vld [vmem:[#allocation44_spill] sm:$0xff]  ;;  %v14411_v15 = vld [vmem:[#allocation43_spill] sm:$0xff] }
 0x92e   :  { %8126 = vmatprep.subr.bf16.mxu0 %v13041_v40  ;;  %8167 = vmatprep.subr.bf16.mxu1 %v14402_v8  ;;  %v14412_v40 = vld [vmem:[#allocation46_spill] sm:$0xff] }
 0x931   :  { %8127 = vmatpush1.bf16.msra.mxu0 %v14403_v18  ;;  %8168 = vmatpush1.bf16.msra.mxu1 %v14404_v5 }
 0x932   :  { %8128 = vmatprep.subr.bf16.mxu0 %v14405_v49  ;;  %8169 = vmatprep.subr.bf16.mxu1 %v14406_v47 }
 0x935   :  { %8129 = vmatpush1.bf16.msra.mxu0 %v14407_v23  ;;  %8170 = vmatpush1.bf16.msra.mxu1 %v14408_v61 }
 0x936   :  { %8130 = vmatprep.subr.bf16.mxu0 %v14409_v17  ;;  %8171 = vmatprep.subr.bf16.mxu1 %v14410_v34 }
 0x939   :  { %8131 = vmatpush1.bf16.msra.mxu0 %v14411_v15  ;;  %8172 = vmatpush1.bf16.msra.mxu1 %v14412_v40 }
 0x93a   :  { %8132 = vmatprep.subr.bf16.mxu0 %v14413_v25  ;;  %8173 = vmatprep.subr.bf16.mxu1 %v14414_v39 }
 0x93d   :  { %8133 = vmatpush1.bf16.msra.mxu0 %v14415_v1  ;;  %8174 = vmatpush1.bf16.msra.mxu1 %v14416_v46 }
 0x93e   :  { %8134 = vmatprep.subr.bf16.mxu0 %v14417_v43  ;;  %8175 = vmatprep.subr.bf16.mxu1 %v14418_v19 }
 0x941   :  { %8135 = vmatpush1.bf16.msra.mxu0 %v14419_v13  ;;  %8176 = vmatpush1.bf16.msra.mxu1 %v14420_v2 }
 0x942   :  { %8136 = vmatprep.subr.bf16.mxu0 %v14421_v60  ;;  %8177 = vmatprep.subr.bf16.mxu1 %v14422_v10 }
 0x945   :  { %8137 = vmatpush1.bf16.msra.mxu0 %v14423_v9  ;;  %8178 = vmatpush1.bf16.msra.mxu1 %v14424_v36  ;;  %v8326_v9 = vld [vmem:[%s13553_s1 + $0x10] sm:$0xff] }
 0x946   :  { %8138 = vmatprep.subr.bf16.mxu0 %v14425_v48  ;;  %8179 = vmatprep.subr.bf16.mxu1 %v14426_v52  ;;  %v8217_v36 = vunpack.c.l.bf16 %v8326_v9  ;;  %v8218_v48 = vunpack.c.h.bf16 %v8326_v9 }
 0x949   :  { %8139 = vmatpush1.bf16.msra.mxu0 %v14427_v57  ;;  %8180 = vmatpush1.bf16.msra.mxu1 %v14428_v42  ;;  %v8327_v42 = vld [vmem:[%s13553_s1 + $0x18] sm:$0xff] }
 0x94a   :  { %8140 = vmatprep.subr.bf16.mxu0 %v14429_v26  ;;  %8181 = vmatprep.subr.bf16.mxu1 %v14430_v24 }
 0x94d   :  { %8141 = vmatpush1.bf16.msra.mxu0 %v14431_v29  ;;  %8182 = vmatpush1.bf16.msra.mxu1 %v14432_v20 }
 0x94e   :  { %8142 = vmatprep.subr.bf16.mxu0 %v14433_v14  ;;  %8183 = vmatprep.subr.bf16.mxu1 %v14434_v30 }
 0x951   :  { %8143 = vmatpush1.bf16.msra.mxu0 %v14435_v37  ;;  %8184 = vmatpush1.bf16.msra.mxu1 %v14436_v6 }
 0x952   :  { %8144 = vmatprep.subr.bf16.mxu0 %v14437_v28  ;;  %8185 = vmatprep.subr.bf16.mxu1 %v14438_v4  ;;  %v8220_v4 = vunpack.c.h.bf16 %v8327_v42 }
 0x955   :  { %8145 = vmatpush1.bf16.msra.mxu0 %v14439_v58  ;;  %8186 = vmatpush1.bf16.msra.mxu1 %v14440_v45  ;;  %v8219_v45 = vunpack.c.l.bf16 %v8327_v42 }
 0x956   :  { %8146 = vmatprep.subr.bf16.mxu0 %v14441_v3  ;;  %8187 = vmatprep.subr.bf16.mxu1 %v14442_v54 }
 0x959   :  { %8147 = vmatpush1.bf16.msra.mxu0 %v14443_v59  ;;  %8188 = vmatpush1.bf16.msra.mxu1 %v14444_v35 }
 0x95a   :  { %8148 = vmatprep.subr.bf16.mxu0 %v14445_v51  ;;  %8189 = vmatprep.subr.bf16.mxu1 %v14446_v62 }
 0x95d   :  { %8149 = vmatpush1.bf16.msra.mxu0 %v14447_v16  ;;  %8190 = vmatpush1.bf16.msra.mxu1 %v13327_v53 }
 0x95e   :  { %8150 = vmatprep.subr.bf16.mxu0 %v13331_v33  ;;  %8191 = vmatprep.subr.bf16.mxu1 %v13333_v41  ;;  %v52_v41 = vld [vmem:[%s13552_s0 + $0xe0] sm:$0xff] }
 0x95f   :  { %v8207_v33 = vunpack.c.l.bf16 %v52_v41  ;;  %v8208_v53 = vunpack.c.h.bf16 %v52_v41 }
 0x961   :  { %8151 = vmatpush1.bf16.msra.mxu0 %v13349_v63  ;;  %8192 = vmatpush1.bf16.msra.mxu1 %v13351_v38 }
 0x962   :  { %8152 = vmatprep.subr.bf16.mxu0 %v13355_v50  ;;  %8193 = vmatprep.subr.bf16.mxu1 %v13357_v21  ;;  %v54_v50 = vld [vmem:[%s13552_s0 + $0xe8] sm:$0xff] }
 0x963   :  { %v8210_v8 = vunpack.c.h.bf16 %v54_v50  ;;  %v8209_v5 = vunpack.c.l.bf16 %v54_v50 }
 0x965   :  { %8153 = vmatpush1.bf16.msra.mxu0 %v13361_v27  ;;  %8194 = vmatpush1.bf16.msra.mxu1 %v13363_v22 }
 0x968   :  { %8155 = vmatmul.mubr.bf16.vlgmr.msra.gmra.mrb[60].mxu0 %v13447_v44  ;;  %8196 = vmatmul.mubr.bf16.vlgmr.msra.gmra.mrb[60].mxu1 %v13447_v44 }
 0x9fb   :  { %v8074_v63 = vpop.f32.mrb[56].mxu0  ;;  %v8115_v38 = vpop.f32.mrb[56].mxu1 }
 0x9fc   :  { %v8211_v55 = vadd.f32 %v8207_v33, %v8074_v63  ;;  %v8076_v21 = vpop.f32.mrb[57].mxu0  ;;  %v8117_v27 = vpop.f32.mrb[57].mxu1  ;;  %v8213_v47 = vadd.f32 %v8209_v5, %v8115_v38 }
 0x9fd   :  { %v8212_v22 = vadd.f32 %v8208_v53, %v8076_v21  ;;  %v8078_v11 = vpop.f32.mrb[58].mxu0  ;;  %v8119_v0 = vpop.f32.mrb[58].mxu1  ;;  %v8214_v18 = vadd.f32 %v8210_v8, %v8117_v27 }
 0x9fe   :  { %v9421_v12 = vmul.f32 -1.442695, %v8211_v55  ;;  %v8079_v44 = vpop.f32.mrb[59].mxu0  ;;  %v8120_v31 = vpop.f32.mrb[59].mxu1 }
 0x9ff   :  { %v9422_v7 = vmul.f32 -1.442695, %v8212_v22  ;;  %v9423_v49 = vmul.f32 -1.442695, %v8214_v18 }
 0xa00   :  { %9653 = vpow2.f32 %v9421_v12 }
 0xa01   :  { %9655 = vpow2.f32 %v9422_v7 }
 0xa02   :  { %9657 = vpow2.f32 %v9423_v49 }
 0xa03   :  { %9659 = vtanh.f32 %v8213_v47 }
 0xa0a   :  { %v9654_v23 = vpop.eup %9653 }
 0xa0b   :  { %v9656_v61 = vpop.eup %9655  ;;  %v8228_v17 = vadd.f32 1.0, %v9654_v23 }
 0xa0c   :  { %v8234_v34 = vadd.f32 1.0, %v9656_v61  ;;  %v9658_v15 = vpop.eup %9657 }
 0xa0d   :  { %9661 = vrcp.f32 %v8228_v17  ;;  %v9660_v40 = vpop.eup %9659  ;;  %v8241_v46 = vadd.f32 1.0, %v9658_v15 }
 0xa0e   :  { %9663 = vrcp.f32 %v8234_v34 }
 0xa0f   :  { %9665 = vrcp.f32 %v8241_v46 }
 0xa17   :  { %v9662_v25 = vpop.eup %9661 }
 0xa18   :  { %v9664_v39 = vpop.eup %9663  ;;  %v8246_v1 = vmul.f32 %v9662_v25, %v9660_v40 }
 0xa19   :  { %v8245_v43 = vmul.f32 %v9664_v39, %v13444_v56  ;;  %v9666_v13 = vpop.eup %9665 }
 0xa1b   :  { %v8247_v19 = vadd.f32 %v8246_v1, %v8245_v43 }
 0xa1d   :  { %9667 = vtanh.f32 %v8247_v19 }
 0xa27   :  { %v9668_v2 = vpop.eup %9667 }
 0xa28   :  { %v8249_v60 = vmul.f32 %v9668_v2, %v9666_v13 }
 0xa2a   :  { %v8279_v10 = vpack.c.bf16 %v8249_v60, %v8249_v60 }
 0xa2c   :  { %9427 = vst [vmem:[%s13555_s3 + $0x1c] sm:$0xf] %v8279_v10 }
 0xa3b   :  { %v8156_v52 = vpop.f32.mrb[60].mxu0  ;;  %v8197_v57 = vpop.f32.mrb[60].mxu1 }
 0xa3c   :  { %v8221_v56 = vadd.f32 %v8217_v36, %v8156_v52  ;;  %v8158_v26 = vpop.f32.mrb[61].mxu0  ;;  %v8199_v24 = vpop.f32.mrb[61].mxu1  ;;  %v8223_v54 = vadd.f32 %v8219_v45, %v8197_v57 }
 0xa3d   :  { %v8222_v29 = vadd.f32 %v8218_v48, %v8158_v26  ;;  %v8160_v20 = vpop.f32.mrb[62].mxu0  ;;  %v8201_v14 = vpop.f32.mrb[62].mxu1  ;;  %v8224_v58 = vadd.f32 %v8220_v4, %v8199_v24 }
 0xa3e   :  { %v9424_v30 = vmul.f32 -1.442695, %v8221_v56  ;;  %v8161_v37 = vpop.f32.mrb[63].mxu0  ;;  %v8202_v6 = vpop.f32.mrb[63].mxu1 }
 0xa3f   :  { %v9425_v28 = vmul.f32 -1.442695, %v8222_v29  ;;  %v9426_v3 = vmul.f32 -1.442695, %v8224_v58 }
 0xa40   :  { %9669 = vpow2.f32 %v9424_v30 }
 0xa41   :  { %9671 = vpow2.f32 %v9425_v28 }
 0xa42   :  { %9673 = vpow2.f32 %v9426_v3 }
 0xa43   :  { %9675 = vtanh.f32 %v8223_v54 }
 0xa4a   :  { %v9670_v59 = vpop.eup %9669 }
 0xa4b   :  { %v9672_v35 = vpop.eup %9671  ;;  %v8253_v51 = vadd.f32 1.0, %v9670_v59 }
 0xa4c   :  { %v8259_v62 = vadd.f32 1.0, %v9672_v35  ;;  %v9674_v16 = vpop.eup %9673 }
 0xa4d   :  { %9677 = vrcp.f32 %v8253_v51  ;;  %v9676_v41 = vpop.eup %9675  ;;  %v8266_v38 = vadd.f32 1.0, %v9674_v16 }
 0xa4e   :  { %9679 = vrcp.f32 %v8259_v62 }
 0xa4f   :  { %9681 = vrcp.f32 %v8266_v38 }
 0xa57   :  { %v9678_v33 = vpop.eup %9677 }
 0xa58   :  { %v9680_v53 = vpop.eup %9679  ;;  %v8271_v63 = vmul.f32 %v9678_v33, %v9676_v41 }
 0xa59   :  { %v8270_v55 = vmul.f32 %v9680_v53, %v13460_v32  ;;  %v9682_v21 = vpop.eup %9681 }
 0xa5b   :  { %v8272_v50 = vadd.f32 %v8271_v63, %v8270_v55 }
 0xa5d   :  { %9683 = vtanh.f32 %v8272_v50 }
 0xa67   :  { %v9684_v27 = vpop.eup %9683 }
 0xa68   :  { %v8274_v22 = vmul.f32 %v9684_v27, %v9682_v21 }
 0xa6a   :  { %v8282_v11 = vpack.c.bf16 %v8274_v22, %v8274_v22 }
 0xa6c   :  { %8283 = vst [vmem:[%s13556_s4] sm:$0xf] %v8282_v11 }

</bundles_post_ra>
